<compile_context>
chip_gen: v7x
topology: tpu7x:2x2x1
jax: 0.10.0
libtpu: 0.0.40
codegen_flags: <defaults>
</compile_context>

<pallas_src>
import numpy as np
import jax
import jax.numpy as jnp
from jax.experimental import pallas as pl
from jax.experimental.pallas import tpu as pltpu

_TN_MAX = 1024                       # row-tile cap (multiple of 16)
_C_PAD = 128                         # lane-dense output channel count
_VMEM_LIMIT = 32 * 1024 * 1024       # scoped VMEM allowance (usage stays < ~17 MiB)


def _round_up(n, m):
    return (n + m - 1) // m * m


# ----------------------------- Pallas kernels ------------------------------ #

def conv_bn_prelu_pool_kernel(p_ref, w_ref, shift_ref, alpha_ref, o_ref):
    """Fused Conv(one im2col matmul) + MaxPool + BN shift + PReLU.

    p_ref:  [1, KK*TN, K] bf16  tile-major patches (KK pool-window slots stacked)
    w_ref:  [K, 128]      bf16  conv weight with BN scale folded in
    shift/alpha: [1, 128] f32   folded BN shift (incl. conv bias), PReLU slope
    o_ref:  [TN, 128]     bf16  pooled, activated output rows (lane-dense)

    Max over the raw matmul outputs commutes with `+shift` always and with PReLU
    when alpha >= 0 (asserted in prepare_params).
    """
    tn = o_ref.shape[0]
    kk = p_ref.shape[1] // tn
    y = jnp.dot(p_ref[0], w_ref[...], preferred_element_type=jnp.float32)  # [KK*TN, 128]
    acc = y[:tn]
    for m in range(1, kk):                               # KK is small & static
        acc = jnp.maximum(acc, y[m * tn:(m + 1) * tn])   # pool max on raw conv outputs
    acc = acc + shift_ref[...]                           # conv bias + eval-mode BN
    acc = jnp.where(acc >= 0.0, acc, alpha_ref[...] * acc)   # per-channel PReLU
    o_ref[...] = acc.astype(o_ref.dtype)


def linear_heads_kernel(x_ref, w5_ref, b5_ref, a5_ref, w6_ref, b6_ref, o_ref):
    """Fused Linear(1152->256)+PReLU and the three heads merged into one [256,16]."""
    h = jnp.dot(x_ref[...], w5_ref[...], preferred_element_type=jnp.float32) + b5_ref[...]
    h = jnp.where(h >= 0.0, h, a5_ref[...] * h)
    y = jnp.dot(h.astype(jnp.bfloat16), w6_ref[...],
                preferred_element_type=jnp.float32) + b6_ref[...]
    col = jax.lax.broadcasted_iota(jnp.int32, y.shape, 1)
    o_ref[...] = jnp.where(col == 0, jax.nn.sigmoid(y), y)   # sigmoid on cls column only


# ------------------------------ XLA-side glue ------------------------------ #

def _conv_pool_slots(x, kh, kw, kp, sp, pad):
    """x: [B,H,W,Cin] -> list of kp*kp bf16 slot arrays [N, kh*kw*Cin], plus Po, Qo.

    Slot m=(u*kp+v) holds, for every pooled output position, the conv im2col patch
    of the conv-output pixel at pool-window offset (u, v).  Border positions from
    pool padding are clamped to a duplicate in-window pixel, which leaves the max
    unchanged (equivalent to PyTorch's implicit -inf padding).  kp=sp=1 gives a
    plain conv (no pooling)."""
    x = x.astype(jnp.bfloat16)
    B, H, W, Cin = x.shape
    Hc, Wc = H - kh + 1, W - kw + 1                 # conv output spatial size
    cols = [x[:, ki:ki + Hc, kj:kj + Wc, :] for ki in range(kh) for kj in range(kw)]
    convp = jnp.concatenate(cols, axis=-1)          # [B, Hc, Wc, K]
    Po = (Hc + 2 * pad - kp) // sp + 1
    Qo = (Wc + 2 * pad - kp) // sp + 1
    r0 = np.arange(Po) * sp - pad
    c0 = np.arange(Qo) * sp - pad
    slots = []
    for u in range(kp):
        ridx = np.clip(r0 + u, 0, Hc - 1)
        rows = jnp.take(convp, ridx, axis=1)        # [B, Po, Wc, K]
        for v in range(kp):
            cidx = np.clip(c0 + v, 0, Wc - 1)
            s = jnp.take(rows, cidx, axis=2)        # [B, Po, Qo, K]
            slots.append(s.reshape(B * Po * Qo, kh * kw * Cin))
    return slots, Po, Qo


def _conv_pool_call(slots, w, shift, alpha, c_real):
    KK = len(slots)
    N, K = slots[0].shape
    Cp = w.shape[1]
    # >= 2 grid steps whenever there is enough work, so v7x shards across both TCs.
    ntiles = max(2, pl.cdiv(N, _TN_MAX)) if N >= 32 else 1
    tn = _round_up(pl.cdiv(N, ntiles), 16)          # bf16 blocks need 16-row multiples
    n_pad = ntiles * tn
    # Tile-major, slot-major patch layout [ntiles, KK*tn, K] (same bytes as [KK,N,K]).
    slots = [jnp.pad(s, ((0, n_pad - N), (0, 0))).reshape(ntiles, tn, K) for s in slots]
    P = jnp.stack(slots, axis=1).reshape(ntiles, KK * tn, K)
    out = pl.pallas_call(
        conv_bn_prelu_pool_kernel,
        out_shape=jax.ShapeDtypeStruct((n_pad, Cp), jnp.bfloat16),
        grid=(ntiles,),
        in_specs=[
            pl.BlockSpec((1, KK * tn, K), lambda i: (i, 0, 0)),
            pl.BlockSpec((K, Cp), lambda i: (0, 0)),          # weights stay resident
            pl.BlockSpec((1, Cp), lambda i: (0, 0)),
            pl.BlockSpec((1, Cp), lambda i: (0, 0)),
        ],
        out_specs=pl.BlockSpec((tn, Cp), lambda i: (i, 0)),
        compiler_params=pltpu.CompilerParams(
            dimension_semantics=("parallel",),
            vmem_limit_bytes=_VMEM_LIMIT),
    )(P, w, shift, alpha)
    return out[:N, :c_real]                         # drop padded rows / channels


def _linear_heads_call(x, w5, b5, a5, w6, b6):
    B, D = x.shape
    ntiles = max(2, pl.cdiv(B, 256)) if B >= 32 else 1
    tb = _round_up(pl.cdiv(B, ntiles), 16)
    b_pad = ntiles * tb
    if b_pad != B:
        x = jnp.pad(x, ((0, b_pad - B), (0, 0)))
    out = pl.pallas_call(
        linear_heads_kernel,
        out_shape=jax.ShapeDtypeStruct((b_pad, 16), jnp.float32),
        grid=(ntiles,),
        in_specs=[
            pl.BlockSpec((tb, D), lambda i: (i, 0)),
            pl.BlockSpec((D, 256), lambda i: (0, 0)),
            pl.BlockSpec((1, 256), lambda i: (0, 0)),
            pl.BlockSpec((1, 256), lambda i: (0, 0)),
            pl.BlockSpec((256, 16), lambda i: (0, 0)),
            pl.BlockSpec((1, 16), lambda i: (0, 0)),
        ],
        out_specs=pl.BlockSpec((tb, 16), lambda i: (i, 0)),
        compiler_params=pltpu.CompilerParams(
            dimension_semantics=("parallel",),
            vmem_limit_bytes=_VMEM_LIMIT),
    )(x.astype(jnp.bfloat16), w5, b5, a5, w6, b6)
    return out[:B]


# --------------------------------- ONet ------------------------------------ #

def onet_forward(x_nchw, pp):
    x = jnp.transpose(x_nchw, (0, 2, 3, 1))                       # NCHW -> NHWC
    B = x.shape[0]

    # pre_layer: four fused conv+BN+PReLU(+pool) stages (bf16 intermediates)
    slots, Po, Qo = _conv_pool_slots(x, 3, 3, 3, 2, 1)            # conv1 + pool(3,2,p=1)
    x = _conv_pool_call(slots, pp['cw1'], pp['ch1'], pp['ca1'], 32).reshape(B, Po, Qo, 32)

    slots, Po, Qo = _conv_pool_slots(x, 3, 3, 3, 2, 0)            # conv2 + pool(3,2)
    x = _conv_pool_call(slots, pp['cw2'], pp['ch2'], pp['ca2'], 64).reshape(B, Po, Qo, 64)

    slots, Po, Qo = _conv_pool_slots(x, 3, 3, 2, 2, 0)            # conv3 + pool(2,2)
    x = _conv_pool_call(slots, pp['cw3'], pp['ch3'], pp['ca3'], 64).reshape(B, Po, Qo, 64)

    slots, Po, Qo = _conv_pool_slots(x, 2, 2, 1, 1, 0)            # conv4, no pool
    x = _conv_pool_call(slots, pp['cw4'], pp['ch4'], pp['ca4'], 128).reshape(B, Po * Qo * 128)

    # linear5 + PReLU + merged heads (NCHW flatten permutation folded into w5)
    y = _linear_heads_call(x, pp['w5'], pp['b5'], pp['a5'], pp['w6'], pp['b6'])
    return y[:, 0:1], y[:, 1:5], y[:, 5:15]                       # cls, offset, point


def prepare_params(p, eps=1e-5):
    """Fold BN into the conv weights / shift, pad output channels to 128 lanes,
    reorder weights for the kernels, cast MXU operands to bf16.  Runs once,
    outside the jitted forward."""
    pp = {}

    def conv(idx, w, b, g, be, m, v, a):
        cout, cin, kh, kw = w.shape
        # activation-after-pool-max is only valid for a monotone PReLU (alpha >= 0)
        assert float(jnp.min(a)) >= 0.0, \
            "PReLU slope must be >= 0 to apply activation after the pool max"
        wm = jnp.transpose(w, (2, 3, 1, 0)).reshape(kh * kw * cin, cout)
        scale = g / jnp.sqrt(v + eps)
        wm = wm * scale[None, :]                              # BN scale folded into weight
        shift = be + (b - m) * scale                          # conv bias + BN shift folded
        pad = _C_PAD - cout                                   # lane-dense 128-ch output
        wm = jnp.pad(wm, ((0, 0), (0, pad)))
        shift = jnp.pad(shift, (0, pad))
        a = jnp.pad(a, (0, pad))
        pp[f'cw{idx}'] = wm.astype(jnp.bfloat16)
        pp[f'ch{idx}'] = shift[None, :].astype(jnp.float32)
        pp[f'ca{idx}'] = a[None, :].astype(jnp.float32)

    conv(1, p['w1'], p['b1'], p['g1'], p['be1'], p['m1'], p['v1'], p['a1'])
    conv(2, p['w2'], p['b2'], p['g2'], p['be2'], p['m2'], p['v2'], p['a2'])
    conv(3, p['w3'], p['b3'], p['g3'], p['be3'], p['m3'], p['v3'], p['a3'])
    conv(4, p['w4'], p['b4'], p['g4'], p['be4'], p['m4'], p['v4'], p['a4'])

    # linear5: PyTorch flattens NCHW as (c, h, w); our activations flatten as (h, w, c).
    old_idx = np.array([c * 9 + h * 3 + w
                        for h in range(3) for w in range(3) for c in range(128)])
    pp['w5'] = jnp.asarray(p['w5'])[:, old_idx].T.astype(jnp.bfloat16)    # [1152, 256]
    pp['b5'] = p['b5'][None, :].astype(jnp.float32)
    pp['a5'] = p['a5'][None, :].astype(jnp.float32)

    # merged heads: one lane-dense [256, 16] bf16 matmul (column 15 is zero padding)
    pp['w6'] = jnp.concatenate(
        [p['w61'].T, p['w62'].T, p['w63'].T, jnp.zeros((256, 1), jnp.float32)],
        axis=1).astype(jnp.bfloat16)
    pp['b6'] = jnp.concatenate(
        [p['b61'], p['b62'], p['b63'], jnp.zeros((1,), jnp.float32)])[None, :].astype(jnp.float32)
    return pp


# ----------------------- pure-JAX reference (f32) --------------------------- #

def onet_reference(x_nchw, p, eps=1e-5):
    x = x_nchw.astype(jnp.float32)

    def conv(x, w, b):
        y = jax.lax.conv_general_dilated(
            x, w, (1, 1), 'VALID', dimension_numbers=('NCHW', 'OIHW', 'NCHW'))
        return y + b[None, :, None, None]

    def bn_prelu(x, g, be, m, v, a):
        s = g / jnp.sqrt(v + eps)
        x = x * s[None, :, None, None] + (be - m * s)[None, :, None, None]
        return jnp.where(x >= 0, x, a[None, :, None, None] * x)

    def pool(x, k, s, pad):
        return jax.lax.reduce_window(
            x, -jnp.inf, jax.lax.max, (1, 1, k, k), (1, 1, s, s),
            [(0, 0), (0, 0), (pad, pad), (pad, pad)])

    x = pool(bn_prelu(conv(x, p['w1'], p['b1']), p['g1'], p['be1'], p['m1'], p['v1'], p['a1']), 3, 2, 1)
    x = pool(bn_prelu(conv(x, p['w2'], p['b2']), p['g2'], p['be2'], p['m2'], p['v2'], p['a2']), 3, 2, 0)
    x = pool(bn_prelu(conv(x, p['w3'], p['b3']), p['g3'], p['be3'], p['m3'], p['v3'], p['a3']), 2, 2, 0)
    x = bn_prelu(conv(x, p['w4'], p['b4']), p['g4'], p['be4'], p['m4'], p['v4'], p['a4'])
    x = x.reshape(x.shape[0], -1)                                 # NCHW flatten (C,H,W)
    h = x @ p['w5'].T + p['b5']
    h = jnp.where(h >= 0, h, p['a5'] * h)
    cls = jax.nn.sigmoid(h @ p['w61'].T + p['b61'])
    return cls, h @ p['w62'].T + p['b62'], h @ p['w63'].T + p['b63']


# ------------------------------ test harness -------------------------------- #

def init_params(key):
    keys = jax.random.split(key, 40)
    it = iter(keys)

    def nrm(shape, scale=0.1):
        return (jax.random.normal(next(it), shape) * scale).astype(jnp.float32)

    def bn(c):
        gamma = (1.0 + nrm((c,), 0.05)).astype(jnp.float32)
        beta = nrm((c,), 0.05)
        mean = nrm((c,), 0.05)
        var = (1.0 + jnp.abs(nrm((c,), 0.05))).astype(jnp.float32)
        return gamma, beta, mean, var

    p = {}
    p['w1'], p['b1'] = nrm((32, 3, 3, 3)), nrm((32,))
    p['g1'], p['be1'], p['m1'], p['v1'] = bn(32)
    p['a1'] = jnp.full((32,), 0.25, jnp.float32)
    p['w2'], p['b2'] = nrm((64, 32, 3, 3), 0.05), nrm((64,))
    p['g2'], p['be2'], p['m2'], p['v2'] = bn(64)
    p['a2'] = jnp.full((64,), 0.25, jnp.float32)
    p['w3'], p['b3'] = nrm((64, 64, 3, 3), 0.05), nrm((64,))
    p['g3'], p['be3'], p['m3'], p['v3'] = bn(64)
    p['a3'] = jnp.full((64,), 0.25, jnp.float32)
    p['w4'], p['b4'] = nrm((128, 64, 2, 2), 0.05), nrm((128,))
    p['g4'], p['be4'], p['m4'], p['v4'] = bn(128)
    p['a4'] = jnp.full((128,), 0.25, jnp.float32)
    p['w5'], p['b5'] = nrm((256, 1152), 0.03), nrm((256,))
    p['a5'] = jnp.full((256,), 0.25, jnp.float32)
    p['w61'], p['b61'] = nrm((1, 256), 0.05), nrm((1,))
    p['w62'], p['b62'] = nrm((4, 256), 0.05), nrm((4,))
    p['w63'], p['b63'] = nrm((10, 256), 0.05), nrm((10,))
    return p


if __name__ == "__main__":
    key = jax.random.PRNGKey(0)
    pkey, xkey = jax.random.split(key)
    params = init_params(pkey)
    prepped = prepare_params(params)                 # once, outside the jitted forward
    # ONet's flatten to 128*3*3 implies a 48x48 input.
    x = jax.random.normal(xkey, (2, 3, 48, 48), dtype=jnp.float32)

    cls, offset, point = jax.jit(onet_forward)(x, prepped)
    jax.block_until_ready((cls, offset, point))

    assert cls.shape == (2, 1) and offset.shape == (2, 4) and point.shape == (2, 10)
    assert bool(jnp.all(jnp.isfinite(cls))) and bool(jnp.all((cls > 0) & (cls < 1)))
    assert bool(jnp.all(jnp.isfinite(offset))) and bool(jnp.all(jnp.isfinite(point)))

    # cross-check against the pure-JAX f32 reference (bf16 MXU operands -> loose tol)
    rcls, roff, rpt = jax.jit(onet_reference)(x, params)
    jax.block_until_ready((rcls, roff, rpt))
    assert float(jnp.max(jnp.abs(cls - rcls))) < 0.1
    assert float(jnp.max(jnp.abs(offset - roff))) < 0.3
    assert float(jnp.max(jnp.abs(point - rpt))) < 0.3

    print("KERNEL_OK")
</pallas_src>

<mosaic_0001>
module attributes {stable_mosaic.version = 11 : i64} {
  func.func @conv_bn_prelu_pool_kernel(%arg0: i32, %arg1: memref<1x4896x27xbf16, #tpu.memory_space<vmem>>, %arg2: memref<27x128xbf16, #tpu.memory_space<vmem>>, %arg3: memref<1x128xf32, #tpu.memory_space<vmem>>, %arg4: memref<1x128xf32, #tpu.memory_space<vmem>>, %arg5: memref<544x128xbf16, #tpu.memory_space<vmem>>) attributes {dimension_semantics = [#tpu.dimension_semantics<parallel>], iteration_bounds = array<i64: 2>, scalar_prefetch = 0 : i64, scratch_operands = 0 : i64, tpu.core_type = #tpu.core_type<tc>, window_params = [{transform_indices = @transform_0, window_bounds = array<i64: 1, 4896, 27>}, {pipeline_mode = #tpu.pipeline_mode<synchronous>, transform_indices = @transform_1, window_bounds = array<i64: 27, 128>}, {pipeline_mode = #tpu.pipeline_mode<synchronous>, transform_indices = @transform_2, window_bounds = array<i64: 1, 128>}, {pipeline_mode = #tpu.pipeline_mode<synchronous>, transform_indices = @transform_3, window_bounds = array<i64: 1, 128>}, {transform_indices = @transform_4, window_bounds = array<i64: 544, 128>}]} {
    %c0 = arith.constant 0 : index
    %c0_0 = arith.constant 0 : index
    %c0_1 = arith.constant 0 : index
    %0 = vector.load %arg1[%c0, %c0_0, %c0_1] : memref<1x4896x27xbf16, #tpu.memory_space<vmem>>, vector<1x4896x27xbf16>
    %1 = vector.shape_cast %0 : vector<1x4896x27xbf16> to vector<4896x27xbf16>
    %c0_2 = arith.constant 0 : index
    %c0_3 = arith.constant 0 : index
    %2 = vector.load %arg2[%c0_2, %c0_3] : memref<27x128xbf16, #tpu.memory_space<vmem>>, vector<27x128xbf16>
    %cst = arith.constant dense<0.000000e+00> : vector<4896x128xf32>
    %3 = tpu.matmul %1, %2, %cst {dimension_numbers = #tpu.dot_dimension_numbers<[1], [0], [0], [1], [0, 0, 1, 1], [], []>} : vector<4896x27xbf16>, vector<27x128xbf16>, vector<4896x128xf32> -> vector<4896x128xf32>
    %4 = vector.extract_strided_slice %3 {offsets = [0, 0], sizes = [544, 128], strides = [1, 1]} : vector<4896x128xf32> to vector<544x128xf32>
    %5 = vector.extract_strided_slice %3 {offsets = [544, 0], sizes = [544, 128], strides = [1, 1]} : vector<4896x128xf32> to vector<544x128xf32>
    %6 = arith.maximumf %4, %5 : vector<544x128xf32>
    %7 = vector.extract_strided_slice %3 {offsets = [1088, 0], sizes = [544, 128], strides = [1, 1]} : vector<4896x128xf32> to vector<544x128xf32>
    %8 = arith.maximumf %6, %7 : vector<544x128xf32>
    %9 = vector.extract_strided_slice %3 {offsets = [1632, 0], sizes = [544, 128], strides = [1, 1]} : vector<4896x128xf32> to vector<544x128xf32>
    %10 = arith.maximumf %8, %9 : vector<544x128xf32>
    %11 = vector.extract_strided_slice %3 {offsets = [2176, 0], sizes = [544, 128], strides = [1, 1]} : vector<4896x128xf32> to vector<544x128xf32>
    %12 = arith.maximumf %10, %11 : vector<544x128xf32>
    %13 = vector.extract_strided_slice %3 {offsets = [2720, 0], sizes = [544, 128], strides = [1, 1]} : vector<4896x128xf32> to vector<544x128xf32>
    %14 = arith.maximumf %12, %13 : vector<544x128xf32>
    %15 = vector.extract_strided_slice %3 {offsets = [3264, 0], sizes = [544, 128], strides = [1, 1]} : vector<4896x128xf32> to vector<544x128xf32>
    %16 = arith.maximumf %14, %15 : vector<544x128xf32>
    %17 = vector.extract_strided_slice %3 {offsets = [3808, 0], sizes = [544, 128], strides = [1, 1]} : vector<4896x128xf32> to vector<544x128xf32>
    %18 = arith.maximumf %16, %17 : vector<544x128xf32>
    %19 = vector.extract_strided_slice %3 {offsets = [4352, 0], sizes = [544, 128], strides = [1, 1]} : vector<4896x128xf32> to vector<544x128xf32>
    %20 = arith.maximumf %18, %19 : vector<544x128xf32>
    %c0_4 = arith.constant 0 : index
    %c0_5 = arith.constant 0 : index
    %21 = vector.load %arg3[%c0_4, %c0_5] : memref<1x128xf32, #tpu.memory_space<vmem>>, vector<1x128xf32>
    %22 = vector.broadcast %21 : vector<1x128xf32> to vector<544x128xf32>
    %23 = arith.addf %20, %22 : vector<544x128xf32>
    %cst_6 = arith.constant 0.000000e+00 : f32
    %24 = vector.broadcast %cst_6 : f32 to vector<544x128xf32>
    %25 = arith.cmpf oge, %23, %24 : vector<544x128xf32>
    %c0_7 = arith.constant 0 : index
    %c0_8 = arith.constant 0 : index
    %26 = vector.load %arg4[%c0_7, %c0_8] : memref<1x128xf32, #tpu.memory_space<vmem>>, vector<1x128xf32>
    %27 = vector.broadcast %26 : vector<1x128xf32> to vector<544x128xf32>
    %28 = arith.mulf %27, %23 : vector<544x128xf32>
    %29 = arith.select %25, %23, %28 : vector<544x128xi1>, vector<544x128xf32>
    %30 = arith.truncf %29 : vector<544x128xf32> to vector<544x128xbf16>
    %c0_9 = arith.constant 0 : index
    %c0_10 = arith.constant 0 : index
    %31 = vector.load %arg5[%c0_9, %c0_10] : memref<544x128xbf16, #tpu.memory_space<vmem>>, vector<544x128xbf16>
    tpu.vector_store %arg5[%c0_9, %c0_10], %30 {strides = array<i32>} : memref<544x128xbf16, #tpu.memory_space<vmem>>, vector<544x128xbf16>,
    return
  }
  func.func @transform_0(%arg0: i32) -> (i32, i32, i32) {
    %c0_i32 = arith.constant 0 : i32
    %c0_i32_0 = arith.constant 0 : i32
    %c0_i32_1 = arith.constant 0 : i32
    return %arg0, %c0_i32, %c0_i32_0 : i32, i32, i32
  }
  func.func @transform_1(%arg0: i32) -> (i32, i32) {
    %c0_i32 = arith.constant 0 : i32
    %c0_i32_0 = arith.constant 0 : i32
    %c0_i32_1 = arith.constant 0 : i32
    return %c0_i32, %c0_i32_0 : i32, i32
  }
  func.func @transform_2(%arg0: i32) -> (i32, i32) {
    %c0_i32 = arith.constant 0 : i32
    %c0_i32_0 = arith.constant 0 : i32
    %c0_i32_1 = arith.constant 0 : i32
    return %c0_i32, %c0_i32_0 : i32, i32
  }
  func.func @transform_3(%arg0: i32) -> (i32, i32) {
    %c0_i32 = arith.constant 0 : i32
    %c0_i32_0 = arith.constant 0 : i32
    %c0_i32_1 = arith.constant 0 : i32
    return %c0_i32, %c0_i32_0 : i32, i32
  }
  func.func @transform_4(%arg0: i32) -> (i32, i32) {
    %c0_i32 = arith.constant 0 : i32
    %c0_i32_0 = arith.constant 0 : i32
    return %arg0, %c0_i32 : i32, i32
  }
}

module attributes {stable_mosaic.version = 11 : i64} {
  func.func @conv_bn_prelu_pool_kernel(%arg0: i32, %arg1: memref<1x1008x288xbf16, #tpu.memory_space<vmem>>, %arg2: memref<288x128xbf16, #tpu.memory_space<vmem>>, %arg3: memref<1x128xf32, #tpu.memory_space<vmem>>, %arg4: memref<1x128xf32, #tpu.memory_space<vmem>>, %arg5: memref<112x128xbf16, #tpu.memory_space<vmem>>) attributes {dimension_semantics = [#tpu.dimension_semantics<parallel>], iteration_bounds = array<i64: 2>, scalar_prefetch = 0 : i64, scratch_operands = 0 : i64, tpu.core_type = #tpu.core_type<tc>, window_params = [{transform_indices = @transform_0, window_bounds = array<i64: 1, 1008, 288>}, {pipeline_mode = #tpu.pipeline_mode<synchronous>, transform_indices = @transform_1, window_bounds = array<i64: 288, 128>}, {pipeline_mode = #tpu.pipeline_mode<synchronous>, transform_indices = @transform_2, window_bounds = array<i64: 1, 128>}, {pipeline_mode = #tpu.pipeline_mode<synchronous>, transform_indices = @transform_3, window_bounds = array<i64: 1, 128>}, {transform_indices = @transform_4, window_bounds = array<i64: 112, 128>}]} {
    %c0 = arith.constant 0 : index
    %c0_0 = arith.constant 0 : index
    %c0_1 = arith.constant 0 : index
    %0 = vector.load %arg1[%c0, %c0_0, %c0_1] : memref<1x1008x288xbf16, #tpu.memory_space<vmem>>, vector<1x1008x288xbf16>
    %1 = vector.shape_cast %0 : vector<1x1008x288xbf16> to vector<1008x288xbf16>
    %c0_2 = arith.constant 0 : index
    %c0_3 = arith.constant 0 : index
    %2 = vector.load %arg2[%c0_2, %c0_3] : memref<288x128xbf16, #tpu.memory_space<vmem>>, vector<288x128xbf16>
    %cst = arith.constant dense<0.000000e+00> : vector<1008x128xf32>
    %3 = tpu.matmul %1, %2, %cst {dimension_numbers = #tpu.dot_dimension_numbers<[1], [0], [0], [1], [0, 0, 1, 1], [], []>} : vector<1008x288xbf16>, vector<288x128xbf16>, vector<1008x128xf32> -> vector<1008x128xf32>
    %4 = vector.extract_strided_slice %3 {offsets = [0, 0], sizes = [112, 128], strides = [1, 1]} : vector<1008x128xf32> to vector<112x128xf32>
    %5 = vector.extract_strided_slice %3 {offsets = [112, 0], sizes = [112, 128], strides = [1, 1]} : vector<1008x128xf32> to vector<112x128xf32>
    %6 = arith.maximumf %4, %5 : vector<112x128xf32>
    %7 = vector.extract_strided_slice %3 {offsets = [224, 0], sizes = [112, 128], strides = [1, 1]} : vector<1008x128xf32> to vector<112x128xf32>
    %8 = arith.maximumf %6, %7 : vector<112x128xf32>
    %9 = vector.extract_strided_slice %3 {offsets = [336, 0], sizes = [112, 128], strides = [1, 1]} : vector<1008x128xf32> to vector<112x128xf32>
    %10 = arith.maximumf %8, %9 : vector<112x128xf32>
    %11 = vector.extract_strided_slice %3 {offsets = [448, 0], sizes = [112, 128], strides = [1, 1]} : vector<1008x128xf32> to vector<112x128xf32>
    %12 = arith.maximumf %10, %11 : vector<112x128xf32>
    %13 = vector.extract_strided_slice %3 {offsets = [560, 0], sizes = [112, 128], strides = [1, 1]} : vector<1008x128xf32> to vector<112x128xf32>
    %14 = arith.maximumf %12, %13 : vector<112x128xf32>
    %15 = vector.extract_strided_slice %3 {offsets = [672, 0], sizes = [112, 128], strides = [1, 1]} : vector<1008x128xf32> to vector<112x128xf32>
    %16 = arith.maximumf %14, %15 : vector<112x128xf32>
    %17 = vector.extract_strided_slice %3 {offsets = [784, 0], sizes = [112, 128], strides = [1, 1]} : vector<1008x128xf32> to vector<112x128xf32>
    %18 = arith.maximumf %16, %17 : vector<112x128xf32>
    %19 = vector.extract_strided_slice %3 {offsets = [896, 0], sizes = [112, 128], strides = [1, 1]} : vector<1008x128xf32> to vector<112x128xf32>
    %20 = arith.maximumf %18, %19 : vector<112x128xf32>
    %c0_4 = arith.constant 0 : index
    %c0_5 = arith.constant 0 : index
    %21 = vector.load %arg3[%c0_4, %c0_5] : memref<1x128xf32, #tpu.memory_space<vmem>>, vector<1x128xf32>
    %22 = vector.broadcast %21 : vector<1x128xf32> to vector<112x128xf32>
    %23 = arith.addf %20, %22 : vector<112x128xf32>
    %cst_6 = arith.constant 0.000000e+00 : f32
    %24 = vector.broadcast %cst_6 : f32 to vector<112x128xf32>
    %25 = arith.cmpf oge, %23, %24 : vector<112x128xf32>
    %c0_7 = arith.constant 0 : index
    %c0_8 = arith.constant 0 : index
    %26 = vector.load %arg4[%c0_7, %c0_8] : memref<1x128xf32, #tpu.memory_space<vmem>>, vector<1x128xf32>
    %27 = vector.broadcast %26 : vector<1x128xf32> to vector<112x128xf32>
    %28 = arith.mulf %27, %23 : vector<112x128xf32>
    %29 = arith.select %25, %23, %28 : vector<112x128xi1>, vector<112x128xf32>
    %30 = arith.truncf %29 : vector<112x128xf32> to vector<112x128xbf16>
    %c0_9 = arith.constant 0 : index
    %c0_10 = arith.constant 0 : index
    %31 = vector.load %arg5[%c0_9, %c0_10] : memref<112x128xbf16, #tpu.memory_space<vmem>>, vector<112x128xbf16>
    tpu.vector_store %arg5[%c0_9, %c0_10], %30 {strides = array<i32>} : memref<112x128xbf16, #tpu.memory_space<vmem>>, vector<112x128xbf16>,
    return
  }
  func.func @transform_0(%arg0: i32) -> (i32, i32, i32) {
    %c0_i32 = arith.constant 0 : i32
    %c0_i32_0 = arith.constant 0 : i32
    %c0_i32_1 = arith.constant 0 : i32
    return %arg0, %c0_i32, %c0_i32_0 : i32, i32, i32
  }
  func.func @transform_1(%arg0: i32) -> (i32, i32) {
    %c0_i32 = arith.constant 0 : i32
    %c0_i32_0 = arith.constant 0 : i32
    %c0_i32_1 = arith.constant 0 : i32
    return %c0_i32, %c0_i32_0 : i32, i32
  }
  func.func @transform_2(%arg0: i32) -> (i32, i32) {
    %c0_i32 = arith.constant 0 : i32
    %c0_i32_0 = arith.constant 0 : i32
    %c0_i32_1 = arith.constant 0 : i32
    return %c0_i32, %c0_i32_0 : i32, i32
  }
  func.func @transform_3(%arg0: i32) -> (i32, i32) {
    %c0_i32 = arith.constant 0 : i32
    %c0_i32_0 = arith.constant 0 : i32
    %c0_i32_1 = arith.constant 0 : i32
    return %c0_i32, %c0_i32_0 : i32, i32
  }
  func.func @transform_4(%arg0: i32) -> (i32, i32) {
    %c0_i32 = arith.constant 0 : i32
    %c0_i32_0 = arith.constant 0 : i32
    return %arg0, %c0_i32 : i32, i32
  }
}

module attributes {stable_mosaic.version = 11 : i64} {
  func.func @conv_bn_prelu_pool_kernel(%arg0: i32, %arg1: memref<1x64x576xbf16, #tpu.memory_space<vmem>>, %arg2: memref<576x128xbf16, #tpu.memory_space<vmem>>, %arg3: memref<1x128xf32, #tpu.memory_space<vmem>>, %arg4: memref<1x128xf32, #tpu.memory_space<vmem>>, %arg5: memref<16x128xbf16, #tpu.memory_space<vmem>>) attributes {dimension_semantics = [#tpu.dimension_semantics<parallel>], iteration_bounds = array<i64: 2>, scalar_prefetch = 0 : i64, scratch_operands = 0 : i64, tpu.core_type = #tpu.core_type<tc>, window_params = [{transform_indices = @transform_0, window_bounds = array<i64: 1, 64, 576>}, {pipeline_mode = #tpu.pipeline_mode<synchronous>, transform_indices = @transform_1, window_bounds = array<i64: 576, 128>}, {pipeline_mode = #tpu.pipeline_mode<synchronous>, transform_indices = @transform_2, window_bounds = array<i64: 1, 128>}, {pipeline_mode = #tpu.pipeline_mode<synchronous>, transform_indices = @transform_3, window_bounds = array<i64: 1, 128>}, {transform_indices = @transform_4, window_bounds = array<i64: 16, 128>}]} {
    %c0 = arith.constant 0 : index
    %c0_0 = arith.constant 0 : index
    %c0_1 = arith.constant 0 : index
    %0 = vector.load %arg1[%c0, %c0_0, %c0_1] : memref<1x64x576xbf16, #tpu.memory_space<vmem>>, vector<1x64x576xbf16>
    %1 = vector.shape_cast %0 : vector<1x64x576xbf16> to vector<64x576xbf16>
    %c0_2 = arith.constant 0 : index
    %c0_3 = arith.constant 0 : index
    %2 = vector.load %arg2[%c0_2, %c0_3] : memref<576x128xbf16, #tpu.memory_space<vmem>>, vector<576x128xbf16>
    %cst = arith.constant dense<0.000000e+00> : vector<64x128xf32>
    %3 = tpu.matmul %1, %2, %cst {dimension_numbers = #tpu.dot_dimension_numbers<[1], [0], [0], [1], [0, 0, 1, 1], [], []>} : vector<64x576xbf16>, vector<576x128xbf16>, vector<64x128xf32> -> vector<64x128xf32>
    %4 = vector.extract_strided_slice %3 {offsets = [0, 0], sizes = [16, 128], strides = [1, 1]} : vector<64x128xf32> to vector<16x128xf32>
    %5 = vector.extract_strided_slice %3 {offsets = [16, 0], sizes = [16, 128], strides = [1, 1]} : vector<64x128xf32> to vector<16x128xf32>
    %6 = arith.maximumf %4, %5 : vector<16x128xf32>
    %7 = vector.extract_strided_slice %3 {offsets = [32, 0], sizes = [16, 128], strides = [1, 1]} : vector<64x128xf32> to vector<16x128xf32>
    %8 = arith.maximumf %6, %7 : vector<16x128xf32>
    %9 = vector.extract_strided_slice %3 {offsets = [48, 0], sizes = [16, 128], strides = [1, 1]} : vector<64x128xf32> to vector<16x128xf32>
    %10 = arith.maximumf %8, %9 : vector<16x128xf32>
    %c0_4 = arith.constant 0 : index
    %c0_5 = arith.constant 0 : index
    %11 = vector.load %arg3[%c0_4, %c0_5] : memref<1x128xf32, #tpu.memory_space<vmem>>, vector<1x128xf32>
    %12 = vector.broadcast %11 : vector<1x128xf32> to vector<16x128xf32>
    %13 = arith.addf %10, %12 : vector<16x128xf32>
    %cst_6 = arith.constant 0.000000e+00 : f32
    %14 = vector.broadcast %cst_6 : f32 to vector<16x128xf32>
    %15 = arith.cmpf oge, %13, %14 : vector<16x128xf32>
    %c0_7 = arith.constant 0 : index
    %c0_8 = arith.constant 0 : index
    %16 = vector.load %arg4[%c0_7, %c0_8] : memref<1x128xf32, #tpu.memory_space<vmem>>, vector<1x128xf32>
    %17 = vector.broadcast %16 : vector<1x128xf32> to vector<16x128xf32>
    %18 = arith.mulf %17, %13 : vector<16x128xf32>
    %19 = arith.select %15, %13, %18 : vector<16x128xi1>, vector<16x128xf32>
    %20 = arith.truncf %19 : vector<16x128xf32> to vector<16x128xbf16>
    %c0_9 = arith.constant 0 : index
    %c0_10 = arith.constant 0 : index
    %21 = vector.load %arg5[%c0_9, %c0_10] : memref<16x128xbf16, #tpu.memory_space<vmem>>, vector<16x128xbf16>
    tpu.vector_store %arg5[%c0_9, %c0_10], %20 {strides = array<i32>} : memref<16x128xbf16, #tpu.memory_space<vmem>>, vector<16x128xbf16>,
    return
  }
  func.func @transform_0(%arg0: i32) -> (i32, i32, i32) {
    %c0_i32 = arith.constant 0 : i32
    %c0_i32_0 = arith.constant 0 : i32
    %c0_i32_1 = arith.constant 0 : i32
    return %arg0, %c0_i32, %c0_i32_0 : i32, i32, i32
  }
  func.func @transform_1(%arg0: i32) -> (i32, i32) {
    %c0_i32 = arith.constant 0 : i32
    %c0_i32_0 = arith.constant 0 : i32
    %c0_i32_1 = arith.constant 0 : i32
    return %c0_i32, %c0_i32_0 : i32, i32
  }
  func.func @transform_2(%arg0: i32) -> (i32, i32) {
    %c0_i32 = arith.constant 0 : i32
    %c0_i32_0 = arith.constant 0 : i32
    %c0_i32_1 = arith.constant 0 : i32
    return %c0_i32, %c0_i32_0 : i32, i32
  }
  func.func @transform_3(%arg0: i32) -> (i32, i32) {
    %c0_i32 = arith.constant 0 : i32
    %c0_i32_0 = arith.constant 0 : i32
    %c0_i32_1 = arith.constant 0 : i32
    return %c0_i32, %c0_i32_0 : i32, i32
  }
  func.func @transform_4(%arg0: i32) -> (i32, i32) {
    %c0_i32 = arith.constant 0 : i32
    %c0_i32_0 = arith.constant 0 : i32
    return %arg0, %c0_i32 : i32, i32
  }
}

module attributes {stable_mosaic.version = 11 : i64} {
  func.func @conv_bn_prelu_pool_kernel(%arg0: i32, %arg1: memref<1x32x256xbf16, #tpu.memory_space<vmem>>, %arg2: memref<256x128xbf16, #tpu.memory_space<vmem>>, %arg3: memref<1x128xf32, #tpu.memory_space<vmem>>, %arg4: memref<1x128xf32, #tpu.memory_space<vmem>>, %arg5: memref<32x128xbf16, #tpu.memory_space<vmem>>) attributes {dimension_semantics = [#tpu.dimension_semantics<parallel>], iteration_bounds = array<i64: 1>, scalar_prefetch = 0 : i64, scratch_operands = 0 : i64, tpu.core_type = #tpu.core_type<tc>, window_params = [{transform_indices = @transform_0, window_bounds = array<i64: 1, 32, 256>}, {pipeline_mode = #tpu.pipeline_mode<synchronous>, transform_indices = @transform_1, window_bounds = array<i64: 256, 128>}, {pipeline_mode = #tpu.pipeline_mode<synchronous>, transform_indices = @transform_2, window_bounds = array<i64: 1, 128>}, {pipeline_mode = #tpu.pipeline_mode<synchronous>, transform_indices = @transform_3, window_bounds = array<i64: 1, 128>}, {transform_indices = @transform_4, window_bounds = array<i64: 32, 128>}]} {
    %c0 = arith.constant 0 : index
    %c0_0 = arith.constant 0 : index
    %c0_1 = arith.constant 0 : index
    %0 = vector.load %arg1[%c0, %c0_0, %c0_1] : memref<1x32x256xbf16, #tpu.memory_space<vmem>>, vector<1x32x256xbf16>
    %1 = vector.shape_cast %0 : vector<1x32x256xbf16> to vector<32x256xbf16>
    %c0_2 = arith.constant 0 : index
    %c0_3 = arith.constant 0 : index
    %2 = vector.load %arg2[%c0_2, %c0_3] : memref<256x128xbf16, #tpu.memory_space<vmem>>, vector<256x128xbf16>
    %cst = arith.constant dense<0.000000e+00> : vector<32x128xf32>
    %3 = tpu.matmul %1, %2, %cst {dimension_numbers = #tpu.dot_dimension_numbers<[1], [0], [0], [1], [0, 0, 1, 1], [], []>} : vector<32x256xbf16>, vector<256x128xbf16>, vector<32x128xf32> -> vector<32x128xf32>
    %c0_4 = arith.constant 0 : index
    %c0_5 = arith.constant 0 : index
    %4 = vector.load %arg3[%c0_4, %c0_5] : memref<1x128xf32, #tpu.memory_space<vmem>>, vector<1x128xf32>
    %5 = vector.broadcast %4 : vector<1x128xf32> to vector<32x128xf32>
    %6 = arith.addf %3, %5 : vector<32x128xf32>
    %cst_6 = arith.constant 0.000000e+00 : f32
    %7 = vector.broadcast %cst_6 : f32 to vector<32x128xf32>
    %8 = arith.cmpf oge, %6, %7 : vector<32x128xf32>
    %c0_7 = arith.constant 0 : index
    %c0_8 = arith.constant 0 : index
    %9 = vector.load %arg4[%c0_7, %c0_8] : memref<1x128xf32, #tpu.memory_space<vmem>>, vector<1x128xf32>
    %10 = vector.broadcast %9 : vector<1x128xf32> to vector<32x128xf32>
    %11 = arith.mulf %10, %6 : vector<32x128xf32>
    %12 = arith.select %8, %6, %11 : vector<32x128xi1>, vector<32x128xf32>
    %13 = arith.truncf %12 : vector<32x128xf32> to vector<32x128xbf16>
    %c0_9 = arith.constant 0 : index
    %c0_10 = arith.constant 0 : index
    %14 = vector.load %arg5[%c0_9, %c0_10] : memref<32x128xbf16, #tpu.memory_space<vmem>>, vector<32x128xbf16>
    tpu.vector_store %arg5[%c0_9, %c0_10], %13 {strides = array<i32>} : memref<32x128xbf16, #tpu.memory_space<vmem>>, vector<32x128xbf16>,
    return
  }
  func.func @transform_0(%arg0: i32) -> (i32, i32, i32) {
    %c0_i32 = arith.constant 0 : i32
    %c0_i32_0 = arith.constant 0 : i32
    %c0_i32_1 = arith.constant 0 : i32
    return %arg0, %c0_i32, %c0_i32_0 : i32, i32, i32
  }
  func.func @transform_1(%arg0: i32) -> (i32, i32) {
    %c0_i32 = arith.constant 0 : i32
    %c0_i32_0 = arith.constant 0 : i32
    %c0_i32_1 = arith.constant 0 : i32
    return %c0_i32, %c0_i32_0 : i32, i32
  }
  func.func @transform_2(%arg0: i32) -> (i32, i32) {
    %c0_i32 = arith.constant 0 : i32
    %c0_i32_0 = arith.constant 0 : i32
    %c0_i32_1 = arith.constant 0 : i32
    return %c0_i32, %c0_i32_0 : i32, i32
  }
  func.func @transform_3(%arg0: i32) -> (i32, i32) {
    %c0_i32 = arith.constant 0 : i32
    %c0_i32_0 = arith.constant 0 : i32
    %c0_i32_1 = arith.constant 0 : i32
    return %c0_i32, %c0_i32_0 : i32, i32
  }
  func.func @transform_4(%arg0: i32) -> (i32, i32) {
    %c0_i32 = arith.constant 0 : i32
    %c0_i32_0 = arith.constant 0 : i32
    return %arg0, %c0_i32 : i32, i32
  }
}

module attributes {stable_mosaic.version = 11 : i64} {
  func.func @linear_heads_kernel(%arg0: i32, %arg1: memref<16x1152xbf16, #tpu.memory_space<vmem>>, %arg2: memref<1152x256xbf16, #tpu.memory_space<vmem>>, %arg3: memref<1x256xf32, #tpu.memory_space<vmem>>, %arg4: memref<1x256xf32, #tpu.memory_space<vmem>>, %arg5: memref<256x16xbf16, #tpu.memory_space<vmem>>, %arg6: memref<1x16xf32, #tpu.memory_space<vmem>>, %arg7: memref<16x16xf32, #tpu.memory_space<vmem>>) attributes {dimension_semantics = [#tpu.dimension_semantics<parallel>], iteration_bounds = array<i64: 1>, scalar_prefetch = 0 : i64, scratch_operands = 0 : i64, tpu.core_type = #tpu.core_type<tc>, window_params = [{transform_indices = @transform_0, window_bounds = array<i64: 16, 1152>}, {pipeline_mode = #tpu.pipeline_mode<synchronous>, transform_indices = @transform_1, window_bounds = array<i64: 1152, 256>}, {pipeline_mode = #tpu.pipeline_mode<synchronous>, transform_indices = @transform_2, window_bounds = array<i64: 1, 256>}, {pipeline_mode = #tpu.pipeline_mode<synchronous>, transform_indices = @transform_3, window_bounds = array<i64: 1, 256>}, {pipeline_mode = #tpu.pipeline_mode<synchronous>, transform_indices = @transform_4, window_bounds = array<i64: 256, 16>}, {pipeline_mode = #tpu.pipeline_mode<synchronous>, transform_indices = @transform_5, window_bounds = array<i64: 1, 16>}, {transform_indices = @transform_6, window_bounds = array<i64: 16, 16>}]} {
    %c0 = arith.constant 0 : index
    %c0_0 = arith.constant 0 : index
    %0 = vector.load %arg1[%c0, %c0_0] : memref<16x1152xbf16, #tpu.memory_space<vmem>>, vector<16x1152xbf16>
    %c0_1 = arith.constant 0 : index
    %c0_2 = arith.constant 0 : index
    %1 = vector.load %arg2[%c0_1, %c0_2] : memref<1152x256xbf16, #tpu.memory_space<vmem>>, vector<1152x256xbf16>
    %cst = arith.constant dense<0.000000e+00> : vector<16x256xf32>
    %2 = tpu.matmul %0, %1, %cst {dimension_numbers = #tpu.dot_dimension_numbers<[1], [0], [0], [1], [0, 0, 1, 1], [], []>} : vector<16x1152xbf16>, vector<1152x256xbf16>, vector<16x256xf32> -> vector<16x256xf32>
    %c0_3 = arith.constant 0 : index
    %c0_4 = arith.constant 0 : index
    %3 = vector.load %arg3[%c0_3, %c0_4] : memref<1x256xf32, #tpu.memory_space<vmem>>, vector<1x256xf32>
    %4 = vector.broadcast %3 : vector<1x256xf32> to vector<16x256xf32>
    %5 = arith.addf %2, %4 : vector<16x256xf32>
    %cst_5 = arith.constant 0.000000e+00 : f32
    %6 = vector.broadcast %cst_5 : f32 to vector<16x256xf32>
    %7 = arith.cmpf oge, %5, %6 : vector<16x256xf32>
    %c0_6 = arith.constant 0 : index
    %c0_7 = arith.constant 0 : index
    %8 = vector.load %arg4[%c0_6, %c0_7] : memref<1x256xf32, #tpu.memory_space<vmem>>, vector<1x256xf32>
    %9 = vector.broadcast %8 : vector<1x256xf32> to vector<16x256xf32>
    %10 = arith.mulf %9, %5 : vector<16x256xf32>
    %11 = arith.select %7, %5, %10 : vector<16x256xi1>, vector<16x256xf32>
    %12 = arith.truncf %11 : vector<16x256xf32> to vector<16x256xbf16>
    %c0_8 = arith.constant 0 : index
    %c0_9 = arith.constant 0 : index
    %13 = vector.load %arg5[%c0_8, %c0_9] : memref<256x16xbf16, #tpu.memory_space<vmem>>, vector<256x16xbf16>
    %cst_10 = arith.constant dense<0.000000e+00> : vector<16x16xf32>
    %14 = tpu.matmul %12, %13, %cst_10 {dimension_numbers = #tpu.dot_dimension_numbers<[1], [0], [0], [1], [0, 0, 1, 1], [], []>} : vector<16x256xbf16>, vector<256x16xbf16>, vector<16x16xf32> -> vector<16x16xf32>
    %c0_11 = arith.constant 0 : index
    %c0_12 = arith.constant 0 : index
    %15 = vector.load %arg6[%c0_11, %c0_12] : memref<1x16xf32, #tpu.memory_space<vmem>>, vector<1x16xf32>
    %16 = vector.broadcast %15 : vector<1x16xf32> to vector<16x16xf32>
    %17 = arith.addf %14, %16 : vector<16x16xf32>
    %18 = tpu.iota {dimensions = array<i32: 1>} : vector<16x16xi32>
    %c0_i32 = arith.constant 0 : i32
    %19 = vector.broadcast %c0_i32 : i32 to vector<16x16xi32>
    %20 = arith.cmpi eq, %18, %19 : vector<16x16xi32>
    %21 = arith.negf %17 : vector<16x16xf32>
    %22 = math.exp %21 : vector<16x16xf32>
    %cst_13 = arith.constant 1.000000e+00 : f32
    %23 = vector.broadcast %cst_13 : f32 to vector<16x16xf32>
    %24 = arith.addf %23, %22 : vector<16x16xf32>
    %25 = arith.divf %23, %24 : vector<16x16xf32>
    %26 = arith.select %20, %25, %17 : vector<16x16xi1>, vector<16x16xf32>
    %c0_14 = arith.constant 0 : index
    %c0_15 = arith.constant 0 : index
    %27 = vector.load %arg7[%c0_14, %c0_15] : memref<16x16xf32, #tpu.memory_space<vmem>>, vector<16x16xf32>
    tpu.vector_store %arg7[%c0_14, %c0_15], %26 {strides = array<i32>} : memref<16x16xf32, #tpu.memory_space<vmem>>, vector<16x16xf32>,
    return
  }
  func.func @transform_0(%arg0: i32) -> (i32, i32) {
    %c0_i32 = arith.constant 0 : i32
    %c0_i32_0 = arith.constant 0 : i32
    return %arg0, %c0_i32 : i32, i32
  }
  func.func @transform_1(%arg0: i32) -> (i32, i32) {
    %c0_i32 = arith.constant 0 : i32
    %c0_i32_0 = arith.constant 0 : i32
    %c0_i32_1 = arith.constant 0 : i32
    return %c0_i32, %c0_i32_0 : i32, i32
  }
  func.func @transform_2(%arg0: i32) -> (i32, i32) {
    %c0_i32 = arith.constant 0 : i32
    %c0_i32_0 = arith.constant 0 : i32
    %c0_i32_1 = arith.constant 0 : i32
    return %c0_i32, %c0_i32_0 : i32, i32
  }
  func.func @transform_3(%arg0: i32) -> (i32, i32) {
    %c0_i32 = arith.constant 0 : i32
    %c0_i32_0 = arith.constant 0 : i32
    %c0_i32_1 = arith.constant 0 : i32
    return %c0_i32, %c0_i32_0 : i32, i32
  }
  func.func @transform_4(%arg0: i32) -> (i32, i32) {
    %c0_i32 = arith.constant 0 : i32
    %c0_i32_0 = arith.constant 0 : i32
    %c0_i32_1 = arith.constant 0 : i32
    return %c0_i32, %c0_i32_0 : i32, i32
  }
  func.func @transform_5(%arg0: i32) -> (i32, i32) {
    %c0_i32 = arith.constant 0 : i32
    %c0_i32_0 = arith.constant 0 : i32
    %c0_i32_1 = arith.constant 0 : i32
    return %c0_i32, %c0_i32_0 : i32, i32
  }
  func.func @transform_6(%arg0: i32) -> (i32, i32) {
    %c0_i32 = arith.constant 0 : i32
    %c0_i32_0 = arith.constant 0 : i32
    return %arg0, %c0_i32 : i32, i32
  }
}

</mosaic_0001>

<bundles_post_ra>
// kernel: onet_forward.5
= control target key start
LH: loop header
LB: loop body
LE: loop exit
PB: predicated region body
PF: predicated region fallthrough
CT: control target
= control target key end

     0   :  { %s9234_s15 = smov 0   ;;  %s12434_s0 = inlined_call_operand.vmem [shape: bf16[2,4896,27], index: 0, kind: input, shape index: {}]   ;;  %s12435_s1 = inlined_call_operand.vmem [shape: bf16[27,128], index: 1, kind: input, shape index: {}]   ;;  %s12436_s2 = inlined_call_operand.vmem [shape: f32[1,128], index: 2, kind: input, shape index: {}]   ;;  %s12437_s3 = inlined_call_operand.vmem [shape: f32[1,128], index: 3, kind: input, shape index: {}]   ;;  %s12438_s4 = inlined_call_operand.vmem [shape: bf16[1088,128], index: 4, kind: output, shape index: {}]  }
   0x1 LB: > { %s9240_s16 = sadd.s32 4294967295, %s9206_s15   ;;  %p6994_p0 = scmp.ge.s32.totalorder %s9206_s15, 1  ;;  %s9206_s15 = sphi %s9234_s15, %s14_s15  }
   0x2   : > { %p162_p1 = scmp.lt.s32.totalorder %s9206_s15, 3 }
   0x4   : > { %p163_p2 = pnand %p6994_p0, %p162_p1 }
   0x6   : > { %166 = sbr.rel (%p163_p2) target bundleno = 899 (0x383), region = 36 }
   0xd   : > { %v8892_v0 = vld [vmem:[%s12435_s1] sm:$0xff]   ;;  %vm3276_vm0 = vcmask 1044480   ;;  %v8893_v1 = vld [vmem:[%s12435_s1 + $0x8] sm:$0x3f]   ;;  %vm3277_vm1 = vcmask 1045504   ;;  %p188_p3 = scmp.lt.s32.totalorder %s9240_s16, 1 }
   0xe   : > { %8262 = vmatprep.subr.bf16.mxu0 %v8892_v0  ;;  %8878 = vmatprep.subr.bf16.mxu1 %v8892_v0  ;;  %v9208_v2 = vmov 65535   ;;  %vm2357_vm2 = vcmask 220160   ;;  %s193_s26 = smul.u32 68, %s9240_s16 }
   0xf   : > { %8263 = vmatpush3.bf16.msra.mxu0 %v8892_v0  ;;  %8880 = vmatpush3.bf16.msra.mxu1 %v8892_v0  ;;  %v3278_v3 = vsel %vm3276_vm0, 4294967295, %v9208_v2  ;;  %s189_s21 = scalar_select %p188_p3, %s9240_s16, 1 }
  0x10   : > { %v3279_v4 = vsel %vm3277_vm1, %v3278_v3, 0  ;;  %p11903_p4 = scmp.lt.s32.totalorder %s193_s26, 135 }
  0x11   : > { %v3281_v5 = vand.u32 %v8893_v1, %v3279_v4  ;;  %s8882_s22 = smul.u32 2448, %s189_s21 }
  0x12   : > { %s13620_s26 = smov (!%p11903_p4, %s193_s26), 135 }
  0x13   : > { %8264 = vmatprep.subr.bf16.mxu0 %v3281_v5  ;;  %8879 = vmatprep.subr.bf16.mxu1 %v3281_v5  ;;  %s9255_s25 = scalar_lea.vmem %s12434_s0, %s8882_s22  ;;  %s6996_s6 = sshll.u32 %s13620_s26, 2 }
  0x14   : > { %8265 = vmatpush3.bf16.msra.mxu0 %v3281_v5  ;;  %8881 = vmatpush3.bf16.msra.mxu1 %v3281_v5  ;;  %v8894_v6 = vld [vmem:[%s9255_s25] sm:$0xff]   ;;  %v8895_v7 = vld [vmem:[%s9255_s25 + $0x4d0] sm:$0xff]   ;;  %v8896_v8 = vld [vmem:[%s9255_s25 + $0x8] sm:$0xff]   ;;  %s11985_s9 = scalar_lea.vmem %s12438_s4, %s6996_s6 }
  0x15   : > { %8266 = vmatprep.mubr.msk.bf16.mxu0 %vm2357_vm2, %v8894_v6  ;;  %8574 = vmatprep.mubr.msk.bf16.mxu1 %vm2357_vm2, %v8895_v7  ;;  %v8897_v9 = vld [vmem:[%s9255_s25 + $0x4d8] sm:$0xff]   ;;  %v8898_v10 = vld [vmem:[%s9255_s25 + $0x10] sm:$0xff]   ;;  %v8899_v11 = vld [vmem:[%s9255_s25 + $0x4e0] sm:$0xff]  }
  0x16   : > { %v8900_v12 = vld [vmem:[%s9255_s25 + $0x18] sm:$0xff]   ;;  %v8901_v13 = vld [vmem:[%s9255_s25 + $0x4e8] sm:$0xff]   ;;  %v8902_v14 = vld [vmem:[%s9255_s25 + $0x20] sm:$0xff]  }
  0x17   : > { %8267 = vmatmul.mubr.msk.bf16.vlgmr.msra.gmra.mrb[0].mxu0 %vm2357_vm2, %v8896_v8  ;;  %8575 = vmatmul.mubr.msk.bf16.vlgmr.msra.gmra.mrb[0].mxu1 %vm2357_vm2, %v8897_v9  ;;  %v8903_v15 = vld [vmem:[%s9255_s25 + $0x4f0] sm:$0xff]   ;;  %v8904_v16 = vld [vmem:[%s9255_s25 + $0x28] sm:$0xff]   ;;  %v8905_v17 = vld [vmem:[%s9255_s25 + $0x4f8] sm:$0xff]  }
  0x18   : > { %8270 = vmatprep.mubr.msk.bf16.mxu0 %vm2357_vm2, %v8898_v10  ;;  %8578 = vmatprep.mubr.msk.bf16.mxu1 %vm2357_vm2, %v8899_v11  ;;  %v8906_v18 = vld [vmem:[%s9255_s25 + $0x30] sm:$0xff]   ;;  %v8907_v19 = vld [vmem:[%s9255_s25 + $0x500] sm:$0xff]   ;;  %v8908_v20 = vld [vmem:[%s9255_s25 + $0x38] sm:$0xff]  }
  0x19   : > { %v8909_v21 = vld [vmem:[%s9255_s25 + $0x508] sm:$0xff]   ;;  %v8910_v22 = vld [vmem:[%s9255_s25 + $0x40] sm:$0xff]   ;;  %v8911_v23 = vld [vmem:[%s9255_s25 + $0x510] sm:$0xff]  }
  0x1a   : > { %v8912_v24 = vld [vmem:[%s9255_s25 + $0x48] sm:$0xff]   ;;  %v8913_v25 = vld [vmem:[%s9255_s25 + $0x518] sm:$0xff]   ;;  %v8914_v26 = vld [vmem:[%s9255_s25 + $0x50] sm:$0xff]  }
  0x1b   : > { %v8915_v27 = vld [vmem:[%s9255_s25 + $0x520] sm:$0xff]   ;;  %v8916_v28 = vld [vmem:[%s9255_s25 + $0x58] sm:$0xff]   ;;  %v8917_v29 = vld [vmem:[%s9255_s25 + $0x528] sm:$0xff]  }
  0x1c   : > { %v8918_v30 = vld [vmem:[%s9255_s25 + $0x60] sm:$0xff]   ;;  %v8919_v31 = vld [vmem:[%s9255_s25 + $0x530] sm:$0xff]   ;;  %v8920_v32 = vld [vmem:[%s9255_s25 + $0x68] sm:$0xff]  }
  0x1d   : > { %v8921_v33 = vld [vmem:[%s9255_s25 + $0x538] sm:$0xff]   ;;  %v8922_v34 = vld [vmem:[%s9255_s25 + $0x70] sm:$0xff]   ;;  %v8923_v35 = vld [vmem:[%s9255_s25 + $0x540] sm:$0xff]  }
  0x1e   : > { %v8924_v36 = vld [vmem:[%s9255_s25 + $0x78] sm:$0xff]   ;;  %v8925_v37 = vld [vmem:[%s9255_s25 + $0x548] sm:$0xff]   ;;  %v8926_v38 = vld [vmem:[%s9255_s25 + $0x80] sm:$0xff]  }
  0x1f   : > { %8271 = vmatmul.mubr.msk.bf16.gmra.mrb[4].mxu0 %vm2357_vm2, %v8900_v12  ;;  %8579 = vmatmul.mubr.msk.bf16.gmra.mrb[4].mxu1 %vm2357_vm2, %v8901_v13  ;;  %v8927_v39 = vld [vmem:[%s9255_s25 + $0x550] sm:$0xff]   ;;  %v8928_v40 = vld [vmem:[%s9255_s25 + $0x88] sm:$0xff]   ;;  %v8929_v41 = vld [vmem:[%s9255_s25 + $0x558] sm:$0xff]  }
  0x20   : > { %8274 = vmatprep.mubr.msk.bf16.mxu0 %vm2357_vm2, %v8902_v14  ;;  %8582 = vmatprep.mubr.msk.bf16.mxu1 %vm2357_vm2, %v8903_v15  ;;  %v8930_v42 = vld [vmem:[%s9255_s25 + $0x90] sm:$0xff]   ;;  %v8931_v43 = vld [vmem:[%s9255_s25 + $0x560] sm:$0xff]   ;;  %v8932_v44 = vld [vmem:[%s9255_s25 + $0x98] sm:$0xff]  }
  0x21   : > { %v8933_v45 = vld [vmem:[%s9255_s25 + $0x568] sm:$0xff]   ;;  %v8934_v46 = vld [vmem:[%s9255_s25 + $0xa0] sm:$0xff]   ;;  %v8935_v47 = vld [vmem:[%s9255_s25 + $0x570] sm:$0xff]  }
  0x22   : > { %v8936_v48 = vld [vmem:[%s9255_s25 + $0xa8] sm:$0xff]   ;;  %v8937_v49 = vld [vmem:[%s9255_s25 + $0x578] sm:$0xff]   ;;  %v8938_v50 = vld [vmem:[%s9255_s25 + $0xb0] sm:$0xff]  }
  0x23   : > { %v8939_v51 = vld [vmem:[%s9255_s25 + $0x580] sm:$0xff]   ;;  %v8940_v52 = vld [vmem:[%s9255_s25 + $0xb8] sm:$0xff]   ;;  %v8941_v53 = vld [vmem:[%s9255_s25 + $0x588] sm:$0xff]  }
  0x24   : > { %v8942_v54 = vld [vmem:[%s9255_s25 + $0xc0] sm:$0xff]   ;;  %v8943_v55 = vld [vmem:[%s9255_s25 + $0x590] sm:$0xff]   ;;  %v8944_v56 = vld [vmem:[%s9255_s25 + $0xc8] sm:$0xff]  }
  0x25   : > { %v8945_v57 = vld [vmem:[%s9255_s25 + $0x598] sm:$0xff]   ;;  %v8946_v58 = vld [vmem:[%s9255_s25 + $0xd0] sm:$0xff]   ;;  %v8947_v59 = vld [vmem:[%s9255_s25 + $0x5a0] sm:$0xff]  }
  0x26   : > { %v8948_v60 = vld [vmem:[%s9255_s25 + $0xd8] sm:$0xff]   ;;  %v8949_v61 = vld [vmem:[%s9255_s25 + $0x5a8] sm:$0xff]   ;;  %v8950_v62 = vld [vmem:[%s9255_s25 + $0xe0] sm:$0xff]  }
  0x27   : > { %8275 = vmatmul.mubr.msk.bf16.gmra.mrb[8].mxu0 %vm2357_vm2, %v8904_v16  ;;  %8583 = vmatmul.mubr.msk.bf16.gmra.mrb[8].mxu1 %vm2357_vm2, %v8905_v17  ;;  %v8951_v63 = vld [vmem:[%s9255_s25 + $0x5b0] sm:$0xff]   ;;  %v8952_v0 = vld [vmem:[%s9255_s25 + $0xe8] sm:$0xff]   ;;  %v8953_v1 = vld [vmem:[%s9255_s25 + $0x5b8] sm:$0xff]  }
  0x28   : > { %8278 = vmatprep.mubr.msk.bf16.mxu0 %vm2357_vm2, %v8906_v18  ;;  %8586 = vmatprep.mubr.msk.bf16.mxu1 %vm2357_vm2, %v8907_v19  ;;  %v8954_v2 = vld [vmem:[%s9255_s25 + $0xf0] sm:$0xff]   ;;  %v8955_v3 = vld [vmem:[%s9255_s25 + $0x5c0] sm:$0xff]   ;;  %v8956_v4 = vld [vmem:[%s9255_s25 + $0xf8] sm:$0xff]  }
  0x29   : > { %v8957_v5 = vld [vmem:[%s9255_s25 + $0x5c8] sm:$0xff]   ;;  %v8958_v6 = vld [vmem:[%s9255_s25 + $0x100] sm:$0xff]   ;;  %v8959_v7 = vld [vmem:[%s9255_s25 + $0x5d0] sm:$0xff]  }
  0x2a   : > { %v8960_v8 = vld [vmem:[%s9255_s25 + $0x108] sm:$0xff]   ;;  %v8961_v9 = vld [vmem:[%s9255_s25 + $0x5d8] sm:$0xff]   ;;  %v8962_v10 = vld [vmem:[%s9255_s25 + $0x110] sm:$0xff]  }
  0x2b   : > { %v8963_v11 = vld [vmem:[%s9255_s25 + $0x5e0] sm:$0xff]   ;;  %v8964_v12 = vld [vmem:[%s9255_s25 + $0x118] sm:$0xff]   ;;  %v8965_v13 = vld [vmem:[%s9255_s25 + $0x5e8] sm:$0xff]  }
  0x2c   : > { %v8966_v14 = vld [vmem:[%s9255_s25 + $0x120] sm:$0xff]   ;;  %v8967_v15 = vld [vmem:[%s9255_s25 + $0x5f0] sm:$0xff]   ;;  %v8968_v16 = vld [vmem:[%s9255_s25 + $0x128] sm:$0xff]  }
  0x2d   : > { %v8969_v17 = vld [vmem:[%s9255_s25 + $0x5f8] sm:$0xff]   ;;  %v8970_v18 = vld [vmem:[%s9255_s25 + $0x130] sm:$0xff]   ;;  %v8971_v19 = vld [vmem:[%s9255_s25 + $0x600] sm:$0xff]  }
  0x2f   : > { %8279 = vmatmul.mubr.msk.bf16.gmra.mrb[12].mxu0 %vm2357_vm2, %v8908_v20  ;;  %8587 = vmatmul.mubr.msk.bf16.gmra.mrb[12].mxu1 %vm2357_vm2, %v8909_v21  ;;  %v8972_v20 = vld [vmem:[%s9255_s25 + $0x138] sm:$0xff]   ;;  %v8973_v21 = vld [vmem:[%s9255_s25 + $0x608] sm:$0xff]  }
  0x30   : > { %8282 = vmatprep.mubr.msk.bf16.mxu0 %vm2357_vm2, %v8910_v22  ;;  %8590 = vmatprep.mubr.msk.bf16.mxu1 %vm2357_vm2, %v8911_v23  ;;  %v8974_v22 = vld [vmem:[%s9255_s25 + $0x140] sm:$0xff]   ;;  %v8975_v23 = vld [vmem:[%s9255_s25 + $0x610] sm:$0xff]  }
  0x37   : > { %8283 = vmatmul.mubr.msk.bf16.gmra.mrb[16].mxu0 %vm2357_vm2, %v8912_v24  ;;  %8591 = vmatmul.mubr.msk.bf16.gmra.mrb[16].mxu1 %vm2357_vm2, %v8913_v25  ;;  %v8976_v24 = vld [vmem:[%s9255_s25 + $0x148] sm:$0xff]   ;;  %v8977_v25 = vld [vmem:[%s9255_s25 + $0x618] sm:$0xff]  }
  0x38   : > { %8286 = vmatprep.mubr.msk.bf16.mxu0 %vm2357_vm2, %v8914_v26  ;;  %8594 = vmatprep.mubr.msk.bf16.mxu1 %vm2357_vm2, %v8915_v27  ;;  %v8978_v26 = vld [vmem:[%s9255_s25 + $0x150] sm:$0xff]   ;;  %v8979_v27 = vld [vmem:[%s9255_s25 + $0x620] sm:$0xff]  }
  0x3f   : > { %8287 = vmatmul.mubr.msk.bf16.gmra.mrb[20].mxu0 %vm2357_vm2, %v8916_v28  ;;  %8595 = vmatmul.mubr.msk.bf16.gmra.mrb[20].mxu1 %vm2357_vm2, %v8917_v29  ;;  %v8980_v28 = vld [vmem:[%s9255_s25 + $0x158] sm:$0xff]   ;;  %v8981_v29 = vld [vmem:[%s9255_s25 + $0x628] sm:$0xff]  }
  0x40   : > { %8290 = vmatprep.mubr.msk.bf16.mxu0 %vm2357_vm2, %v8918_v30  ;;  %8598 = vmatprep.mubr.msk.bf16.mxu1 %vm2357_vm2, %v8919_v31  ;;  %v8982_v30 = vld [vmem:[%s9255_s25 + $0x160] sm:$0xff]   ;;  %v8983_v31 = vld [vmem:[%s9255_s25 + $0x630] sm:$0xff]  }
  0x47   : > { %8291 = vmatmul.mubr.msk.bf16.gmra.mrb[24].mxu0 %vm2357_vm2, %v8920_v32  ;;  %8599 = vmatmul.mubr.msk.bf16.gmra.mrb[24].mxu1 %vm2357_vm2, %v8921_v33  ;;  %v8984_v32 = vld [vmem:[%s9255_s25 + $0x168] sm:$0xff]   ;;  %v8985_v33 = vld [vmem:[%s9255_s25 + $0x638] sm:$0xff]  }
  0x48   : > { %8294 = vmatprep.mubr.msk.bf16.mxu0 %vm2357_vm2, %v8922_v34  ;;  %8602 = vmatprep.mubr.msk.bf16.mxu1 %vm2357_vm2, %v8923_v35  ;;  %v8986_v34 = vld [vmem:[%s9255_s25 + $0x170] sm:$0xff]   ;;  %v8987_v35 = vld [vmem:[%s9255_s25 + $0x640] sm:$0xff]  }
  0x4f   : > { %8295 = vmatmul.mubr.msk.bf16.gmra.mrb[28].mxu0 %vm2357_vm2, %v8924_v36  ;;  %8603 = vmatmul.mubr.msk.bf16.gmra.mrb[28].mxu1 %vm2357_vm2, %v8925_v37  ;;  %v8988_v36 = vld [vmem:[%s9255_s25 + $0x178] sm:$0xff]   ;;  %v8989_v37 = vld [vmem:[%s9255_s25 + $0x648] sm:$0xff]  }
  0x50   : > { %8298 = vmatprep.mubr.msk.bf16.mxu0 %vm2357_vm2, %v8926_v38  ;;  %8606 = vmatprep.mubr.msk.bf16.mxu1 %vm2357_vm2, %v8927_v39  ;;  %v8990_v38 = vld [vmem:[%s9255_s25 + $0x180] sm:$0xff]   ;;  %v8991_v39 = vld [vmem:[%s9255_s25 + $0x650] sm:$0xff]  }
  0x57   : > { %8299 = vmatmul.mubr.msk.bf16.gmra.mrb[32].mxu0 %vm2357_vm2, %v8928_v40  ;;  %8607 = vmatmul.mubr.msk.bf16.gmra.mrb[32].mxu1 %vm2357_vm2, %v8929_v41  ;;  %v8992_v40 = vld [vmem:[%s9255_s25 + $0x188] sm:$0xff]   ;;  %v8993_v41 = vld [vmem:[%s9255_s25 + $0x658] sm:$0xff]  }
  0x58   : > { %8302 = vmatprep.mubr.msk.bf16.mxu0 %vm2357_vm2, %v8930_v42  ;;  %8610 = vmatprep.mubr.msk.bf16.mxu1 %vm2357_vm2, %v8931_v43  ;;  %v8994_v42 = vld [vmem:[%s9255_s25 + $0x190] sm:$0xff]   ;;  %v8995_v43 = vld [vmem:[%s9255_s25 + $0x660] sm:$0xff]  }
  0x5f   : > { %8303 = vmatmul.mubr.msk.bf16.gmra.mrb[36].mxu0 %vm2357_vm2, %v8932_v44  ;;  %8611 = vmatmul.mubr.msk.bf16.gmra.mrb[36].mxu1 %vm2357_vm2, %v8933_v45  ;;  %v8996_v44 = vld [vmem:[%s9255_s25 + $0x198] sm:$0xff]   ;;  %v8997_v45 = vld [vmem:[%s9255_s25 + $0x668] sm:$0xff]  }
  0x60   : > { %8306 = vmatprep.mubr.msk.bf16.mxu0 %vm2357_vm2, %v8934_v46  ;;  %8614 = vmatprep.mubr.msk.bf16.mxu1 %vm2357_vm2, %v8935_v47  ;;  %v8998_v46 = vld [vmem:[%s9255_s25 + $0x1a0] sm:$0xff]   ;;  %v8999_v47 = vld [vmem:[%s9255_s25 + $0x670] sm:$0xff]  }
  0x67   : > { %8307 = vmatmul.mubr.msk.bf16.gmra.mrb[40].mxu0 %vm2357_vm2, %v8936_v48  ;;  %8615 = vmatmul.mubr.msk.bf16.gmra.mrb[40].mxu1 %vm2357_vm2, %v8937_v49  ;;  %v9000_v48 = vld [vmem:[%s9255_s25 + $0x1a8] sm:$0xff]   ;;  %v9001_v49 = vld [vmem:[%s9255_s25 + $0x678] sm:$0xff]  }
  0x68   : > { %8310 = vmatprep.mubr.msk.bf16.mxu0 %vm2357_vm2, %v8938_v50  ;;  %8618 = vmatprep.mubr.msk.bf16.mxu1 %vm2357_vm2, %v8939_v51  ;;  %v9002_v50 = vld [vmem:[%s9255_s25 + $0x1b0] sm:$0xff]   ;;  %v9003_v51 = vld [vmem:[%s9255_s25 + $0x680] sm:$0xff]  }
  0x6f   : > { %8311 = vmatmul.mubr.msk.bf16.gmra.mrb[44].mxu0 %vm2357_vm2, %v8940_v52  ;;  %8619 = vmatmul.mubr.msk.bf16.gmra.mrb[44].mxu1 %vm2357_vm2, %v8941_v53  ;;  %v9004_v52 = vld [vmem:[%s9255_s25 + $0x1b8] sm:$0xff]  }
  0x70   : > { %8314 = vmatprep.mubr.msk.bf16.mxu0 %vm2357_vm2, %v8942_v54  ;;  %8622 = vmatprep.mubr.msk.bf16.mxu1 %vm2357_vm2, %v8943_v55  ;;  %v9005_v54 = vld [vmem:[%s9255_s25 + $0x688] sm:$0xff]   ;;  %v9006_v55 = vld [vmem:[%s9255_s25 + $0x1c0] sm:$0xff]  }
  0x77   : > { %8315 = vmatmul.mubr.msk.bf16.gmra.mrb[48].mxu0 %vm2357_vm2, %v8944_v56  ;;  %8623 = vmatmul.mubr.msk.bf16.gmra.mrb[48].mxu1 %vm2357_vm2, %v8945_v57 }
  0x78   : > { %8318 = vmatprep.mubr.msk.bf16.mxu0 %vm2357_vm2, %v8946_v58  ;;  %8626 = vmatprep.mubr.msk.bf16.mxu1 %vm2357_vm2, %v8947_v59 }
  0x7f   : > { %8319 = vmatmul.mubr.msk.bf16.gmra.mrb[52].mxu0 %vm2357_vm2, %v8948_v60  ;;  %8627 = vmatmul.mubr.msk.bf16.gmra.mrb[52].mxu1 %vm2357_vm2, %v8949_v61  ;;  %v9007_v61 = vld [vmem:[%s9255_s25 + $0x690] sm:$0xff]  }
  0x80   : > { %8322 = vmatprep.mubr.msk.bf16.mxu0 %vm2357_vm2, %v8950_v62  ;;  %8630 = vmatprep.mubr.msk.bf16.mxu1 %vm2357_vm2, %v8951_v63 }
  0x87   : > { %8323 = vmatmul.mubr.msk.bf16.gmra.mrb[56].mxu0 %vm2357_vm2, %v8952_v0  ;;  %8631 = vmatmul.mubr.msk.bf16.gmra.mrb[56].mxu1 %vm2357_vm2, %v8953_v1  ;;  %v9008_v0 = vld [vmem:[%s9255_s25 + $0x1c8] sm:$0xff]  }
  0x88   : > { %8326 = vmatprep.mubr.msk.bf16.mxu0 %vm2357_vm2, %v8954_v2  ;;  %8634 = vmatprep.mubr.msk.bf16.mxu1 %vm2357_vm2, %v8955_v3  ;;  %v9009_v2 = vld [vmem:[%s9255_s25 + $0x698] sm:$0xff]   ;;  %v9010_v3 = vld [vmem:[%s9255_s25 + $0x1d0] sm:$0xff]  }
  0x8f   : > { %8327 = vmatmul.mubr.msk.bf16.gmra.mrb[60].mxu0 %vm2357_vm2, %v8956_v4  ;;  %8635 = vmatmul.mubr.msk.bf16.gmra.mrb[60].mxu1 %vm2357_vm2, %v8957_v5 }
  0x90   : > { %8330 = vmatprep.mubr.msk.bf16.mxu0 %vm2357_vm2, %v8958_v6  ;;  %8638 = vmatprep.mubr.msk.bf16.mxu1 %vm2357_vm2, %v8959_v7 }
  0x97   : > { %8331 = vmatmul.mubr.msk.bf16.gmra.mrb[64].mxu0 %vm2357_vm2, %v8960_v8  ;;  %8639 = vmatmul.mubr.msk.bf16.gmra.mrb[64].mxu1 %vm2357_vm2, %v8961_v9  ;;  %v9011_v9 = vld [vmem:[%s9255_s25 + $0x6a0] sm:$0xff]  }
  0x98   : > { %8334 = vmatprep.mubr.msk.bf16.mxu0 %vm2357_vm2, %v8962_v10  ;;  %8642 = vmatprep.mubr.msk.bf16.mxu1 %vm2357_vm2, %v8963_v11 }
  0x9f   : > { %8335 = vmatmul.mubr.msk.bf16.gmra.mrb[68].mxu0 %vm2357_vm2, %v8964_v12  ;;  %8643 = vmatmul.mubr.msk.bf16.gmra.mrb[68].mxu1 %vm2357_vm2, %v8965_v13  ;;  %v9012_v12 = vld [vmem:[%s9255_s25 + $0x1d8] sm:$0xff]  }
  0xa0   : > { %8338 = vmatprep.mubr.msk.bf16.mxu0 %vm2357_vm2, %v8966_v14  ;;  %8646 = vmatprep.mubr.msk.bf16.mxu1 %vm2357_vm2, %v8967_v15  ;;  %v9013_v14 = vld [vmem:[%s9255_s25 + $0x6a8] sm:$0xff]   ;;  %v9014_v15 = vld [vmem:[%s9255_s25 + $0x1e0] sm:$0xff]  }
  0xa7   : > { %8339 = vmatmul.mubr.msk.bf16.gmra.mrb[72].mxu0 %vm2357_vm2, %v8968_v16  ;;  %8647 = vmatmul.mubr.msk.bf16.gmra.mrb[72].mxu1 %vm2357_vm2, %v8969_v17 }
  0xa8   : > { %8342 = vmatprep.mubr.msk.bf16.mxu0 %vm2357_vm2, %v8970_v18  ;;  %8650 = vmatprep.mubr.msk.bf16.mxu1 %vm2357_vm2, %v8971_v19 }
  0xaf   : > { %8343 = vmatmul.mubr.msk.bf16.gmra.mrb[76].mxu0 %vm2357_vm2, %v8972_v20  ;;  %8651 = vmatmul.mubr.msk.bf16.gmra.mrb[76].mxu1 %vm2357_vm2, %v8973_v21  ;;  %v9015_v21 = vld [vmem:[%s9255_s25 + $0x6b0] sm:$0xff]  }
  0xb0   : > { %8346 = vmatprep.mubr.msk.bf16.mxu0 %vm2357_vm2, %v8974_v22  ;;  %8654 = vmatprep.mubr.msk.bf16.mxu1 %vm2357_vm2, %v8975_v23 }
  0xb7   : > { %8347 = vmatmul.mubr.msk.bf16.gmra.mrb[80].mxu0 %vm2357_vm2, %v8976_v24  ;;  %8655 = vmatmul.mubr.msk.bf16.gmra.mrb[80].mxu1 %vm2357_vm2, %v8977_v25  ;;  %v9016_v24 = vld [vmem:[%s9255_s25 + $0x1e8] sm:$0xff]  }
  0xb8   : > { %8350 = vmatprep.mubr.msk.bf16.mxu0 %vm2357_vm2, %v8978_v26  ;;  %8658 = vmatprep.mubr.msk.bf16.mxu1 %vm2357_vm2, %v8979_v27  ;;  %v9017_v26 = vld [vmem:[%s9255_s25 + $0x6b8] sm:$0xff]   ;;  %v9018_v27 = vld [vmem:[%s9255_s25 + $0x1f0] sm:$0xff]  }
  0xbf   : > { %8351 = vmatmul.mubr.msk.bf16.gmra.mrb[84].mxu0 %vm2357_vm2, %v8980_v28  ;;  %8659 = vmatmul.mubr.msk.bf16.gmra.mrb[84].mxu1 %vm2357_vm2, %v8981_v29 }
  0xc0   : > { %8354 = vmatprep.mubr.msk.bf16.mxu0 %vm2357_vm2, %v8982_v30  ;;  %8662 = vmatprep.mubr.msk.bf16.mxu1 %vm2357_vm2, %v8983_v31 }
  0xc7   : > { %8355 = vmatmul.mubr.msk.bf16.gmra.mrb[88].mxu0 %vm2357_vm2, %v8984_v32  ;;  %8663 = vmatmul.mubr.msk.bf16.gmra.mrb[88].mxu1 %vm2357_vm2, %v8985_v33  ;;  %v9019_v33 = vld [vmem:[%s9255_s25 + $0x6c0] sm:$0xff]  }
  0xc8   : > { %8358 = vmatprep.mubr.msk.bf16.mxu0 %vm2357_vm2, %v8986_v34  ;;  %8666 = vmatprep.mubr.msk.bf16.mxu1 %vm2357_vm2, %v8987_v35 }
  0xcf   : > { %8359 = vmatmul.mubr.msk.bf16.gmra.mrb[92].mxu0 %vm2357_vm2, %v8988_v36  ;;  %8667 = vmatmul.mubr.msk.bf16.gmra.mrb[92].mxu1 %vm2357_vm2, %v8989_v37  ;;  %v9020_v36 = vld [vmem:[%s9255_s25 + $0x1f8] sm:$0xff]  }
  0xd0   : > { %8362 = vmatprep.mubr.msk.bf16.mxu0 %vm2357_vm2, %v8990_v38  ;;  %8670 = vmatprep.mubr.msk.bf16.mxu1 %vm2357_vm2, %v8991_v39  ;;  %v9021_v38 = vld [vmem:[%s9255_s25 + $0x6c8] sm:$0xff]   ;;  %v9022_v39 = vld [vmem:[%s9255_s25 + $0x200] sm:$0xff]  }
  0xd7   : > { %8363 = vmatmul.mubr.msk.bf16.gmra.mrb[96].mxu0 %vm2357_vm2, %v8992_v40  ;;  %8671 = vmatmul.mubr.msk.bf16.gmra.mrb[96].mxu1 %vm2357_vm2, %v8993_v41 }
  0xd8   : > { %8366 = vmatprep.mubr.msk.bf16.mxu0 %vm2357_vm2, %v8994_v42  ;;  %8674 = vmatprep.mubr.msk.bf16.mxu1 %vm2357_vm2, %v8995_v43 }
  0xdf   : > { %8367 = vmatmul.mubr.msk.bf16.gmra.mrb[100].mxu0 %vm2357_vm2, %v8996_v44  ;;  %8675 = vmatmul.mubr.msk.bf16.gmra.mrb[100].mxu1 %vm2357_vm2, %v8997_v45  ;;  %v9023_v45 = vld [vmem:[%s9255_s25 + $0x6d0] sm:$0xff]  }
  0xe0   : > { %8370 = vmatprep.mubr.msk.bf16.mxu0 %vm2357_vm2, %v8998_v46  ;;  %8678 = vmatprep.mubr.msk.bf16.mxu1 %vm2357_vm2, %v8999_v47 }
  0xe7   : > { %8371 = vmatmul.mubr.msk.bf16.gmra.mrb[104].mxu0 %vm2357_vm2, %v9000_v48  ;;  %8679 = vmatmul.mubr.msk.bf16.gmra.mrb[104].mxu1 %vm2357_vm2, %v9001_v49  ;;  %v9024_v48 = vld [vmem:[%s9255_s25 + $0x208] sm:$0xff]  }
  0xe8   : > { %8374 = vmatprep.mubr.msk.bf16.mxu0 %vm2357_vm2, %v9002_v50  ;;  %8682 = vmatprep.mubr.msk.bf16.mxu1 %vm2357_vm2, %v9003_v51  ;;  %v9025_v50 = vld [vmem:[%s9255_s25 + $0x6d8] sm:$0xff]   ;;  %v9026_v51 = vld [vmem:[%s9255_s25 + $0x210] sm:$0xff]  }
  0xea   : > { %v9478_v53 = vpop.f32.mrb[0].mxu0  ;;  %v9484_v57 = vpop.f32.mrb[0].mxu1 }
  0xeb   : > { %v9482_v56 = vpop.f32.mrb[1].mxu0  ;;  %12661 = vst [vmem:[#allocation2_spill] sm:$0xff] %v9484_v57  ;;  %v9488_v59 = vpop.f32.mrb[1].mxu1 }
  0xec   : > { %v9486_v58 = vpop.f32.mrb[2].mxu0  ;;  %12662 = vst [vmem:[#allocation3_spill] sm:$0xff] %v9488_v59  ;;  %v9493_v62 = vpop.f32.mrb[2].mxu1 }
  0xed   : > { %v9490_v60 = vpop.f32.mrb[3].mxu0  ;;  %12663 = vst [vmem:[#allocation4_spill] sm:$0xff] %v9493_v62  ;;  %v9495_v63 = vpop.f32.mrb[3].mxu1 }
  0xee   : > { %12664 = vst [vmem:[#allocation5_spill] sm:$0xff] %v9495_v63 }
  0xef   : > { %8375 = vmatmul.mubr.msk.bf16.gmra.mrb[108].mxu0 %vm2357_vm2, %v9004_v52  ;;  %8683 = vmatmul.mubr.msk.bf16.gmra.mrb[108].mxu1 %vm2357_vm2, %v9005_v54 }
  0xf0   : > { %8378 = vmatprep.mubr.msk.bf16.mxu0 %vm2357_vm2, %v9006_v55  ;;  %8686 = vmatprep.mubr.msk.bf16.mxu1 %vm2357_vm2, %v9007_v61 }
  0xf2   : > { %v9502_v1 = vpop.f32.mrb[4].mxu0  ;;  %v9508_v5 = vpop.f32.mrb[4].mxu1 }
  0xf3   : > { %v9506_v4 = vpop.f32.mrb[5].mxu0  ;;  %12665 = vst [vmem:[#allocation6_spill] sm:$0xff] %v9508_v5  ;;  %v9512_v7 = vpop.f32.mrb[5].mxu1 }
  0xf4   : > { %v9510_v6 = vpop.f32.mrb[6].mxu0  ;;  %12666 = vst [vmem:[#allocation7_spill] sm:$0xff] %v9512_v7  ;;  %v9517_v10 = vpop.f32.mrb[6].mxu1  ;;  %v9045_v7 = vld [vmem:[%s9255_s25 + $0x728] sm:$0xff]  }
  0xf5   : > { %v9514_v8 = vpop.f32.mrb[7].mxu0  ;;  %12667 = vst [vmem:[#allocation8_spill] sm:$0xff] %v9517_v10  ;;  %v9519_v11 = vpop.f32.mrb[7].mxu1 }
  0xf6   : > { %12668 = vst [vmem:[#allocation9_spill] sm:$0xff] %v9519_v11  ;;  %v9044_v11 = vld [vmem:[%s9255_s25 + $0x258] sm:$0xff]  }
  0xf7   : > { %8379 = vmatmul.mubr.msk.bf16.gmra.mrb[112].mxu0 %vm2357_vm2, %v9008_v0  ;;  %8687 = vmatmul.mubr.msk.bf16.gmra.mrb[112].mxu1 %vm2357_vm2, %v9009_v2  ;;  %v9027_v2 = vld [vmem:[%s9255_s25 + $0x6e0] sm:$0xff]  }
  0xf8   : > { %8382 = vmatprep.mubr.msk.bf16.mxu0 %vm2357_vm2, %v9010_v3  ;;  %8690 = vmatprep.mubr.msk.bf16.mxu1 %vm2357_vm2, %v9011_v9 }
  0xfa   : > { %v9526_v13 = vpop.f32.mrb[8].mxu0  ;;  %v9532_v17 = vpop.f32.mrb[8].mxu1 }
  0xfb   : > { %v9530_v16 = vpop.f32.mrb[9].mxu0  ;;  %12669 = vst [vmem:[#allocation10_spill] sm:$0xff] %v9532_v17  ;;  %v9536_v19 = vpop.f32.mrb[9].mxu1 }
  0xfc   : > { %v9534_v18 = vpop.f32.mrb[10].mxu0  ;;  %12670 = vst [vmem:[#allocation11_spill] sm:$0xff] %v9536_v19  ;;  %v9541_v22 = vpop.f32.mrb[10].mxu1 }
  0xfd   : > { %v9538_v20 = vpop.f32.mrb[11].mxu0  ;;  %12671 = vst [vmem:[#allocation12_spill] sm:$0xff] %v9541_v22  ;;  %v9543_v23 = vpop.f32.mrb[11].mxu1 }
  0xfe   : > { %12672 = vst [vmem:[#allocation13_spill] sm:$0xff] %v9543_v23 }
  0xff   : > { %8383 = vmatmul.mubr.msk.bf16.gmra.mrb[116].mxu0 %vm2357_vm2, %v9012_v12  ;;  %8691 = vmatmul.mubr.msk.bf16.gmra.mrb[116].mxu1 %vm2357_vm2, %v9013_v14  ;;  %v9028_v12 = vld [vmem:[%s9255_s25 + $0x218] sm:$0xff]  }
 0x100   : > { %8386 = vmatprep.mubr.msk.bf16.mxu0 %vm2357_vm2, %v9014_v15  ;;  %8694 = vmatprep.mubr.msk.bf16.mxu1 %vm2357_vm2, %v9015_v21  ;;  %v9029_v15 = vld [vmem:[%s9255_s25 + $0x6e8] sm:$0xff]   ;;  %v9030_v21 = vld [vmem:[%s9255_s25 + $0x220] sm:$0xff]  }
 0x102   : > { %v9550_v25 = vpop.f32.mrb[12].mxu0  ;;  %v9556_v29 = vpop.f32.mrb[12].mxu1 }
 0x103   : > { %v9554_v28 = vpop.f32.mrb[13].mxu0  ;;  %12673 = vst [vmem:[#allocation14_spill] sm:$0xff] %v9556_v29  ;;  %v9560_v31 = vpop.f32.mrb[13].mxu1 }
 0x104   : > { %v9558_v30 = vpop.f32.mrb[14].mxu0  ;;  %12674 = vst [vmem:[#allocation15_spill] sm:$0xff] %v9560_v31  ;;  %v9565_v34 = vpop.f32.mrb[14].mxu1  ;;  %v9041_v31 = vld [vmem:[%s9255_s25 + $0x718] sm:$0xff]  }
 0x105   : > { %v9562_v32 = vpop.f32.mrb[15].mxu0  ;;  %12675 = vst [vmem:[#allocation16_spill] sm:$0xff] %v9565_v34  ;;  %v9567_v35 = vpop.f32.mrb[15].mxu1 }
 0x106   : > { %12676 = vst [vmem:[#allocation17_spill] sm:$0xff] %v9567_v35  ;;  %v9040_v35 = vld [vmem:[%s9255_s25 + $0x248] sm:$0xff]  }
 0x107   : > { %8387 = vmatmul.mubr.msk.bf16.gmra.mrb[120].mxu0 %vm2357_vm2, %v9016_v24  ;;  %8695 = vmatmul.mubr.msk.bf16.gmra.mrb[120].mxu1 %vm2357_vm2, %v9017_v26 }
 0x108   : > { %8390 = vmatprep.mubr.msk.bf16.mxu0 %vm2357_vm2, %v9018_v27  ;;  %8698 = vmatprep.mubr.msk.bf16.mxu1 %vm2357_vm2, %v9019_v33 }
 0x10a   : > { %v9574_v37 = vpop.f32.mrb[16].mxu0  ;;  %v9580_v41 = vpop.f32.mrb[16].mxu1 }
 0x10b   : > { %v9578_v40 = vpop.f32.mrb[17].mxu0  ;;  %12677 = vst [vmem:[#allocation18_spill] sm:$0xff] %v9580_v41  ;;  %v9584_v43 = vpop.f32.mrb[17].mxu1 }
 0x10c   : > { %v9582_v42 = vpop.f32.mrb[18].mxu0  ;;  %12679 = vst [vmem:[#allocation20_spill] sm:$0xff] %v9584_v43  ;;  %v9589_v46 = vpop.f32.mrb[18].mxu1 }
 0x10d   : > { %12678 = vst [vmem:[#allocation19_spill] sm:$0xff] %v9582_v42  ;;  %v9586_v44 = vpop.f32.mrb[19].mxu0  ;;  %12680 = vst [vmem:[#allocation21_spill] sm:$0xff] %v9589_v46  ;;  %v9591_v47 = vpop.f32.mrb[19].mxu1  ;;  %v9057_v42 = vld [vmem:[%s9255_s25 + $0x758] sm:$0xff]  }
 0x10e   : > { %12681 = vst [vmem:[#allocation22_spill] sm:$0xff] %v9591_v47 }
 0x10f   : > { %8391 = vmatmul.mubr.msk.bf16.gmra.mrb[124].mxu0 %vm2357_vm2, %v9020_v36  ;;  %8699 = vmatmul.mubr.msk.bf16.gmra.mrb[124].mxu1 %vm2357_vm2, %v9021_v38  ;;  %v9031_v38 = vld [vmem:[%s9255_s25 + $0x6f0] sm:$0xff]  }
 0x110   : > { %8394 = vmatprep.mubr.msk.bf16.mxu0 %vm2357_vm2, %v9022_v39  ;;  %8702 = vmatprep.mubr.msk.bf16.mxu1 %vm2357_vm2, %v9023_v45 }
 0x112   : > { %v9598_v49 = vpop.f32.mrb[20].mxu0  ;;  %v9604_v54 = vpop.f32.mrb[20].mxu1 }
 0x113   : > { %v9602_v52 = vpop.f32.mrb[21].mxu0  ;;  %12682 = vst [vmem:[#allocation23_spill] sm:$0xff] %v9604_v54  ;;  %v9608_v61 = vpop.f32.mrb[21].mxu1  ;;  %v9038_v54 = vld [vmem:[%s9255_s25 + $0x240] sm:$0xff]  }
 0x114   : > { %v9606_v55 = vpop.f32.mrb[22].mxu0  ;;  %12684 = vst [vmem:[#allocation25_spill] sm:$0xff] %v9608_v61  ;;  %v9613_v3 = vpop.f32.mrb[22].mxu1 }
 0x115   : > { %12683 = vst [vmem:[#allocation24_spill] sm:$0xff] %v9606_v55  ;;  %v9610_v0 = vpop.f32.mrb[23].mxu0  ;;  %12685 = vst [vmem:[#allocation26_spill] sm:$0xff] %v9613_v3  ;;  %v9615_v9 = vpop.f32.mrb[23].mxu1  ;;  %v9061_v55 = vld [vmem:[%s9255_s25 + $0x768] sm:$0xff]  }
 0x116   : > { %12686 = vst [vmem:[#allocation27_spill] sm:$0xff] %v9615_v9 }
 0x117   : > { %8395 = vmatmul.mubr.msk.bf16.gmra.mrb[128].mxu0 %vm2357_vm2, %v9024_v48  ;;  %8703 = vmatmul.mubr.msk.bf16.gmra.mrb[128].mxu1 %vm2357_vm2, %v9025_v50  ;;  %v9032_v48 = vld [vmem:[%s9255_s25 + $0x228] sm:$0xff]  }
 0x118   : > { %8398 = vmatprep.mubr.msk.bf16.mxu0 %vm2357_vm2, %v9026_v51  ;;  %8706 = vmatprep.mubr.msk.bf16.mxu1 %vm2357_vm2, %v9027_v2  ;;  %v9033_v51 = vld [vmem:[%s9255_s25 + $0x6f8] sm:$0xff]   ;;  %v9034_v2 = vld [vmem:[%s9255_s25 + $0x230] sm:$0xff]  }
 0x11a   : > { %v9622_v14 = vpop.f32.mrb[24].mxu0  ;;  %v9628_v26 = vpop.f32.mrb[24].mxu1 }
 0x11b   : > { %v9626_v24 = vpop.f32.mrb[25].mxu0  ;;  %12687 = vst [vmem:[#allocation28_spill] sm:$0xff] %v9628_v26  ;;  %v9632_v33 = vpop.f32.mrb[25].mxu1 }
 0x11c   : > { %v9630_v27 = vpop.f32.mrb[26].mxu0  ;;  %12689 = vst [vmem:[#allocation30_spill] sm:$0xff] %v9632_v33  ;;  %v9637_v39 = vpop.f32.mrb[26].mxu1 }
 0x11d   : > { %12688 = vst [vmem:[#allocation29_spill] sm:$0xff] %v9630_v27  ;;  %v9634_v36 = vpop.f32.mrb[27].mxu0  ;;  %12690 = vst [vmem:[#allocation31_spill] sm:$0xff] %v9637_v39  ;;  %v9639_v45 = vpop.f32.mrb[27].mxu1  ;;  %v9065_v27 = vld [vmem:[%s9255_s25 + $0x778] sm:$0xff]  }
 0x11e   : > { %12691 = vst [vmem:[#allocation32_spill] sm:$0xff] %v9639_v45 }
 0x11f   : > { %8399 = vmatmul.mubr.msk.bf16.gmra.mrb[132].mxu0 %vm2357_vm2, %v9028_v12  ;;  %8707 = vmatmul.mubr.msk.bf16.gmra.mrb[132].mxu1 %vm2357_vm2, %v9029_v15 }
 0x120   : > { %8402 = vmatprep.mubr.msk.bf16.mxu0 %vm2357_vm2, %v9030_v21  ;;  %8710 = vmatprep.mubr.msk.bf16.mxu1 %vm2357_vm2, %v9031_v38  ;;  %v9035_v21 = vld [vmem:[%s9255_s25 + $0x700] sm:$0xff]  }
 0x122   : > { %v9646_v50 = vpop.f32.mrb[28].mxu0  ;;  %v9652_v26 = vpop.f32.mrb[28].mxu1 }
 0x123   : > { %v9650_v33 = vpop.f32.mrb[29].mxu0  ;;  %12692 = vst [vmem:[#allocation33_spill] sm:$0xff] %v9652_v26  ;;  %v9656_v12 = vpop.f32.mrb[29].mxu1 }
 0x124   : > { %v9654_v45 = vpop.f32.mrb[30].mxu0  ;;  %12694 = vst [vmem:[#allocation35_spill] sm:$0xff] %v9656_v12  ;;  %v9661_v38 = vpop.f32.mrb[30].mxu1  ;;  %v9036_v12 = vld [vmem:[%s9255_s25 + $0x238] sm:$0xff]  }
 0x125   : > { %12693 = vst [vmem:[#allocation34_spill] sm:$0xff] %v9654_v45  ;;  %v9658_v15 = vpop.f32.mrb[31].mxu0  ;;  %12695 = vst [vmem:[#allocation36_spill] sm:$0xff] %v9661_v38  ;;  %v9663_v39 = vpop.f32.mrb[31].mxu1  ;;  %v9037_v38 = vld [vmem:[%s9255_s25 + $0x708] sm:$0xff]  }
 0x126   : > { %12696 = vst [vmem:[#allocation37_spill] sm:$0xff] %v9663_v39  ;;  %v9069_v45 = vld [vmem:[%s9255_s25 + $0x788] sm:$0xff]  }
 0x127   : > { %8403 = vmatmul.mubr.msk.bf16.gmra.mrb[136].mxu0 %vm2357_vm2, %v9032_v48  ;;  %8711 = vmatmul.mubr.msk.bf16.gmra.mrb[136].mxu1 %vm2357_vm2, %v9033_v51 }
 0x128   : > { %8406 = vmatprep.mubr.msk.bf16.mxu0 %vm2357_vm2, %v9034_v2  ;;  %8714 = vmatprep.mubr.msk.bf16.mxu1 %vm2357_vm2, %v9035_v21  ;;  %v9039_v21 = vld [vmem:[%s9255_s25 + $0x710] sm:$0xff]  }
 0x12a   : > { %v9669_v26 = vpop.f32.mrb[32].mxu0  ;;  %v9674_v3 = vpop.f32.mrb[32].mxu1 }
 0x12b   : > { %v9671_v9 = vpop.f32.mrb[33].mxu0  ;;  %v9682_v51 = vpop.f32.mrb[33].mxu1 }
 0x12c   : > { %v9676_v61 = vpop.f32.mrb[34].mxu0  ;;  %v9689_v47 = vpop.f32.mrb[34].mxu1 }
 0x12d   : > { %12697 = vst [vmem:[#allocation38_spill] sm:$0xff] %v9676_v61  ;;  %v9684_v2 = vpop.f32.mrb[35].mxu0  ;;  %v9693_v43 = vpop.f32.mrb[35].mxu1 }
 0x12f   : > { %8407 = vmatmul.mubr.msk.bf16.gmra.mrb[140].mxu0 %vm2357_vm2, %v9036_v12  ;;  %8715 = vmatmul.mubr.msk.bf16.gmra.mrb[140].mxu1 %vm2357_vm2, %v9037_v38  ;;  %v9042_v12 = vld [vmem:[%s9255_s25 + $0x250] sm:$0xff]  }
 0x130   : > { %8410 = vmatprep.mubr.msk.bf16.mxu0 %vm2357_vm2, %v9038_v54  ;;  %8718 = vmatprep.mubr.msk.bf16.mxu1 %vm2357_vm2, %v9039_v21  ;;  %v9043_v21 = vld [vmem:[%s9255_s25 + $0x720] sm:$0xff]  }
 0x132   : > { %v9701_v39 = vpop.f32.mrb[36].mxu0  ;;  %v9706_v46 = vpop.f32.mrb[36].mxu1 }
 0x133   : > { %12698 = vst [vmem:[#allocation39_spill] sm:$0xff] %v9701_v39  ;;  %v9703_v41 = vpop.f32.mrb[37].mxu0  ;;  %v9714_v38 = vpop.f32.mrb[37].mxu1 }
 0x134   : > { %12699 = vst [vmem:[#allocation40_spill] sm:$0xff] %v9703_v41  ;;  %v9708_v34 = vpop.f32.mrb[38].mxu0  ;;  %v9721_v23 = vpop.f32.mrb[38].mxu1  ;;  %v9053_v41 = vld [vmem:[%s9255_s25 + $0x748] sm:$0xff]  }
 0x135   : > { %12700 = vst [vmem:[#allocation41_spill] sm:$0xff] %v9708_v34  ;;  %v9716_v54 = vpop.f32.mrb[39].mxu0  ;;  %v9725_v19 = vpop.f32.mrb[39].mxu1 }
 0x136   : > { %12701 = vst [vmem:[#allocation42_spill] sm:$0xff] %v9716_v54  ;;  %v9052_v54 = vld [vmem:[%s9255_s25 + $0x278] sm:$0xff]  }
 0x137   : > { %8411 = vmatmul.mubr.msk.bf16.gmra.mrb[144].mxu0 %vm2357_vm2, %v9040_v35  ;;  %8719 = vmatmul.mubr.msk.bf16.gmra.mrb[144].mxu1 %vm2357_vm2, %v9041_v31  ;;  %v9046_v35 = vld [vmem:[%s9255_s25 + $0x260] sm:$0xff]  }
 0x138   : > { %8414 = vmatprep.mubr.msk.bf16.mxu0 %vm2357_vm2, %v9042_v12  ;;  %8722 = vmatprep.mubr.msk.bf16.mxu1 %vm2357_vm2, %v9043_v21  ;;  %v9047_v21 = vld [vmem:[%s9255_s25 + $0x730] sm:$0xff]  }
 0x13a   : > { %v9733_v29 = vpop.f32.mrb[40].mxu0  ;;  %v9738_v22 = vpop.f32.mrb[40].mxu1 }
 0x13b   : > { %12702 = vst [vmem:[#allocation43_spill] sm:$0xff] %v9733_v29  ;;  %v9735_v17 = vpop.f32.mrb[41].mxu0  ;;  %v9746_v31 = vpop.f32.mrb[41].mxu1 }
 0x13c   : > { %12703 = vst [vmem:[#allocation44_spill] sm:$0xff] %v9735_v17  ;;  %v9740_v10 = vpop.f32.mrb[42].mxu0  ;;  %v9753_v63 = vpop.f32.mrb[42].mxu1  ;;  %v9049_v17 = vld [vmem:[%s9255_s25 + $0x738] sm:$0xff]  }
 0x13d   : > { %12704 = vst [vmem:[#allocation45_spill] sm:$0xff] %v9740_v10  ;;  %v9748_v12 = vpop.f32.mrb[43].mxu0  ;;  %v9757_v59 = vpop.f32.mrb[43].mxu1 }
 0x13e   : > { %12705 = vst [vmem:[#allocation46_spill] sm:$0xff] %v9748_v12  ;;  %v9048_v12 = vld [vmem:[%s9255_s25 + $0x268] sm:$0xff]  }
 0x13f   : > { %8415 = vmatmul.mubr.msk.bf16.gmra.mrb[148].mxu0 %vm2357_vm2, %v9044_v11  ;;  %8723 = vmatmul.mubr.msk.bf16.gmra.mrb[148].mxu1 %vm2357_vm2, %v9045_v7  ;;  %v9050_v11 = vld [vmem:[%s9255_s25 + $0x270] sm:$0xff]  }
 0x140   : > { %8418 = vmatprep.mubr.msk.bf16.mxu0 %vm2357_vm2, %v9046_v35  ;;  %8726 = vmatprep.mubr.msk.bf16.mxu1 %vm2357_vm2, %v9047_v21  ;;  %v9051_v21 = vld [vmem:[%s9255_s25 + $0x740] sm:$0xff]  }
 0x142   : > { %v9765_v5 = vpop.f32.mrb[44].mxu0  ;;  %v9770_v62 = vpop.f32.mrb[44].mxu1 }
 0x143   : > { %12706 = vst [vmem:[#allocation47_spill] sm:$0xff] %v9765_v5  ;;  %v9767_v57 = vpop.f32.mrb[45].mxu0  ;;  %v9778_v7 = vpop.f32.mrb[45].mxu1 }
 0x144   : > { %12707 = vst [vmem:[#allocation48_spill] sm:$0xff] %v9767_v57  ;;  %v9772_v10 = vpop.f32.mrb[46].mxu0  ;;  %v9785_v5 = vpop.f32.mrb[46].mxu1 }
 0x145   : > { %12708 = vst [vmem:[#allocation49_spill] sm:$0xff] %v9772_v10  ;;  %v9780_v35 = vpop.f32.mrb[47].mxu0  ;;  %v9789_v29 = vpop.f32.mrb[47].mxu1 }
 0x146   : > { %12709 = vst [vmem:[#allocation50_spill] sm:$0xff] %v9780_v35 }
 0x147   : > { %8419 = vmatmul.mubr.msk.bf16.gmra.mrb[152].mxu0 %vm2357_vm2, %v9048_v12  ;;  %8727 = vmatmul.mubr.msk.bf16.gmra.mrb[152].mxu1 %vm2357_vm2, %v9049_v17  ;;  %v9054_v12 = vld [vmem:[%s9255_s25 + $0x280] sm:$0xff]  }
 0x148   : > { %8422 = vmatprep.mubr.msk.bf16.mxu0 %vm2357_vm2, %v9050_v11  ;;  %8730 = vmatprep.mubr.msk.bf16.mxu1 %vm2357_vm2, %v9051_v21  ;;  %v9055_v21 = vld [vmem:[%s9255_s25 + $0x750] sm:$0xff]  }
 0x14a   : > { %v9797_v57 = vpop.f32.mrb[48].mxu0  ;;  %v9802_v10 = vpop.f32.mrb[48].mxu1 }
 0x14b   : > { %12710 = vst [vmem:[#allocation51_spill] sm:$0xff] %v9797_v57  ;;  %v9799_v35 = vpop.f32.mrb[49].mxu0  ;;  %v9810_v17 = vpop.f32.mrb[49].mxu1 }
 0x14c   : > { %12711 = vst [vmem:[#allocation52_spill] sm:$0xff] %v9799_v35  ;;  %v9804_v34 = vpop.f32.mrb[50].mxu0  ;;  %12713 = vst [vmem:[#allocation54_spill] sm:$0xff] %v9810_v17  ;;  %v9817_v57 = vpop.f32.mrb[50].mxu1  ;;  %v9056_v17 = vld [vmem:[%s9255_s25 + $0x288] sm:$0xff]  }
 0x14d   : > { %12712 = vst [vmem:[#allocation53_spill] sm:$0xff] %v9804_v34  ;;  %v9812_v11 = vpop.f32.mrb[51].mxu0  ;;  %12715 = vst [vmem:[#allocation56_spill] sm:$0xff] %v9817_v57  ;;  %v9821_v39 = vpop.f32.mrb[51].mxu1 }
 0x14e   : > { %12714 = vst [vmem:[#allocation55_spill] sm:$0xff] %v9812_v11  ;;  %12716 = vst [vmem:[#allocation57_spill] sm:$0xff] %v9821_v39 }
 0x14f   : > { %8423 = vmatmul.mubr.msk.bf16.gmra.mrb[156].mxu0 %vm2357_vm2, %v9052_v54  ;;  %8731 = vmatmul.mubr.msk.bf16.gmra.mrb[156].mxu1 %vm2357_vm2, %v9053_v41  ;;  %v9058_v54 = vld [vmem:[%s9255_s25 + $0x290] sm:$0xff]  }
 0x150   : > { %8426 = vmatprep.mubr.msk.bf16.mxu0 %vm2357_vm2, %v9054_v12  ;;  %8734 = vmatprep.mubr.msk.bf16.mxu1 %vm2357_vm2, %v9055_v21  ;;  %v9059_v21 = vld [vmem:[%s9255_s25 + $0x760] sm:$0xff]  }
 0x152   : > { %v9829_v35 = vpop.f32.mrb[52].mxu0  ;;  %v9834_v34 = vpop.f32.mrb[52].mxu1 }
 0x153   : > { %12717 = vst [vmem:[#allocation58_spill] sm:$0xff] %v9829_v35  ;;  %v9831_v11 = vpop.f32.mrb[53].mxu0  ;;  %v9842_v41 = vpop.f32.mrb[53].mxu1 }
 0x154   : > { %12718 = vst [vmem:[#allocation59_spill] sm:$0xff] %v9831_v11  ;;  %v9836_v57 = vpop.f32.mrb[54].mxu0  ;;  %12720 = vst [vmem:[#allocation61_spill] sm:$0xff] %v9842_v41  ;;  %v9849_v35 = vpop.f32.mrb[54].mxu1  ;;  %v9060_v41 = vld [vmem:[%s9255_s25 + $0x298] sm:$0xff]  }
 0x155   : > { %12719 = vst [vmem:[#allocation60_spill] sm:$0xff] %v9836_v57  ;;  %v9844_v12 = vpop.f32.mrb[55].mxu0  ;;  %12722 = vst [vmem:[#allocation63_spill] sm:$0xff] %v9849_v35  ;;  %v9853_v39 = vpop.f32.mrb[55].mxu1 }
 0x156   : > { %12721 = vst [vmem:[#allocation62_spill] sm:$0xff] %v9844_v12  ;;  %12723 = vst [vmem:[#allocation64_spill] sm:$0xff] %v9853_v39 }
 0x157   : > { %8427 = vmatmul.mubr.msk.bf16.gmra.mrb[160].mxu0 %vm2357_vm2, %v9056_v17  ;;  %8735 = vmatmul.mubr.msk.bf16.gmra.mrb[160].mxu1 %vm2357_vm2, %v9057_v42  ;;  %v9062_v17 = vld [vmem:[%s9255_s25 + $0x2a0] sm:$0xff]  }
 0x158   : > { %8430 = vmatprep.mubr.msk.bf16.mxu0 %vm2357_vm2, %v9058_v54  ;;  %8738 = vmatprep.mubr.msk.bf16.mxu1 %vm2357_vm2, %v9059_v21  ;;  %v9063_v21 = vld [vmem:[%s9255_s25 + $0x770] sm:$0xff]  }
 0x15a   : > { %v9861_v11 = vpop.f32.mrb[56].mxu0  ;;  %v9866_v57 = vpop.f32.mrb[56].mxu1 }
 0x15b   : > { %12724 = vst [vmem:[#allocation65_spill] sm:$0xff] %v9861_v11  ;;  %v9863_v12 = vpop.f32.mrb[57].mxu0  ;;  %v9874_v42 = vpop.f32.mrb[57].mxu1 }
 0x15c   : > { %12725 = vst [vmem:[#allocation66_spill] sm:$0xff] %v9863_v12  ;;  %v9868_v35 = vpop.f32.mrb[58].mxu0  ;;  %12727 = vst [vmem:[#allocation68_spill] sm:$0xff] %v9874_v42  ;;  %v9881_v11 = vpop.f32.mrb[58].mxu1  ;;  %v9064_v42 = vld [vmem:[%s9255_s25 + $0x2a8] sm:$0xff]  }
 0x15d   : > { %12726 = vst [vmem:[#allocation67_spill] sm:$0xff] %v9868_v35  ;;  %v9876_v54 = vpop.f32.mrb[59].mxu0  ;;  %12729 = vst [vmem:[#allocation70_spill] sm:$0xff] %v9881_v11  ;;  %v9885_v39 = vpop.f32.mrb[59].mxu1 }
 0x15e   : > { %12728 = vst [vmem:[#allocation69_spill] sm:$0xff] %v9876_v54  ;;  %12730 = vst [vmem:[#allocation71_spill] sm:$0xff] %v9885_v39 }
 0x15f   : > { %8431 = vmatmul.mubr.msk.bf16.gmra.mrb[164].mxu0 %vm2357_vm2, %v9060_v41  ;;  %8739 = vmatmul.mubr.msk.bf16.gmra.mrb[164].mxu1 %vm2357_vm2, %v9061_v55  ;;  %v9066_v41 = vld [vmem:[%s9255_s25 + $0x2b0] sm:$0xff]  }
 0x160   : > { %8434 = vmatprep.mubr.msk.bf16.mxu0 %vm2357_vm2, %v9062_v17  ;;  %8742 = vmatprep.mubr.msk.bf16.mxu1 %vm2357_vm2, %v9063_v21  ;;  %v9067_v21 = vld [vmem:[%s9255_s25 + $0x780] sm:$0xff]  }
 0x162   : > { %v9893_v12 = vpop.f32.mrb[60].mxu0  ;;  %v9898_v35 = vpop.f32.mrb[60].mxu1 }
 0x163   : > { %12731 = vst [vmem:[#allocation72_spill] sm:$0xff] %v9893_v12  ;;  %v9895_v54 = vpop.f32.mrb[61].mxu0  ;;  %v9906_v55 = vpop.f32.mrb[61].mxu1 }
 0x164   : > { %12732 = vst [vmem:[#allocation73_spill] sm:$0xff] %v9895_v54  ;;  %v9900_v11 = vpop.f32.mrb[62].mxu0  ;;  %12734 = vst [vmem:[#allocation75_spill] sm:$0xff] %v9906_v55  ;;  %v9913_v12 = vpop.f32.mrb[62].mxu1  ;;  %v9068_v55 = vld [vmem:[%s9255_s25 + $0x2b8] sm:$0xff]  }
 0x165   : > { %12733 = vst [vmem:[#allocation74_spill] sm:$0xff] %v9900_v11  ;;  %v9908_v17 = vpop.f32.mrb[63].mxu0  ;;  %12736 = vst [vmem:[#allocation77_spill] sm:$0xff] %v9913_v12  ;;  %v9917_v39 = vpop.f32.mrb[63].mxu1 }
 0x166   : > { %12735 = vst [vmem:[#allocation76_spill] sm:$0xff] %v9908_v17  ;;  %12737 = vst [vmem:[#allocation78_spill] sm:$0xff] %v9917_v39 }
 0x167   : > { %8435 = vmatmul.mubr.msk.bf16.gmra.mrb[168].mxu0 %vm2357_vm2, %v9064_v42  ;;  %8743 = vmatmul.mubr.msk.bf16.gmra.mrb[168].mxu1 %vm2357_vm2, %v9065_v27  ;;  %v9070_v42 = vld [vmem:[%s9255_s25 + $0x2c0] sm:$0xff]  }
 0x168   : > { %8438 = vmatprep.mubr.msk.bf16.mxu0 %vm2357_vm2, %v9066_v41  ;;  %8746 = vmatprep.mubr.msk.bf16.mxu1 %vm2357_vm2, %v9067_v21  ;;  %v9071_v21 = vld [vmem:[%s9255_s25 + $0x790] sm:$0xff]  }
 0x16a   : > { %v9925_v54 = vpop.f32.mrb[64].mxu0  ;;  %v9930_v11 = vpop.f32.mrb[64].mxu1 }
 0x16b   : > { %12738 = vst [vmem:[#allocation79_spill] sm:$0xff] %v9925_v54  ;;  %v9927_v17 = vpop.f32.mrb[65].mxu0  ;;  %v9938_v27 = vpop.f32.mrb[65].mxu1 }
 0x16c   : > { %12739 = vst [vmem:[#allocation80_spill] sm:$0xff] %v9927_v17  ;;  %v9932_v12 = vpop.f32.mrb[66].mxu0  ;;  %12741 = vst [vmem:[#allocation82_spill] sm:$0xff] %v9938_v27  ;;  %v9945_v17 = vpop.f32.mrb[66].mxu1 }
 0x16d   : > { %12740 = vst [vmem:[#allocation81_spill] sm:$0xff] %v9932_v12  ;;  %v9940_v41 = vpop.f32.mrb[67].mxu0  ;;  %12743 = vst [vmem:[#allocation84_spill] sm:$0xff] %v9945_v17  ;;  %v9949_v39 = vpop.f32.mrb[67].mxu1  ;;  %v9072_v17 = vld [vmem:[%s9255_s25 + $0x2c8] sm:$0xff]  }
 0x16e   : > { %12742 = vst [vmem:[#allocation83_spill] sm:$0xff] %v9940_v41  ;;  %12744 = vst [vmem:[#allocation85_spill] sm:$0xff] %v9949_v39  ;;  %v12745_v41 = vmax.f32 %v9478_v53, %v9674_v3  ;;  %v9073_v39 = vld [vmem:[%s9255_s25 + $0x798] sm:$0xff]   ;;  %v12749_v53 = vmax.f32 %v9486_v58, %v9689_v47  ;;  %v12753_v47 = vmax.f32 %v9502_v1, %v9706_v46 }
 0x16f   : > { %8439 = vmatmul.mubr.msk.bf16.gmra.mrb[172].mxu0 %vm2357_vm2, %v9068_v55  ;;  %8747 = vmatmul.mubr.msk.bf16.gmra.mrb[172].mxu1 %vm2357_vm2, %v9069_v45  ;;  %v12747_v55 = vmax.f32 %v9482_v56, %v9682_v51  ;;  %v12751_v56 = vmax.f32 %v9490_v60, %v9693_v43  ;;  %v9076_v43 = vld [vmem:[%s9255_s25 + $0x2d8] sm:$0xff]   ;;  %v12757_v1 = vmax.f32 %v9510_v6, %v9721_v23 }
 0x170   : > { %8442 = vmatprep.mubr.msk.bf16.mxu0 %vm2357_vm2, %v9070_v42  ;;  %8750 = vmatprep.mubr.msk.bf16.mxu1 %vm2357_vm2, %v9071_v21  ;;  %v9074_v42 = vld [vmem:[%s9255_s25 + $0x2d0] sm:$0xff]   ;;  %v12761_v23 = vmax.f32 %v9526_v13, %v9738_v22  ;;  %v12765_v13 = vmax.f32 %v9534_v18, %v9753_v63  ;;  %v12769_v18 = vmax.f32 %v9550_v25, %v9770_v62 }
 0x171   : > { %v12773_v62 = vmax.f32 %v9558_v30, %v9785_v5  ;;  %v12778_v30 = vmax.f32 %v9574_v37, %v9802_v10 }
 0x172   : > { %v8336_v54 = vpop.f32.mrb[68].mxu0  ;;  %v9963_v61 = vpop.f32.mrb[68].mxu1 }
 0x173   : > { %v9960_v27 = vmax.f32 %v12745_v41, %v8336_v54  ;;  %v3589_v12 = vpop.f32.mrb[69].mxu0  ;;  %12746 = vst [vmem:[#allocation86_spill] sm:$0xff] %v9963_v61  ;;  %v9972_v21 = vpop.f32.mrb[69].mxu1  ;;  %v9075_v41 = vld [vmem:[%s9255_s25 + $0x7a0] sm:$0xff]  }
 0x174   : > { %v9968_v48 = vmax.f32 %v12747_v55, %v3589_v12  ;;  %v8337_v45 = vpop.f32.mrb[70].mxu0  ;;  %12748 = vst [vmem:[#allocation87_spill] sm:$0xff] %v9972_v21  ;;  %v9980_v61 = vpop.f32.mrb[70].mxu1 }
 0x175   : > { %v9977_v3 = vmax.f32 %v12749_v53, %v8337_v45  ;;  %v3592_v54 = vpop.f32.mrb[71].mxu0  ;;  %12750 = vst [vmem:[#allocation88_spill] sm:$0xff] %v9980_v61  ;;  %v9987_v12 = vpop.f32.mrb[71].mxu1 }
 0x176   : > { %v9985_v51 = vmax.f32 %v12751_v56, %v3592_v54  ;;  %12752 = vst [vmem:[#allocation89_spill] sm:$0xff] %v9987_v12  ;;  %v9077_v54 = vld [vmem:[%s9255_s25 + $0x7a8] sm:$0xff]  }
 0x177   : > { %8443 = vmatmul.mubr.msk.bf16.gmra.mrb[176].mxu0 %vm2357_vm2, %v9072_v17  ;;  %8751 = vmatmul.mubr.msk.bf16.gmra.mrb[176].mxu1 %vm2357_vm2, %v9073_v39  ;;  %v12755_v17 = vmax.f32 %v9506_v4, %v9714_v38  ;;  %v12759_v4 = vmax.f32 %v9514_v8, %v9725_v19  ;;  %v9080_v19 = vld [vmem:[%s9255_s25 + $0x2e8] sm:$0xff]  }
 0x178   : > { %8446 = vmatprep.mubr.msk.bf16.mxu0 %vm2357_vm2, %v9074_v42  ;;  %8754 = vmatprep.mubr.msk.bf16.mxu1 %vm2357_vm2, %v9075_v41  ;;  %v9078_v42 = vld [vmem:[%s9255_s25 + $0x2e0] sm:$0xff]   ;;  %v9112_v12 = vld [vmem:[%s9255_s25 + $0x368] sm:$0xff]  }
 0x17a   : > { %v8340_v58 = vpop.f32.mrb[72].mxu0  ;;  %v9999_v45 = vpop.f32.mrb[72].mxu1 }
 0x17b   : > { %v9996_v55 = vmax.f32 %v12753_v47, %v8340_v58  ;;  %v3605_v60 = vpop.f32.mrb[73].mxu0  ;;  %12754 = vst [vmem:[#allocation90_spill] sm:$0xff] %v9999_v45  ;;  %v10008_v41 = vpop.f32.mrb[73].mxu1  ;;  %v9079_v58 = vld [vmem:[%s9255_s25 + $0x7b0] sm:$0xff]  }
 0x17c   : > { %v10004_v53 = vmax.f32 %v12755_v17, %v3605_v60  ;;  %v8341_v39 = vpop.f32.mrb[74].mxu0  ;;  %12756 = vst [vmem:[#allocation91_spill] sm:$0xff] %v10008_v41  ;;  %v10016_v47 = vpop.f32.mrb[74].mxu1 }
 0x17d   : > { %v10013_v46 = vmax.f32 %v12757_v1, %v8341_v39  ;;  %v3608_v56 = vpop.f32.mrb[75].mxu0  ;;  %12758 = vst [vmem:[#allocation92_spill] sm:$0xff] %v10016_v47  ;;  %v10023_v60 = vpop.f32.mrb[75].mxu1  ;;  %v9115_v47 = vld [vmem:[%s9255_s25 + $0x840] sm:$0xff]  }
 0x17e   : > { %v10021_v38 = vmax.f32 %v12759_v4, %v3608_v56  ;;  %12760 = vst [vmem:[#allocation93_spill] sm:$0xff] %v10023_v60  ;;  %v9081_v56 = vld [vmem:[%s9255_s25 + $0x7b8] sm:$0xff]  }
 0x17f   : > { %8447 = vmatmul.mubr.msk.bf16.gmra.mrb[180].mxu0 %vm2357_vm2, %v9076_v43  ;;  %8755 = vmatmul.mubr.msk.bf16.gmra.mrb[180].mxu1 %vm2357_vm2, %v9077_v54  ;;  %v12763_v43 = vmax.f32 %v9530_v16, %v9746_v31  ;;  %v12767_v16 = vmax.f32 %v9538_v20, %v9757_v59  ;;  %v9084_v20 = vld [vmem:[%s9255_s25 + $0x2f8] sm:$0xff]  }
 0x180   : > { %8450 = vmatprep.mubr.msk.bf16.mxu0 %vm2357_vm2, %v9078_v42  ;;  %8758 = vmatprep.mubr.msk.bf16.mxu1 %vm2357_vm2, %v9079_v58  ;;  %v9082_v42 = vld [vmem:[%s9255_s25 + $0x2f0] sm:$0xff]  }
 0x182   : > { %v8344_v6 = vpop.f32.mrb[76].mxu0  ;;  %v10035_v39 = vpop.f32.mrb[76].mxu1 }
 0x183   : > { %v10032_v17 = vmax.f32 %v12761_v23, %v8344_v6  ;;  %v3621_v8 = vpop.f32.mrb[77].mxu0  ;;  %12762 = vst [vmem:[#allocation94_spill] sm:$0xff] %v10035_v39  ;;  %v10044_v58 = vpop.f32.mrb[77].mxu1  ;;  %v9083_v6 = vld [vmem:[%s9255_s25 + $0x7c0] sm:$0xff]  }
 0x184   : > { %v10040_v1 = vmax.f32 %v12763_v43, %v3621_v8  ;;  %v8345_v54 = vpop.f32.mrb[78].mxu0  ;;  %12764 = vst [vmem:[#allocation95_spill] sm:$0xff] %v10044_v58  ;;  %v10052_v23 = vpop.f32.mrb[78].mxu1  ;;  %v9111_v58 = vld [vmem:[%s9255_s25 + $0x830] sm:$0xff]  }
 0x185   : > { %v10049_v22 = vmax.f32 %v12765_v13, %v8345_v54  ;;  %v3624_v4 = vpop.f32.mrb[79].mxu0  ;;  %12766 = vst [vmem:[#allocation96_spill] sm:$0xff] %v10052_v23  ;;  %v10059_v8 = vpop.f32.mrb[79].mxu1 }
 0x186   : > { %v10057_v31 = vmax.f32 %v12767_v16, %v3624_v4  ;;  %12768 = vst [vmem:[#allocation97_spill] sm:$0xff] %v10059_v8  ;;  %v9085_v4 = vld [vmem:[%s9255_s25 + $0x7c8] sm:$0xff]  }
 0x187   : > { %8451 = vmatmul.mubr.msk.bf16.gmra.mrb[184].mxu0 %vm2357_vm2, %v9080_v19  ;;  %8759 = vmatmul.mubr.msk.bf16.gmra.mrb[184].mxu1 %vm2357_vm2, %v9081_v56  ;;  %v12771_v19 = vmax.f32 %v9554_v28, %v9778_v7  ;;  %v12775_v28 = vmax.f32 %v9562_v32, %v9789_v29  ;;  %v9088_v32 = vld [vmem:[%s9255_s25 + $0x308] sm:$0xff]  }
 0x188   : > { %8454 = vmatprep.mubr.msk.bf16.mxu0 %vm2357_vm2, %v9082_v42  ;;  %8762 = vmatprep.mubr.msk.bf16.mxu1 %vm2357_vm2, %v9083_v6  ;;  %v9086_v42 = vld [vmem:[%s9255_s25 + $0x300] sm:$0xff]  }
 0x18a   : > { %v8348_v63 = vpop.f32.mrb[80].mxu0  ;;  %v10071_v54 = vpop.f32.mrb[80].mxu1 }
 0x18b   : > { %v10068_v43 = vmax.f32 %v12769_v18, %v8348_v63  ;;  %v3637_v59 = vpop.f32.mrb[81].mxu0  ;;  %12770 = vst [vmem:[#allocation98_spill] sm:$0xff] %v10071_v54  ;;  %v10080_v6 = vpop.f32.mrb[81].mxu1  ;;  %v9087_v63 = vld [vmem:[%s9255_s25 + $0x7d0] sm:$0xff]   ;;  %v9110_v54 = vld [vmem:[%s9255_s25 + $0x360] sm:$0xff]  }
 0x18c   : > { %v10076_v13 = vmax.f32 %v12771_v19, %v3637_v59  ;;  %v8349_v56 = vpop.f32.mrb[82].mxu0  ;;  %12772 = vst [vmem:[#allocation99_spill] sm:$0xff] %v10080_v6  ;;  %v10088_v18 = vpop.f32.mrb[82].mxu1  ;;  %v9107_v6 = vld [vmem:[%s9255_s25 + $0x820] sm:$0xff]  }
 0x18d   : > { %v10085_v25 = vmax.f32 %v12773_v62, %v8349_v56  ;;  %v3640_v16 = vpop.f32.mrb[83].mxu0  ;;  %12774 = vst [vmem:[#allocation100_spill] sm:$0xff] %v10088_v18  ;;  %v10095_v59 = vpop.f32.mrb[83].mxu1  ;;  %v12780_v62 = vld [vmem:[#allocation54_spill] sm:$0xff]  ;;  %v12784_v18 = vld [vmem:[#allocation56_spill] sm:$0xff] }
 0x18e   : > { %v10093_v7 = vmax.f32 %v12775_v28, %v3640_v16  ;;  %12777 = vst [vmem:[#allocation102_spill] sm:$0xff] %v10095_v59  ;;  %v9089_v28 = vld [vmem:[%s9255_s25 + $0x7d8] sm:$0xff]   ;;  %v12783_v59 = vld [vmem:[#allocation19_spill] sm:$0xff] }
 0x18f   : > { %8455 = vmatmul.mubr.msk.bf16.gmra.mrb[188].mxu0 %vm2357_vm2, %v9084_v20  ;;  %8763 = vmatmul.mubr.msk.bf16.gmra.mrb[188].mxu1 %vm2357_vm2, %v9085_v4  ;;  %v12781_v20 = vmax.f32 %v9578_v40, %v12780_v62  ;;  %v12785_v10 = vmax.f32 %v12783_v59, %v12784_v18  ;;  %v12787_v40 = vld [vmem:[#allocation57_spill] sm:$0xff]  ;;  %v12791_v59 = vmax.f32 %v9598_v49, %v9834_v34 }
 0x190   : > { %12776 = vst [vmem:[#allocation101_spill] sm:$0xff] %v10093_v7  ;;  %8458 = vmatprep.mubr.msk.bf16.mxu0 %vm2357_vm2, %v9086_v42  ;;  %8766 = vmatprep.mubr.msk.bf16.mxu1 %vm2357_vm2, %v9087_v63  ;;  %v9090_v42 = vld [vmem:[%s9255_s25 + $0x310] sm:$0xff]  }
 0x192   : > { %v8352_v5 = vpop.f32.mrb[84].mxu0  ;;  %v10107_v56 = vpop.f32.mrb[84].mxu1 }
 0x193   : > { %v10104_v19 = vmax.f32 %v12778_v30, %v8352_v5  ;;  %v3653_v29 = vpop.f32.mrb[85].mxu0  ;;  %12779 = vst [vmem:[#allocation103_spill] sm:$0xff] %v10107_v56  ;;  %v10116_v63 = vpop.f32.mrb[85].mxu1  ;;  %v9091_v30 = vld [vmem:[%s9255_s25 + $0x7e0] sm:$0xff]  }
 0x194   : > { %v10112_v16 = vmax.f32 %v12781_v20, %v3653_v29  ;;  %v8353_v4 = vpop.f32.mrb[86].mxu0  ;;  %12782 = vst [vmem:[#allocation54_spill] sm:$0xff] %v10116_v63  ;;  %v10124_v56 = vpop.f32.mrb[86].mxu1  ;;  %v12788_v29 = vmax.f32 %v9586_v44, %v12787_v40  ;;  %v12793_v40 = vld [vmem:[#allocation61_spill] sm:$0xff]  ;;  %v12797_v63 = vld [vmem:[#allocation63_spill] sm:$0xff] }
 0x195   : > { %v10121_v37 = vmax.f32 %v12785_v10, %v8353_v4  ;;  %v3656_v5 = vpop.f32.mrb[87].mxu0  ;;  %12786 = vst [vmem:[#allocation19_spill] sm:$0xff] %v10124_v56  ;;  %v10131_v20 = vpop.f32.mrb[87].mxu1  ;;  %v9092_v10 = vld [vmem:[%s9255_s25 + $0x318] sm:$0xff]   ;;  %v12796_v56 = vld [vmem:[#allocation24_spill] sm:$0xff] }
 0x196   : > { %v10129_v62 = vmax.f32 %v12788_v29, %v3656_v5  ;;  %12790 = vst [vmem:[#allocation57_spill] sm:$0xff] %v10131_v20  ;;  %v9093_v20 = vld [vmem:[%s9255_s25 + $0x7e8] sm:$0xff]   ;;  %v12798_v34 = vmax.f32 %v12796_v56, %v12797_v63  ;;  %v12804_v63 = vmax.f32 %v9622_v14, %v9866_v57 }
 0x197   : > { %8459 = vmatmul.mubr.msk.bf16.gmra.mrb[192].mxu0 %vm2357_vm2, %v9088_v32  ;;  %8767 = vmatmul.mubr.msk.bf16.gmra.mrb[192].mxu1 %vm2357_vm2, %v9089_v28  ;;  %v12794_v32 = vmax.f32 %v9602_v52, %v12793_v40  ;;  %v12800_v52 = vld [vmem:[#allocation64_spill] sm:$0xff] }
 0x198   : > { %12789 = vst [vmem:[#allocation56_spill] sm:$0xff] %v10129_v62  ;;  %8462 = vmatprep.mubr.msk.bf16.mxu0 %vm2357_vm2, %v9090_v42  ;;  %8770 = vmatprep.mubr.msk.bf16.mxu1 %vm2357_vm2, %v9091_v30  ;;  %v9094_v42 = vld [vmem:[%s9255_s25 + $0x320] sm:$0xff]  }
 0x19a   : > { %v8356_v18 = vpop.f32.mrb[88].mxu0  ;;  %v10143_v5 = vpop.f32.mrb[88].mxu1 }
 0x19b   : > { %v10140_v4 = vmax.f32 %v12791_v59, %v8356_v18  ;;  %v3669_v44 = vpop.f32.mrb[89].mxu0  ;;  %12792 = vst [vmem:[#allocation104_spill] sm:$0xff] %v10143_v5  ;;  %v10152_v30 = vpop.f32.mrb[89].mxu1  ;;  %v9095_v59 = vld [vmem:[%s9255_s25 + $0x7f0] sm:$0xff]  }
 0x19c   : > { %v10148_v29 = vmax.f32 %v12794_v32, %v3669_v44  ;;  %v8357_v28 = vpop.f32.mrb[90].mxu0  ;;  %12795 = vst [vmem:[#allocation61_spill] sm:$0xff] %v10152_v30  ;;  %v10160_v5 = vpop.f32.mrb[90].mxu1  ;;  %v12801_v44 = vmax.f32 %v9610_v0, %v12800_v52  ;;  %v12806_v52 = vld [vmem:[#allocation68_spill] sm:$0xff]  ;;  %v12810_v30 = vld [vmem:[#allocation70_spill] sm:$0xff] }
 0x19d   : > { %v10157_v49 = vmax.f32 %v12798_v34, %v8357_v28  ;;  %v3672_v18 = vpop.f32.mrb[91].mxu0  ;;  %12799 = vst [vmem:[#allocation24_spill] sm:$0xff] %v10160_v5  ;;  %v10167_v32 = vpop.f32.mrb[91].mxu1  ;;  %v9096_v34 = vld [vmem:[%s9255_s25 + $0x328] sm:$0xff]   ;;  %v12809_v5 = vld [vmem:[#allocation29_spill] sm:$0xff] }
 0x19e   : > { %v10165_v40 = vmax.f32 %v12801_v44, %v3672_v18  ;;  %12803 = vst [vmem:[#allocation64_spill] sm:$0xff] %v10167_v32  ;;  %v9097_v32 = vld [vmem:[%s9255_s25 + $0x7f8] sm:$0xff]   ;;  %v12811_v57 = vmax.f32 %v12809_v5, %v12810_v30  ;;  %v12817_v30 = vmax.f32 %v9646_v50, %v9898_v35 }
 0x19f   : > { %8463 = vmatmul.mubr.msk.bf16.gmra.mrb[196].mxu0 %vm2357_vm2, %v9092_v10  ;;  %8771 = vmatmul.mubr.msk.bf16.gmra.mrb[196].mxu1 %vm2357_vm2, %v9093_v20  ;;  %v12807_v10 = vmax.f32 %v9626_v24, %v12806_v52  ;;  %v12813_v24 = vld [vmem:[#allocation71_spill] sm:$0xff] }
 0x1a0   : > { %12802 = vst [vmem:[#allocation63_spill] sm:$0xff] %v10165_v40  ;;  %8466 = vmatprep.mubr.msk.bf16.mxu0 %vm2357_vm2, %v9094_v42  ;;  %8774 = vmatprep.mubr.msk.bf16.mxu1 %vm2357_vm2, %v9095_v59  ;;  %v9098_v42 = vld [vmem:[%s9255_s25 + $0x330] sm:$0xff]  }
 0x1a2   : > { %v8360_v56 = vpop.f32.mrb[92].mxu0  ;;  %v10179_v18 = vpop.f32.mrb[92].mxu1 }
 0x1a3   : > { %v10176_v28 = vmax.f32 %v12804_v63, %v8360_v56  ;;  %v3685_v0 = vpop.f32.mrb[93].mxu0  ;;  %12805 = vst [vmem:[#allocation105_spill] sm:$0xff] %v10179_v18  ;;  %v10188_v59 = vpop.f32.mrb[93].mxu1  ;;  %v9099_v63 = vld [vmem:[%s9255_s25 + $0x800] sm:$0xff]  }
 0x1a4   : > { %v10184_v44 = vmax.f32 %v12807_v10, %v3685_v0  ;;  %v8361_v20 = vpop.f32.mrb[94].mxu0  ;;  %12808 = vst [vmem:[#allocation68_spill] sm:$0xff] %v10188_v59  ;;  %v10196_v18 = vpop.f32.mrb[94].mxu1  ;;  %v12814_v0 = vmax.f32 %v9634_v36, %v12813_v24  ;;  %v12819_v24 = vld [vmem:[#allocation75_spill] sm:$0xff]  ;;  %v12823_v59 = vld [vmem:[#allocation77_spill] sm:$0xff] }
 0x1a5   : > { %v10193_v14 = vmax.f32 %v12811_v57, %v8361_v20  ;;  %v3688_v56 = vpop.f32.mrb[95].mxu0  ;;  %12812 = vst [vmem:[#allocation29_spill] sm:$0xff] %v10196_v18  ;;  %v10203_v10 = vpop.f32.mrb[95].mxu1  ;;  %v9100_v57 = vld [vmem:[%s9255_s25 + $0x338] sm:$0xff]   ;;  %v12822_v18 = vld [vmem:[#allocation34_spill] sm:$0xff] }
 0x1a6   : > { %v10201_v52 = vmax.f32 %v12814_v0, %v3688_v56  ;;  %12816 = vst [vmem:[#allocation71_spill] sm:$0xff] %v10203_v10  ;;  %v9101_v10 = vld [vmem:[%s9255_s25 + $0x808] sm:$0xff]   ;;  %v12824_v50 = vmax.f32 %v12822_v18, %v12823_v59  ;;  %v12830_v59 = vmax.f32 %v9669_v26, %v9930_v11  ;;  %v12833_v26 = vld [vmem:[#allocation38_spill] sm:$0xff]  ;;  %v12834_v11 = vld [vmem:[#allocation84_spill] sm:$0xff] }
 0x1a7   : > { %8467 = vmatmul.mubr.msk.bf16.gmra.mrb[200].mxu0 %vm2357_vm2, %v9096_v34  ;;  %8775 = vmatmul.mubr.msk.bf16.gmra.mrb[200].mxu1 %vm2357_vm2, %v9097_v32  ;;  %v12820_v34 = vmax.f32 %v9650_v33, %v12819_v24  ;;  %v12826_v33 = vld [vmem:[#allocation78_spill] sm:$0xff] }
 0x1a8   : > { %12815 = vst [vmem:[#allocation70_spill] sm:$0xff] %v10201_v52  ;;  %8470 = vmatprep.mubr.msk.bf16.mxu0 %vm2357_vm2, %v9098_v42  ;;  %8778 = vmatprep.mubr.msk.bf16.mxu1 %vm2357_vm2, %v9099_v63  ;;  %v9102_v42 = vld [vmem:[%s9255_s25 + $0x340] sm:$0xff]  }
 0x1aa   : > { %v8364_v5 = vpop.f32.mrb[96].mxu0  ;;  %v10215_v56 = vpop.f32.mrb[96].mxu1 }
 0x1ab   : > { %v10212_v20 = vmax.f32 %v12817_v30, %v8364_v5  ;;  %v3701_v36 = vpop.f32.mrb[97].mxu0  ;;  %12818 = vst [vmem:[#allocation106_spill] sm:$0xff] %v10215_v56  ;;  %v10224_v63 = vpop.f32.mrb[97].mxu1  ;;  %v9103_v30 = vld [vmem:[%s9255_s25 + $0x810] sm:$0xff]  }
 0x1ac   : > { %v10220_v0 = vmax.f32 %v12820_v34, %v3701_v36  ;;  %v8365_v32 = vpop.f32.mrb[98].mxu0  ;;  %12821 = vst [vmem:[#allocation75_spill] sm:$0xff] %v10224_v63  ;;  %v10232_v56 = vpop.f32.mrb[98].mxu1  ;;  %v12827_v36 = vmax.f32 %v9658_v15, %v12826_v33  ;;  %v12831_v33 = vld [vmem:[#allocation82_spill] sm:$0xff] }
 0x1ad   : > { %v10229_v35 = vmax.f32 %v12824_v50, %v8365_v32  ;;  %v3704_v5 = vpop.f32.mrb[99].mxu0  ;;  %12825 = vst [vmem:[#allocation34_spill] sm:$0xff] %v10232_v56  ;;  %v10239_v34 = vpop.f32.mrb[99].mxu1  ;;  %v9104_v50 = vld [vmem:[%s9255_s25 + $0x348] sm:$0xff]  }
 0x1ae   : > { %v10237_v24 = vmax.f32 %v12827_v36, %v3704_v5  ;;  %12829 = vst [vmem:[#allocation78_spill] sm:$0xff] %v10239_v34  ;;  %v9105_v34 = vld [vmem:[%s9255_s25 + $0x818] sm:$0xff]  }
 0x1af   : > { %8471 = vmatmul.mubr.msk.bf16.gmra.mrb[204].mxu0 %vm2357_vm2, %v9100_v57  ;;  %8779 = vmatmul.mubr.msk.bf16.gmra.mrb[204].mxu1 %vm2357_vm2, %v9101_v10  ;;  %v12832_v57 = vmax.f32 %v9671_v9, %v12831_v33  ;;  %v12836_v33 = vld [vmem:[#allocation85_spill] sm:$0xff] }
 0x1b0   : > { %12828 = vst [vmem:[#allocation77_spill] sm:$0xff] %v10237_v24  ;;  %8474 = vmatprep.mubr.msk.bf16.mxu0 %vm2357_vm2, %v9102_v42  ;;  %8782 = vmatprep.mubr.msk.bf16.mxu1 %vm2357_vm2, %v9103_v30  ;;  %v9106_v42 = vld [vmem:[%s9255_s25 + $0x350] sm:$0xff]   ;;  %v9141_v24 = vld [vmem:[%s9255_s25 + $0x8a8] sm:$0xff]  }
 0x1b2   : > { %v8368_v18 = vpop.f32.mrb[100].mxu0  ;;  %v10251_v5 = vpop.f32.mrb[100].mxu1 }
 0x1b3   : > { %v10248_v32 = vmax.f32 %v12830_v59, %v8368_v18  ;;  %v3717_v15 = vpop.f32.mrb[101].mxu0  ;;  %v10262_v56 = vpop.f32.mrb[101].mxu1  ;;  %v12835_v18 = vmax.f32 %v12833_v26, %v12834_v11 }
 0x1b4   : > { %v10256_v36 = vmax.f32 %v12832_v57, %v3717_v15  ;;  %v8369_v10 = vpop.f32.mrb[102].mxu0  ;;  %v10272_v15 = vpop.f32.mrb[102].mxu1  ;;  %v12837_v57 = vmax.f32 %v9684_v2, %v12836_v33 }
 0x1b5   : > { %v10267_v59 = vmax.f32 %v12835_v18, %v8369_v10  ;;  %v3720_v63 = vpop.f32.mrb[103].mxu0  ;;  %v10281_v10 = vpop.f32.mrb[103].mxu1 }
 0x1b6   : > { %v10277_v30 = vmax.f32 %v12837_v57, %v3720_v63  ;;  %v9108_v57 = vld [vmem:[%s9255_s25 + $0x358] sm:$0xff]  }
 0x1b7   : > { %8475 = vmatmul.mubr.msk.bf16.gmra.mrb[208].mxu0 %vm2357_vm2, %v9104_v50  ;;  %8783 = vmatmul.mubr.msk.bf16.gmra.mrb[208].mxu1 %vm2357_vm2, %v9105_v34  ;;  %v9109_v34 = vld [vmem:[%s9255_s25 + $0x828] sm:$0xff]  }
 0x1b8   : > { %8478 = vmatprep.mubr.msk.bf16.mxu0 %vm2357_vm2, %v9106_v42  ;;  %8786 = vmatprep.mubr.msk.bf16.mxu1 %vm2357_vm2, %v9107_v6 }
 0x1ba   : > { %v10289_v2 = vpop.f32.mrb[104].mxu0  ;;  %v10296_v26 = vpop.f32.mrb[104].mxu1 }
 0x1bb   : > { %12838 = vst [vmem:[#allocation82_spill] sm:$0xff] %v10289_v2  ;;  %v10293_v33 = vpop.f32.mrb[105].mxu0  ;;  %v10306_v42 = vpop.f32.mrb[105].mxu1 }
 0x1bc   : > { %12840 = vst [vmem:[#allocation38_spill] sm:$0xff] %v10293_v33  ;;  %v10300_v9 = vpop.f32.mrb[106].mxu0  ;;  %v10315_v11 = vpop.f32.mrb[106].mxu1  ;;  %v9118_v33 = vld [vmem:[%s9255_s25 + $0x380] sm:$0xff]  }
 0x1bd   : > { %12842 = vst [vmem:[#allocation84_spill] sm:$0xff] %v10300_v9  ;;  %v10310_v23 = vpop.f32.mrb[107].mxu0  ;;  %v10321_v41 = vpop.f32.mrb[107].mxu1 }
 0x1be   : > { %12844 = vst [vmem:[#allocation85_spill] sm:$0xff] %v10310_v23  ;;  %v9114_v23 = vld [vmem:[%s9255_s25 + $0x370] sm:$0xff]  }
 0x1bf   : > { %8479 = vmatmul.mubr.msk.bf16.gmra.mrb[212].mxu0 %vm2357_vm2, %v9108_v57  ;;  %8787 = vmatmul.mubr.msk.bf16.gmra.mrb[212].mxu1 %vm2357_vm2, %v9109_v34  ;;  %v9113_v34 = vld [vmem:[%s9255_s25 + $0x838] sm:$0xff]   ;;  %v9119_v57 = vld [vmem:[%s9255_s25 + $0x850] sm:$0xff]  }
 0x1c0   : > { %8482 = vmatprep.mubr.msk.bf16.mxu0 %vm2357_vm2, %v9110_v54  ;;  %8790 = vmatprep.mubr.msk.bf16.mxu1 %vm2357_vm2, %v9111_v58 }
 0x1c2   : > { %v10329_v39 = vpop.f32.mrb[108].mxu0  ;;  %v10336_v61 = vpop.f32.mrb[108].mxu1 }
 0x1c3   : > { %12846 = vst [vmem:[#allocation107_spill] sm:$0xff] %v10329_v39  ;;  %v10333_v6 = vpop.f32.mrb[109].mxu0  ;;  %v10346_v54 = vpop.f32.mrb[109].mxu1 }
 0x1c4   : > { %12848 = vst [vmem:[#allocation108_spill] sm:$0xff] %v10333_v6  ;;  %v10340_v21 = vpop.f32.mrb[110].mxu0  ;;  %v10355_v18 = vpop.f32.mrb[110].mxu1  ;;  %v9116_v6 = vld [vmem:[%s9255_s25 + $0x378] sm:$0xff]  }
 0x1c5   : > { %12850 = vst [vmem:[#allocation109_spill] sm:$0xff] %v10340_v21  ;;  %v10350_v39 = vpop.f32.mrb[111].mxu0  ;;  %v10361_v8 = vpop.f32.mrb[111].mxu1 }
 0x1c6   : > { %12852 = vst [vmem:[#allocation110_spill] sm:$0xff] %v10350_v39 }
 0x1c7   : > { %8483 = vmatmul.mubr.msk.bf16.gmra.mrb[216].mxu0 %vm2357_vm2, %v9112_v12  ;;  %8791 = vmatmul.mubr.msk.bf16.gmra.mrb[216].mxu1 %vm2357_vm2, %v9113_v34  ;;  %v9117_v34 = vld [vmem:[%s9255_s25 + $0x848] sm:$0xff]   ;;  %v9123_v12 = vld [vmem:[%s9255_s25 + $0x860] sm:$0xff]  }
 0x1c8   : > { %8486 = vmatprep.mubr.msk.bf16.mxu0 %vm2357_vm2, %v9114_v23  ;;  %8794 = vmatprep.mubr.msk.bf16.mxu1 %vm2357_vm2, %v9115_v47 }
 0x1ca   : > { %v10369_v9 = vpop.f32.mrb[112].mxu0  ;;  %v10376_v21 = vpop.f32.mrb[112].mxu1 }
 0x1cb   : > { %12854 = vst [vmem:[#allocation111_spill] sm:$0xff] %v10369_v9  ;;  %v10373_v58 = vpop.f32.mrb[113].mxu0  ;;  %v10386_v23 = vpop.f32.mrb[113].mxu1 }
 0x1cc   : > { %12856 = vst [vmem:[#allocation112_spill] sm:$0xff] %v10373_v58  ;;  %v10380_v60 = vpop.f32.mrb[114].mxu0  ;;  %v10395_v45 = vpop.f32.mrb[114].mxu1  ;;  %v9120_v58 = vld [vmem:[%s9255_s25 + $0x388] sm:$0xff]  }
 0x1cd   : > { %12858 = vst [vmem:[#allocation113_spill] sm:$0xff] %v10380_v60  ;;  %v10390_v9 = vpop.f32.mrb[115].mxu0  ;;  %12861 = vst [vmem:[#allocation115_spill] sm:$0xff] %v10395_v45  ;;  %v10401_v63 = vpop.f32.mrb[115].mxu1 }
 0x1ce   : > { %12860 = vst [vmem:[#allocation114_spill] sm:$0xff] %v10390_v9  ;;  %12863 = vst [vmem:[#allocation116_spill] sm:$0xff] %v10401_v63  ;;  %v9122_v63 = vld [vmem:[%s9255_s25 + $0x390] sm:$0xff]  }
 0x1cf   : > { %8487 = vmatmul.mubr.msk.bf16.gmra.mrb[220].mxu0 %vm2357_vm2, %v9116_v6  ;;  %8795 = vmatmul.mubr.msk.bf16.gmra.mrb[220].mxu1 %vm2357_vm2, %v9117_v34  ;;  %v9121_v34 = vld [vmem:[%s9255_s25 + $0x858] sm:$0xff]   ;;  %v9127_v6 = vld [vmem:[%s9255_s25 + $0x870] sm:$0xff]  }
 0x1d0   : > { %8490 = vmatprep.mubr.msk.bf16.mxu0 %vm2357_vm2, %v9118_v33  ;;  %8798 = vmatprep.mubr.msk.bf16.mxu1 %vm2357_vm2, %v9119_v57 }
 0x1d2   : > { %v10409_v2 = vpop.f32.mrb[116].mxu0  ;;  %v10416_v60 = vpop.f32.mrb[116].mxu1 }
 0x1d3   : > { %12864 = vst [vmem:[#allocation117_spill] sm:$0xff] %v10409_v2  ;;  %v10413_v47 = vpop.f32.mrb[117].mxu0  ;;  %12867 = vst [vmem:[#allocation119_spill] sm:$0xff] %v10416_v60  ;;  %v10426_v57 = vpop.f32.mrb[117].mxu1 }
 0x1d4   : > { %12866 = vst [vmem:[#allocation118_spill] sm:$0xff] %v10413_v47  ;;  %v10420_v50 = vpop.f32.mrb[118].mxu0  ;;  %v10435_v39 = vpop.f32.mrb[118].mxu1  ;;  %v9124_v47 = vld [vmem:[%s9255_s25 + $0x398] sm:$0xff]  }
 0x1d5   : > { %12869 = vst [vmem:[#allocation120_spill] sm:$0xff] %v10420_v50  ;;  %v10430_v2 = vpop.f32.mrb[119].mxu0  ;;  %12872 = vst [vmem:[#allocation122_spill] sm:$0xff] %v10435_v39  ;;  %v10441_v60 = vpop.f32.mrb[119].mxu1 }
 0x1d6   : > { %12871 = vst [vmem:[#allocation121_spill] sm:$0xff] %v10430_v2  ;;  %12874 = vst [vmem:[#allocation123_spill] sm:$0xff] %v10441_v60  ;;  %v9126_v60 = vld [vmem:[%s9255_s25 + $0x3a0] sm:$0xff]  }
 0x1d7   : > { %8491 = vmatmul.mubr.msk.bf16.gmra.mrb[224].mxu0 %vm2357_vm2, %v9120_v58  ;;  %8799 = vmatmul.mubr.msk.bf16.gmra.mrb[224].mxu1 %vm2357_vm2, %v9121_v34  ;;  %v9125_v34 = vld [vmem:[%s9255_s25 + $0x868] sm:$0xff]   ;;  %v9131_v58 = vld [vmem:[%s9255_s25 + $0x880] sm:$0xff]  }
 0x1d8   : > { %8494 = vmatprep.mubr.msk.bf16.mxu0 %vm2357_vm2, %v9122_v63  ;;  %8802 = vmatprep.mubr.msk.bf16.mxu1 %vm2357_vm2, %v9123_v12 }
 0x1da   : > { %v10449_v45 = vpop.f32.mrb[120].mxu0  ;;  %v10456_v50 = vpop.f32.mrb[120].mxu1 }
 0x1db   : > { %12875 = vst [vmem:[#allocation124_spill] sm:$0xff] %v10449_v45  ;;  %v10453_v33 = vpop.f32.mrb[121].mxu0  ;;  %12878 = vst [vmem:[#allocation126_spill] sm:$0xff] %v10456_v50  ;;  %v10466_v12 = vpop.f32.mrb[121].mxu1 }
 0x1dc   : > { %12877 = vst [vmem:[#allocation125_spill] sm:$0xff] %v10453_v33  ;;  %v10460_v7 = vpop.f32.mrb[122].mxu0  ;;  %v10475_v9 = vpop.f32.mrb[122].mxu1  ;;  %v9128_v33 = vld [vmem:[%s9255_s25 + $0x3a8] sm:$0xff]  }
 0x1dd   : > { %12880 = vst [vmem:[#allocation127_spill] sm:$0xff] %v10460_v7  ;;  %v10470_v45 = vpop.f32.mrb[123].mxu0  ;;  %12883 = vst [vmem:[#allocation129_spill] sm:$0xff] %v10475_v9  ;;  %v10481_v50 = vpop.f32.mrb[123].mxu1 }
 0x1de   : > { %12882 = vst [vmem:[#allocation128_spill] sm:$0xff] %v10470_v45  ;;  %12885 = vst [vmem:[#allocation130_spill] sm:$0xff] %v10481_v50  ;;  %v9130_v50 = vld [vmem:[%s9255_s25 + $0x3b0] sm:$0xff]  }
 0x1df   : > { %8495 = vmatmul.mubr.msk.bf16.gmra.mrb[228].mxu0 %vm2357_vm2, %v9124_v47  ;;  %8803 = vmatmul.mubr.msk.bf16.gmra.mrb[228].mxu1 %vm2357_vm2, %v9125_v34  ;;  %v9129_v34 = vld [vmem:[%s9255_s25 + $0x878] sm:$0xff]   ;;  %v9135_v47 = vld [vmem:[%s9255_s25 + $0x890] sm:$0xff]  }
 0x1e0   : > { %8498 = vmatprep.mubr.msk.bf16.mxu0 %vm2357_vm2, %v9126_v60  ;;  %8806 = vmatprep.mubr.msk.bf16.mxu1 %vm2357_vm2, %v9127_v6 }
 0x1e2   : > { %v10489_v39 = vpop.f32.mrb[124].mxu0  ;;  %v10496_v7 = vpop.f32.mrb[124].mxu1 }
 0x1e3   : > { %12886 = vst [vmem:[#allocation131_spill] sm:$0xff] %v10489_v39  ;;  %v10493_v63 = vpop.f32.mrb[125].mxu0  ;;  %12889 = vst [vmem:[#allocation133_spill] sm:$0xff] %v10496_v7  ;;  %v10506_v6 = vpop.f32.mrb[125].mxu1 }
 0x1e4   : > { %12888 = vst [vmem:[#allocation132_spill] sm:$0xff] %v10493_v63  ;;  %v10500_v62 = vpop.f32.mrb[126].mxu0  ;;  %v10515_v2 = vpop.f32.mrb[126].mxu1  ;;  %v9132_v63 = vld [vmem:[%s9255_s25 + $0x3b8] sm:$0xff]  }
 0x1e5   : > { %12891 = vst [vmem:[#allocation134_spill] sm:$0xff] %v10500_v62  ;;  %v10510_v39 = vpop.f32.mrb[127].mxu0  ;;  %12894 = vst [vmem:[#allocation136_spill] sm:$0xff] %v10515_v2  ;;  %v10521_v7 = vpop.f32.mrb[127].mxu1 }
 0x1e6   : > { %12893 = vst [vmem:[#allocation135_spill] sm:$0xff] %v10510_v39  ;;  %12896 = vst [vmem:[#allocation137_spill] sm:$0xff] %v10521_v7  ;;  %v9134_v7 = vld [vmem:[%s9255_s25 + $0x3c0] sm:$0xff]  }
 0x1e7   : > { %8499 = vmatmul.mubr.msk.bf16.gmra.mrb[232].mxu0 %vm2357_vm2, %v9128_v33  ;;  %8807 = vmatmul.mubr.msk.bf16.gmra.mrb[232].mxu1 %vm2357_vm2, %v9129_v34  ;;  %v9133_v34 = vld [vmem:[%s9255_s25 + $0x888] sm:$0xff]   ;;  %v9139_v33 = vld [vmem:[%s9255_s25 + $0x8a0] sm:$0xff]  }
 0x1e8   : > { %8502 = vmatprep.mubr.msk.bf16.mxu0 %vm2357_vm2, %v9130_v50  ;;  %8810 = vmatprep.mubr.msk.bf16.mxu1 %vm2357_vm2, %v9131_v58 }
 0x1ea   : > { %v10529_v9 = vpop.f32.mrb[128].mxu0  ;;  %v10536_v62 = vpop.f32.mrb[128].mxu1 }
 0x1eb   : > { %12897 = vst [vmem:[#allocation138_spill] sm:$0xff] %v10529_v9  ;;  %v10533_v60 = vpop.f32.mrb[129].mxu0  ;;  %12900 = vst [vmem:[#allocation140_spill] sm:$0xff] %v10536_v62  ;;  %v10546_v58 = vpop.f32.mrb[129].mxu1 }
 0x1ec   : > { %12899 = vst [vmem:[#allocation139_spill] sm:$0xff] %v10533_v60  ;;  %v10540_v40 = vpop.f32.mrb[130].mxu0  ;;  %v10555_v45 = vpop.f32.mrb[130].mxu1  ;;  %v9136_v60 = vld [vmem:[%s9255_s25 + $0x3c8] sm:$0xff]  }
 0x1ed   : > { %12902 = vst [vmem:[#allocation141_spill] sm:$0xff] %v10540_v40  ;;  %v10550_v9 = vpop.f32.mrb[131].mxu0  ;;  %12905 = vst [vmem:[#allocation143_spill] sm:$0xff] %v10555_v45  ;;  %v10561_v62 = vpop.f32.mrb[131].mxu1 }
 0x1ee   : > { %12904 = vst [vmem:[#allocation142_spill] sm:$0xff] %v10550_v9  ;;  %12907 = vst [vmem:[#allocation144_spill] sm:$0xff] %v10561_v62  ;;  %v9138_v62 = vld [vmem:[%s9255_s25 + $0x3d0] sm:$0xff]  }
 0x1ef   : > { %8503 = vmatmul.mubr.msk.bf16.gmra.mrb[236].mxu0 %vm2357_vm2, %v9132_v63  ;;  %8811 = vmatmul.mubr.msk.bf16.gmra.mrb[236].mxu1 %vm2357_vm2, %v9133_v34  ;;  %v9137_v34 = vld [vmem:[%s9255_s25 + $0x898] sm:$0xff]   ;;  %v12917_v63 = vmax.f32 %v9960_v27, %v10251_v5  ;;  %v12921_v27 = vmax.f32 %v9977_v3, %v10272_v15  ;;  %v12925_v15 = vmax.f32 %v9996_v55, %v10296_v26 }
 0x1f0   : > { %8506 = vmatprep.mubr.msk.bf16.mxu0 %vm2357_vm2, %v9134_v7  ;;  %8814 = vmatprep.mubr.msk.bf16.mxu1 %vm2357_vm2, %v9135_v47  ;;  %v12929_v55 = vmax.f32 %v10013_v46, %v10315_v11  ;;  %v12933_v11 = vmax.f32 %v10032_v17, %v10336_v61  ;;  %v12937_v61 = vmax.f32 %v10049_v22, %v10355_v18 }
 0x1f1   : > { %v12942_v18 = vmax.f32 %v10068_v43, %v10376_v21 }
 0x1f2   : > { %v10569_v2 = vpop.f32.mrb[132].mxu0  ;;  %v10576_v40 = vpop.f32.mrb[132].mxu1 }
 0x1f3   : > { %12908 = vst [vmem:[#allocation145_spill] sm:$0xff] %v10569_v2  ;;  %v10573_v50 = vpop.f32.mrb[133].mxu0  ;;  %12911 = vst [vmem:[#allocation147_spill] sm:$0xff] %v10576_v40  ;;  %v10586_v47 = vpop.f32.mrb[133].mxu1 }
 0x1f4   : > { %12910 = vst [vmem:[#allocation146_spill] sm:$0xff] %v10573_v50  ;;  %v10580_v52 = vpop.f32.mrb[134].mxu0  ;;  %v10595_v39 = vpop.f32.mrb[134].mxu1  ;;  %v9140_v50 = vld [vmem:[%s9255_s25 + $0x3d8] sm:$0xff]  }
 0x1f5   : > { %12913 = vst [vmem:[#allocation148_spill] sm:$0xff] %v10580_v52  ;;  %v10590_v2 = vpop.f32.mrb[135].mxu0  ;;  %v10601_v40 = vpop.f32.mrb[135].mxu1 }
 0x1f6   : > { %12915 = vst [vmem:[#allocation149_spill] sm:$0xff] %v10590_v2 }
 0x1f7   : > { %8507 = vmatmul.mubr.msk.bf16.gmra.mrb[240].mxu0 %vm2357_vm2, %v9136_v60  ;;  %8815 = vmatmul.mubr.msk.bf16.gmra.mrb[240].mxu1 %vm2357_vm2, %v9137_v34  ;;  %v12919_v60 = vmax.f32 %v9968_v48, %v10262_v56  ;;  %v12923_v48 = vmax.f32 %v9985_v51, %v10281_v10  ;;  %v9144_v10 = vld [vmem:[%s9255_s25 + $0x3e8] sm:$0xff]  }
 0x1f8   : > { %8510 = vmatprep.mubr.msk.bf16.mxu0 %vm2357_vm2, %v9138_v62  ;;  %8818 = vmatprep.mubr.msk.bf16.mxu1 %vm2357_vm2, %v9139_v33  ;;  %v9142_v62 = vld [vmem:[%s9255_s25 + $0x3e0] sm:$0xff]  }
 0x1fa   : > { %v8404_v45 = vpop.f32.mrb[136].mxu0  ;;  %v10615_v52 = vpop.f32.mrb[136].mxu1 }
 0x1fb   : > { %v10612_v2 = vmax.f32 %v12917_v63, %v8404_v45  ;;  %v3861_v7 = vpop.f32.mrb[137].mxu0  ;;  %12918 = vst [vmem:[#allocation150_spill] sm:$0xff] %v10615_v52  ;;  %v10624_v33 = vpop.f32.mrb[137].mxu1  ;;  %v9143_v63 = vld [vmem:[%s9255_s25 + $0x8b0] sm:$0xff]  }
 0x1fc   : > { %v10620_v9 = vmax.f32 %v12919_v60, %v3861_v7  ;;  %v8405_v34 = vpop.f32.mrb[138].mxu0  ;;  %12920 = vst [vmem:[#allocation151_spill] sm:$0xff] %v10624_v33  ;;  %v10632_v52 = vpop.f32.mrb[138].mxu1  ;;  %v9181_v33 = vld [vmem:[%s9255_s25 + $0x948] sm:$0xff]  }
 0x1fd   : > { %v10629_v45 = vmax.f32 %v12921_v27, %v8405_v34  ;;  %v3864_v5 = vpop.f32.mrb[139].mxu0  ;;  %12922 = vst [vmem:[#allocation152_spill] sm:$0xff] %v10632_v52  ;;  %v10639_v7 = vpop.f32.mrb[139].mxu1 }
 0x1fe   : > { %v10637_v56 = vmax.f32 %v12923_v48, %v3864_v5  ;;  %12924 = vst [vmem:[#allocation153_spill] sm:$0xff] %v10639_v7  ;;  %v9145_v5 = vld [vmem:[%s9255_s25 + $0x8b8] sm:$0xff]   ;;  %v13035_v7 = vld [vmem:[#allocation108_spill] sm:$0xff] }
 0x1ff   : > { %8511 = vmatmul.mubr.msk.bf16.gmra.mrb[244].mxu0 %vm2357_vm2, %v9140_v50  ;;  %8819 = vmatmul.mubr.msk.bf16.gmra.mrb[244].mxu1 %vm2357_vm2, %v9141_v24  ;;  %v12927_v50 = vmax.f32 %v10004_v53, %v10306_v42  ;;  %v12931_v53 = vmax.f32 %v10021_v38, %v10321_v41  ;;  %v9148_v38 = vld [vmem:[%s9255_s25 + $0x3f8] sm:$0xff]  }
 0x200   : > { %8514 = vmatprep.mubr.msk.bf16.mxu0 %vm2357_vm2, %v9142_v62  ;;  %8822 = vmatprep.mubr.msk.bf16.mxu1 %vm2357_vm2, %v9143_v63  ;;  %v9146_v62 = vld [vmem:[%s9255_s25 + $0x3f0] sm:$0xff]  }
 0x202   : > { %v8408_v3 = vpop.f32.mrb[140].mxu0  ;;  %v10651_v34 = vpop.f32.mrb[140].mxu1 }
 0x203   : > { %v10648_v60 = vmax.f32 %v12925_v15, %v8408_v3  ;;  %v3877_v51 = vpop.f32.mrb[141].mxu0  ;;  %12926 = vst [vmem:[#allocation154_spill] sm:$0xff] %v10651_v34  ;;  %v10660_v63 = vpop.f32.mrb[141].mxu1  ;;  %v9147_v3 = vld [vmem:[%s9255_s25 + $0x8c0] sm:$0xff]  }
 0x204   : > { %v10656_v27 = vmax.f32 %v12927_v50, %v3877_v51  ;;  %v8409_v24 = vpop.f32.mrb[142].mxu0  ;;  %12928 = vst [vmem:[#allocation155_spill] sm:$0xff] %v10660_v63  ;;  %v10668_v15 = vpop.f32.mrb[142].mxu1 }
 0x205   : > { %v10665_v26 = vmax.f32 %v12929_v55, %v8409_v24  ;;  %v3880_v48 = vpop.f32.mrb[143].mxu0  ;;  %12930 = vst [vmem:[#allocation156_spill] sm:$0xff] %v10668_v15  ;;  %v10675_v51 = vpop.f32.mrb[143].mxu1  ;;  %v9179_v15 = vld [vmem:[%s9255_s25 + $0x940] sm:$0xff]  }
 0x206   : > { %v10673_v42 = vmax.f32 %v12931_v53, %v3880_v48  ;;  %12932 = vst [vmem:[#allocation157_spill] sm:$0xff] %v10675_v51  ;;  %v9149_v48 = vld [vmem:[%s9255_s25 + $0x8c8] sm:$0xff]  }
 0x207   : > { %8515 = vmatmul.mubr.msk.bf16.gmra.mrb[248].mxu0 %vm2357_vm2, %v9144_v10  ;;  %8823 = vmatmul.mubr.msk.bf16.gmra.mrb[248].mxu1 %vm2357_vm2, %v9145_v5  ;;  %v12935_v10 = vmax.f32 %v10040_v1, %v10346_v54  ;;  %v12939_v1 = vmax.f32 %v10057_v31, %v10361_v8  ;;  %v9152_v8 = vld [vmem:[%s9255_s25 + $0x408] sm:$0xff]  }
 0x208   : > { %8518 = vmatprep.mubr.msk.bf16.mxu0 %vm2357_vm2, %v9146_v62  ;;  %8826 = vmatprep.mubr.msk.bf16.mxu1 %vm2357_vm2, %v9147_v3  ;;  %v9150_v62 = vld [vmem:[%s9255_s25 + $0x400] sm:$0xff]  }
 0x20a   : > { %v8412_v46 = vpop.f32.mrb[144].mxu0  ;;  %v10687_v24 = vpop.f32.mrb[144].mxu1 }
 0x20b   : > { %v10684_v50 = vmax.f32 %v12933_v11, %v8412_v46  ;;  %v3893_v41 = vpop.f32.mrb[145].mxu0  ;;  %12934 = vst [vmem:[#allocation158_spill] sm:$0xff] %v10687_v24  ;;  %v10696_v3 = vpop.f32.mrb[145].mxu1  ;;  %v9151_v46 = vld [vmem:[%s9255_s25 + $0x8d0] sm:$0xff]  }
 0x20c   : > { %v10692_v55 = vmax.f32 %v12935_v10, %v3893_v41  ;;  %v8413_v5 = vpop.f32.mrb[146].mxu0  ;;  %12936 = vst [vmem:[#allocation159_spill] sm:$0xff] %v10696_v3  ;;  %v10704_v11 = vpop.f32.mrb[146].mxu1  ;;  %v9177_v3 = vld [vmem:[%s9255_s25 + $0x938] sm:$0xff]  }
 0x20d   : > { %v10701_v17 = vmax.f32 %v12937_v61, %v8413_v5  ;;  %v3896_v53 = vpop.f32.mrb[147].mxu0  ;;  %12938 = vst [vmem:[#allocation160_spill] sm:$0xff] %v10704_v11  ;;  %v10711_v41 = vpop.f32.mrb[147].mxu1 }
 0x20e   : > { %v10709_v54 = vmax.f32 %v12939_v1, %v3896_v53  ;;  %12941 = vst [vmem:[#allocation162_spill] sm:$0xff] %v10711_v41  ;;  %v9153_v53 = vld [vmem:[%s9255_s25 + $0x8d8] sm:$0xff]   ;;  %v12946_v1 = vld [vmem:[#allocation115_spill] sm:$0xff] }
 0x20f   : > { %8519 = vmatmul.mubr.msk.bf16.gmra.mrb[252].mxu0 %vm2357_vm2, %v9148_v38  ;;  %8827 = vmatmul.mubr.msk.bf16.gmra.mrb[252].mxu1 %vm2357_vm2, %v9149_v48  ;;  %v12944_v38 = vmax.f32 %v10076_v13, %v10386_v23  ;;  %v12947_v21 = vmax.f32 %v10085_v25, %v12946_v1  ;;  %v12950_v13 = vld [vmem:[#allocation101_spill] sm:$0xff]  ;;  %v12951_v23 = vld [vmem:[#allocation116_spill] sm:$0xff] }
 0x210   : > { %12940 = vst [vmem:[#allocation161_spill] sm:$0xff] %v10709_v54  ;;  %8522 = vmatprep.mubr.msk.bf16.mxu0 %vm2357_vm2, %v9150_v62  ;;  %8830 = vmatprep.mubr.msk.bf16.mxu1 %vm2357_vm2, %v9151_v46  ;;  %v9154_v62 = vld [vmem:[%s9255_s25 + $0x410] sm:$0xff]   ;;  %v9187_v54 = vld [vmem:[%s9255_s25 + $0x960] sm:$0xff]  }
 0x212   : > { %v8416_v22 = vpop.f32.mrb[148].mxu0  ;;  %v10723_v5 = vpop.f32.mrb[148].mxu1 }
 0x213   : > { %v10720_v10 = vmax.f32 %v12942_v18, %v8416_v22  ;;  %v3909_v31 = vpop.f32.mrb[149].mxu0  ;;  %12943 = vst [vmem:[#allocation163_spill] sm:$0xff] %v10723_v5  ;;  %v10732_v46 = vpop.f32.mrb[149].mxu1  ;;  %v9155_v18 = vld [vmem:[%s9255_s25 + $0x8e0] sm:$0xff]  }
 0x214   : > { %v10728_v61 = vmax.f32 %v12944_v38, %v3909_v31  ;;  %v8417_v48 = vpop.f32.mrb[150].mxu0  ;;  %12945 = vst [vmem:[#allocation164_spill] sm:$0xff] %v10732_v46  ;;  %v10740_v5 = vpop.f32.mrb[150].mxu1  ;;  %v12952_v31 = vmax.f32 %v12950_v13, %v12951_v23 }
 0x215   : > { %v10737_v43 = vmax.f32 %v12947_v21, %v8417_v48  ;;  %v3912_v22 = vpop.f32.mrb[151].mxu0  ;;  %12949 = vst [vmem:[#allocation165_spill] sm:$0xff] %v10740_v5  ;;  %v10747_v41 = vpop.f32.mrb[151].mxu1  ;;  %v12955_v48 = vld [vmem:[#allocation119_spill] sm:$0xff]  ;;  %v12960_v5 = vld [vmem:[#allocation122_spill] sm:$0xff] }
 0x216   : > { %v10745_v38 = vmax.f32 %v12952_v31, %v3912_v22  ;;  %12954 = vst [vmem:[#allocation116_spill] sm:$0xff] %v10747_v41  ;;  %v12956_v1 = vmax.f32 %v10104_v19, %v12955_v48  ;;  %v9156_v22 = vld [vmem:[%s9255_s25 + $0x418] sm:$0xff]   ;;  %v9157_v41 = vld [vmem:[%s9255_s25 + $0x8e8] sm:$0xff]   ;;  %v12961_v19 = vmax.f32 %v10121_v37, %v12960_v5  ;;  %v12969_v5 = vld [vmem:[#allocation126_spill] sm:$0xff] }
 0x217   : > { %12948 = vst [vmem:[#allocation115_spill] sm:$0xff] %v10737_v43  ;;  %8523 = vmatmul.mubr.msk.bf16.gmra.mrb[0].mxu0 %vm2357_vm2, %v9152_v8  ;;  %8831 = vmatmul.mubr.msk.bf16.gmra.mrb[0].mxu1 %vm2357_vm2, %v9153_v53  ;;  %v12958_v8 = vmax.f32 %v10112_v16, %v10426_v57  ;;  %v12964_v16 = vld [vmem:[#allocation56_spill] sm:$0xff]  ;;  %v12965_v57 = vld [vmem:[#allocation123_spill] sm:$0xff] }
 0x218   : > { %12953 = vst [vmem:[#allocation101_spill] sm:$0xff] %v10745_v38  ;;  %8526 = vmatprep.mubr.msk.bf16.mxu0 %vm2357_vm2, %v9154_v62  ;;  %8834 = vmatprep.mubr.msk.bf16.mxu1 %vm2357_vm2, %v9155_v18  ;;  %v9158_v62 = vld [vmem:[%s9255_s25 + $0x420] sm:$0xff]   ;;  %v9189_v38 = vld [vmem:[%s9255_s25 + $0x968] sm:$0xff]   ;;  %v9191_v43 = vld [vmem:[%s9255_s25 + $0x970] sm:$0xff]  }
 0x21a   : > { %v8420_v25 = vpop.f32.mrb[152].mxu0  ;;  %v10759_v23 = vpop.f32.mrb[152].mxu1 }
 0x21b   : > { %v10756_v21 = vmax.f32 %v12956_v1, %v8420_v25  ;;  %v3925_v13 = vpop.f32.mrb[153].mxu0  ;;  %12957 = vst [vmem:[#allocation119_spill] sm:$0xff] %v10759_v23  ;;  %v10768_v18 = vpop.f32.mrb[153].mxu1  ;;  %v9159_v1 = vld [vmem:[%s9255_s25 + $0x8f0] sm:$0xff]  }
 0x21c   : > { %v10764_v31 = vmax.f32 %v12958_v8, %v3925_v13  ;;  %v8421_v53 = vpop.f32.mrb[154].mxu0  ;;  %12959 = vst [vmem:[#allocation166_spill] sm:$0xff] %v10768_v18  ;;  %v10776_v23 = vpop.f32.mrb[154].mxu1  ;;  %v12966_v13 = vmax.f32 %v12964_v16, %v12965_v57 }
 0x21d   : > { %v10773_v25 = vmax.f32 %v12961_v19, %v8421_v53  ;;  %v3928_v48 = vpop.f32.mrb[155].mxu0  ;;  %12963 = vst [vmem:[#allocation167_spill] sm:$0xff] %v10776_v23  ;;  %v10783_v46 = vpop.f32.mrb[155].mxu1  ;;  %v12970_v53 = vmax.f32 %v10140_v4, %v12969_v5  ;;  %v12974_v23 = vld [vmem:[#allocation129_spill] sm:$0xff] }
 0x21e   : > { %v10781_v8 = vmax.f32 %v12966_v13, %v3928_v48  ;;  %12968 = vst [vmem:[#allocation123_spill] sm:$0xff] %v10783_v46  ;;  %v9160_v48 = vld [vmem:[%s9255_s25 + $0x428] sm:$0xff]   ;;  %v9161_v46 = vld [vmem:[%s9255_s25 + $0x8f8] sm:$0xff]   ;;  %v12975_v4 = vmax.f32 %v10157_v49, %v12974_v23 }
 0x21f   : > { %12962 = vst [vmem:[#allocation122_spill] sm:$0xff] %v10773_v25  ;;  %8527 = vmatmul.mubr.msk.bf16.gmra.mrb[4].mxu0 %vm2357_vm2, %v9156_v22  ;;  %8835 = vmatmul.mubr.msk.bf16.gmra.mrb[4].mxu1 %vm2357_vm2, %v9157_v41  ;;  %v12972_v22 = vmax.f32 %v10148_v29, %v10466_v12  ;;  %v12978_v29 = vld [vmem:[#allocation63_spill] sm:$0xff]  ;;  %v12979_v12 = vld [vmem:[#allocation130_spill] sm:$0xff]  ;;  %v12983_v23 = vld [vmem:[#allocation133_spill] sm:$0xff] }
 0x220   : > { %12967 = vst [vmem:[#allocation56_spill] sm:$0xff] %v10781_v8  ;;  %8530 = vmatprep.mubr.msk.bf16.mxu0 %vm2357_vm2, %v9158_v62  ;;  %8838 = vmatprep.mubr.msk.bf16.mxu1 %vm2357_vm2, %v9159_v1  ;;  %v9162_v62 = vld [vmem:[%s9255_s25 + $0x430] sm:$0xff]   ;;  %v9193_v8 = vld [vmem:[%s9255_s25 + $0x978] sm:$0xff]   ;;  %v9195_v25 = vld [vmem:[%s9255_s25 + $0x980] sm:$0xff]  }
 0x222   : > { %v8424_v37 = vpop.f32.mrb[156].mxu0  ;;  %v10795_v57 = vpop.f32.mrb[156].mxu1 }
 0x223   : > { %v10792_v19 = vmax.f32 %v12970_v53, %v8424_v37  ;;  %v3941_v16 = vpop.f32.mrb[157].mxu0  ;;  %12971 = vst [vmem:[#allocation126_spill] sm:$0xff] %v10795_v57  ;;  %v10804_v1 = vpop.f32.mrb[157].mxu1  ;;  %v9163_v53 = vld [vmem:[%s9255_s25 + $0x900] sm:$0xff]  }
 0x224   : > { %v10800_v13 = vmax.f32 %v12972_v22, %v3941_v16  ;;  %v8425_v41 = vpop.f32.mrb[158].mxu0  ;;  %12973 = vst [vmem:[#allocation168_spill] sm:$0xff] %v10804_v1  ;;  %v10812_v57 = vpop.f32.mrb[158].mxu1  ;;  %v12980_v16 = vmax.f32 %v12978_v29, %v12979_v12 }
 0x225   : > { %v10809_v37 = vmax.f32 %v12975_v4, %v8425_v41  ;;  %v3944_v5 = vpop.f32.mrb[159].mxu0  ;;  %12977 = vst [vmem:[#allocation169_spill] sm:$0xff] %v10812_v57  ;;  %v10819_v18 = vpop.f32.mrb[159].mxu1  ;;  %v12984_v41 = vmax.f32 %v10176_v28, %v12983_v23  ;;  %v12988_v57 = vld [vmem:[#allocation136_spill] sm:$0xff] }
 0x226   : > { %v10817_v22 = vmax.f32 %v12980_v16, %v3944_v5  ;;  %12982 = vst [vmem:[#allocation130_spill] sm:$0xff] %v10819_v18  ;;  %v9164_v5 = vld [vmem:[%s9255_s25 + $0x438] sm:$0xff]   ;;  %v9165_v18 = vld [vmem:[%s9255_s25 + $0x908] sm:$0xff]   ;;  %v12989_v28 = vmax.f32 %v10193_v14, %v12988_v57  ;;  %v12996_v57 = vld [vmem:[#allocation140_spill] sm:$0xff] }
 0x227   : > { %12976 = vst [vmem:[#allocation129_spill] sm:$0xff] %v10809_v37  ;;  %8531 = vmatmul.mubr.msk.bf16.gmra.mrb[8].mxu0 %vm2357_vm2, %v9160_v48  ;;  %8839 = vmatmul.mubr.msk.bf16.gmra.mrb[8].mxu1 %vm2357_vm2, %v9161_v46  ;;  %v12986_v48 = vmax.f32 %v10184_v44, %v10506_v6  ;;  %v12991_v44 = vld [vmem:[#allocation70_spill] sm:$0xff]  ;;  %v12992_v6 = vld [vmem:[#allocation137_spill] sm:$0xff] }
 0x228   : > { %12981 = vst [vmem:[#allocation63_spill] sm:$0xff] %v10817_v22  ;;  %8534 = vmatprep.mubr.msk.bf16.mxu0 %vm2357_vm2, %v9162_v62  ;;  %8842 = vmatprep.mubr.msk.bf16.mxu1 %vm2357_vm2, %v9163_v53  ;;  %v9166_v62 = vld [vmem:[%s9255_s25 + $0x440] sm:$0xff]  }
 0x22a   : > { %v8428_v49 = vpop.f32.mrb[160].mxu0  ;;  %v10831_v12 = vpop.f32.mrb[160].mxu1 }
 0x22b   : > { %v10828_v4 = vmax.f32 %v12984_v41, %v8428_v49  ;;  %v3957_v29 = vpop.f32.mrb[161].mxu0  ;;  %12985 = vst [vmem:[#allocation133_spill] sm:$0xff] %v10831_v12  ;;  %v10840_v53 = vpop.f32.mrb[161].mxu1  ;;  %v9167_v41 = vld [vmem:[%s9255_s25 + $0x910] sm:$0xff]  }
 0x22c   : > { %v10836_v16 = vmax.f32 %v12986_v48, %v3957_v29  ;;  %v8429_v46 = vpop.f32.mrb[162].mxu0  ;;  %12987 = vst [vmem:[#allocation170_spill] sm:$0xff] %v10840_v53  ;;  %v10848_v12 = vpop.f32.mrb[162].mxu1  ;;  %v12993_v29 = vmax.f32 %v12991_v44, %v12992_v6 }
 0x22d   : > { %v10845_v49 = vmax.f32 %v12989_v28, %v8429_v46  ;;  %v3960_v23 = vpop.f32.mrb[163].mxu0  ;;  %12990 = vst [vmem:[#allocation136_spill] sm:$0xff] %v10848_v12  ;;  %v10855_v1 = vpop.f32.mrb[163].mxu1  ;;  %v12997_v46 = vmax.f32 %v10212_v20, %v12996_v57  ;;  %v13001_v12 = vld [vmem:[#allocation143_spill] sm:$0xff] }
 0x22e   : > { %v10853_v48 = vmax.f32 %v12993_v29, %v3960_v23  ;;  %12995 = vst [vmem:[#allocation137_spill] sm:$0xff] %v10855_v1  ;;  %v9168_v23 = vld [vmem:[%s9255_s25 + $0x448] sm:$0xff]   ;;  %v9169_v1 = vld [vmem:[%s9255_s25 + $0x918] sm:$0xff]   ;;  %v13002_v20 = vmax.f32 %v10229_v35, %v13001_v12 }
 0x22f   : > { %8535 = vmatmul.mubr.msk.bf16.gmra.mrb[12].mxu0 %vm2357_vm2, %v9164_v5  ;;  %8843 = vmatmul.mubr.msk.bf16.gmra.mrb[12].mxu1 %vm2357_vm2, %v9165_v18  ;;  %v12999_v5 = vmax.f32 %v10220_v0, %v10546_v58  ;;  %v13004_v0 = vld [vmem:[#allocation77_spill] sm:$0xff]  ;;  %v13005_v58 = vld [vmem:[#allocation144_spill] sm:$0xff]  ;;  %v13009_v12 = vld [vmem:[#allocation147_spill] sm:$0xff] }
 0x230   : > { %12994 = vst [vmem:[#allocation70_spill] sm:$0xff] %v10853_v48  ;;  %8538 = vmatprep.mubr.msk.bf16.mxu0 %vm2357_vm2, %v9166_v62  ;;  %8846 = vmatprep.mubr.msk.bf16.mxu1 %vm2357_vm2, %v9167_v41  ;;  %v9170_v62 = vld [vmem:[%s9255_s25 + $0x450] sm:$0xff]   ;;  %v13129_v48 = vld [vmem:[#allocation141_spill] sm:$0xff] }
 0x232   : > { %v8432_v14 = vpop.f32.mrb[164].mxu0  ;;  %v10867_v6 = vpop.f32.mrb[164].mxu1 }
 0x233   : > { %v10864_v28 = vmax.f32 %v12997_v46, %v8432_v14  ;;  %v3973_v44 = vpop.f32.mrb[165].mxu0  ;;  %12998 = vst [vmem:[#allocation140_spill] sm:$0xff] %v10867_v6  ;;  %v10876_v41 = vpop.f32.mrb[165].mxu1  ;;  %v9171_v46 = vld [vmem:[%s9255_s25 + $0x920] sm:$0xff]  }
 0x234   : > { %v10872_v29 = vmax.f32 %v12999_v5, %v3973_v44  ;;  %v8433_v18 = vpop.f32.mrb[166].mxu0  ;;  %13000 = vst [vmem:[#allocation171_spill] sm:$0xff] %v10876_v41  ;;  %v10884_v6 = vpop.f32.mrb[166].mxu1  ;;  %v13006_v44 = vmax.f32 %v13004_v0, %v13005_v58  ;;  %v13019_v41 = vld [vmem:[#allocation38_spill] sm:$0xff] }
 0x235   : > { %v10881_v14 = vmax.f32 %v13002_v20, %v8433_v18  ;;  %v3976_v57 = vpop.f32.mrb[167].mxu0  ;;  %13003 = vst [vmem:[#allocation143_spill] sm:$0xff] %v10884_v6  ;;  %v10891_v53 = vpop.f32.mrb[167].mxu1  ;;  %v13010_v18 = vmax.f32 %v10248_v32, %v13009_v12  ;;  %v13012_v32 = vmax.f32 %v10267_v59, %v10595_v39 }
 0x236   : > { %v10889_v5 = vmax.f32 %v13006_v44, %v3976_v57  ;;  %13008 = vst [vmem:[#allocation144_spill] sm:$0xff] %v10891_v53  ;;  %v9172_v57 = vld [vmem:[%s9255_s25 + $0x458] sm:$0xff]   ;;  %v9173_v53 = vld [vmem:[%s9255_s25 + $0x928] sm:$0xff]  }
 0x237   : > { %8539 = vmatmul.mubr.msk.bf16.gmra.mrb[16].mxu0 %vm2357_vm2, %v9168_v23  ;;  %8847 = vmatmul.mubr.msk.bf16.gmra.mrb[16].mxu1 %vm2357_vm2, %v9169_v1  ;;  %v13011_v23 = vmax.f32 %v10256_v36, %v10586_v47  ;;  %v9176_v36 = vld [vmem:[%s9255_s25 + $0x468] sm:$0xff]  }
 0x238   : > { %13007 = vst [vmem:[#allocation77_spill] sm:$0xff] %v10889_v5  ;;  %8542 = vmatprep.mubr.msk.bf16.mxu0 %vm2357_vm2, %v9170_v62  ;;  %8850 = vmatprep.mubr.msk.bf16.mxu1 %vm2357_vm2, %v9171_v46  ;;  %v9174_v62 = vld [vmem:[%s9255_s25 + $0x460] sm:$0xff]  }
 0x23a   : > { %v8436_v35 = vpop.f32.mrb[168].mxu0  ;;  %v10903_v58 = vpop.f32.mrb[168].mxu1 }
 0x23b   : > { %v10900_v20 = vmax.f32 %v13010_v18, %v8436_v35  ;;  %v3989_v0 = vpop.f32.mrb[169].mxu0  ;;  %v10914_v6 = vpop.f32.mrb[169].mxu1  ;;  %v9175_v18 = vld [vmem:[%s9255_s25 + $0x930] sm:$0xff]  }
 0x23c   : > { %v10908_v44 = vmax.f32 %v13011_v23, %v3989_v0  ;;  %v8437_v1 = vpop.f32.mrb[170].mxu0  ;;  %v10924_v47 = vpop.f32.mrb[170].mxu1  ;;  %v13013_v0 = vmax.f32 %v10277_v30, %v10601_v40  ;;  %v13014_v30 = vld [vmem:[#allocation39_spill] sm:$0xff] }
 0x23d   : > { %v10919_v35 = vmax.f32 %v13012_v32, %v8437_v1  ;;  %v3992_v12 = vpop.f32.mrb[171].mxu0  ;;  %v10933_v59 = vpop.f32.mrb[171].mxu1  ;;  %v13015_v32 = vld [vmem:[#allocation82_spill] sm:$0xff] }
 0x23e   : > { %v10929_v23 = vmax.f32 %v13013_v0, %v3992_v12  ;;  %v13016_v12 = vmax.f32 %v13014_v30, %v13015_v32  ;;  %v13022_v30 = vld [vmem:[#allocation41_spill] sm:$0xff] }
 0x23f   : > { %8543 = vmatmul.mubr.msk.bf16.gmra.mrb[20].mxu0 %vm2357_vm2, %v9172_v57  ;;  %8851 = vmatmul.mubr.msk.bf16.gmra.mrb[20].mxu1 %vm2357_vm2, %v9173_v53  ;;  %v13018_v57 = vld [vmem:[#allocation40_spill] sm:$0xff] }
 0x240   : > { %8546 = vmatprep.mubr.msk.bf16.mxu0 %vm2357_vm2, %v9174_v62  ;;  %8854 = vmatprep.mubr.msk.bf16.mxu1 %vm2357_vm2, %v9175_v18  ;;  %v13020_v1 = vmax.f32 %v13018_v57, %v13019_v41  ;;  %v9178_v62 = vld [vmem:[%s9255_s25 + $0x470] sm:$0xff]   ;;  %v13027_v57 = vld [vmem:[#allocation85_spill] sm:$0xff] }
 0x241   : > { %v9180_v41 = vld [vmem:[%s9255_s25 + $0x478] sm:$0xff]  }
 0x242   : > { %v8440_v40 = vpop.f32.mrb[172].mxu0  ;;  %v10947_v46 = vpop.f32.mrb[172].mxu1 }
 0x243   : > { %v10944_v0 = vmax.f32 %v13016_v12, %v8440_v40  ;;  %v4005_v39 = vpop.f32.mrb[173].mxu0  ;;  %v10958_v24 = vpop.f32.mrb[173].mxu1  ;;  %v13023_v40 = vld [vmem:[#allocation84_spill] sm:$0xff] }
 0x244   : > { %v10952_v11 = vmax.f32 %v13020_v1, %v4005_v39  ;;  %v8441_v53 = vpop.f32.mrb[174].mxu0  ;;  %v13024_v32 = vmax.f32 %v13022_v30, %v13023_v40  ;;  %v10968_v39 = vpop.f32.mrb[174].mxu1  ;;  %v13026_v1 = vld [vmem:[#allocation42_spill] sm:$0xff] }
 0x245   : > { %13017 = vst [vmem:[#allocation147_spill] sm:$0xff] %v10944_v0  ;;  %v4008_v51 = vpop.f32.mrb[175].mxu0  ;;  %v13028_v63 = vmax.f32 %v13026_v1, %v13027_v57  ;;  %v9185_v0 = vld [vmem:[%s9255_s25 + $0x958] sm:$0xff]  }
 0x246   : > { %13021 = vst [vmem:[#allocation39_spill] sm:$0xff] %v10952_v11  ;;  %v10963_v12 = vmax.f32 %v13024_v32, %v8441_v53  ;;  %v10977_v53 = vpop.f32.mrb[175].mxu1  ;;  %v13031_v32 = vld [vmem:[#allocation107_spill] sm:$0xff] }
 0x247   : > { %v10973_v18 = vmax.f32 %v13028_v63, %v4008_v51  ;;  %8547 = vmatmul.mubr.msk.bf16.gmra.mrb[24].mxu0 %vm2357_vm2, %v9176_v36  ;;  %8855 = vmatmul.mubr.msk.bf16.gmra.mrb[24].mxu1 %vm2357_vm2, %v9177_v3  ;;  %v13030_v51 = vld [vmem:[#allocation43_spill] sm:$0xff]  ;;  %v13034_v36 = vld [vmem:[#allocation44_spill] sm:$0xff] }
 0x248   : > { %13025 = vst [vmem:[#allocation82_spill] sm:$0xff] %v10963_v12  ;;  %8550 = vmatprep.mubr.msk.bf16.mxu0 %vm2357_vm2, %v9178_v62  ;;  %8858 = vmatprep.mubr.msk.bf16.mxu1 %vm2357_vm2, %v9179_v15  ;;  %v13032_v1 = vmax.f32 %v13030_v51, %v13031_v32  ;;  %v13036_v40 = vmax.f32 %v13034_v36, %v13035_v7  ;;  %v9182_v62 = vld [vmem:[%s9255_s25 + $0x480] sm:$0xff]   ;;  %v13038_v51 = vld [vmem:[#allocation45_spill] sm:$0xff]  ;;  %v9183_v12 = vld [vmem:[%s9255_s25 + $0x950] sm:$0xff]  }
 0x249   : > { %13029 = vst [vmem:[#allocation40_spill] sm:$0xff] %v10973_v18  ;;  %v13043_v36 = vld [vmem:[#allocation110_spill] sm:$0xff]  ;;  %v9184_v7 = vld [vmem:[%s9255_s25 + $0x488] sm:$0xff]  }
 0x24a   : > { %v8444_v63 = vpop.f32.mrb[176].mxu0  ;;  %v10991_v34 = vpop.f32.mrb[176].mxu1 }
 0x24b   : > { %v10988_v57 = vmax.f32 %v13032_v1, %v8444_v63  ;;  %v4021_v30 = vpop.f32.mrb[177].mxu0  ;;  %v11002_v18 = vpop.f32.mrb[177].mxu1  ;;  %v13039_v63 = vld [vmem:[#allocation109_spill] sm:$0xff] }
 0x24c   : > { %v10996_v52 = vmax.f32 %v13036_v40, %v4021_v30  ;;  %v8445_v3 = vpop.f32.mrb[178].mxu0  ;;  %v13040_v32 = vmax.f32 %v13038_v51, %v13039_v63  ;;  %v11012_v30 = vpop.f32.mrb[178].mxu1  ;;  %v13042_v40 = vld [vmem:[#allocation46_spill] sm:$0xff] }
 0x24d   : > { %13033 = vst [vmem:[#allocation38_spill] sm:$0xff] %v10988_v57  ;;  %v4024_v57 = vpop.f32.mrb[179].mxu0 }
 0x24e   : > { %13037 = vst [vmem:[#allocation41_spill] sm:$0xff] %v10996_v52  ;;  %v11007_v1 = vmax.f32 %v13040_v32, %v8445_v3  ;;  %v13044_v52 = vmax.f32 %v13042_v40, %v13043_v36  ;;  %v11021_v3 = vpop.f32.mrb[179].mxu1  ;;  %v13048_v32 = vld [vmem:[#allocation111_spill] sm:$0xff] }
 0x24f   : > { %13046 = vst [vmem:[#allocation85_spill] sm:$0xff] %v11021_v3  ;;  %8551 = vmatmul.mubr.msk.bf16.gmra.mrb[28].mxu0 %vm2357_vm2, %v9180_v41  ;;  %8859 = vmatmul.mubr.msk.bf16.gmra.mrb[28].mxu1 %vm2357_vm2, %v9181_v33  ;;  %v13051_v41 = vld [vmem:[#allocation48_spill] sm:$0xff] }
 0x250   : > { %13041 = vst [vmem:[#allocation84_spill] sm:$0xff] %v11007_v1  ;;  %v11017_v15 = vmax.f32 %v13044_v52, %v4024_v57  ;;  %8554 = vmatprep.mubr.msk.bf16.mxu0 %vm2357_vm2, %v9182_v62  ;;  %8862 = vmatprep.mubr.msk.bf16.mxu1 %vm2357_vm2, %v9183_v12  ;;  %v13047_v57 = vld [vmem:[#allocation47_spill] sm:$0xff]  ;;  %v13052_v1 = vld [vmem:[#allocation112_spill] sm:$0xff] }
 0x251   : > { %v13049_v40 = vmax.f32 %v13047_v57, %v13048_v32  ;;  %v13053_v63 = vmax.f32 %v13051_v41, %v13052_v1  ;;  %v9186_v62 = vld [vmem:[%s9255_s25 + $0x490] sm:$0xff]   ;;  %v13055_v57 = vld [vmem:[#allocation49_spill] sm:$0xff]  ;;  %v13061_v41 = vld [vmem:[#allocation114_spill] sm:$0xff] }
 0x252   : > { %13045 = vst [vmem:[#allocation42_spill] sm:$0xff] %v11017_v15  ;;  %v8448_v52 = vpop.f32.mrb[180].mxu0  ;;  %v11035_v15 = vpop.f32.mrb[180].mxu1  ;;  %v9188_v1 = vld [vmem:[%s9255_s25 + $0x498] sm:$0xff]  }
 0x253   : > { %v11032_v36 = vmax.f32 %v13049_v40, %v8448_v52  ;;  %v4037_v51 = vpop.f32.mrb[181].mxu0  ;;  %v11046_v3 = vpop.f32.mrb[181].mxu1  ;;  %v13056_v52 = vld [vmem:[#allocation113_spill] sm:$0xff] }
 0x254   : > { %v11040_v11 = vmax.f32 %v13053_v63, %v4037_v51  ;;  %v8449_v33 = vpop.f32.mrb[182].mxu0  ;;  %v13057_v32 = vmax.f32 %v13055_v57, %v13056_v52  ;;  %v11056_v51 = vpop.f32.mrb[182].mxu1  ;;  %v13060_v63 = vld [vmem:[#allocation50_spill] sm:$0xff] }
 0x255   : > { %13050 = vst [vmem:[#allocation43_spill] sm:$0xff] %v11032_v36  ;;  %v4040_v36 = vpop.f32.mrb[183].mxu0  ;;  %13059 = vst [vmem:[#allocation108_spill] sm:$0xff] %v11056_v51 }
 0x256   : > { %13054 = vst [vmem:[#allocation107_spill] sm:$0xff] %v11040_v11  ;;  %v11051_v40 = vmax.f32 %v13057_v32, %v8449_v33  ;;  %v13062_v11 = vmax.f32 %v13060_v63, %v13061_v41  ;;  %v11065_v33 = vpop.f32.mrb[183].mxu1  ;;  %v13066_v32 = vld [vmem:[#allocation117_spill] sm:$0xff] }
 0x257   : > { %13064 = vst [vmem:[#allocation109_spill] sm:$0xff] %v11065_v33  ;;  %8555 = vmatmul.mubr.msk.bf16.gmra.mrb[32].mxu0 %vm2357_vm2, %v9184_v7  ;;  %8863 = vmatmul.mubr.msk.bf16.gmra.mrb[32].mxu1 %vm2357_vm2, %v9185_v0  ;;  %v13069_v7 = vld [vmem:[#allocation52_spill] sm:$0xff] }
 0x258   : > { %13058 = vst [vmem:[#allocation44_spill] sm:$0xff] %v11051_v40  ;;  %v11061_v12 = vmax.f32 %v13062_v11, %v4040_v36  ;;  %8558 = vmatprep.mubr.msk.bf16.mxu0 %vm2357_vm2, %v9186_v62  ;;  %8866 = vmatprep.mubr.msk.bf16.mxu1 %vm2357_vm2, %v9187_v54  ;;  %v13065_v36 = vld [vmem:[#allocation51_spill] sm:$0xff]  ;;  %v13070_v40 = vld [vmem:[#allocation118_spill] sm:$0xff] }
 0x259   : > { %v13067_v63 = vmax.f32 %v13065_v36, %v13066_v32  ;;  %v13071_v52 = vmax.f32 %v13069_v7, %v13070_v40  ;;  %v9190_v62 = vld [vmem:[%s9255_s25 + $0x4a0] sm:$0xff]   ;;  %v13073_v36 = vld [vmem:[#allocation53_spill] sm:$0xff]  ;;  %v9192_v40 = vld [vmem:[%s9255_s25 + $0x4a8] sm:$0xff]  }
 0x25a   : > { %13063 = vst [vmem:[#allocation45_spill] sm:$0xff] %v11061_v12  ;;  %v8452_v11 = vpop.f32.mrb[184].mxu0  ;;  %v11079_v12 = vpop.f32.mrb[184].mxu1  ;;  %v13079_v7 = vld [vmem:[#allocation121_spill] sm:$0xff] }
 0x25b   : > { %v11076_v41 = vmax.f32 %v13067_v63, %v8452_v11  ;;  %v4053_v57 = vpop.f32.mrb[185].mxu0  ;;  %v11090_v51 = vpop.f32.mrb[185].mxu1  ;;  %v13074_v11 = vld [vmem:[#allocation120_spill] sm:$0xff] }
 0x25c   : > { %v11084_v33 = vmax.f32 %v13071_v52, %v4053_v57  ;;  %v8453_v0 = vpop.f32.mrb[186].mxu0  ;;  %v13075_v32 = vmax.f32 %v13073_v36, %v13074_v11  ;;  %v11100_v57 = vpop.f32.mrb[186].mxu1  ;;  %v13078_v52 = vld [vmem:[#allocation55_spill] sm:$0xff] }
 0x25d   : > { %13068 = vst [vmem:[#allocation46_spill] sm:$0xff] %v11076_v41  ;;  %v4056_v41 = vpop.f32.mrb[187].mxu0  ;;  %13077 = vst [vmem:[#allocation111_spill] sm:$0xff] %v11100_v57 }
 0x25e   : > { %13072 = vst [vmem:[#allocation110_spill] sm:$0xff] %v11084_v33  ;;  %v11095_v63 = vmax.f32 %v13075_v32, %v8453_v0  ;;  %v13080_v33 = vmax.f32 %v13078_v52, %v13079_v7  ;;  %v11109_v0 = vpop.f32.mrb[187].mxu1  ;;  %v13084_v32 = vld [vmem:[#allocation124_spill] sm:$0xff] }
 0x25f   : > { %13082 = vst [vmem:[#allocation112_spill] sm:$0xff] %v11109_v0  ;;  %8559 = vmatmul.mubr.msk.bf16.gmra.mrb[36].mxu0 %vm2357_vm2, %v9188_v1  ;;  %8867 = vmatmul.mubr.msk.bf16.gmra.mrb[36].mxu1 %vm2357_vm2, %v9189_v38  ;;  %v13087_v1 = vld [vmem:[#allocation59_spill] sm:$0xff] }
 0x260   : > { %13076 = vst [vmem:[#allocation47_spill] sm:$0xff] %v11095_v63  ;;  %v11105_v54 = vmax.f32 %v13080_v33, %v4056_v41  ;;  %8562 = vmatprep.mubr.msk.bf16.mxu0 %vm2357_vm2, %v9190_v62  ;;  %8870 = vmatprep.mubr.msk.bf16.mxu1 %vm2357_vm2, %v9191_v43  ;;  %v13083_v41 = vld [vmem:[#allocation58_spill] sm:$0xff]  ;;  %v13088_v63 = vld [vmem:[#allocation125_spill] sm:$0xff]  ;;  %v9194_v62 = vld [vmem:[%s9255_s25 + $0x4b0] sm:$0xff]  }
 0x261   : > { %v13085_v52 = vmax.f32 %v13083_v41, %v13084_v32  ;;  %v13089_v11 = vmax.f32 %v13087_v1, %v13088_v63  ;;  %v13091_v41 = vld [vmem:[#allocation60_spill] sm:$0xff]  ;;  %v9196_v63 = vld [vmem:[%s9255_s25 + $0x4b8] sm:$0xff]  }
 0x262   : > { %13081 = vst [vmem:[#allocation48_spill] sm:$0xff] %v11105_v54  ;;  %v8456_v33 = vpop.f32.mrb[188].mxu0  ;;  %v11123_v54 = vpop.f32.mrb[188].mxu1  ;;  %v13097_v1 = vld [vmem:[#allocation128_spill] sm:$0xff] }
 0x263   : > { %v11120_v7 = vmax.f32 %v13085_v52, %v8456_v33  ;;  %v4069_v36 = vpop.f32.mrb[189].mxu0  ;;  %v11134_v57 = vpop.f32.mrb[189].mxu1  ;;  %v13092_v33 = vld [vmem:[#allocation127_spill] sm:$0xff] }
 0x264   : > { %v11128_v0 = vmax.f32 %v13089_v11, %v4069_v36  ;;  %v8457_v38 = vpop.f32.mrb[190].mxu0  ;;  %v13093_v32 = vmax.f32 %v13091_v41, %v13092_v33  ;;  %v11144_v36 = vpop.f32.mrb[190].mxu1  ;;  %v13096_v11 = vld [vmem:[#allocation62_spill] sm:$0xff] }
 0x265   : > { %13086 = vst [vmem:[#allocation49_spill] sm:$0xff] %v11120_v7  ;;  %v4072_v7 = vpop.f32.mrb[191].mxu0  ;;  %13095 = vst [vmem:[#allocation114_spill] sm:$0xff] %v11144_v36 }
 0x266   : > { %13090 = vst [vmem:[#allocation113_spill] sm:$0xff] %v11128_v0  ;;  %v11139_v52 = vmax.f32 %v13093_v32, %v8457_v38  ;;  %v13098_v0 = vmax.f32 %v13096_v11, %v13097_v1  ;;  %v11153_v38 = vpop.f32.mrb[191].mxu1 }
 0x267   : > { %13100 = vst [vmem:[#allocation117_spill] sm:$0xff] %v11153_v38  ;;  %8563 = vmatmul.mubr.msk.bf16.gmra.mrb[40].mxu0 %vm2357_vm2, %v9192_v40  ;;  %8871 = vmatmul.mubr.msk.bf16.gmra.mrb[40].mxu1 %vm2357_vm2, %v9193_v8  ;;  %v13106_v40 = vld [vmem:[#allocation66_spill] sm:$0xff]  ;;  %v9197_v38 = vld [vmem:[%s9255_s25 + $0x988] sm:$0xff]  }
 0x268   : > { %13094 = vst [vmem:[#allocation50_spill] sm:$0xff] %v11139_v52  ;;  %v11149_v43 = vmax.f32 %v13098_v0, %v4072_v7  ;;  %8566 = vmatprep.mubr.msk.bf16.mxu0 %vm2357_vm2, %v9194_v62  ;;  %8874 = vmatprep.mubr.msk.bf16.mxu1 %vm2357_vm2, %v9195_v25  ;;  %v13101_v0 = vld [vmem:[#allocation65_spill] sm:$0xff]  ;;  %v13102_v7 = vld [vmem:[#allocation131_spill] sm:$0xff]  ;;  %v13107_v52 = vld [vmem:[#allocation132_spill] sm:$0xff] }
 0x269   : > { %v13103_v11 = vmax.f32 %v13101_v0, %v13102_v7  ;;  %v13108_v36 = vmax.f32 %v13106_v40, %v13107_v52  ;;  %v9198_v62 = vld [vmem:[%s9255_s25 + $0x4c0] sm:$0xff]   ;;  %v13115_v40 = vld [vmem:[#allocation135_spill] sm:$0xff]  ;;  %v13123_v52 = vld [vmem:[#allocation73_spill] sm:$0xff] }
 0x26a   : > { %13099 = vst [vmem:[#allocation51_spill] sm:$0xff] %v11149_v43  ;;  %v8460_v32 = vpop.f32.mrb[192].mxu0  ;;  %v11167_v43 = vpop.f32.mrb[192].mxu1  ;;  %v13111_v0 = vld [vmem:[#allocation134_spill] sm:$0xff] }
 0x26b   : > { %v11164_v1 = vmax.f32 %v13103_v11, %v8460_v32  ;;  %v4085_v41 = vpop.f32.mrb[193].mxu0  ;;  %13105 = vst [vmem:[#allocation118_spill] sm:$0xff] %v11167_v43  ;;  %v11178_v22 = vpop.f32.mrb[193].mxu1  ;;  %v13110_v32 = vld [vmem:[#allocation67_spill] sm:$0xff] }
 0x26c   : > { %v11172_v33 = vmax.f32 %v13108_v36, %v4085_v41  ;;  %v8461_v8 = vpop.f32.mrb[194].mxu0  ;;  %v13112_v7 = vmax.f32 %v13110_v32, %v13111_v0  ;;  %v11187_v36 = vpop.f32.mrb[194].mxu1  ;;  %v13114_v41 = vld [vmem:[#allocation69_spill] sm:$0xff]  ;;  %v13119_v0 = vld [vmem:[#allocation72_spill] sm:$0xff] }
 0x26d   : > { %13104 = vst [vmem:[#allocation52_spill] sm:$0xff] %v11164_v1  ;;  %v4088_v1 = vpop.f32.mrb[195].mxu0  ;;  %v11196_v43 = vpop.f32.mrb[195].mxu1 }
 0x26e   : > { %13109 = vst [vmem:[#allocation53_spill] sm:$0xff] %v11172_v33  ;;  %v11183_v11 = vmax.f32 %v13112_v7, %v8461_v8  ;;  %v13116_v33 = vmax.f32 %v13114_v41, %v13115_v40  ;;  %13118 = vst [vmem:[#allocation121_spill] sm:$0xff] %v11196_v43  ;;  %v13120_v7 = vld [vmem:[#allocation138_spill] sm:$0xff]  ;;  %v9199_v40 = vld [vmem:[%s9255_s25 + $0x4c8] sm:$0xff]  }
 0x26f   : > { %8567 = vmatmul.mubr.msk.bf16.gmra.mrb[44].mxu0 %vm2357_vm2, %v9196_v63  ;;  %8875 = vmatmul.mubr.msk.bf16.gmra.mrb[44].mxu1 %vm2357_vm2, %v9197_v38  ;;  %v13121_v41 = vmax.f32 %v13119_v0, %v13120_v7  ;;  %v13128_v43 = vld [vmem:[#allocation74_spill] sm:$0xff] }
 0x270   : > { %13113 = vst [vmem:[#allocation120_spill] sm:$0xff] %v11183_v11  ;;  %v11192_v37 = vmax.f32 %v13116_v33, %v4088_v1  ;;  %8570 = vmatprep.mubr.msk.bf16.mxu0 %vm2357_vm2, %v9198_v62  ;;  %v13130_v0 = vmax.f32 %v13128_v43, %v13129_v48  ;;  %v13146_v48 = vld [vmem:[#allocation81_spill] sm:$0xff] }
 0x272   : > { %13117 = vst [vmem:[#allocation55_spill] sm:$0xff] %v11192_v37  ;;  %v8464_v32 = vpop.f32.mrb[196].mxu0  ;;  %v11209_v25 = vpop.f32.mrb[196].mxu1  ;;  %v13124_v37 = vld [vmem:[#allocation139_spill] sm:$0xff] }
 0x273   : > { %v11206_v33 = vmax.f32 %v13121_v41, %v8464_v32  ;;  %v4101_v1 = vpop.f32.mrb[197].mxu0  ;;  %v13125_v63 = vmax.f32 %v13123_v52, %v13124_v37  ;;  %v11218_v62 = vpop.f32.mrb[197].mxu1  ;;  %v13133_v37 = vld [vmem:[#allocation76_spill] sm:$0xff]  ;;  %v13134_v52 = vld [vmem:[#allocation142_spill] sm:$0xff] }
 0x274   : > { %v8465_v8 = vpop.f32.mrb[198].mxu0  ;;  %13127 = vst [vmem:[#allocation59_spill] sm:$0xff] %v11218_v62 }
 0x275   : > { %13122 = vst [vmem:[#allocation58_spill] sm:$0xff] %v11206_v33  ;;  %v11214_v11 = vmax.f32 %v13125_v63, %v4101_v1  ;;  %v11223_v32 = vmax.f32 %v13130_v0, %v8465_v8  ;;  %v4104_v7 = vpop.f32.mrb[199].mxu0  ;;  %v11227_v33 = vpop.f32.mrb[198].mxu1  ;;  %v13135_v1 = vmax.f32 %v13133_v37, %v13134_v52  ;;  %v13138_v8 = vld [vmem:[#allocation79_spill] sm:$0xff]  ;;  %v13139_v0 = vld [vmem:[#allocation145_spill] sm:$0xff]  ;;  %v13143_v52 = vld [vmem:[#allocation146_spill] sm:$0xff] }
 0x276   : > { %13132 = vst [vmem:[#allocation60_spill] sm:$0xff] %v11227_v33  ;;  %v13140_v41 = vmax.f32 %v13138_v8, %v13139_v0 }
 0x277   : > { %13126 = vst [vmem:[#allocation124_spill] sm:$0xff] %v11214_v11  ;;  %13131 = vst [vmem:[#allocation125_spill] sm:$0xff] %v11223_v32  ;;  %v11232_v63 = vmax.f32 %v13135_v1, %v4104_v7  ;;  %v11236_v11 = vpop.f32.mrb[199].mxu1  ;;  %8571 = vmatmul.mubr.msk.bf16.gmra.mrb[48].mxu0 %vm2357_vm2, %v9199_v40  ;;  %v13142_v7 = vld [vmem:[#allocation80_spill] sm:$0xff] }
 0x278   : > { %13137 = vst [vmem:[#allocation62_spill] sm:$0xff] %v11236_v11  ;;  %v13144_v1 = vmax.f32 %v13142_v7, %v13143_v52  ;;  %v13147_v11 = vld [vmem:[#allocation148_spill] sm:$0xff]  ;;  %v13150_v7 = vld [vmem:[#allocation83_spill] sm:$0xff] }
 0x279   : > { %13136 = vst [vmem:[#allocation127_spill] sm:$0xff] %v11232_v63  ;;  %v13148_v5 = vmax.f32 %v13146_v48, %v13147_v11 }
 0x27a   : > { %v8468_v43 = vpop.f32.mrb[200].mxu0  ;;  %v11246_v37 = vpop.f32.mrb[200].mxu1 }
 0x27b   : > { %v11244_v32 = vmax.f32 %v13140_v41, %v8468_v43  ;;  %v4117_v62 = vpop.f32.mrb[201].mxu0  ;;  %v11255_v33 = vpop.f32.mrb[201].mxu1 }
 0x27c   : > { %v11251_v38 = vmax.f32 %v13144_v1, %v4117_v62  ;;  %v8469_v63 = vpop.f32.mrb[202].mxu0  ;;  %v11264_v0 = vpop.f32.mrb[202].mxu1  ;;  %v13151_v62 = vld [vmem:[#allocation149_spill] sm:$0xff] }
 0x27d   : > { %13141 = vst [vmem:[#allocation128_spill] sm:$0xff] %v11244_v32  ;;  %v11260_v8 = vmax.f32 %v13148_v5, %v8469_v63  ;;  %v4120_v41 = vpop.f32.mrb[203].mxu0  ;;  %v13152_v52 = vmax.f32 %v13150_v7, %v13151_v62  ;;  %v13154_v63 = vmax.f32 %v10612_v2, %v10903_v58  ;;  %v13156_v5 = vmax.f32 %v10629_v45, %v10924_v47 }
 0x27e   : > { %13145 = vst [vmem:[#allocation65_spill] sm:$0xff] %v11251_v38  ;;  %v11273_v38 = vpop.f32.mrb[203].mxu1  ;;  %v13158_v58 = vmax.f32 %v10637_v56, %v10933_v59  ;;  %v13162_v47 = vmax.f32 %v10656_v27, %v10958_v24  ;;  %v13164_v59 = vmax.f32 %v10665_v26, %v10968_v39  ;;  %v13168_v24 = vmax.f32 %v10684_v50, %v10991_v34  ;;  %v13177_v50 = vld [vmem:[#allocation161_spill] sm:$0xff] }
 0x27f   : > { %13149 = vst [vmem:[#allocation131_spill] sm:$0xff] %v11260_v8  ;;  %v11269_v1 = vmax.f32 %v13152_v52, %v4120_v41  ;;  %v13155_v41 = vmax.f32 %v10620_v9, %v10914_v6  ;;  %v13160_v6 = vmax.f32 %v10648_v60, %v10947_v46  ;;  %v13166_v46 = vmax.f32 %v10673_v42, %v10977_v53 }
 0x280   : > { %v13171_v39 = vmax.f32 %v10692_v55, %v11002_v18  ;;  %v13174_v53 = vmax.f32 %v10701_v17, %v11012_v30  ;;  %v13182_v18 = vmax.f32 %v10720_v10, %v11035_v15  ;;  %v13185_v30 = vmax.f32 %v10728_v61, %v11046_v3  ;;  %v13193_v15 = vld [vmem:[#allocation101_spill] sm:$0xff] }
 0x281   : > { %13153 = vst [vmem:[#allocation66_spill] sm:$0xff] %v11269_v1  ;;  %v13198_v3 = vmax.f32 %v10756_v21, %v11079_v12  ;;  %v13209_v12 = vld [vmem:[#allocation56_spill] sm:$0xff] }
 0x282   : > { %v8472_v11 = vpop.f32.mrb[204].mxu0  ;;  %v11282_v8 = vpop.f32.mrb[204].mxu1 }
 0x283   : > { %v11280_v48 = vmax.f32 %v13154_v63, %v8472_v11  ;;  %v4133_v43 = vpop.f32.mrb[205].mxu0  ;;  %v11289_v52 = vpop.f32.mrb[205].mxu1 }
 0x284   : > { %v11287_v7 = vmax.f32 %v13155_v41, %v4133_v43  ;;  %v8473_v62 = vpop.f32.mrb[206].mxu0  ;;  %v11296_v2 = vpop.f32.mrb[206].mxu1 }
 0x285   : > { %v11294_v40 = vmax.f32 %v13156_v5, %v8473_v62  ;;  %v4136_v1 = vpop.f32.mrb[207].mxu0  ;;  %v11303_v63 = vpop.f32.mrb[207].mxu1 }
 0x286   : > { %v11301_v11 = vmax.f32 %v13158_v58, %v4136_v1 }
 0x287   : > { %13157 = vst [vmem:[#allocation132_spill] sm:$0xff] %v11294_v40 }
 0x288   : > { %13159 = vst [vmem:[#allocation67_spill] sm:$0xff] %v11301_v11  ;;  %v13280_v11 = vld [vmem:[#allocation40_spill] sm:$0xff] }
 0x28a   : > { %v8476_v9 = vpop.f32.mrb[208].mxu0  ;;  %v11310_v45 = vpop.f32.mrb[208].mxu1 }
 0x28b   : > { %v11308_v43 = vmax.f32 %v13160_v6, %v8476_v9  ;;  %v4149_v41 = vpop.f32.mrb[209].mxu0  ;;  %v11317_v56 = vpop.f32.mrb[209].mxu1 }
 0x28c   : > { %v11315_v5 = vmax.f32 %v13162_v47, %v4149_v41  ;;  %v8477_v62 = vpop.f32.mrb[210].mxu0  ;;  %v11324_v60 = vpop.f32.mrb[210].mxu1 }
 0x28d   : > { %13161 = vst [vmem:[#allocation134_spill] sm:$0xff] %v11308_v43  ;;  %v11322_v1 = vmax.f32 %v13164_v59, %v8477_v62  ;;  %v4152_v58 = vpop.f32.mrb[211].mxu0  ;;  %v11331_v6 = vpop.f32.mrb[211].mxu1 }
 0x28e   : > { %13163 = vst [vmem:[#allocation69_spill] sm:$0xff] %v11315_v5  ;;  %v11329_v9 = vmax.f32 %v13166_v46, %v4152_v58 }
 0x28f   : > { %13165 = vst [vmem:[#allocation135_spill] sm:$0xff] %v11322_v1  ;;  %v13289_v1 = vld [vmem:[#allocation151_spill] sm:$0xff] }
 0x290   : > { %13167 = vst [vmem:[#allocation72_spill] sm:$0xff] %v11329_v9 }
 0x292   : > { %v8480_v27 = vpop.f32.mrb[212].mxu0  ;;  %v11338_v26 = vpop.f32.mrb[212].mxu1 }
 0x293   : > { %v11336_v41 = vmax.f32 %v13168_v24, %v8480_v27  ;;  %v4165_v47 = vpop.f32.mrb[213].mxu0  ;;  %13170 = vst [vmem:[#allocation73_spill] sm:$0xff] %v11338_v26  ;;  %v11345_v42 = vpop.f32.mrb[213].mxu1  ;;  %v13178_v27 = vld [vmem:[#allocation85_spill] sm:$0xff] }
 0x294   : > { %v11343_v62 = vmax.f32 %v13171_v39, %v4165_v47  ;;  %v8481_v59 = vpop.f32.mrb[214].mxu0  ;;  %13173 = vst [vmem:[#allocation74_spill] sm:$0xff] %v11345_v42  ;;  %v11352_v34 = vpop.f32.mrb[214].mxu1  ;;  %v13179_v24 = vmax.f32 %v13177_v50, %v13178_v27  ;;  %v13189_v27 = vld [vmem:[#allocation108_spill] sm:$0xff] }
 0x295   : > { %13169 = vst [vmem:[#allocation138_spill] sm:$0xff] %v11336_v41  ;;  %v11350_v58 = vmax.f32 %v13174_v53, %v8481_v59  ;;  %v4168_v46 = vpop.f32.mrb[215].mxu0  ;;  %13176 = vst [vmem:[#allocation76_spill] sm:$0xff] %v11352_v34  ;;  %v11359_v26 = vpop.f32.mrb[215].mxu1  ;;  %v13307_v41 = vld [vmem:[#allocation154_spill] sm:$0xff] }
 0x296   : > { %13172 = vst [vmem:[#allocation139_spill] sm:$0xff] %v11343_v62  ;;  %v11357_v32 = vmax.f32 %v13179_v24, %v4168_v46  ;;  %13181 = vst [vmem:[#allocation79_spill] sm:$0xff] %v11359_v26  ;;  %v13188_v46 = vld [vmem:[#allocation115_spill] sm:$0xff] }
 0x297   : > { %13175 = vst [vmem:[#allocation141_spill] sm:$0xff] %v11350_v58  ;;  %v13190_v24 = vmax.f32 %v13188_v46, %v13189_v27 }
 0x298   : > { %13180 = vst [vmem:[#allocation142_spill] sm:$0xff] %v11357_v32 }
 0x29a   : > { %v8484_v55 = vpop.f32.mrb[216].mxu0  ;;  %v11366_v17 = vpop.f32.mrb[216].mxu1 }
 0x29b   : > { %v11364_v47 = vmax.f32 %v13182_v18, %v8484_v55  ;;  %v4181_v39 = vpop.f32.mrb[217].mxu0  ;;  %13184 = vst [vmem:[#allocation80_spill] sm:$0xff] %v11366_v17  ;;  %v11373_v50 = vpop.f32.mrb[217].mxu1  ;;  %v13194_v55 = vld [vmem:[#allocation109_spill] sm:$0xff] }
 0x29c   : > { %v11371_v59 = vmax.f32 %v13185_v30, %v4181_v39  ;;  %v8485_v53 = vpop.f32.mrb[218].mxu0  ;;  %13187 = vst [vmem:[#allocation81_spill] sm:$0xff] %v11373_v50  ;;  %v11380_v10 = vpop.f32.mrb[218].mxu1  ;;  %v13195_v18 = vmax.f32 %v13193_v15, %v13194_v55  ;;  %v13205_v55 = vld [vmem:[#allocation111_spill] sm:$0xff] }
 0x29d   : > { %13183 = vst [vmem:[#allocation145_spill] sm:$0xff] %v11364_v47  ;;  %v11378_v26 = vmax.f32 %v13190_v24, %v8485_v53  ;;  %v4184_v34 = vpop.f32.mrb[219].mxu0  ;;  %13192 = vst [vmem:[#allocation83_spill] sm:$0xff] %v11380_v10  ;;  %v11387_v42 = vpop.f32.mrb[219].mxu1  ;;  %v13201_v53 = vmax.f32 %v10764_v31, %v11090_v51  ;;  %v13214_v51 = vmax.f32 %v10792_v19, %v11123_v54  ;;  %v13225_v54 = vld [vmem:[#allocation63_spill] sm:$0xff]  ;;  %v13327_v47 = vld [vmem:[#allocation158_spill] sm:$0xff] }
 0x29e   : > { %13186 = vst [vmem:[#allocation146_spill] sm:$0xff] %v11371_v59  ;;  %v11385_v17 = vmax.f32 %v13195_v18, %v4184_v34  ;;  %13197 = vst [vmem:[#allocation161_spill] sm:$0xff] %v11387_v42  ;;  %v13204_v34 = vld [vmem:[#allocation122_spill] sm:$0xff] }
 0x29f   : > { %13191 = vst [vmem:[#allocation148_spill] sm:$0xff] %v11378_v26  ;;  %v13206_v18 = vmax.f32 %v13204_v34, %v13205_v55 }
 0x2a0   : > { %13196 = vst [vmem:[#allocation149_spill] sm:$0xff] %v11385_v17  ;;  %v13344_v17 = vld [vmem:[#allocation48_spill] sm:$0xff] }
 0x2a2   : > { %v8488_v61 = vpop.f32.mrb[220].mxu0  ;;  %v11394_v46 = vpop.f32.mrb[220].mxu1 }
 0x2a3   : > { %v11392_v39 = vmax.f32 %v13198_v3, %v8488_v61  ;;  %v4197_v30 = vpop.f32.mrb[221].mxu0  ;;  %13200 = vst [vmem:[#allocation115_spill] sm:$0xff] %v11394_v46  ;;  %v11401_v15 = vpop.f32.mrb[221].mxu1  ;;  %v13210_v61 = vld [vmem:[#allocation112_spill] sm:$0xff] }
 0x2a4   : > { %v11399_v27 = vmax.f32 %v13201_v53, %v4197_v30  ;;  %v8489_v24 = vpop.f32.mrb[222].mxu0  ;;  %13203 = vst [vmem:[#allocation101_spill] sm:$0xff] %v11401_v15  ;;  %v11408_v21 = vpop.f32.mrb[222].mxu1  ;;  %v13211_v3 = vmax.f32 %v13209_v12, %v13210_v61  ;;  %v13221_v61 = vld [vmem:[#allocation114_spill] sm:$0xff] }
 0x2a5   : > { %13199 = vst [vmem:[#allocation85_spill] sm:$0xff] %v11392_v39  ;;  %v11406_v42 = vmax.f32 %v13206_v18, %v8489_v24  ;;  %v4200_v10 = vpop.f32.mrb[223].mxu0  ;;  %13208 = vst [vmem:[#allocation122_spill] sm:$0xff] %v11408_v21  ;;  %v11415_v50 = vpop.f32.mrb[223].mxu1  ;;  %v13217_v24 = vmax.f32 %v10800_v13, %v11134_v57  ;;  %v13230_v57 = vld [vmem:[#allocation118_spill] sm:$0xff] }
 0x2a6   : > { %13202 = vst [vmem:[#allocation108_spill] sm:$0xff] %v11399_v27  ;;  %v11413_v46 = vmax.f32 %v13211_v3, %v4200_v10  ;;  %13213 = vst [vmem:[#allocation56_spill] sm:$0xff] %v11415_v50  ;;  %v13220_v10 = vld [vmem:[#allocation129_spill] sm:$0xff]  ;;  %v13357_v27 = vld [vmem:[#allocation80_spill] sm:$0xff] }
 0x2a7   : > { %13207 = vst [vmem:[#allocation109_spill] sm:$0xff] %v11406_v42  ;;  %v13222_v3 = vmax.f32 %v13220_v10, %v13221_v61 }
 0x2a8   : > { %13212 = vst [vmem:[#allocation111_spill] sm:$0xff] %v11413_v46  ;;  %v13369_v46 = vld [vmem:[#allocation51_spill] sm:$0xff] }
 0x2aa   : > { %v8492_v31 = vpop.f32.mrb[224].mxu0  ;;  %v11422_v34 = vpop.f32.mrb[224].mxu1 }
 0x2ab   : > { %v11420_v30 = vmax.f32 %v13214_v51, %v8492_v31  ;;  %v4213_v53 = vpop.f32.mrb[225].mxu0  ;;  %13216 = vst [vmem:[#allocation172_spill] sm:$0xff] %v11422_v34  ;;  %v11429_v12 = vpop.f32.mrb[225].mxu1  ;;  %v13226_v31 = vld [vmem:[#allocation117_spill] sm:$0xff] }
 0x2ac   : > { %v11427_v55 = vmax.f32 %v13217_v24, %v4213_v53  ;;  %v8493_v18 = vpop.f32.mrb[226].mxu0  ;;  %13219 = vst [vmem:[#allocation174_spill] sm:$0xff] %v11429_v12  ;;  %v11436_v19 = vpop.f32.mrb[226].mxu1  ;;  %v13227_v51 = vmax.f32 %v13225_v54, %v13226_v31  ;;  %v13231_v53 = vmax.f32 %v10828_v4, %v13230_v57  ;;  %v13241_v57 = vld [vmem:[#allocation121_spill] sm:$0xff] }
 0x2ad   : > { %13215 = vst [vmem:[#allocation112_spill] sm:$0xff] %v11420_v30  ;;  %v11434_v50 = vmax.f32 %v13222_v3, %v8493_v18  ;;  %v4216_v21 = vpop.f32.mrb[227].mxu0  ;;  %13224 = vst [vmem:[#allocation114_spill] sm:$0xff] %v11436_v19  ;;  %v11443_v15 = vpop.f32.mrb[227].mxu1  ;;  %v13234_v18 = vmax.f32 %v10836_v16, %v11178_v22  ;;  %v13245_v16 = vmax.f32 %v10864_v28, %v11209_v25  ;;  %v13256_v25 = vld [vmem:[#allocation77_spill] sm:$0xff] }
 0x2ae   : > { %13218 = vst [vmem:[#allocation173_spill] sm:$0xff] %v11427_v55  ;;  %v11441_v34 = vmax.f32 %v13227_v51, %v4216_v21  ;;  %13229 = vst [vmem:[#allocation117_spill] sm:$0xff] %v11443_v15  ;;  %v13237_v21 = vmax.f32 %v10845_v49, %v11187_v36  ;;  %v13248_v36 = vld [vmem:[#allocation59_spill] sm:$0xff]  ;;  %v13426_v19 = vld [vmem:[#allocation133_spill] sm:$0xff] }
 0x2af   : > { %13223 = vst [vmem:[#allocation129_spill] sm:$0xff] %v11434_v50  ;;  %v13382_v55 = vld [vmem:[#allocation115_spill] sm:$0xff] }
 0x2b0   : > { %13228 = vst [vmem:[#allocation63_spill] sm:$0xff] %v11441_v34  ;;  %v13394_v34 = vld [vmem:[#allocation55_spill] sm:$0xff] }
 0x2b2   : > { %v8496_v13 = vpop.f32.mrb[228].mxu0  ;;  %v11450_v10 = vpop.f32.mrb[228].mxu1 }
 0x2b3   : > { %v11448_v24 = vmax.f32 %v13231_v53, %v8496_v13  ;;  %v4229_v12 = vpop.f32.mrb[229].mxu0  ;;  %13233 = vst [vmem:[#allocation175_spill] sm:$0xff] %v11450_v10  ;;  %v11457_v54 = vpop.f32.mrb[229].mxu1  ;;  %v13240_v13 = vld [vmem:[#allocation70_spill] sm:$0xff] }
 0x2b4   : > { %v11455_v61 = vmax.f32 %v13234_v18, %v4229_v12  ;;  %v8497_v3 = vpop.f32.mrb[230].mxu0  ;;  %13236 = vst [vmem:[#allocation177_spill] sm:$0xff] %v11457_v54  ;;  %v11464_v4 = vpop.f32.mrb[230].mxu1  ;;  %v13242_v53 = vmax.f32 %v13240_v13, %v13241_v57 }
 0x2b5   : > { %13232 = vst [vmem:[#allocation118_spill] sm:$0xff] %v11448_v24  ;;  %v11462_v31 = vmax.f32 %v13237_v21, %v8497_v3  ;;  %v4232_v51 = vpop.f32.mrb[231].mxu0  ;;  %13239 = vst [vmem:[#allocation179_spill] sm:$0xff] %v11464_v4  ;;  %v11471_v15 = vpop.f32.mrb[231].mxu1  ;;  %v13249_v3 = vmax.f32 %v10872_v29, %v13248_v36 }
 0x2b6   : > { %13235 = vst [vmem:[#allocation176_spill] sm:$0xff] %v11455_v61  ;;  %v11469_v10 = vmax.f32 %v13242_v53, %v4232_v51  ;;  %13244 = vst [vmem:[#allocation121_spill] sm:$0xff] %v11471_v15  ;;  %v13252_v51 = vld [vmem:[#allocation60_spill] sm:$0xff] }
 0x2b7   : > { %13238 = vst [vmem:[#allocation178_spill] sm:$0xff] %v11462_v31  ;;  %v13253_v57 = vmax.f32 %v10881_v14, %v13252_v51  ;;  %v13407_v61 = vld [vmem:[#allocation172_spill] sm:$0xff] }
 0x2b8   : > { %13243 = vst [vmem:[#allocation70_spill] sm:$0xff] %v11469_v10 }
 0x2ba   : > { %v8500_v22 = vpop.f32.mrb[232].mxu0  ;;  %v11478_v49 = vpop.f32.mrb[232].mxu1 }
 0x2bb   : > { %v11476_v12 = vmax.f32 %v13245_v16, %v8500_v22  ;;  %v4245_v18 = vpop.f32.mrb[233].mxu0  ;;  %13247 = vst [vmem:[#allocation181_spill] sm:$0xff] %v11478_v49  ;;  %v11485_v13 = vpop.f32.mrb[233].mxu1  ;;  %v13257_v22 = vld [vmem:[#allocation62_spill] sm:$0xff] }
 0x2bc   : > { %v11483_v21 = vmax.f32 %v13249_v3, %v4245_v18  ;;  %v8501_v4 = vpop.f32.mrb[234].mxu0  ;;  %13251 = vst [vmem:[#allocation182_spill] sm:$0xff] %v11485_v13  ;;  %v11492_v28 = vpop.f32.mrb[234].mxu1  ;;  %v13258_v16 = vmax.f32 %v13256_v25, %v13257_v22  ;;  %v13261_v18 = vmax.f32 %v10900_v20, %v11246_v37  ;;  %v13266_v22 = vmax.f32 %v10919_v35, %v11264_v0  ;;  %v13286_v13 = vld [vmem:[#allocation88_spill] sm:$0xff] }
 0x2bd   : > { %13246 = vst [vmem:[#allocation180_spill] sm:$0xff] %v11476_v12  ;;  %v11490_v53 = vmax.f32 %v13253_v57, %v8501_v4  ;;  %v4248_v15 = vpop.f32.mrb[235].mxu0  ;;  %13255 = vst [vmem:[#allocation183_spill] sm:$0xff] %v11492_v28  ;;  %v11499_v54 = vpop.f32.mrb[235].mxu1  ;;  %v13263_v4 = vmax.f32 %v10908_v44, %v11255_v33  ;;  %v13269_v44 = vmax.f32 %v10929_v23, %v11273_v38  ;;  %v13418_v12 = vld [vmem:[#allocation127_spill] sm:$0xff] }
 0x2be   : > { %13250 = vst [vmem:[#allocation59_spill] sm:$0xff] %v11483_v21  ;;  %v11497_v49 = vmax.f32 %v13258_v16, %v4248_v15  ;;  %13260 = vst [vmem:[#allocation62_spill] sm:$0xff] %v11499_v54  ;;  %v13274_v15 = vld [vmem:[#allocation39_spill] sm:$0xff] }
 0x2bf   : > { %13254 = vst [vmem:[#allocation60_spill] sm:$0xff] %v11490_v53 }
 0x2c0   : > { %13259 = vst [vmem:[#allocation77_spill] sm:$0xff] %v11497_v49  ;;  %v11930_v49 = vld [vmem:[%s12437_s3] ss:$0 sm:$0xff] }
 0x2c2   : > { %v8504_v29 = vpop.f32.mrb[236].mxu0  ;;  %v11506_v14 = vpop.f32.mrb[236].mxu1 }
 0x2c3   : > { %v11504_v36 = vmax.f32 %v13261_v18, %v8504_v29  ;;  %v4261_v3 = vpop.f32.mrb[237].mxu0  ;;  %v11515_v25 = vpop.f32.mrb[237].mxu1  ;;  %v13277_v18 = vld [vmem:[#allocation82_spill] sm:$0xff] }
 0x2c4   : > { %v11511_v51 = vmax.f32 %v13263_v4, %v4261_v3  ;;  %v8505_v57 = vpop.f32.mrb[238].mxu0  ;;  %13265 = vst [vmem:[#allocation186_spill] sm:$0xff] %v11515_v25  ;;  %v11524_v29 = vpop.f32.mrb[238].mxu1  ;;  %v13272_v4 = vld [vmem:[#allocation147_spill] sm:$0xff] }
 0x2c5   : > { %13262 = vst [vmem:[#allocation184_spill] sm:$0xff] %v11504_v36  ;;  %v11520_v20 = vmax.f32 %v13266_v22, %v8505_v57  ;;  %v4264_v37 = vpop.f32.mrb[239].mxu0  ;;  %13268 = vst [vmem:[#allocation188_spill] sm:$0xff] %v11524_v29  ;;  %v11533_v3 = vpop.f32.mrb[239].mxu1  ;;  %v13442_v36 = vld [vmem:[#allocation66_spill] sm:$0xff] }
 0x2c6   : > { %13264 = vst [vmem:[#allocation185_spill] sm:$0xff] %v11511_v51  ;;  %v11529_v33 = vmax.f32 %v13269_v44, %v4264_v37  ;;  %13271 = vst [vmem:[#allocation190_spill] sm:$0xff] %v11533_v3  ;;  %v13276_v37 = vld [vmem:[#allocation2_spill] sm:$0xff] }
 0x2c7   : > { %13267 = vst [vmem:[#allocation187_spill] sm:$0xff] %v11520_v20 }
 0x2c8   : > { %13270 = vst [vmem:[#allocation189_spill] sm:$0xff] %v11529_v33 }
 0x2ca   : > { %v8508_v0 = vpop.f32.mrb[240].mxu0  ;;  %v11538_v16 = vpop.f32.mrb[240].mxu1 }
 0x2cb   : > { %v5938_v57 = vmax.f32 %v13272_v4, %v8508_v0  ;;  %v4277_v22 = vpop.f32.mrb[241].mxu0  ;;  %13273 = vst [vmem:[#allocation147_spill] sm:$0xff] %v11538_v16  ;;  %v11543_v38 = vpop.f32.mrb[241].mxu1  ;;  %v13279_v4 = vld [vmem:[#allocation3_spill] sm:$0xff]  ;;  %v13282_v16 = vld [vmem:[#allocation86_spill] sm:$0xff] }
 0x2cc   : > { %v5936_v54 = vmax.f32 %v13274_v15, %v4277_v22  ;;  %v8509_v28 = vpop.f32.mrb[242].mxu0  ;;  %13275 = vst [vmem:[#allocation39_spill] sm:$0xff] %v11543_v38  ;;  %v11549_v0 = vpop.f32.mrb[242].mxu1  ;;  %v13285_v38 = vld [vmem:[#allocation5_spill] sm:$0xff] }
 0x2cd   : > { %v6006_v44 = vmax.f32 %v5938_v57, %v13276_v37  ;;  %v5939_v29 = vmax.f32 %v13277_v18, %v8509_v28  ;;  %v4280_v40 = vpop.f32.mrb[243].mxu0  ;;  %13278 = vst [vmem:[#allocation2_spill] sm:$0xff] %v11549_v0  ;;  %v11555_v23 = vpop.f32.mrb[243].mxu1  ;;  %v13283_v57 = vld [vmem:[#allocation4_spill] sm:$0xff]  ;;  %v13284_v18 = vld [vmem:[#allocation87_spill] sm:$0xff] }
 0x2ce   : > { %v6004_v3 = vmax.f32 %v5936_v54, %v13279_v4  ;;  %v5937_v15 = vmax.f32 %v13280_v11, %v4280_v40  ;;  %13281 = vst [vmem:[#allocation82_spill] sm:$0xff] %v11555_v23  ;;  %v13287_v4 = vld [vmem:[#allocation150_spill] sm:$0xff]  ;;  %v13288_v11 = vld [vmem:[#allocation89_spill] sm:$0xff] }
 0x2cf   : > { %v6074_v43 = vmax.f32 %v6006_v44, %v13282_v16  ;;  %v6007_v37 = vmax.f32 %v5939_v29, %v13283_v57  ;;  %v13290_v16 = vld [vmem:[#allocation38_spill] sm:$0xff] }
 0x2d0   : > { %v6072_v35 = vmax.f32 %v6004_v3, %v13284_v18  ;;  %v6005_v5 = vmax.f32 %v5937_v15, %v13285_v38  ;;  %v13292_v38 = vld [vmem:[#allocation152_spill] sm:$0xff] }
 0x2d1   : > { %v6075_v54 = vmax.f32 %v6007_v37, %v13286_v13  ;;  %v11565_v40 = vmax.f32 %v6074_v43, %v13287_v4  ;;  %v13293_v13 = vld [vmem:[#allocation41_spill] sm:$0xff]  ;;  %v13296_v4 = vld [vmem:[#allocation6_spill] sm:$0xff] }
 0x2d2   : > { %v6073_v22 = vmax.f32 %v6005_v5, %v13288_v11  ;;  %v8512_v0 = vpop.f32.mrb[244].mxu0  ;;  %v11569_v25 = vmax.f32 %v6072_v35, %v13289_v1  ;;  %v11572_v57 = vpop.f32.mrb[244].mxu1  ;;  %v13295_v35 = vld [vmem:[#allocation153_spill] sm:$0xff]  ;;  %v13299_v5 = vld [vmem:[#allocation7_spill] sm:$0xff] }
 0x2d3   : > { %v5942_v29 = vmax.f32 %v13290_v16, %v8512_v0  ;;  %v4293_v44 = vpop.f32.mrb[245].mxu0  ;;  %13291 = vst [vmem:[#allocation3_spill] sm:$0xff] %v11572_v57  ;;  %v11577_v15 = vmax.f32 %v6075_v54, %v13292_v38  ;;  %v11582_v18 = vpop.f32.mrb[245].mxu1  ;;  %v13297_v16 = vld [vmem:[#allocation84_spill] sm:$0xff]  ;;  %v13300_v57 = vld [vmem:[#allocation42_spill] sm:$0xff] }
 0x2d4   : > { %v5940_v43 = vmax.f32 %v13293_v13, %v4293_v44  ;;  %v8513_v37 = vpop.f32.mrb[246].mxu0  ;;  %13294 = vst [vmem:[#allocation40_spill] sm:$0xff] %v11582_v18  ;;  %v11587_v0 = vmax.f32 %v6073_v22, %v13295_v35  ;;  %v11593_v38 = vpop.f32.mrb[246].mxu1  ;;  %v13304_v13 = vld [vmem:[#allocation91_spill] sm:$0xff]  ;;  %v13464_v20 = vmax.f32 %v11569_v25, %v11289_v52 }
 0x2d5   : > { %v6010_v11 = vmax.f32 %v5942_v29, %v13296_v4  ;;  %v5943_v28 = vmax.f32 %v13297_v16, %v8513_v37  ;;  %v4296_v54 = vpop.f32.mrb[247].mxu0  ;;  %13298 = vst [vmem:[#allocation86_spill] sm:$0xff] %v11593_v38  ;;  %v11601_v35 = vpop.f32.mrb[247].mxu1  ;;  %v13302_v37 = vld [vmem:[#allocation90_spill] sm:$0xff]  ;;  %v13303_v16 = vld [vmem:[#allocation8_spill] sm:$0xff]  ;;  %v13308_v38 = vld [vmem:[#allocation93_spill] sm:$0xff]  ;;  %v13469_v52 = vmax.f32 %v11577_v15, %v11296_v2 }
 0x2d6   : > { %v6008_v3 = vmax.f32 %v5940_v43, %v13299_v5  ;;  %v5941_v1 = vmax.f32 %v13300_v57, %v4296_v54  ;;  %13301 = vst [vmem:[#allocation4_spill] sm:$0xff] %v11601_v35  ;;  %v13305_v43 = vld [vmem:[#allocation9_spill] sm:$0xff]  ;;  %v13306_v57 = vld [vmem:[#allocation92_spill] sm:$0xff]  ;;  %v13309_v29 = vld [vmem:[#allocation155_spill] sm:$0xff] }
 0x2d7   : > { %v6078_v4 = vmax.f32 %v6010_v11, %v13302_v37  ;;  %v6011_v44 = vmax.f32 %v5943_v28, %v13303_v16  ;;  %v13310_v11 = vld [vmem:[#allocation43_spill] sm:$0xff] }
 0x2d8   : > { %v6076_v62 = vmax.f32 %v6008_v3, %v13304_v13  ;;  %v6009_v5 = vmax.f32 %v5941_v1, %v13305_v43  ;;  %v13312_v1 = vld [vmem:[#allocation156_spill] sm:$0xff] }
 0x2d9   : > { %v6079_v54 = vmax.f32 %v6011_v44, %v13306_v57  ;;  %v11613_v22 = vmax.f32 %v6078_v4, %v13307_v41  ;;  %v13313_v44 = vld [vmem:[#allocation107_spill] sm:$0xff] }
 0x2da   : > { %v6077_v58 = vmax.f32 %v6009_v5, %v13308_v38  ;;  %v8516_v23 = vpop.f32.mrb[248].mxu0  ;;  %v11617_v9 = vmax.f32 %v6076_v62, %v13309_v29  ;;  %v11620_v16 = vpop.f32.mrb[248].mxu1  ;;  %v13316_v5 = vld [vmem:[#allocation10_spill] sm:$0xff]  ;;  %v13319_v38 = vld [vmem:[#allocation11_spill] sm:$0xff] }
 0x2db   : > { %v5946_v28 = vmax.f32 %v13310_v11, %v8516_v23  ;;  %v4309_v37 = vpop.f32.mrb[249].mxu0  ;;  %13311 = vst [vmem:[#allocation87_spill] sm:$0xff] %v11620_v16  ;;  %v11625_v13 = vmax.f32 %v6079_v54, %v13312_v1  ;;  %v11630_v43 = vpop.f32.mrb[249].mxu1  ;;  %v13315_v23 = vld [vmem:[#allocation157_spill] sm:$0xff]  ;;  %v13317_v11 = vld [vmem:[#allocation44_spill] sm:$0xff] }
 0x2dc   : > { %v5944_v41 = vmax.f32 %v13313_v44, %v4309_v37  ;;  %v8517_v4 = vpop.f32.mrb[250].mxu0  ;;  %13314 = vst [vmem:[#allocation5_spill] sm:$0xff] %v11630_v43  ;;  %v11635_v29 = vmax.f32 %v6077_v58, %v13315_v23  ;;  %v11641_v1 = vpop.f32.mrb[250].mxu1  ;;  %v13320_v16 = vld [vmem:[#allocation45_spill] sm:$0xff]  ;;  %v13324_v44 = vld [vmem:[#allocation95_spill] sm:$0xff] }
 0x2dd   : > { %v6014_v57 = vmax.f32 %v5946_v28, %v13316_v5  ;;  %v5947_v18 = vmax.f32 %v13317_v11, %v8517_v4  ;;  %v4312_v54 = vpop.f32.mrb[251].mxu0  ;;  %13318 = vst [vmem:[#allocation88_spill] sm:$0xff] %v11641_v1  ;;  %v11649_v23 = vpop.f32.mrb[251].mxu1  ;;  %v13322_v4 = vld [vmem:[#allocation94_spill] sm:$0xff]  ;;  %v13323_v11 = vld [vmem:[#allocation12_spill] sm:$0xff]  ;;  %v13328_v1 = vld [vmem:[#allocation97_spill] sm:$0xff] }
 0x2de   : > { %v6012_v3 = vmax.f32 %v5944_v41, %v13319_v38  ;;  %v5945_v62 = vmax.f32 %v13320_v16, %v4312_v54  ;;  %13321 = vst [vmem:[#allocation150_spill] sm:$0xff] %v11649_v23  ;;  %v13325_v41 = vld [vmem:[#allocation13_spill] sm:$0xff]  ;;  %v13326_v16 = vld [vmem:[#allocation96_spill] sm:$0xff]  ;;  %v13329_v28 = vld [vmem:[#allocation159_spill] sm:$0xff] }
 0x2df   : > { %v6082_v5 = vmax.f32 %v6014_v57, %v13322_v4  ;;  %v6015_v37 = vmax.f32 %v5947_v18, %v13323_v11  ;;  %v13330_v57 = vld [vmem:[#allocation46_spill] sm:$0xff]  ;;  %v13332_v43 = vld [vmem:[#allocation73_spill] sm:$0xff] }
 0x2e0   : > { %v6080_v59 = vmax.f32 %v6012_v3, %v13324_v44  ;;  %v6013_v38 = vmax.f32 %v5945_v62, %v13325_v41  ;;  %v13333_v62 = vld [vmem:[#allocation160_spill] sm:$0xff]  ;;  %v13340_v3 = vld [vmem:[#allocation47_spill] sm:$0xff] }
 0x2e1   : > { %v6083_v54 = vmax.f32 %v6015_v37, %v13326_v16  ;;  %v11661_v58 = vmax.f32 %v6082_v5, %v13327_v47  ;;  %v13335_v37 = vld [vmem:[#allocation110_spill] sm:$0xff] }
 0x2e2   : > { %v6081_v26 = vmax.f32 %v6013_v38, %v13328_v1  ;;  %v8520_v35 = vpop.f32.mrb[252].mxu0  ;;  %v11665_v32 = vmax.f32 %v6080_v59, %v13329_v28  ;;  %v11668_v11 = vpop.f32.mrb[252].mxu1  ;;  %v13338_v28 = vld [vmem:[#allocation162_spill] sm:$0xff]  ;;  %v13349_v1 = vld [vmem:[#allocation99_spill] sm:$0xff] }
 0x2e3   : > { %v5950_v18 = vmax.f32 %v13330_v57, %v8520_v35  ;;  %v4325_v4 = vpop.f32.mrb[253].mxu0  ;;  %13331 = vst [vmem:[#allocation89_spill] sm:$0xff] %v11668_v11  ;;  %v11673_v44 = vmax.f32 %v6083_v54, %v13333_v62  ;;  %v11678_v41 = vpop.f32.mrb[253].mxu1  ;;  %v13339_v16 = vld [vmem:[#allocation14_spill] sm:$0xff]  ;;  %v13343_v11 = vld [vmem:[#allocation15_spill] sm:$0xff] }
 0x2e4   : > { %v5948_v47 = vmax.f32 %v13335_v37, %v4325_v4  ;;  %v8521_v5 = vpop.f32.mrb[254].mxu0  ;;  %13336 = vst [vmem:[#allocation38_spill] sm:$0xff] %v11678_v41  ;;  %v11683_v38 = vmax.f32 %v6081_v26, %v13338_v28  ;;  %v11689_v62 = vpop.f32.mrb[254].mxu1  ;;  %v13348_v4 = vld [vmem:[#allocation16_spill] sm:$0xff] }
 0x2e5   : > { %13334 = vst [vmem:[#allocation151_spill] sm:$0xff] %v11673_v44  ;;  %v6018_v57 = vmax.f32 %v5950_v18, %v13339_v16  ;;  %v5951_v23 = vmax.f32 %v13340_v3, %v8521_v5  ;;  %v4328_v54 = vpop.f32.mrb[255].mxu0  ;;  %13341 = vst [vmem:[#allocation152_spill] sm:$0xff] %v11689_v62  ;;  %v11697_v28 = vpop.f32.mrb[255].mxu1  ;;  %v13347_v5 = vld [vmem:[#allocation98_spill] sm:$0xff]  ;;  %v13352_v44 = vld [vmem:[#allocation163_spill] sm:$0xff] }
 0x2e6   : > { %v6016_v39 = vmax.f32 %v5948_v47, %v13343_v11  ;;  %v5949_v35 = vmax.f32 %v13344_v17, %v4328_v54  ;;  %13345 = vst [vmem:[#allocation41_spill] sm:$0xff] %v11697_v28  ;;  %v13350_v11 = vld [vmem:[#allocation17_spill] sm:$0xff]  ;;  %v13351_v17 = vld [vmem:[#allocation100_spill] sm:$0xff]  ;;  %v13353_v62 = vld [vmem:[#allocation102_spill] sm:$0xff] }
 0x2e7   : > { %v6086_v16 = vmax.f32 %v6018_v57, %v13347_v5  ;;  %v6019_v41 = vmax.f32 %v5951_v23, %v13348_v4  ;;  %v13354_v3 = vld [vmem:[#allocation164_spill] sm:$0xff]  ;;  %v13355_v57 = vld [vmem:[#allocation49_spill] sm:$0xff] }
 0x2e8   : > { %v6084_v37 = vmax.f32 %v6016_v39, %v13349_v1  ;;  %v6017_v47 = vmax.f32 %v5949_v35, %v13350_v11  ;;  %v13358_v1 = vld [vmem:[#allocation165_spill] sm:$0xff]  ;;  %v13365_v39 = vld [vmem:[#allocation50_spill] sm:$0xff] }
 0x2e9   : > { %v6087_v54 = vmax.f32 %v6019_v41, %v13351_v17  ;;  %v11709_v26 = vmax.f32 %v6086_v16, %v13352_v44  ;;  %v13360_v41 = vld [vmem:[#allocation113_spill] sm:$0xff]  ;;  %v13364_v17 = vld [vmem:[#allocation18_spill] sm:$0xff] }
 0x2ea   : > { %v6085_v42 = vmax.f32 %v6017_v47, %v13353_v62  ;;  %v8524_v59 = vpop.f32.mrb[0].mxu0  ;;  %v11713_v18 = vmax.f32 %v6084_v37, %v13354_v3  ;;  %v11716_v5 = vpop.f32.mrb[0].mxu1  ;;  %v13363_v3 = vld [vmem:[#allocation116_spill] sm:$0xff]  ;;  %v13374_v62 = vld [vmem:[#allocation54_spill] sm:$0xff] }
 0x2eb   : > { %v5954_v23 = vmax.f32 %v13355_v57, %v8524_v59  ;;  %v4341_v4 = vpop.f32.mrb[1].mxu0  ;;  %13356 = vst [vmem:[#allocation153_spill] sm:$0xff] %v11716_v5  ;;  %v11721_v35 = vmax.f32 %v6087_v54, %v13358_v1  ;;  %v11726_v11 = vpop.f32.mrb[1].mxu1  ;;  %v13368_v5 = vld [vmem:[#allocation20_spill] sm:$0xff] }
 0x2ec   : > { %v5952_v44 = vmax.f32 %v13360_v41, %v4341_v4  ;;  %v8525_v16 = vpop.f32.mrb[2].mxu0  ;;  %13361 = vst [vmem:[#allocation84_spill] sm:$0xff] %v11726_v11  ;;  %v11731_v47 = vmax.f32 %v6085_v42, %v13363_v3  ;;  %v11737_v1 = vpop.f32.mrb[2].mxu1  ;;  %v13373_v4 = vld [vmem:[#allocation21_spill] sm:$0xff] }
 0x2ed   : > { %13359 = vst [vmem:[#allocation6_spill] sm:$0xff] %v11721_v35  ;;  %v6022_v57 = vmax.f32 %v5954_v23, %v13364_v17  ;;  %v5955_v28 = vmax.f32 %v13365_v39, %v8525_v16  ;;  %v4344_v54 = vpop.f32.mrb[3].mxu0  ;;  %13366 = vst [vmem:[#allocation7_spill] sm:$0xff] %v11737_v1  ;;  %v11745_v3 = vpop.f32.mrb[3].mxu1  ;;  %v13372_v16 = vld [vmem:[#allocation103_spill] sm:$0xff]  ;;  %v13378_v1 = vld [vmem:[#allocation57_spill] sm:$0xff] }
 0x2ee   : > { %v6020_v30 = vmax.f32 %v5952_v44, %v13368_v5  ;;  %v5953_v59 = vmax.f32 %v13369_v46, %v4344_v54  ;;  %13370 = vst [vmem:[#allocation42_spill] sm:$0xff] %v11745_v3  ;;  %v13375_v5 = vld [vmem:[#allocation22_spill] sm:$0xff]  ;;  %v13376_v46 = vld [vmem:[#allocation19_spill] sm:$0xff] }
 0x2ef   : > { %v6090_v17 = vmax.f32 %v6022_v57, %v13372_v16  ;;  %v6023_v11 = vmax.f32 %v5955_v28, %v13373_v4  ;;  %v13377_v35 = vld [vmem:[#allocation119_spill] sm:$0xff]  ;;  %v13379_v39 = vld [vmem:[#allocation166_spill] sm:$0xff]  ;;  %v13380_v57 = vld [vmem:[#allocation52_spill] sm:$0xff] }
 0x2f0   : > { %v6088_v41 = vmax.f32 %v6020_v30, %v13374_v62  ;;  %v6021_v44 = vmax.f32 %v5953_v59, %v13375_v5  ;;  %v13383_v62 = vld [vmem:[#allocation167_spill] sm:$0xff]  ;;  %v13390_v30 = vld [vmem:[#allocation120_spill] sm:$0xff] }
 0x2f1   : > { %v6091_v54 = vmax.f32 %v6023_v11, %v13376_v46  ;;  %v11757_v42 = vmax.f32 %v6090_v17, %v13377_v35  ;;  %v13385_v11 = vld [vmem:[#allocation53_spill] sm:$0xff]  ;;  %v13389_v46 = vld [vmem:[#allocation23_spill] sm:$0xff] }
 0x2f2   : > { %v6089_v50 = vmax.f32 %v6021_v44, %v13378_v1  ;;  %v8528_v37 = vpop.f32.mrb[4].mxu0  ;;  %v11761_v23 = vmax.f32 %v6088_v41, %v13379_v39  ;;  %v11764_v16 = vpop.f32.mrb[4].mxu1  ;;  %v13388_v39 = vld [vmem:[#allocation123_spill] sm:$0xff]  ;;  %v13399_v1 = vld [vmem:[#allocation61_spill] sm:$0xff] }
 0x2f3   : > { %v5958_v28 = vmax.f32 %v13380_v57, %v8528_v37  ;;  %v4357_v4 = vpop.f32.mrb[5].mxu0  ;;  %13381 = vst [vmem:[#allocation90_spill] sm:$0xff] %v11764_v16  ;;  %v11769_v59 = vmax.f32 %v6091_v54, %v13383_v62  ;;  %v11774_v5 = vpop.f32.mrb[5].mxu1  ;;  %v13393_v16 = vld [vmem:[#allocation25_spill] sm:$0xff] }
 0x2f4   : > { %v5956_v35 = vmax.f32 %v13385_v11, %v4357_v4  ;;  %v8529_v17 = vpop.f32.mrb[6].mxu0  ;;  %13386 = vst [vmem:[#allocation91_spill] sm:$0xff] %v11774_v5  ;;  %v11779_v44 = vmax.f32 %v6089_v50, %v13388_v39  ;;  %v11785_v62 = vpop.f32.mrb[6].mxu1  ;;  %v13398_v4 = vld [vmem:[#allocation26_spill] sm:$0xff] }
 0x2f5   : > { %13384 = vst [vmem:[#allocation8_spill] sm:$0xff] %v11769_v59  ;;  %v6026_v57 = vmax.f32 %v5958_v28, %v13389_v46  ;;  %v5959_v3 = vmax.f32 %v13390_v30, %v8529_v17  ;;  %v4360_v54 = vpop.f32.mrb[7].mxu0  ;;  %13391 = vst [vmem:[#allocation9_spill] sm:$0xff] %v11785_v62  ;;  %v11793_v39 = vpop.f32.mrb[7].mxu1  ;;  %v13397_v17 = vld [vmem:[#allocation104_spill] sm:$0xff]  ;;  %v13402_v59 = vld [vmem:[#allocation126_spill] sm:$0xff] }
 0x2f6   : > { %v6024_v24 = vmax.f32 %v5956_v35, %v13393_v16  ;;  %v5957_v37 = vmax.f32 %v13394_v34, %v4360_v54  ;;  %13395 = vst [vmem:[#allocation92_spill] sm:$0xff] %v11793_v39  ;;  %v13400_v16 = vld [vmem:[#allocation27_spill] sm:$0xff]  ;;  %v13401_v34 = vld [vmem:[#allocation24_spill] sm:$0xff] }
 0x2f7   : > { %v6094_v46 = vmax.f32 %v6026_v57, %v13397_v17  ;;  %v6027_v5 = vmax.f32 %v5959_v3, %v13398_v4  ;;  %v13403_v62 = vld [vmem:[#allocation64_spill] sm:$0xff]  ;;  %v13405_v57 = vld [vmem:[#allocation58_spill] sm:$0xff] }
 0x2f8   : > { %v6092_v11 = vmax.f32 %v6024_v24, %v13399_v1  ;;  %v6025_v35 = vmax.f32 %v5957_v37, %v13400_v16  ;;  %v13404_v30 = vld [vmem:[#allocation168_spill] sm:$0xff]  ;;  %v13408_v1 = vld [vmem:[#allocation169_spill] sm:$0xff] }
 0x2f9   : > { %v6095_v54 = vmax.f32 %v6027_v5, %v13401_v34  ;;  %v11805_v50 = vmax.f32 %v6094_v46, %v13402_v59  ;;  %v13410_v5 = vld [vmem:[#allocation124_spill] sm:$0xff]  ;;  %v13415_v24 = vld [vmem:[#allocation125_spill] sm:$0xff] }
 0x2fa   : > { %v6093_v31 = vmax.f32 %v6025_v35, %v13403_v62  ;;  %v8532_v41 = vpop.f32.mrb[8].mxu0  ;;  %v11809_v28 = vmax.f32 %v6092_v11, %v13404_v30  ;;  %v11812_v17 = vpop.f32.mrb[8].mxu1  ;;  %v13412_v11 = vld [vmem:[#allocation174_spill] sm:$0xff]  ;;  %v13414_v34 = vld [vmem:[#allocation28_spill] sm:$0xff] }
 0x2fb   : > { %v5962_v3 = vmax.f32 %v13405_v57, %v8532_v41  ;;  %v4373_v4 = vpop.f32.mrb[9].mxu0  ;;  %13406 = vst [vmem:[#allocation154_spill] sm:$0xff] %v11812_v17  ;;  %v11817_v37 = vmax.f32 %v6095_v54, %v13408_v1  ;;  %v11822_v16 = vpop.f32.mrb[9].mxu1  ;;  %v13413_v30 = vld [vmem:[#allocation130_spill] sm:$0xff] }
 0x2fc   : > { %v5960_v59 = vmax.f32 %v13410_v5, %v4373_v4  ;;  %v8533_v46 = vpop.f32.mrb[10].mxu0  ;;  %13411 = vst [vmem:[#allocation155_spill] sm:$0xff] %v11822_v16  ;;  %v11827_v35 = vmax.f32 %v6093_v31, %v13413_v30  ;;  %v11833_v1 = vpop.f32.mrb[10].mxu1  ;;  %v13417_v62 = vld [vmem:[#allocation30_spill] sm:$0xff]  ;;  %v13422_v4 = vld [vmem:[#allocation31_spill] sm:$0xff]  ;;  %v13423_v5 = vld [vmem:[#allocation68_spill] sm:$0xff] }
 0x2fd   : > { %13409 = vst [vmem:[#allocation93_spill] sm:$0xff] %v11817_v37  ;;  %v6030_v57 = vmax.f32 %v5962_v3, %v13414_v34  ;;  %v5963_v39 = vmax.f32 %v13415_v24, %v8533_v46  ;;  %v4376_v54 = vpop.f32.mrb[11].mxu0  ;;  %13416 = vst [vmem:[#allocation43_spill] sm:$0xff] %v11833_v1  ;;  %v11841_v30 = vpop.f32.mrb[11].mxu1  ;;  %v13421_v46 = vld [vmem:[#allocation105_spill] sm:$0xff]  ;;  %v13427_v1 = vld [vmem:[#allocation71_spill] sm:$0xff] }
 0x2fe   : > { %v6028_v17 = vmax.f32 %v5960_v59, %v13417_v62  ;;  %v5961_v41 = vmax.f32 %v13418_v12, %v4376_v54  ;;  %13419 = vst [vmem:[#allocation156_spill] sm:$0xff] %v11841_v30  ;;  %v13424_v59 = vld [vmem:[#allocation32_spill] sm:$0xff]  ;;  %v13425_v12 = vld [vmem:[#allocation29_spill] sm:$0xff]  ;;  %v13428_v24 = vld [vmem:[#allocation170_spill] sm:$0xff] }
 0x2ff   : > { %v6098_v34 = vmax.f32 %v6030_v57, %v13421_v46  ;;  %v6031_v16 = vmax.f32 %v5963_v39, %v13422_v4  ;;  %v13429_v57 = vld [vmem:[#allocation128_spill] sm:$0xff] }
 0x300   : > { %v6096_v10 = vmax.f32 %v6028_v17, %v13423_v5  ;;  %v6029_v62 = vmax.f32 %v5961_v41, %v13424_v59  ;;  %v13431_v17 = vld [vmem:[#allocation175_spill] sm:$0xff]  ;;  %v13432_v5 = vld [vmem:[#allocation136_spill] sm:$0xff] }
 0x301   : > { %v6099_v54 = vmax.f32 %v6031_v16, %v13425_v12  ;;  %v11853_v31 = vmax.f32 %v6098_v34, %v13426_v19  ;;  %v13433_v19 = vld [vmem:[#allocation65_spill] sm:$0xff]  ;;  %v13438_v41 = vld [vmem:[#allocation131_spill] sm:$0xff] }
 0x302   : > { %v6097_v53 = vmax.f32 %v6029_v62, %v13427_v1  ;;  %v8536_v37 = vpop.f32.mrb[12].mxu0  ;;  %v11857_v3 = vmax.f32 %v6096_v10, %v13428_v24  ;;  %v11860_v46 = vpop.f32.mrb[12].mxu1  ;;  %v13435_v24 = vld [vmem:[#allocation177_spill] sm:$0xff]  ;;  %v13447_v1 = vld [vmem:[#allocation75_spill] sm:$0xff] }
 0x303   : > { %v5966_v39 = vmax.f32 %v13429_v57, %v8536_v37  ;;  %v4389_v4 = vpop.f32.mrb[13].mxu0  ;;  %13430 = vst [vmem:[#allocation107_spill] sm:$0xff] %v11860_v46  ;;  %v11865_v16 = vmax.f32 %v6099_v54, %v13432_v5  ;;  %v11870_v10 = vpop.f32.mrb[13].mxu1  ;;  %v13436_v62 = vld [vmem:[#allocation137_spill] sm:$0xff]  ;;  %v13441_v46 = vld [vmem:[#allocation35_spill] sm:$0xff] }
 0x304   : > { %v5964_v34 = vmax.f32 %v13433_v19, %v4389_v4  ;;  %v8537_v59 = vpop.f32.mrb[14].mxu0  ;;  %13434 = vst [vmem:[#allocation157_spill] sm:$0xff] %v11870_v10  ;;  %v11875_v12 = vmax.f32 %v6097_v53, %v13436_v62  ;;  %v13437_v57 = vld [vmem:[#allocation33_spill] sm:$0xff]  ;;  %v11881_v5 = vpop.f32.mrb[14].mxu1  ;;  %v13446_v10 = vld [vmem:[#allocation36_spill] sm:$0xff] }
 0x305   : > { %v6034_v21 = vmax.f32 %v5966_v39, %v13437_v57  ;;  %v5967_v30 = vmax.f32 %v13438_v41, %v8537_v59  ;;  %v4392_v54 = vpop.f32.mrb[15].mxu0  ;;  %13439 = vst [vmem:[#allocation10_spill] sm:$0xff] %v11881_v5  ;;  %v11890_v62 = vpop.f32.mrb[15].mxu1  ;;  %v13444_v41 = vld [vmem:[#allocation121_spill] sm:$0xff]  ;;  %v13445_v57 = vld [vmem:[#allocation106_spill] sm:$0xff]  ;;  %v13451_v39 = vld [vmem:[#allocation140_spill] sm:$0xff] }
 0x306   : > { %v6032_v37 = vmax.f32 %v5964_v34, %v13441_v46  ;;  %v5965_v53 = vmax.f32 %v13442_v36, %v4392_v54  ;;  %13443 = vst [vmem:[#allocation44_spill] sm:$0xff] %v11890_v62  ;;  %v13448_v46 = vld [vmem:[#allocation37_spill] sm:$0xff]  ;;  %v13449_v36 = vld [vmem:[#allocation34_spill] sm:$0xff] }
 0x307   : > { %v6102_v4 = vmax.f32 %v6034_v21, %v13445_v57  ;;  %v6035_v51 = vmax.f32 %v5967_v30, %v13446_v10  ;;  %v13452_v21 = vld [vmem:[#allocation78_spill] sm:$0xff] }
 0x308   : > { %v6100_v19 = vmax.f32 %v6032_v37, %v13447_v1  ;;  %v6033_v34 = vmax.f32 %v5965_v53, %v13448_v46  ;;  %v11914_v10 = vld [vmem:[%s12436_s2] ss:$0 sm:$0xff]  ;;  %v13453_v1 = vld [vmem:[#allocation171_spill] sm:$0xff]  ;;  %v13454_v37 = vmax.f32 %v11280_v48, %v11506_v14 }
 0x309   : > { %v6103_v54 = vmax.f32 %v6035_v51, %v13449_v36  ;;  %v11908_v59 = vmax.f32 %v6102_v4, %v13451_v39  ;;  %v13456_v36 = vld [vmem:[#allocation143_spill] sm:$0xff]  ;;  %v13459_v48 = vld [vmem:[#allocation186_spill] sm:$0xff] }
 0x30a   : > { %v6101_v57 = vmax.f32 %v6033_v34, %v13452_v21  ;;  %v8540_v30 = vpop.f32.mrb[16].mxu0  ;;  %v11917_v51 = vmax.f32 %v6100_v19, %v13453_v1  ;;  %v8848_v46 = vpop.f32.mrb[16].mxu1  ;;  %v13458_v19 = vmax.f32 %v11565_v40, %v11282_v8  ;;  %v13460_v14 = vmax.f32 %v11287_v7, %v13459_v48  ;;  %v13465_v8 = vld [vmem:[#allocation132_spill] sm:$0xff] }
 0x30b   : > { %v6242_v53 = vmax.f32 %v13454_v37, %v8540_v30  ;;  %v4405_v4 = vpop.f32.mrb[17].mxu0  ;;  %v11925_v21 = vmax.f32 %v6103_v54, %v13456_v36  ;;  %v5637_v37 = vpop.f32.mrb[17].mxu1  ;;  %v13462_v54 = vld [vmem:[#allocation144_spill] sm:$0xff] }
 0x30c   : > { %v6278_v1 = vmax.f32 %v13458_v19, %v8848_v46  ;;  %v6240_v30 = vmax.f32 %v13460_v14, %v4405_v4  ;;  %v8541_v62 = vpop.f32.mrb[18].mxu0  ;;  %v11941_v36 = vmax.f32 %v6101_v57, %v13462_v54  ;;  %v6276_v39 = vmax.f32 %v13464_v20, %v5637_v37  ;;  %v13466_v7 = vld [vmem:[#allocation188_spill] sm:$0xff]  ;;  %v8849_v4 = vpop.f32.mrb[18].mxu1  ;;  %v13470_v20 = vld [vmem:[#allocation67_spill] sm:$0xff]  ;;  %v13471_v37 = vld [vmem:[#allocation190_spill] sm:$0xff] }
 0x30d   : > { %13457 = vst [vmem:[#allocation11_spill] sm:$0xff] %v11925_v21  ;;  %v6317_v5 = vadd.f32 %v11914_v10, %v6242_v53  ;;  %v13467_v40 = vmax.f32 %v13465_v8, %v13466_v7  ;;  %v4408_v19 = vpop.f32.mrb[19].mxu0  ;;  %v6279_v25 = vmax.f32 %v13469_v52, %v8849_v4  ;;  %v13472_v54 = vmax.f32 %v13470_v20, %v13471_v37  ;;  %v5640_v8 = vpop.f32.mrb[19].mxu1 }
 0x30e   : > { %13463 = vst [vmem:[#allocation45_spill] sm:$0xff] %v11941_v36  ;;  %v6353_v14 = vadd.f32 %v11914_v10, %v6278_v1  ;;  %v6315_v53 = vadd.f32 %v11914_v10, %v6240_v30  ;;  %v6351_v7 = vadd.f32 %v11914_v10, %v6276_v39 }
 0x30f   : > { %v6243_v46 = vmax.f32 %v13467_v40, %v8541_v62  ;;  %v6241_v34 = vmax.f32 %v13472_v54, %v4408_v19  ;;  %vm6385_vm3 = vcmp.ge.f32.partialorder %v6317_v5, 0.0  ;;  %v6460_v62 = vmul.f32 %v11930_v49, %v6317_v5 }
 0x310   : > { %vm6421_vm4 = vcmp.ge.f32.partialorder %v6353_v14, 0.0  ;;  %v6496_v1 = vmul.f32 %v11930_v49, %v6353_v14  ;;  %vm6383_vm5 = vcmp.ge.f32.partialorder %v6315_v53, 0.0  ;;  %v6458_v30 = vmul.f32 %v11930_v49, %v6315_v53 }
 0x311   : > { %v6318_v40 = vadd.f32 %v11914_v10, %v6243_v46  ;;  %v6528_v2 = vsel %vm6385_vm3, %v6317_v5, %v6460_v62  ;;  %vm6419_vm6 = vcmp.ge.f32.partialorder %v6351_v7, 0.0  ;;  %v6494_v15 = vmul.f32 %v11930_v49, %v6351_v7  ;;  %v13474_v5 = vld [vmem:[#allocation134_spill] sm:$0xff]  ;;  %v13475_v62 = vld [vmem:[#allocation147_spill] sm:$0xff] }
 0x312   : > { %v6564_v4 = vsel %vm6421_vm4, %v6353_v14, %v6496_v1  ;;  %v6526_v19 = vsel %vm6383_vm5, %v6315_v53, %v6458_v30  ;;  %v6354_v39 = vadd.f32 %v11914_v10, %v6279_v25  ;;  %v8544_v20 = vpop.f32.mrb[20].mxu0  ;;  %v6316_v37 = vadd.f32 %v11914_v10, %v6241_v34  ;;  %v8852_v21 = vpop.f32.mrb[20].mxu1 }
 0x313   : > { %vm6386_vm7 = vcmp.ge.f32.partialorder %v6318_v40, 0.0  ;;  %v6461_v52 = vmul.f32 %v11930_v49, %v6318_v40  ;;  %v6562_v46 = vsel %vm6419_vm6, %v6351_v7, %v6494_v15  ;;  %v13473_v54 = vmax.f32 %v11587_v0, %v11303_v63  ;;  %v4421_v33 = vpop.f32.mrb[21].mxu0  ;;  %v5653_v53 = vpop.f32.mrb[21].mxu1 }
 0x314   : > { %v13476_v36 = vmax.f32 %v13474_v5, %v13475_v62  ;;  %vm6422_vm8 = vcmp.ge.f32.partialorder %v6354_v39, 0.0  ;;  %v6497_v34 = vmul.f32 %v11930_v49, %v6354_v39  ;;  %v13477_v63 = vmax.f32 %v11613_v22, %v11310_v45  ;;  %v8545_v25 = vpop.f32.mrb[22].mxu0  ;;  %v8853_v1 = vpop.f32.mrb[22].mxu1 }
 0x315   : > { %v6277_v57 = vmax.f32 %v13473_v54, %v5640_v8  ;;  %v6529_v14 = vsel %vm6386_vm7, %v6318_v40, %v6461_v52  ;;  %vm6384_vm9 = vcmp.ge.f32.partialorder %v6316_v37, 0.0  ;;  %v4424_v30 = vpop.f32.mrb[23].mxu0  ;;  %v13479_v54 = vld [vmem:[#allocation39_spill] sm:$0xff] }
 0x316   : > { %v6246_v48 = vmax.f32 %v13476_v36, %v8544_v20  ;;  %v6282_v0 = vmax.f32 %v13477_v63, %v8852_v21  ;;  %v7759_v8 = vpack.c.bf16 %v6529_v14, %v6528_v2  ;;  %v6459_v36 = vmul.f32 %v11930_v49, %v6316_v37  ;;  %v13478_v20 = vld [vmem:[#allocation69_spill] sm:$0xff]  ;;  %v5656_v21 = vpop.f32.mrb[23].mxu1 }
 0x317   : > { %v6352_v7 = vadd.f32 %v11914_v10, %v6277_v57  ;;  %v6565_v40 = vsel %vm6422_vm8, %v6354_v39, %v6497_v34  ;;  %v13480_v45 = vmax.f32 %v13478_v20, %v13479_v54  ;;  %v13481_v34 = vmax.f32 %v11617_v9, %v11317_v56 }
 0x318   : > { %v6321_v15 = vadd.f32 %v11914_v10, %v6246_v48  ;;  %v6357_v52 = vadd.f32 %v11914_v10, %v6282_v0  ;;  %7921 = vst [vmem:[%s11985_s9 + $0x8] sm:$0xff] %v7759_v8   ;;  %v7849_v2 = vpack.c.bf16 %v6565_v40, %v6564_v4  ;;  %v6527_v5 = vsel %vm6384_vm9, %v6316_v37, %v6459_v36  ;;  %v13482_v0 = vld [vmem:[#allocation135_spill] sm:$0xff] }
 0x319   : > { %v6244_v22 = vmax.f32 %v13480_v45, %v4421_v33  ;;  %vm6420_vm10 = vcmp.ge.f32.partialorder %v6352_v7, 0.0  ;;  %v6495_v57 = vmul.f32 %v11930_v49, %v6352_v7  ;;  %v7754_v62 = vpack.c.bf16 %v6527_v5, %v6526_v19  ;;  %v13483_v19 = vld [vmem:[#allocation2_spill] sm:$0xff] }
 0x31a   : > { %vm6389_vm11 = vcmp.ge.f32.partialorder %v6321_v15, 0.0  ;;  %v6464_v39 = vmul.f32 %v11930_v49, %v6321_v15  ;;  %vm6425_vm12 = vcmp.ge.f32.partialorder %v6357_v52, 0.0  ;;  %7939 = vst [vmem:[%s11985_s9 + $0x98] sm:$0xff] %v7849_v2   ;;  %v6500_v14 = vmul.f32 %v11930_v49, %v6357_v52  ;;  %v8548_v20 = vpop.f32.mrb[24].mxu0  ;;  %v8856_v56 = vpop.f32.mrb[24].mxu1 }
 0x31b   : > { %v6563_v48 = vsel %vm6420_vm10, %v6352_v7, %v6495_v57  ;;  %v6319_v33 = vadd.f32 %v11914_v10, %v6244_v22  ;;  %v6280_v4 = vmax.f32 %v13481_v34, %v5653_v53  ;;  %7755 = vst [vmem:[%s11985_s9] sm:$0xff] %v7754_v62   ;;  %v13484_v8 = vmax.f32 %v13482_v0, %v13483_v19  ;;  %v4437_v9 = vpop.f32.mrb[25].mxu0 }
 0x31c   : > { %v7844_v37 = vpack.c.bf16 %v6563_v48, %v6562_v46  ;;  %v6532_v63 = vsel %vm6389_vm11, %v6321_v15, %v6464_v39  ;;  %v13485_v40 = vmax.f32 %v11625_v13, %v11324_v60  ;;  %v6568_v54 = vsel %vm6425_vm12, %v6357_v52, %v6500_v14  ;;  %v13486_v15 = vld [vmem:[#allocation72_spill] sm:$0xff]  ;;  %v8549_v52 = vpop.f32.mrb[26].mxu0  ;;  %v13490_v39 = vld [vmem:[#allocation138_spill] sm:$0xff]  ;;  %v13491_v48 = vld [vmem:[#allocation3_spill] sm:$0xff] }
 0x31d   : > { %v6247_v36 = vmax.f32 %v13484_v8, %v8545_v25  ;;  %vm6387_vm13 = vcmp.ge.f32.partialorder %v6319_v33, 0.0  ;;  %v6462_v45 = vmul.f32 %v11930_v49, %v6319_v33  ;;  %v6355_v22 = vadd.f32 %v11914_v10, %v6280_v4  ;;  %v13487_v25 = vld [vmem:[#allocation82_spill] sm:$0xff] }
 0x31e   : > { %v6283_v7 = vmax.f32 %v13485_v40, %v8853_v1  ;;  %7938 = vst [vmem:[%s11985_s9 + $0x90] sm:$0xff] %v7844_v37   ;;  %v13488_v2 = vmax.f32 %v13486_v15, %v13487_v25  ;;  %v13489_v60 = vmax.f32 %v11635_v29, %v11331_v6  ;;  %v5669_v1 = vpop.f32.mrb[25].mxu1  ;;  %v13492_v14 = vmax.f32 %v13490_v39, %v13491_v48  ;;  %v4440_v37 = vpop.f32.mrb[27].mxu0 }
 0x31f   : > { %v6322_v46 = vadd.f32 %v11914_v10, %v6247_v36  ;;  %v6530_v57 = vsel %vm6387_vm13, %v6319_v33, %v6462_v45  ;;  %vm6423_vm14 = vcmp.ge.f32.partialorder %v6355_v22, 0.0  ;;  %v6498_v62 = vmul.f32 %v11930_v49, %v6355_v22  ;;  %v8857_v4 = vpop.f32.mrb[26].mxu1  ;;  %v13495_v45 = vld [vmem:[#allocation40_spill] sm:$0xff] }
 0x320   : > { %v6358_v53 = vadd.f32 %v11914_v10, %v6283_v7  ;;  %v6245_v5 = vmax.f32 %v13488_v2, %v4424_v30  ;;  %v6281_v13 = vmax.f32 %v13489_v60, %v5656_v21  ;;  %v6250_v34 = vmax.f32 %v13492_v14, %v8548_v20  ;;  %v5672_v6 = vpop.f32.mrb[27].mxu1  ;;  %v13494_v20 = vld [vmem:[#allocation139_spill] sm:$0xff] }
 0x321   : > { %vm6390_vm15 = vcmp.ge.f32.partialorder %v6322_v46, 0.0  ;;  %v6465_v0 = vmul.f32 %v11930_v49, %v6322_v46  ;;  %v6566_v29 = vsel %vm6423_vm14, %v6355_v22, %v6498_v62  ;;  %v13493_v40 = vmax.f32 %v11661_v58, %v13332_v43 }
 0x322   : > { %vm6426_vm0 = vcmp.ge.f32.partialorder %v6358_v53, 0.0  ;;  %v6501_v30 = vmul.f32 %v11930_v49, %v6358_v53  ;;  %v6320_v21 = vadd.f32 %v11914_v10, %v6245_v5  ;;  %v6356_v33 = vadd.f32 %v11914_v10, %v6281_v13  ;;  %v8860_v13 = vpop.f32.mrb[28].mxu1 }
 0x323   : > { %v6325_v19 = vadd.f32 %v11914_v10, %v6250_v34  ;;  %v6533_v8 = vsel %vm6390_vm15, %v6322_v46, %v6465_v0  ;;  %v6286_v7 = vmax.f32 %v13493_v40, %v8856_v56  ;;  %v13496_v15 = vmax.f32 %v13494_v20, %v13495_v45  ;;  %v13499_v34 = vld [vmem:[#allocation141_spill] sm:$0xff]  ;;  %v13500_v0 = vld [vmem:[#allocation86_spill] sm:$0xff]  ;;  %v13502_v20 = vld [vmem:[#allocation151_spill] sm:$0xff] }
 0x324   : > { %v6569_v36 = vsel %vm6426_vm0, %v6358_v53, %v6501_v30  ;;  %v7769_v2 = vpack.c.bf16 %v6533_v8, %v6532_v63  ;;  %vm6388_vm1 = vcmp.ge.f32.partialorder %v6320_v21, 0.0  ;;  %v6463_v5 = vmul.f32 %v11930_v49, %v6320_v21  ;;  %v8552_v53 = vpop.f32.mrb[28].mxu0  ;;  %v13497_v63 = vld [vmem:[#allocation74_spill] sm:$0xff] }
 0x325   : > { %v6248_v25 = vmax.f32 %v13496_v15, %v4437_v9  ;;  %v7859_v22 = vpack.c.bf16 %v6569_v36, %v6568_v54  ;;  %vm6424_vm2 = vcmp.ge.f32.partialorder %v6356_v33, 0.0  ;;  %v6499_v60 = vmul.f32 %v11930_v49, %v6356_v33  ;;  %v4453_v62 = vpop.f32.mrb[29].mxu0 }
 0x326   : > { %vm6393_vm3 = vcmp.ge.f32.partialorder %v6325_v19, 0.0  ;;  %v6468_v46 = vmul.f32 %v11930_v49, %v6325_v19  ;;  %7923 = vst [vmem:[%s11985_s9 + $0x18] sm:$0xff] %v7769_v2   ;;  %v6531_v43 = vsel %vm6388_vm1, %v6320_v21, %v6463_v5  ;;  %v6361_v58 = vadd.f32 %v11914_v10, %v6286_v7  ;;  %v12053_v21 = vpop.f32.mrb[29].mxu1  ;;  %v12055_v36 = vpop.f32.mrb[30].mxu0  ;;  %v13505_v2 = vld [vmem:[#allocation142_spill] sm:$0xff] }
 0x327   : > { %7941 = vst [vmem:[%s11985_s9 + $0xa8] sm:$0xff] %v7859_v22   ;;  %v6323_v56 = vadd.f32 %v11914_v10, %v6248_v25  ;;  %v13498_v54 = vmax.f32 %v11665_v32, %v13497_v63  ;;  %v7764_v39 = vpack.c.bf16 %v6531_v43, %v6530_v57  ;;  %v6567_v48 = vsel %vm6424_vm2, %v6356_v33, %v6499_v60  ;;  %v4456_v7 = vpop.f32.mrb[31].mxu0  ;;  %v13506_v22 = vld [vmem:[#allocation4_spill] sm:$0xff] }
 0x328   : > { %v6536_v14 = vsel %vm6393_vm3, %v6325_v19, %v6468_v46  ;;  %v13501_v30 = vmax.f32 %v13499_v34, %v13500_v0  ;;  %v7854_v40 = vpack.c.bf16 %v6567_v48, %v6566_v29  ;;  %vm6429_vm4 = vcmp.ge.f32.partialorder %v6361_v58, 0.0  ;;  %v13508_v46 = vld [vmem:[#allocation79_spill] sm:$0xff] }
 0x329   : > { %v6284_v9 = vmax.f32 %v13498_v54, %v5669_v1  ;;  %v6504_v32 = vmul.f32 %v11930_v49, %v6361_v58  ;;  %vm6391_vm5 = vcmp.ge.f32.partialorder %v6323_v56, 0.0  ;;  %v8861_v1 = vpop.f32.mrb[30].mxu1  ;;  %7922 = vst [vmem:[%s11985_s9 + $0x10] sm:$0xff] %v7764_v39   ;;  %v6466_v57 = vmul.f32 %v11930_v49, %v6323_v56  ;;  %v13510_v54 = vld [vmem:[#allocation145_spill] sm:$0xff]  ;;  %v13511_v39 = vld [vmem:[#allocation87_spill] sm:$0xff] }
 0x32a   : > { %v6251_v8 = vmax.f32 %v13501_v30, %v8549_v52  ;;  %v13503_v52 = vld [vmem:[#allocation76_spill] sm:$0xff]  ;;  %v5688_v25 = vpop.f32.mrb[31].mxu1  ;;  %7940 = vst [vmem:[%s11985_s9 + $0xa0] sm:$0xff] %v7854_v40   ;;  %v13507_v5 = vmax.f32 %v13505_v2, %v13506_v22  ;;  %v13509_v43 = vmax.f32 %v11683_v38, %v13508_v46  ;;  %v13515_v40 = vld [vmem:[#allocation5_spill] sm:$0xff] }
 0x32b   : > { %v6359_v33 = vadd.f32 %v11914_v10, %v6284_v9  ;;  %v13504_v45 = vmax.f32 %v13502_v20, %v13503_v52  ;;  %v6572_v29 = vsel %vm6429_vm4, %v6361_v58, %v6504_v32  ;;  %v13512_v9 = vmax.f32 %v13510_v54, %v13511_v39  ;;  %v8556_v20 = vpop.f32.mrb[32].mxu0 }
 0x32c   : > { %v6326_v19 = vadd.f32 %v11914_v10, %v6251_v8  ;;  %v6249_v60 = vmax.f32 %v13507_v5, %v4440_v37  ;;  %v6285_v63 = vmax.f32 %v13509_v43, %v5672_v6  ;;  %v6534_v34 = vsel %vm6391_vm5, %v6323_v56, %v6466_v57  ;;  %v13514_v56 = vld [vmem:[#allocation146_spill] sm:$0xff]  ;;  %v12088_v2 = vpop.f32.mrb[33].mxu0 }
 0x32d   : > { %v6287_v15 = vmax.f32 %v13504_v45, %v8857_v4  ;;  %v6254_v48 = vmax.f32 %v13512_v9, %v8552_v53  ;;  %vm6427_vm6 = vcmp.ge.f32.partialorder %v6359_v33, 0.0  ;;  %v6502_v0 = vmul.f32 %v11930_v49, %v6359_v33 }
 0x32e   : > { %vm6394_vm7 = vcmp.ge.f32.partialorder %v6326_v19, 0.0  ;;  %v6469_v4 = vmul.f32 %v11930_v49, %v6326_v19  ;;  %v6324_v30 = vadd.f32 %v11914_v10, %v6249_v60  ;;  %v6360_v37 = vadd.f32 %v11914_v10, %v6285_v63 }
 0x32f   : > { %v6362_v58 = vadd.f32 %v11914_v10, %v6287_v15  ;;  %v6570_v8 = vsel %vm6427_vm6, %v6359_v33, %v6502_v0  ;;  %v6329_v38 = vadd.f32 %v11914_v10, %v6254_v48  ;;  %v13513_v6 = vmax.f32 %v11709_v26, %v13357_v27  ;;  %v8864_v15 = vpop.f32.mrb[32].mxu1 }
 0x330   : > { %v13516_v32 = vmax.f32 %v13514_v56, %v13515_v40  ;;  %v6537_v52 = vsel %vm6394_vm7, %v6326_v19, %v6469_v4  ;;  %vm6392_vm9 = vcmp.ge.f32.partialorder %v6324_v30, 0.0  ;;  %v6467_v22 = vmul.f32 %v11930_v49, %v6324_v30  ;;  %v12092_v26 = vpop.f32.mrb[33].mxu1  ;;  %v13523_v56 = vld [vmem:[#allocation83_spill] sm:$0xff] }
 0x331   : > { %v6290_v53 = vmax.f32 %v13513_v6, %v8860_v13  ;;  %vm6430_vm8 = vcmp.ge.f32.partialorder %v6362_v58, 0.0  ;;  %v6505_v45 = vmul.f32 %v11930_v49, %v6362_v58  ;;  %v7779_v33 = vpack.c.bf16 %v6537_v52, %v6536_v14  ;;  %v12094_v13 = vpop.f32.mrb[34].mxu0  ;;  %v12098_v60 = vpop.f32.mrb[34].mxu1  ;;  %v13526_v52 = vld [vmem:[#allocation150_spill] sm:$0xff] }
 0x332   : > { %v6252_v57 = vmax.f32 %v13516_v32, %v4453_v62  ;;  %vm6428_vm10 = vcmp.ge.f32.partialorder %v6360_v37, 0.0  ;;  %v6503_v27 = vmul.f32 %v11930_v49, %v6360_v37  ;;  %vm6397_vm11 = vcmp.ge.f32.partialorder %v6329_v38, 0.0  ;;  %v12100_v46 = vpop.f32.mrb[35].mxu0  ;;  %v12105_v39 = vpop.f32.mrb[35].mxu1 }
 0x333   : > { %v6573_v62 = vsel %vm6430_vm8, %v6362_v58, %v6505_v45  ;;  %v6472_v19 = vmul.f32 %v11930_v49, %v6329_v38  ;;  %v6365_v5 = vadd.f32 %v11914_v10, %v6290_v53  ;;  %7925 = vst [vmem:[%s11985_s9 + $0x28] sm:$0xff] %v7779_v33   ;;  %v6535_v43 = vsel %vm6392_vm9, %v6324_v30, %v6467_v22  ;;  %v13520_v53 = vld [vmem:[#allocation88_spill] sm:$0xff]  ;;  %v13528_v22 = vld [vmem:[#allocation161_spill] sm:$0xff] }
 0x334   : > { %v7869_v14 = vpack.c.bf16 %v6573_v62, %v6572_v29  ;;  %v6571_v63 = vsel %vm6428_vm10, %v6360_v37, %v6503_v27  ;;  %v6327_v54 = vadd.f32 %v11914_v10, %v6252_v57  ;;  %v7774_v9 = vpack.c.bf16 %v6535_v43, %v6534_v34  ;;  %v13517_v29 = vld [vmem:[#allocation81_spill] sm:$0xff]  ;;  %v13519_v37 = vld [vmem:[#allocation148_spill] sm:$0xff] }
 0x335   : > { %v7864_v48 = vpack.c.bf16 %v6571_v63, %v6570_v8  ;;  %v6540_v0 = vsel %vm6397_vm11, %v6329_v38, %v6472_v19  ;;  %vm6433_vm12 = vcmp.ge.f32.partialorder %v6365_v5, 0.0  ;;  %v6508_v4 = vmul.f32 %v11930_v49, %v6365_v5  ;;  %v13522_v38 = vld [vmem:[#allocation6_spill] sm:$0xff]  ;;  %v13525_v57 = vld [vmem:[#allocation149_spill] sm:$0xff] }
 0x336   : > { %7943 = vst [vmem:[%s11985_s9 + $0xb8] sm:$0xff] %v7869_v14   ;;  %vm6395_vm13 = vcmp.ge.f32.partialorder %v6327_v54, 0.0  ;;  %v6470_v58 = vmul.f32 %v11930_v49, %v6327_v54  ;;  %v13518_v6 = vmax.f32 %v11713_v18, %v13517_v29  ;;  %7924 = vst [vmem:[%s11985_s9 + $0x20] sm:$0xff] %v7774_v9   ;;  %v13521_v34 = vmax.f32 %v13519_v37, %v13520_v53  ;;  %v13530_v14 = vld [vmem:[#allocation85_spill] sm:$0xff]  ;;  %v12133_v9 = vpop.f32.mrb[36].mxu0 }
 0x337   : > { %7942 = vst [vmem:[%s11985_s9 + $0xb0] sm:$0xff] %v7864_v48   ;;  %v13524_v40 = vmax.f32 %v13522_v38, %v13523_v56  ;;  %v13527_v45 = vmax.f32 %v13525_v57, %v13526_v52  ;;  %v13529_v27 = vmax.f32 %v11731_v47, %v13528_v22  ;;  %v13531_v43 = vld [vmem:[#allocation89_spill] sm:$0xff]  ;;  %v12139_v47 = vpop.f32.mrb[36].mxu1 }
 0x338   : > { %v6288_v30 = vmax.f32 %v13518_v6, %v12053_v21  ;;  %v6255_v8 = vmax.f32 %v13521_v34, %v12055_v36  ;;  %v6576_v21 = vsel %vm6433_vm12, %v6365_v5, %v6508_v4  ;;  %v6538_v62 = vsel %vm6395_vm13, %v6327_v54, %v6470_v58  ;;  %v12148_v58 = vpop.f32.mrb[37].mxu1 }
 0x339   : > { %v6291_v32 = vmax.f32 %v13524_v40, %v8861_v1  ;;  %v6253_v33 = vmax.f32 %v13527_v45, %v4456_v7  ;;  %v6289_v18 = vmax.f32 %v13529_v27, %v5688_v25  ;;  %v13532_v63 = vmax.f32 %v13530_v14, %v13531_v43  ;;  %v12141_v25 = vpop.f32.mrb[37].mxu0  ;;  %v12154_v53 = vpop.f32.mrb[38].mxu1  ;;  %v13534_v27 = vld [vmem:[#allocation108_spill] sm:$0xff] }
 0x33a   : > { %v6363_v19 = vadd.f32 %v11914_v10, %v6288_v30  ;;  %v6330_v1 = vadd.f32 %v11914_v10, %v6255_v8  ;;  %v12150_v6 = vpop.f32.mrb[38].mxu0 }
 0x33b   : > { %v6258_v36 = vmax.f32 %v13532_v63, %v8556_v20  ;;  %v6366_v48 = vadd.f32 %v11914_v10, %v6291_v32  ;;  %v6328_v7 = vadd.f32 %v11914_v10, %v6253_v33  ;;  %v6364_v29 = vadd.f32 %v11914_v10, %v6289_v18  ;;  %v12156_v34 = vpop.f32.mrb[39].mxu0  ;;  %v13535_v18 = vld [vmem:[#allocation38_spill] sm:$0xff] }
 0x33c   : > { %vm6431_vm14 = vcmp.ge.f32.partialorder %v6363_v19, 0.0  ;;  %v6506_v5 = vmul.f32 %v11930_v49, %v6363_v19  ;;  %v13533_v20 = vmax.f32 %v11757_v42, %v13382_v55  ;;  %vm6398_vm15 = vcmp.ge.f32.partialorder %v6330_v1, 0.0  ;;  %v12159_v42 = vpop.f32.mrb[39].mxu1 }
 0x33d   : > { %v6333_v54 = vadd.f32 %v11914_v10, %v6258_v36  ;;  %v6473_v30 = vmul.f32 %v11930_v49, %v6330_v1  ;;  %vm6434_vm0 = vcmp.ge.f32.partialorder %v6366_v48, 0.0  ;;  %v6509_v37 = vmul.f32 %v11930_v49, %v6366_v48 }
 0x33e   : > { %v6294_v4 = vmax.f32 %v13533_v20, %v8864_v15  ;;  %v6574_v8 = vsel %vm6431_vm14, %v6363_v19, %v6506_v5  ;;  %vm6396_vm1 = vcmp.ge.f32.partialorder %v6328_v7, 0.0  ;;  %v6471_v55 = vmul.f32 %v11930_v49, %v6328_v7  ;;  %v13543_v20 = vld [vmem:[#allocation122_spill] sm:$0xff] }
 0x33f   : > { %vm6432_vm2 = vcmp.ge.f32.partialorder %v6364_v29, 0.0  ;;  %v6541_v15 = vsel %vm6398_vm15, %v6330_v1, %v6473_v30  ;;  %v6577_v38 = vsel %vm6434_vm0, %v6366_v48, %v6509_v37  ;;  %v6507_v56 = vmul.f32 %v11930_v49, %v6364_v29  ;;  %v13540_v1 = vld [vmem:[#allocation152_spill] sm:$0xff] }
 0x340   : > { %vm6401_vm3 = vcmp.ge.f32.partialorder %v6333_v54, 0.0  ;;  %v7789_v40 = vpack.c.bf16 %v6541_v15, %v6540_v0  ;;  %v7879_v32 = vpack.c.bf16 %v6577_v38, %v6576_v21  ;;  %v6539_v57 = vsel %vm6396_vm1, %v6328_v7, %v6471_v55  ;;  %v13537_v0 = vld [vmem:[#allocation101_spill] sm:$0xff] }
 0x341   : > { %v6476_v52 = vmul.f32 %v11930_v49, %v6333_v54  ;;  %v7784_v45 = vpack.c.bf16 %v6539_v57, %v6538_v62  ;;  %v6575_v33 = vsel %vm6432_vm2, %v6364_v29, %v6507_v56  ;;  %v6369_v22 = vadd.f32 %v11914_v10, %v6294_v4  ;;  %v13539_v62 = vld [vmem:[#allocation109_spill] sm:$0xff]  ;;  %v12178_v29 = vpop.f32.mrb[40].mxu0  ;;  %v13548_v56 = vld [vmem:[#allocation56_spill] sm:$0xff] }
 0x342   : > { %v13536_v19 = vmax.f32 %v13534_v27, %v13535_v18  ;;  %7927 = vst [vmem:[%s11985_s9 + $0x38] sm:$0xff] %v7789_v40   ;;  %7945 = vst [vmem:[%s11985_s9 + $0xc8] sm:$0xff] %v7879_v32   ;;  %v7874_v43 = vpack.c.bf16 %v6575_v33, %v6574_v8  ;;  %v13538_v21 = vmax.f32 %v11761_v23, %v13537_v0  ;;  %v12187_v23 = vpop.f32.mrb[40].mxu1  ;;  %v13545_v8 = vld [vmem:[#allocation111_spill] sm:$0xff]  ;;  %v13546_v55 = vld [vmem:[#allocation41_spill] sm:$0xff] }
 0x343   : > { %v6544_v63 = vsel %vm6401_vm3, %v6333_v54, %v6476_v52  ;;  %v13541_v48 = vmax.f32 %v13539_v62, %v13540_v1  ;;  %7926 = vst [vmem:[%s11985_s9 + $0x30] sm:$0xff] %v7784_v45   ;;  %vm6437_vm4 = vcmp.ge.f32.partialorder %v6369_v22, 0.0  ;;  %v13542_v54 = vld [vmem:[#allocation8_spill] sm:$0xff]  ;;  %v13547_v15 = vmax.f32 %v13545_v8, %v13546_v55  ;;  %v13551_v62 = vld [vmem:[#allocation153_spill] sm:$0xff] }
 0x344   : > { %v6256_v14 = vmax.f32 %v13536_v19, %v12088_v2  ;;  %v6292_v36 = vmax.f32 %v13538_v21, %v12092_v26  ;;  %v6512_v2 = vmul.f32 %v11930_v49, %v6369_v22  ;;  %v13544_v4 = vmax.f32 %v13542_v54, %v13543_v20  ;;  %v12189_v26 = vpop.f32.mrb[41].mxu0  ;;  %7944 = vst [vmem:[%s11985_s9 + $0xc0] sm:$0xff] %v7874_v43   ;;  %v13555_v8 = vld [vmem:[#allocation84_spill] sm:$0xff] }
 0x345   : > { %v6259_v7 = vmax.f32 %v13541_v48, %v12094_v13  ;;  %v6257_v38 = vmax.f32 %v13547_v15, %v12100_v46  ;;  %v13549_v40 = vmax.f32 %v11779_v44, %v13548_v56  ;;  %v12204_v57 = vpop.f32.mrb[42].mxu0 }
 0x346   : > { %v6331_v5 = vadd.f32 %v11914_v10, %v6256_v14  ;;  %v6295_v30 = vmax.f32 %v13544_v4, %v12098_v60  ;;  %v6367_v13 = vadd.f32 %v11914_v10, %v6292_v36  ;;  %v12202_v60 = vpop.f32.mrb[41].mxu1  ;;  %v6580_v52 = vsel %vm6437_vm4, %v6369_v22, %v6512_v2  ;;  %v12210_v18 = vpop.f32.mrb[43].mxu0  ;;  %v13550_v36 = vld [vmem:[#allocation112_spill] sm:$0xff] }
 0x347   : > { %v6334_v37 = vadd.f32 %v11914_v10, %v6259_v7  ;;  %v6293_v32 = vmax.f32 %v13549_v40, %v12105_v39  ;;  %v12208_v27 = vpop.f32.mrb[42].mxu1  ;;  %v6332_v14 = vadd.f32 %v11914_v10, %v6257_v38  ;;  %v13552_v1 = vmax.f32 %v13550_v36, %v13551_v62 }
 0x348   : > { %vm6399_vm5 = vcmp.ge.f32.partialorder %v6331_v5, 0.0  ;;  %v6474_v45 = vmul.f32 %v11930_v49, %v6331_v5  ;;  %v6370_v33 = vadd.f32 %v11914_v10, %v6295_v30  ;;  %vm6435_vm6 = vcmp.ge.f32.partialorder %v6367_v13, 0.0  ;;  %v12214_v39 = vpop.f32.mrb[43].mxu1  ;;  %v12226_v30 = vpop.f32.mrb[44].mxu0 }
 0x349   : > { %v6510_v46 = vmul.f32 %v11930_v49, %v6367_v13  ;;  %vm6402_vm7 = vcmp.ge.f32.partialorder %v6334_v37, 0.0  ;;  %v6477_v44 = vmul.f32 %v11930_v49, %v6334_v37  ;;  %v6368_v21 = vadd.f32 %v11914_v10, %v6293_v32  ;;  %v12241_v40 = vpop.f32.mrb[44].mxu1  ;;  %v12243_v32 = vpop.f32.mrb[45].mxu0 }
 0x34a   : > { %v6542_v19 = vsel %vm6399_vm5, %v6331_v5, %v6474_v45  ;;  %vm6438_vm8 = vcmp.ge.f32.partialorder %v6370_v33, 0.0  ;;  %v6513_v22 = vmul.f32 %v11930_v49, %v6370_v33  ;;  %v6262_v48 = vmax.f32 %v13552_v1, %v12133_v9  ;;  %v13564_v1 = vld [vmem:[#allocation63_spill] sm:$0xff] }
 0x34b   : > { %v6578_v43 = vsel %vm6435_vm6, %v6367_v13, %v6510_v46  ;;  %v6545_v0 = vsel %vm6402_vm7, %v6334_v37, %v6477_v44  ;;  %vm6400_vm9 = vcmp.ge.f32.partialorder %v6332_v14, 0.0  ;;  %v6475_v5 = vmul.f32 %v11930_v49, %v6332_v14  ;;  %v13554_v37 = vld [vmem:[#allocation173_spill] sm:$0xff] }
 0x34c   : > { %v7799_v7 = vpack.c.bf16 %v6545_v0, %v6544_v63  ;;  %v6581_v2 = vsel %vm6438_vm8, %v6370_v33, %v6513_v22  ;;  %vm6436_vm10 = vcmp.ge.f32.partialorder %v6368_v21, 0.0  ;;  %v6511_v20 = vmul.f32 %v11930_v49, %v6368_v21  ;;  %v13559_v22 = vld [vmem:[#allocation7_spill] sm:$0xff] }
 0x34d   : > { %v7889_v54 = vpack.c.bf16 %v6581_v2, %v6580_v52  ;;  %v6337_v4 = vadd.f32 %v11914_v10, %v6262_v48  ;;  %v6543_v13 = vsel %vm6400_vm9, %v6332_v14, %v6475_v5  ;;  %v13553_v9 = vmax.f32 %v11805_v50, %v13407_v61  ;;  %v12247_v50 = vpop.f32.mrb[45].mxu1  ;;  %v13565_v48 = vld [vmem:[#allocation42_spill] sm:$0xff] }
 0x34e   : > { %7929 = vst [vmem:[%s11985_s9 + $0x48] sm:$0xff] %v7799_v7   ;;  %v13556_v55 = vmax.f32 %v13554_v37, %v13555_v8  ;;  %v13557_v38 = vmax.f32 %v11809_v28, %v13412_v11  ;;  %v7794_v52 = vpack.c.bf16 %v6543_v13, %v6542_v19  ;;  %v6579_v45 = vsel %vm6436_vm10, %v6368_v21, %v6511_v20  ;;  %v12254_v33 = vpop.f32.mrb[46].mxu1  ;;  %v13558_v19 = vld [vmem:[#allocation129_spill] sm:$0xff] }
 0x34f   : > { %v6298_v63 = vmax.f32 %v13553_v9, %v12139_v47  ;;  %7947 = vst [vmem:[%s11985_s9 + $0xd8] sm:$0xff] %v7889_v54   ;;  %vm6405_vm11 = vcmp.ge.f32.partialorder %v6337_v4, 0.0  ;;  %v6480_v61 = vmul.f32 %v11930_v49, %v6337_v4  ;;  %v12249_v47 = vpop.f32.mrb[46].mxu0  ;;  %v13560_v14 = vmax.f32 %v13558_v19, %v13559_v22  ;;  %v13561_v21 = vld [vmem:[#allocation93_spill] sm:$0xff]  ;;  %v12271_v5 = vpop.f32.mrb[47].mxu1  ;;  %v13573_v22 = vld [vmem:[#allocation176_spill] sm:$0xff] }
 0x350   : > { %v6260_v15 = vmax.f32 %v13556_v55, %v12141_v25  ;;  %v6296_v56 = vmax.f32 %v13557_v38, %v12148_v58  ;;  %v7884_v25 = vpack.c.bf16 %v6579_v45, %v6578_v43  ;;  %v12256_v46 = vpop.f32.mrb[47].mxu0  ;;  %7928 = vst [vmem:[%s11985_s9 + $0x40] sm:$0xff] %v7794_v52   ;;  %v13562_v43 = vld [vmem:[#allocation114_spill] sm:$0xff]  ;;  %v13566_v7 = vmax.f32 %v13564_v1, %v13565_v48 }
 0x351   : > { %v6373_v28 = vadd.f32 %v11914_v10, %v6298_v63  ;;  %v6548_v44 = vsel %vm6405_vm11, %v6337_v4, %v6480_v61  ;;  %v6263_v0 = vmax.f32 %v13560_v14, %v12150_v6  ;;  %v13563_v36 = vmax.f32 %v13561_v21, %v13562_v43  ;;  %v13567_v63 = vld [vmem:[#allocation117_spill] sm:$0xff]  ;;  %v12285_v38 = vpop.f32.mrb[48].mxu0  ;;  %v13574_v14 = vld [vmem:[#allocation91_spill] sm:$0xff] }
 0x352   : > { %v6335_v11 = vadd.f32 %v11914_v10, %v6260_v15  ;;  %v6371_v58 = vadd.f32 %v11914_v10, %v6296_v56  ;;  %v6261_v2 = vmax.f32 %v13566_v7, %v12156_v34  ;;  %7946 = vst [vmem:[%s11985_s9 + $0xd0] sm:$0xff] %v7884_v25   ;;  %v13568_v37 = vmax.f32 %v11827_v35, %v13567_v63  ;;  %v12290_v61 = vpop.f32.mrb[49].mxu0  ;;  %v13569_v35 = vld [vmem:[#allocation118_spill] sm:$0xff] }
 0x353   : > { %v6299_v62 = vmax.f32 %v13563_v36, %v12154_v53  ;;  %vm6441_vm12 = vcmp.ge.f32.partialorder %v6373_v28, 0.0  ;;  %v6516_v54 = vmul.f32 %v11930_v49, %v6373_v28  ;;  %v6338_v4 = vadd.f32 %v11914_v10, %v6263_v0  ;;  %v12304_v43 = vpop.f32.mrb[50].mxu0 }
 0x354   : > { %vm6403_vm13 = vcmp.ge.f32.partialorder %v6335_v11, 0.0  ;;  %v6478_v20 = vmul.f32 %v11930_v49, %v6335_v11  ;;  %vm6439_vm14 = vcmp.ge.f32.partialorder %v6371_v58, 0.0  ;;  %v6514_v6 = vmul.f32 %v11930_v49, %v6371_v58  ;;  %v12306_v48 = vpop.f32.mrb[51].mxu0 }
 0x355   : > { %v6374_v53 = vadd.f32 %v11914_v10, %v6299_v62  ;;  %v6584_v13 = vsel %vm6441_vm12, %v6373_v28, %v6516_v54  ;;  %v6336_v34 = vadd.f32 %v11914_v10, %v6261_v2  ;;  %v6297_v8 = vmax.f32 %v13568_v37, %v12159_v42  ;;  %v13570_v42 = vld [vmem:[#allocation90_spill] sm:$0xff] }
 0x356   : > { %v6546_v9 = vsel %vm6403_vm13, %v6335_v11, %v6478_v20  ;;  %v6582_v55 = vsel %vm6439_vm14, %v6371_v58, %v6514_v6  ;;  %vm6406_vm15 = vcmp.ge.f32.partialorder %v6338_v4, 0.0  ;;  %v6481_v15 = vmul.f32 %v11930_v49, %v6338_v4  ;;  %v13577_v54 = vld [vmem:[#allocation178_spill] sm:$0xff]  ;;  %v13578_v20 = vld [vmem:[#allocation9_spill] sm:$0xff] }
 0x357   : > { %vm6442_vm0 = vcmp.ge.f32.partialorder %v6374_v53, 0.0  ;;  %v6517_v56 = vmul.f32 %v11930_v49, %v6374_v53  ;;  %vm6404_vm1 = vcmp.ge.f32.partialorder %v6336_v34, 0.0  ;;  %v6479_v52 = vmul.f32 %v11930_v49, %v6336_v34 }
 0x358   : > { %v6372_v45 = vadd.f32 %v11914_v10, %v6297_v8  ;;  %v6549_v25 = vsel %vm6406_vm15, %v6338_v4, %v6481_v15  ;;  %v13571_v28 = vmax.f32 %v13569_v35, %v13570_v42  ;;  %v13572_v58 = vmax.f32 %v11853_v31, %v13431_v17 }
 0x359   : > { %v13575_v0 = vmax.f32 %v13573_v22, %v13574_v14  ;;  %v7809_v36 = vpack.c.bf16 %v6549_v25, %v6548_v44  ;;  %v6585_v62 = vsel %vm6442_vm0, %v6374_v53, %v6517_v56  ;;  %v6547_v1 = vsel %vm6404_vm1, %v6336_v34, %v6479_v52  ;;  %v13582_v52 = vld [vmem:[#allocation70_spill] sm:$0xff]  ;;  %v13586_v22 = vld [vmem:[#allocation180_spill] sm:$0xff]  ;;  %v13589_v14 = vld [vmem:[#allocation181_spill] sm:$0xff] }
 0x35a   : > { %v6266_v11 = vmax.f32 %v13571_v28, %v12178_v29  ;;  %v6302_v19 = vmax.f32 %v13572_v58, %v12187_v23  ;;  %vm6440_vm2 = vcmp.ge.f32.partialorder %v6372_v45, 0.0  ;;  %v7899_v29 = vpack.c.bf16 %v6585_v62, %v6584_v13 }
 0x35b   : > { %v6264_v21 = vmax.f32 %v13575_v0, %v12189_v26  ;;  %v7804_v7 = vpack.c.bf16 %v6547_v1, %v6546_v9  ;;  %v6515_v31 = vmul.f32 %v11930_v49, %v6372_v45  ;;  %7931 = vst [vmem:[%s11985_s9 + $0x58] sm:$0xff] %v7809_v36   ;;  %v13576_v44 = vmax.f32 %v11857_v3, %v13435_v24  ;;  %v13580_v9 = vld [vmem:[#allocation179_spill] sm:$0xff] }
 0x35c   : > { %v6341_v17 = vadd.f32 %v11914_v10, %v6266_v11  ;;  %v6377_v23 = vadd.f32 %v11914_v10, %v6302_v19  ;;  %v13579_v6 = vmax.f32 %v13577_v54, %v13578_v20  ;;  %7949 = vst [vmem:[%s11985_s9 + $0xe8] sm:$0xff] %v7899_v29   ;;  %v13581_v34 = vmax.f32 %v11865_v16, %v13580_v9  ;;  %v13583_v16 = vld [vmem:[#allocation92_spill] sm:$0xff]  ;;  %v13594_v20 = vld [vmem:[#allocation182_spill] sm:$0xff] }
 0x35d   : > { %v6339_v26 = vadd.f32 %v11914_v10, %v6264_v21  ;;  %v6300_v2 = vmax.f32 %v13576_v44, %v12202_v60  ;;  %7930 = vst [vmem:[%s11985_s9 + $0x50] sm:$0xff] %v7804_v7   ;;  %v6583_v53 = vsel %vm6440_vm2, %v6372_v45, %v6515_v31  ;;  %v13585_v45 = vmax.f32 %v11875_v12, %v13444_v41  ;;  %v13587_v12 = vld [vmem:[#allocation154_spill] sm:$0xff] }
 0x35e   : > { %v6267_v4 = vmax.f32 %v13579_v6, %v12204_v57  ;;  %vm6409_vm3 = vcmp.ge.f32.partialorder %v6341_v17, 0.0  ;;  %v6484_v13 = vmul.f32 %v11930_v49, %v6341_v17  ;;  %v6303_v63 = vmax.f32 %v13581_v34, %v12208_v27 }
 0x35f   : > { %v7894_v37 = vpack.c.bf16 %v6583_v53, %v6582_v55  ;;  %vm6445_vm4 = vcmp.ge.f32.partialorder %v6377_v23, 0.0  ;;  %v6520_v3 = vmul.f32 %v11930_v49, %v6377_v23  ;;  %vm6407_vm5 = vcmp.ge.f32.partialorder %v6339_v26, 0.0  ;;  %v13596_v53 = vld [vmem:[#allocation60_spill] sm:$0xff] }
 0x360   : > { %v6552_v24 = vsel %vm6409_vm3, %v6341_v17, %v6484_v13  ;;  %v6482_v60 = vmul.f32 %v11930_v49, %v6339_v26  ;;  %v6375_v57 = vadd.f32 %v11914_v10, %v6300_v2  ;;  %v6342_v8 = vadd.f32 %v11914_v10, %v6267_v4  ;;  %v13597_v13 = vld [vmem:[#allocation43_spill] sm:$0xff] }
 0x361   : > { %7948 = vst [vmem:[%s11985_s9 + $0xe0] sm:$0xff] %v7894_v37   ;;  %v6588_v15 = vsel %vm6445_vm4, %v6377_v23, %v6520_v3  ;;  %v6378_v56 = vadd.f32 %v11914_v10, %v6303_v63  ;;  %v13584_v27 = vmax.f32 %v13582_v52, %v13583_v16  ;;  %v6301_v25 = vmax.f32 %v13585_v45, %v12214_v39  ;;  %v13605_v16 = vld [vmem:[#allocation62_spill] sm:$0xff] }
 0x362   : > { %v6550_v35 = vsel %vm6407_vm5, %v6339_v26, %v6482_v60  ;;  %vm6443_vm6 = vcmp.ge.f32.partialorder %v6375_v57, 0.0  ;;  %v6518_v42 = vmul.f32 %v11930_v49, %v6375_v57  ;;  %vm6410_vm7 = vcmp.ge.f32.partialorder %v6342_v8, 0.0  ;;  %v13591_v26 = vld [vmem:[#allocation59_spill] sm:$0xff] }
 0x363   : > { %v6265_v55 = vmax.f32 %v13584_v27, %v12210_v18  ;;  %v6485_v28 = vmul.f32 %v11930_v49, %v6342_v8  ;;  %vm6446_vm8 = vcmp.ge.f32.partialorder %v6378_v56, 0.0  ;;  %v6521_v11 = vmul.f32 %v11930_v49, %v6378_v56  ;;  %v13600_v60 = vld [vmem:[#allocation183_spill] sm:$0xff]  ;;  %v13606_v27 = vld [vmem:[#allocation45_spill] sm:$0xff] }
 0x364   : > { %v6586_v19 = vsel %vm6443_vm6, %v6375_v57, %v6518_v42  ;;  %v6376_v18 = vadd.f32 %v11914_v10, %v6301_v25  ;;  %v13588_v41 = vmax.f32 %v13586_v22, %v13587_v12  ;;  %v13590_v0 = vmax.f32 %v11908_v59, %v13589_v14  ;;  %v13592_v59 = vld [vmem:[#allocation155_spill] sm:$0xff] }
 0x365   : > { %v6340_v58 = vadd.f32 %v11914_v10, %v6265_v55  ;;  %v6553_v36 = vsel %vm6410_vm7, %v6342_v8, %v6485_v28  ;;  %v6589_v62 = vsel %vm6446_vm8, %v6378_v56, %v6521_v11  ;;  %v13595_v6 = vmax.f32 %v11917_v51, %v13594_v20  ;;  %v13602_v8 = vld [vmem:[#allocation77_spill] sm:$0xff] }
 0x366   : > { %v6270_v39 = vmax.f32 %v13588_v41, %v12226_v30  ;;  %v6306_v21 = vmax.f32 %v13590_v0, %v12241_v40  ;;  %v7819_v29 = vpack.c.bf16 %v6553_v36, %v6552_v24  ;;  %v7909_v7 = vpack.c.bf16 %v6589_v62, %v6588_v15  ;;  %v13603_v15 = vld [vmem:[#allocation156_spill] sm:$0xff]  ;;  %v13610_v62 = vld [vmem:[#allocation185_spill] sm:$0xff] }
 0x367   : > { %vm6408_vm9 = vcmp.ge.f32.partialorder %v6340_v58, 0.0  ;;  %v6483_v1 = vmul.f32 %v11930_v49, %v6340_v58  ;;  %vm6444_vm10 = vcmp.ge.f32.partialorder %v6376_v18, 0.0  ;;  %v6519_v31 = vmul.f32 %v11930_v49, %v6376_v18 }
 0x368   : > { %v6345_v23 = vadd.f32 %v11914_v10, %v6270_v39  ;;  %v6381_v30 = vadd.f32 %v11914_v10, %v6306_v21  ;;  %v13593_v40 = vmax.f32 %v13591_v26, %v13592_v59  ;;  %7933 = vst [vmem:[%s11985_s9 + $0x68] sm:$0xff] %v7819_v29   ;;  %7951 = vst [vmem:[%s11985_s9 + $0xf8] sm:$0xff] %v7909_v7   ;;  %v13613_v7 = vld [vmem:[#allocation187_spill] sm:$0xff] }
 0x369   : > { %v6551_v17 = vsel %vm6408_vm9, %v6340_v58, %v6483_v1  ;;  %v6587_v54 = vsel %vm6444_vm10, %v6376_v18, %v6519_v31  ;;  %v6304_v4 = vmax.f32 %v13595_v6, %v12247_v50  ;;  %v13598_v9 = vmax.f32 %v13596_v53, %v13597_v13  ;;  %v13599_v50 = vld [vmem:[#allocation11_spill] sm:$0xff]  ;;  %v13607_v58 = vld [vmem:[#allocation184_spill] sm:$0xff]  ;;  %v13611_v1 = vld [vmem:[#allocation157_spill] sm:$0xff] }
 0x36a   : > { %v6268_v44 = vmax.f32 %v13593_v40, %v12243_v32  ;;  %v7814_v2 = vpack.c.bf16 %v6551_v17, %v6550_v35  ;;  %v7904_v63 = vpack.c.bf16 %v6587_v54, %v6586_v19  ;;  %vm6413_vm11 = vcmp.ge.f32.partialorder %v6345_v23, 0.0  ;;  %v13608_v19 = vld [vmem:[#allocation107_spill] sm:$0xff]  ;;  %v13614_v31 = vld [vmem:[#allocation10_spill] sm:$0xff]  ;;  %v13617_v6 = vld [vmem:[#allocation44_spill] sm:$0xff] }
 0x36b   : > { %v6271_v34 = vmax.f32 %v13598_v9, %v12249_v47  ;;  %v6488_v37 = vmul.f32 %v11930_v49, %v6345_v23  ;;  %vm6449_vm12 = vcmp.ge.f32.partialorder %v6381_v30, 0.0  ;;  %v6524_v32 = vmul.f32 %v11930_v49, %v6381_v30 }
 0x36c   : > { %7932 = vst [vmem:[%s11985_s9 + $0x60] sm:$0xff] %v7814_v2   ;;  %v6343_v3 = vadd.f32 %v11914_v10, %v6268_v44  ;;  %v6379_v24 = vadd.f32 %v11914_v10, %v6304_v4  ;;  %7950 = vst [vmem:[%s11985_s9 + $0xf0] sm:$0xff] %v7904_v63   ;;  %v13601_v57 = vmax.f32 %v13599_v50, %v13600_v60 }
 0x36d   : > { %v6346_v51 = vadd.f32 %v11914_v10, %v6271_v34  ;;  %v13604_v56 = vmax.f32 %v13602_v8, %v13603_v15  ;;  %v6237_v55 = vmax.f32 %v13606_v27, %v13605_v16  ;;  %v6556_v45 = vsel %vm6413_vm11, %v6345_v23, %v6488_v37 }
 0x36e   : > { %v6307_v47 = vmax.f32 %v13601_v57, %v12254_v33  ;;  %v6592_v25 = vsel %vm6449_vm12, %v6381_v30, %v6524_v32  ;;  %vm6411_vm13 = vcmp.ge.f32.partialorder %v6343_v3, 0.0  ;;  %v6486_v35 = vmul.f32 %v11930_v49, %v6343_v3 }
 0x36f   : > { %v6269_v52 = vmax.f32 %v13604_v56, %v12256_v46  ;;  %vm6447_vm14 = vcmp.ge.f32.partialorder %v6379_v24, 0.0  ;;  %vm6414_vm15 = vcmp.ge.f32.partialorder %v6346_v51, 0.0  ;;  %v6489_v42 = vmul.f32 %v11930_v49, %v6346_v51 }
 0x370   : > { %v6382_v28 = vadd.f32 %v11914_v10, %v6307_v47  ;;  %v6522_v33 = vmul.f32 %v11930_v49, %v6379_v24  ;;  %v6305_v46 = vmax.f32 %v6237_v55, %v12271_v5  ;;  %v13609_v18 = vmax.f32 %v13607_v58, %v13608_v19 }
 0x371   : > { %v6344_v11 = vadd.f32 %v11914_v10, %v6269_v52  ;;  %v6554_v12 = vsel %vm6411_vm13, %v6343_v3, %v6486_v35  ;;  %v6557_v41 = vsel %vm6414_vm15, %v6346_v51, %v6489_v42  ;;  %v13612_v29 = vmax.f32 %v13610_v62, %v13611_v1 }
 0x372   : > { %v6274_v22 = vmax.f32 %v13609_v18, %v12285_v38  ;;  %vm6450_vm0 = vcmp.ge.f32.partialorder %v6382_v28, 0.0  ;;  %v6525_v39 = vmul.f32 %v11930_v49, %v6382_v28  ;;  %v7829_v14 = vpack.c.bf16 %v6557_v41, %v6556_v45 }
 0x373   : > { %vm6412_vm1 = vcmp.ge.f32.partialorder %v6344_v11, 0.0  ;;  %v6487_v0 = vmul.f32 %v11930_v49, %v6344_v11  ;;  %v6380_v21 = vadd.f32 %v11914_v10, %v6305_v46  ;;  %v6272_v38 = vmax.f32 %v13612_v29, %v12290_v61 }
 0x374   : > { %v6593_v36 = vsel %vm6450_vm0, %v6382_v28, %v6525_v39  ;;  %v6349_v5 = vadd.f32 %v11914_v10, %v6274_v22  ;;  %v13615_v17 = vmax.f32 %v13613_v7, %v13614_v31  ;;  %7935 = vst [vmem:[%s11985_s9 + $0x78] sm:$0xff] %v7829_v14   ;;  %v6590_v40 = vsel %vm6447_vm14, %v6379_v24, %v6522_v33 }
 0x375   : > { %v7919_v30 = vpack.c.bf16 %v6593_v36, %v6592_v25  ;;  %v6555_v26 = vsel %vm6412_vm1, %v6344_v11, %v6487_v0  ;;  %vm6448_vm2 = vcmp.ge.f32.partialorder %v6380_v21, 0.0  ;;  %v6523_v59 = vmul.f32 %v11930_v49, %v6380_v21 }
 0x376   : > { %v6275_v23 = vmax.f32 %v13615_v17, %v12304_v43  ;;  %v7824_v44 = vpack.c.bf16 %v6555_v26, %v6554_v12  ;;  %v6347_v2 = vadd.f32 %v11914_v10, %v6272_v38  ;;  %v6492_v61 = vmul.f32 %v11930_v49, %v6349_v5  ;;  %v13616_v43 = vld [vmem:[#allocation189_spill] sm:$0xff] }
 0x377   : > { %7953 = vst [vmem:[%s11985_s9 + $0x108] sm:$0xff] %v7919_v30   ;;  %v6591_v54 = vsel %vm6448_vm2, %v6380_v21, %v6523_v59  ;;  %v13618_v4 = vmax.f32 %v13616_v43, %v13617_v6  ;;  %vm6417_vm3 = vcmp.ge.f32.partialorder %v6349_v5, 0.0 }
 0x378   : > { %v6350_v20 = vadd.f32 %v11914_v10, %v6275_v23  ;;  %7934 = vst [vmem:[%s11985_s9 + $0x70] sm:$0xff] %v7824_v44   ;;  %v7914_v13 = vpack.c.bf16 %v6591_v54, %v6590_v40  ;;  %v6490_v9 = vmul.f32 %v11930_v49, %v6347_v2  ;;  %vm6415_vm5 = vcmp.ge.f32.partialorder %v6347_v2, 0.0 }
 0x379   : > { %v6273_v53 = vmax.f32 %v13618_v4, %v12306_v48  ;;  %v6560_v37 = vsel %vm6417_vm3, %v6349_v5, %v6492_v61 }
 0x37a   : > { %vm6418_vm4 = vcmp.ge.f32.partialorder %v6350_v20, 0.0  ;;  %v6493_v34 = vmul.f32 %v11930_v49, %v6350_v20  ;;  %7952 = vst [vmem:[%s11985_s9 + $0x100] sm:$0xff] %v7914_v13   ;;  %v6558_v24 = vsel %vm6415_vm5, %v6347_v2, %v6490_v9 }
 0x37b   : > { %v6348_v63 = vadd.f32 %v11914_v10, %v6273_v53 }
 0x37c   : > { %v6561_v32 = vsel %vm6418_vm4, %v6350_v20, %v6493_v34 }
 0x37d   : > { %vm6416_vm6 = vcmp.ge.f32.partialorder %v6348_v63, 0.0  ;;  %v6491_v3 = vmul.f32 %v11930_v49, %v6348_v63  ;;  %v7839_v48 = vpack.c.bf16 %v6561_v32, %v6560_v37 }
 0x37f   : > { %v6559_v51 = vsel %vm6416_vm6, %v6348_v63, %v6491_v3  ;;  %7937 = vst [vmem:[%s11985_s9 + $0x88] sm:$0xff] %v7839_v48  }
 0x380   : > { %v7834_v50 = vpack.c.bf16 %v6559_v51, %v6558_v24 }
 0x382   : > { %7936 = vst [vmem:[%s11985_s9 + $0x80] sm:$0xff] %v7834_v50  }
 0x383 PF: > { %s14_s15 = sadd.s32 1, %s9206_s15  }
 0x384   : > { %p11_p5 = scmp.ge.s32.totalorder %s14_s15, 4  }
 0x386   :  { %13 = sbr.rel (!%p11_p5) target bundleno = 1 (0x1), region = 66 }

// kernel: onet_forward.6
= control target key start
LH: loop header
LB: loop body
LE: loop exit
PB: predicated region body
PF: predicated region fallthrough
CT: control target
= control target key end

     0   :  { %s4228_s15 = smov 0   ;;  %s5628_s0 = inlined_call_operand.vmem [shape: bf16[2,1008,288], index: 0, kind: input, shape index: {}]   ;;  %s5629_s1 = inlined_call_operand.vmem [shape: bf16[288,128], index: 1, kind: input, shape index: {}]   ;;  %s5630_s2 = inlined_call_operand.vmem [shape: f32[1,128], index: 2, kind: input, shape index: {}]   ;;  %s5631_s3 = inlined_call_operand.vmem [shape: f32[1,128], index: 3, kind: input, shape index: {}]   ;;  %s5632_s4 = inlined_call_operand.vmem [shape: bf16[224,128], index: 4, kind: output, shape index: {}]  }
   0x1 LB: > { %s4234_s16 = sadd.s32 4294967295, %s4198_s15   ;;  %p3117_p0 = scmp.ge.s32.totalorder %s4198_s15, 1  ;;  %s4198_s15 = sphi %s4228_s15, %s14_s15  }
   0x2   : > { %p162_p1 = scmp.lt.s32.totalorder %s4198_s15, 3 }
   0x4   : > { %p163_p2 = pnand %p3117_p0, %p162_p1 }
   0x5   : > { %v3922_v0 = vld [vmem:[%s5629_s1] sm:$0xff] (!%p163_p2)   ;;  %v4200_v1 = vmov (!%p163_p2), 0   ;;  %v3923_v2 = vld [vmem:[%s5629_s1 + $0x8] sm:$0xff] (!%p163_p2)   ;;  %v4201_v3 = vmov (!%p163_p2), 0.0   ;;  %vm4202_vm0 = vmmov (!%p163_p2), 0   ;;  %p188_p3 = scmp.lt.s32.totalorder (!%p163_p2), %s4234_s16, 1 }
   0x6   : > { %166 = sbr.rel (%p163_p2) target bundleno = 792 (0x318), region = 36  ;;  %1731 = vmatprep.subr.bf16.mxu1 (!%p163_p2), %v4200_v1  ;;  %3528 = vmatprep.subr.bf16.mxu0 (!%p163_p2), %v4201_v3  ;;  %v3924_v4 = vld [vmem:[%s5629_s1 + $0x10] sm:$0xff] (!%p163_p2)   ;;  %v3925_v5 = vld [vmem:[%s5629_s1 + $0x18] sm:$0xff] (!%p163_p2)   ;;  %v3926_v6 = vld [vmem:[%s5629_s1 + $0x20] sm:$0xff] (!%p163_p2)   ;;  %vm1541_vm1 = vcmask (!%p163_p2), 261120  }
   0x7   : > { %1732 = vmatpush1.bf16.msra.mxu1 (!%p163_p2), %v3922_v0  ;;  %3532 = vmatprep.mubr.msk.bf16.mxu0 (!%p163_p2), %vm4202_vm0, %v4201_v3  ;;  %v3936_v7 = vld [vmem:[%s5629_s1 + $0x80] sm:$0xff] (!%p163_p2)   ;;  %v3938_v8 = vld [vmem:[%s5629_s1 + $0x88] sm:$0xff] (!%p163_p2)   ;;  %v3928_v12 = vld [vmem:[%s5629_s1 + $0x30] sm:$0xff] (!%p163_p2)   ;;  %s193_s8 = smul.u32 (!%p163_p2), 14, %s4234_s16 }
   0x8   : > { %1733 = vmatprep.subr.bf16.mxu1 (!%p163_p2), %v4200_v1  ;;  %3529 = vmatpush3.bf16.msra.mxu0 (!%p163_p2), %v3936_v7  ;;  %v3927_v9 = vld [vmem:[%s5629_s1 + $0x28] sm:$0xff] (!%p163_p2)   ;;  %v3929_v13 = vld [vmem:[%s5629_s1 + $0x38] sm:$0xff] (!%p163_p2)   ;;  %v3930_v15 = vld [vmem:[%s5629_s1 + $0x40] sm:$0xff] (!%p163_p2)  }
   0x9   : > { %3530 = vmatprep.subr.bf16.mxu0 (!%p163_p2), %v4201_v3  ;;  %v3931_v16 = vld [vmem:[%s5629_s1 + $0x48] sm:$0xff] (!%p163_p2)   ;;  %v3932_v18 = vld [vmem:[%s5629_s1 + $0x50] sm:$0xff] (!%p163_p2)   ;;  %v3933_v19 = vld [vmem:[%s5629_s1 + $0x58] sm:$0xff] (!%p163_p2)   ;;  %p194_p4 = scmp.lt.s32.totalorder (!%p163_p2), %s193_s8, 27 }
   0xa   : > { %v3934_v21 = vld [vmem:[%s5629_s1 + $0x60] sm:$0xff] (!%p163_p2)   ;;  %v3935_v22 = vld [vmem:[%s5629_s1 + $0x68] sm:$0xff] (!%p163_p2)   ;;  %v3937_v24 = vld [vmem:[%s5629_s1 + $0x70] sm:$0xff] (!%p163_p2)  }
   0xb   : > { %1734 = vmatpush1.bf16.msra.mxu1 (!%p163_p2), %v3923_v2  ;;  %v3939_v25 = vld [vmem:[%s5629_s1 + $0x78] sm:$0xff] (!%p163_p2)  }
   0xc   : > { %1735 = vmatprep.subr.bf16.mxu1 (!%p163_p2), %v4200_v1  ;;  %3531 = vmatpush3.bf16.msra.mxu0 (!%p163_p2), %v3938_v8 }
   0xd   : > { %s189_s23 = scalar_select %p188_p3, %s4234_s16, 1 }
   0xe   : > { %s5640_s8 = smov (!%p194_p4, %s193_s8), 27 }
   0xf   : > { %1736 = vmatpush1.bf16.msra.mxu1 %v3924_v4  ;;  %s3910_s26 = smul.u32 1512, %s189_s23  ;;  %s3119_s12 = sshll.u32 %s5640_s8, 2 }
  0x10   : > { %1737 = vmatprep.subr.bf16.mxu1 %v4200_v1  ;;  %s5545_s17 = scalar_lea.vmem %s5632_s4, %s3119_s12 }
  0x11   : > { %s4272_s9 = scalar_lea.vmem %s5628_s0, %s3910_s26 }
  0x12   : > { %v3940_v10 = vld [vmem:[%s4272_s9 + $0x8] ss:$12 sps:$4 sm:$0xff]   ;;  %v3943_v11 = vld [vmem:[%s4272_s9 + $0x4] ss:$12 sps:$4 sm:$0xff]   ;;  %v3944_v14 = vld [vmem:[%s4272_s9 + $0x20] ss:$12 sps:$4 sm:$0xff]  }
  0x13   : > { %1738 = vmatpush1.bf16.msra.mxu1 %v3925_v5  ;;  %1763 = vmatprep.mubr.bf16.mxu1 %v3943_v11  ;;  %v3948_v17 = vld [vmem:[%s4272_s9 + $0x38] ss:$12 sps:$4 sm:$0xff]   ;;  %v3952_v20 = vld [vmem:[%s4272_s9 + $0x50] ss:$12 sps:$4 sm:$0xff]   ;;  %v3956_v23 = vld [vmem:[%s4272_s9 + $0x68] ss:$12 sps:$4 sm:$0xff]  }
  0x14   : > { %1739 = vmatprep.subr.bf16.mxu1 %v4200_v1  ;;  %3533 = vmatmul.mubr.msk.bf16.vlgmr.msra.gmra.mrb[0].mxu0 %vm1541_vm1, %v3940_v10  ;;  %v3960_v26 = vld [vmem:[%s4272_s9 + $0x80] ss:$12 sps:$4 sm:$0xff]   ;;  %v3945_v28 = vld [vmem:[%s4272_s9 + $0x1c] ss:$12 sps:$4 sm:$0xff]   ;;  %v3964_v29 = vld [vmem:[%s4272_s9 + $0x98] ss:$12 sps:$4 sm:$0xff]  }
  0x15   : > { %3536 = vmatprep.mubr.msk.bf16.mxu0 %vm4202_vm0, %v4201_v3  ;;  %v3941_v27 = vld [vmem:[%s4272_s9] ss:$12 sps:$4 sm:$0xff]   ;;  %v3947_v30 = vld [vmem:[%s4272_s9 + $0x18] ss:$12 sps:$4 sm:$0xff]   ;;  %v3968_v32 = vld [vmem:[%s4272_s9 + $0xb0] ss:$12 sps:$4 sm:$0xff]  }
  0x16   : > { %v3949_v31 = vld [vmem:[%s4272_s9 + $0x34] ss:$12 sps:$4 sm:$0xff]   ;;  %v3951_v33 = vld [vmem:[%s4272_s9 + $0x30] ss:$12 sps:$4 sm:$0xff]   ;;  %v3953_v34 = vld [vmem:[%s4272_s9 + $0x4c] ss:$12 sps:$4 sm:$0xff]  }
  0x17   : > { %1740 = vmatpush1.bf16.msra.mxu1 %v3926_v6  ;;  %v3972_v35 = vld [vmem:[%s4272_s9 + $0xc8] ss:$12 sps:$4 sm:$0xff]   ;;  %v3957_v37 = vld [vmem:[%s4272_s9 + $0x64] ss:$12 sps:$4 sm:$0xff]   ;;  %v3976_v38 = vld [vmem:[%s4272_s9 + $0xe0] ss:$12 sps:$4 sm:$0xff]  }
  0x18   : > { %1741 = vmatprep.subr.bf16.mxu1 %v4200_v1  ;;  %v3955_v36 = vld [vmem:[%s4272_s9 + $0x48] ss:$12 sps:$4 sm:$0xff]   ;;  %v3959_v39 = vld [vmem:[%s4272_s9 + $0x60] ss:$12 sps:$4 sm:$0xff]   ;;  %v3980_v41 = vld [vmem:[%s4272_s9 + $0xf8] ss:$12 sps:$4 sm:$0xff]  }
  0x19   : > { %v3961_v40 = vld [vmem:[%s4272_s9 + $0x7c] ss:$12 sps:$4 sm:$0xff]   ;;  %v3963_v42 = vld [vmem:[%s4272_s9 + $0x78] ss:$12 sps:$4 sm:$0xff]   ;;  %v3965_v43 = vld [vmem:[%s4272_s9 + $0x94] ss:$12 sps:$4 sm:$0xff]  }
  0x1a   : > { %v3984_v44 = vld [vmem:[%s4272_s9 + $0x110] ss:$12 sps:$4 sm:$0xff]   ;;  %v3969_v46 = vld [vmem:[%s4272_s9 + $0xac] ss:$12 sps:$4 sm:$0xff]   ;;  %v3988_v47 = vld [vmem:[%s4272_s9 + $0x128] ss:$12 sps:$4 sm:$0xff]  }
  0x1b   : > { %1742 = vmatpush1.bf16.msra.mxu1 %v3927_v9  ;;  %v3967_v45 = vld [vmem:[%s4272_s9 + $0x90] ss:$12 sps:$4 sm:$0xff]   ;;  %v3971_v48 = vld [vmem:[%s4272_s9 + $0xa8] ss:$12 sps:$4 sm:$0xff]   ;;  %v3992_v50 = vld [vmem:[%s4272_s9 + $0x140] ss:$12 sps:$4 sm:$0xff]  }
  0x1c   : > { %1743 = vmatprep.subr.bf16.mxu1 %v4200_v1  ;;  %3537 = vmatmul.mubr.msk.bf16.gmra.mrb[4].mxu0 %vm1541_vm1, %v3944_v14  ;;  %v3973_v49 = vld [vmem:[%s4272_s9 + $0xc4] ss:$12 sps:$4 sm:$0xff]   ;;  %v3975_v51 = vld [vmem:[%s4272_s9 + $0xc0] ss:$12 sps:$4 sm:$0xff]   ;;  %v3977_v52 = vld [vmem:[%s4272_s9 + $0xdc] ss:$12 sps:$4 sm:$0xff]  }
  0x1d   : > { %3540 = vmatprep.mubr.msk.bf16.mxu0 %vm4202_vm0, %v4201_v3  ;;  %v3996_v53 = vld [vmem:[%s4272_s9 + $0x158] ss:$12 sps:$4 sm:$0xff]   ;;  %v3981_v55 = vld [vmem:[%s4272_s9 + $0xf4] ss:$12 sps:$4 sm:$0xff]   ;;  %v4000_v56 = vld [vmem:[%s4272_s9 + $0x170] ss:$12 sps:$4 sm:$0xff]  }
  0x1e   : > { %v3979_v54 = vld [vmem:[%s4272_s9 + $0xd8] ss:$12 sps:$4 sm:$0xff]   ;;  %v3983_v57 = vld [vmem:[%s4272_s9 + $0xf0] ss:$12 sps:$4 sm:$0xff]   ;;  %v4004_v59 = vld [vmem:[%s4272_s9 + $0x188] ss:$12 sps:$4 sm:$0xff]  }
  0x1f   : > { %1744 = vmatpush1.bf16.msra.mxu1 %v3928_v12  ;;  %v3985_v58 = vld [vmem:[%s4272_s9 + $0x10c] ss:$12 sps:$4 sm:$0xff]   ;;  %v3987_v60 = vld [vmem:[%s4272_s9 + $0x108] ss:$12 sps:$4 sm:$0xff]   ;;  %v3989_v61 = vld [vmem:[%s4272_s9 + $0x124] ss:$12 sps:$4 sm:$0xff]  }
  0x20   : > { %1745 = vmatprep.subr.bf16.mxu1 %v4200_v1  ;;  %v4008_v62 = vld [vmem:[%s4272_s9 + $0x1a0] ss:$12 sps:$4 sm:$0xff]   ;;  %v3993_v0 = vld [vmem:[%s4272_s9 + $0x13c] ss:$12 sps:$4 sm:$0xff]   ;;  %v3995_v2 = vld [vmem:[%s4272_s9 + $0x138] ss:$12 sps:$4 sm:$0xff]  }
  0x21   : > { %v3991_v63 = vld [vmem:[%s4272_s9 + $0x120] ss:$12 sps:$4 sm:$0xff]   ;;  %v4016_v5 = vld [vmem:[%s4272_s9 + $0x1d0] ss:$12 sps:$4 sm:$0xff]   ;;  %v4020_v8 = vld [vmem:[%s4272_s9 + $0x1e8] ss:$12 sps:$4 sm:$0xff]  }
  0x22   : > { %v3997_v4 = vld [vmem:[%s4272_s9 + $0x154] ss:$12 sps:$4 sm:$0xff]   ;;  %v3999_v6 = vld [vmem:[%s4272_s9 + $0x150] ss:$12 sps:$4 sm:$0xff]   ;;  %v4001_v7 = vld [vmem:[%s4272_s9 + $0x16c] ss:$12 sps:$4 sm:$0xff]  }
  0x23   : > { %1746 = vmatpush1.bf16.msra.mxu1 %v3929_v13  ;;  %v4003_v9 = vld [vmem:[%s4272_s9 + $0x168] ss:$12 sps:$4 sm:$0xff]   ;;  %v4005_v10 = vld [vmem:[%s4272_s9 + $0x184] ss:$12 sps:$4 sm:$0xff]   ;;  %v4024_v11 = vld [vmem:[%s4272_s9 + $0x200] ss:$12 sps:$4 sm:$0xff]  }
  0x24   : > { %1747 = vmatprep.subr.bf16.mxu1 %v4200_v1  ;;  %3541 = vmatmul.mubr.msk.bf16.gmra.mrb[8].mxu0 %vm1541_vm1, %v3948_v17  ;;  %v4007_v12 = vld [vmem:[%s4272_s9 + $0x180] ss:$12 sps:$4 sm:$0xff]   ;;  %v4009_v13 = vld [vmem:[%s4272_s9 + $0x19c] ss:$12 sps:$4 sm:$0xff]   ;;  %v4028_v14 = vld [vmem:[%s4272_s9 + $0x218] ss:$12 sps:$4 sm:$0xff]  }
  0x25   : > { %3544 = vmatprep.mubr.msk.bf16.mxu0 %vm4202_vm0, %v4201_v3  ;;  %v4032_v17 = vld [vmem:[%s4272_s9 + $0x230] ss:$12 sps:$4 sm:$0xff]  }
  0x27   : > { %1748 = vmatpush1.bf16.msra.mxu1 %v3930_v15  ;;  %v4011_v15 = vld [vmem:[%s4272_s9 + $0x198] ss:$12 sps:$4 sm:$0xff]  }
  0x28   : > { %1749 = vmatprep.subr.bf16.mxu1 %v4200_v1 }
  0x2b   : > { %1750 = vmatpush1.bf16.msra.mxu1 %v3931_v16  ;;  %v4013_v16 = vld [vmem:[%s4272_s9 + $0x1b4] ss:$12 sps:$4 sm:$0xff]  }
  0x2c   : > { %1751 = vmatprep.subr.bf16.mxu1 %v4200_v1  ;;  %3545 = vmatmul.mubr.msk.bf16.gmra.mrb[12].mxu0 %vm1541_vm1, %v3952_v20  ;;  %v4036_v20 = vld [vmem:[%s4272_s9 + $0x248] ss:$12 sps:$4 sm:$0xff]  }
  0x2d   : > { %3548 = vmatprep.mubr.msk.bf16.mxu0 %vm4202_vm0, %v4201_v3 }
  0x2f   : > { %1752 = vmatpush1.bf16.msra.mxu1 %v3932_v18  ;;  %v4015_v18 = vld [vmem:[%s4272_s9 + $0x1b0] ss:$12 sps:$4 sm:$0xff]  }
  0x30   : > { %1753 = vmatprep.subr.bf16.mxu1 %v4200_v1 }
  0x33   : > { %1754 = vmatpush1.bf16.msra.mxu1 %v3933_v19  ;;  %v4017_v19 = vld [vmem:[%s4272_s9 + $0x1cc] ss:$12 sps:$4 sm:$0xff]  }
  0x34   : > { %1755 = vmatprep.subr.bf16.mxu1 %v4200_v1  ;;  %3549 = vmatmul.mubr.msk.bf16.gmra.mrb[16].mxu0 %vm1541_vm1, %v3956_v23  ;;  %v4040_v23 = vld [vmem:[%s4272_s9 + $0x260] ss:$12 sps:$4 sm:$0xff]  }
  0x35   : > { %3552 = vmatprep.mubr.msk.bf16.mxu0 %vm4202_vm0, %v4201_v3 }
  0x37   : > { %1756 = vmatpush1.bf16.msra.mxu1 %v3934_v21  ;;  %v4019_v21 = vld [vmem:[%s4272_s9 + $0x1c8] ss:$12 sps:$4 sm:$0xff]  }
  0x38   : > { %1757 = vmatprep.subr.bf16.mxu1 %v4200_v1 }
  0x3b   : > { %1758 = vmatpush1.bf16.msra.mxu1 %v3935_v22  ;;  %v4021_v22 = vld [vmem:[%s4272_s9 + $0x1e4] ss:$12 sps:$4 sm:$0xff]  }
  0x3c   : > { %1759 = vmatprep.subr.bf16.mxu1 %v4200_v1  ;;  %3553 = vmatmul.mubr.msk.bf16.gmra.mrb[20].mxu0 %vm1541_vm1, %v3960_v26  ;;  %v4044_v26 = vld [vmem:[%s4272_s9 + $0x278] ss:$12 sps:$4 sm:$0xff]  }
  0x3d   : > { %3556 = vmatprep.mubr.msk.bf16.mxu0 %vm4202_vm0, %v4201_v3 }
  0x3f   : > { %1760 = vmatpush1.bf16.msra.mxu1 %v3937_v24  ;;  %v4023_v24 = vld [vmem:[%s4272_s9 + $0x1e0] ss:$12 sps:$4 sm:$0xff]  }
  0x40   : > { %1761 = vmatprep.subr.bf16.mxu1 %v4200_v1  ;;  %v4012_v1 = vld [vmem:[%s4272_s9 + $0x1b8] ss:$12 sps:$4 sm:$0xff]  }
  0x43   : > { %1762 = vmatpush1.bf16.msra.mxu1 %v3939_v25  ;;  %v4025_v25 = vld [vmem:[%s4272_s9 + $0x1fc] ss:$12 sps:$4 sm:$0xff]  }
  0x44   : > { %3557 = vmatmul.mubr.msk.bf16.gmra.mrb[24].mxu0 %vm1541_vm1, %v3964_v29 }
  0x45   : > { %3560 = vmatprep.mubr.msk.bf16.mxu0 %vm4202_vm0, %v4201_v3 }
  0x46   : > { %1764 = vmatmul.mubr.bf16.vlgmr.msra.gmra.mrb[0].mxu1 %v3941_v27  ;;  %v4027_v27 = vld [vmem:[%s4272_s9 + $0x1f8] ss:$12 sps:$4 sm:$0xff]  }
  0x47   : > { %1771 = vmatprep.mubr.bf16.mxu1 %v3945_v28  ;;  %v4029_v28 = vld [vmem:[%s4272_s9 + $0x214] ss:$12 sps:$4 sm:$0xff]  }
  0x4c   : > { %3561 = vmatmul.mubr.msk.bf16.gmra.mrb[28].mxu0 %vm1541_vm1, %v3968_v32 }
  0x4d   : > { %3564 = vmatprep.mubr.msk.bf16.mxu0 %vm4202_vm0, %v4201_v3 }
  0x4e   : > { %1772 = vmatmul.mubr.bf16.gmra.mrb[4].mxu1 %v3947_v30 }
  0x4f   : > { %1779 = vmatprep.mubr.bf16.mxu1 %v3949_v31  ;;  %v4048_v31 = vld [vmem:[%s4272_s9 + $0x290] ss:$12 sps:$4 sm:$0xff]  }
  0x54   : > { %3565 = vmatmul.mubr.msk.bf16.gmra.mrb[32].mxu0 %vm1541_vm1, %v3972_v35  ;;  %v4033_v35 = vld [vmem:[%s4272_s9 + $0x22c] ss:$12 sps:$4 sm:$0xff]  }
  0x55   : > { %3568 = vmatprep.mubr.msk.bf16.mxu0 %vm4202_vm0, %v4201_v3 }
  0x56   : > { %1780 = vmatmul.mubr.bf16.gmra.mrb[8].mxu1 %v3951_v33  ;;  %v4031_v33 = vld [vmem:[%s4272_s9 + $0x210] ss:$12 sps:$4 sm:$0xff]  }
  0x57   : > { %1787 = vmatprep.mubr.bf16.mxu1 %v3953_v34 }
  0x5c   : > { %3569 = vmatmul.mubr.msk.bf16.gmra.mrb[36].mxu0 %vm1541_vm1, %v3976_v38  ;;  %v4052_v38 = vld [vmem:[%s4272_s9 + $0x2a8] ss:$12 sps:$4 sm:$0xff]  }
  0x5d   : > { %3572 = vmatprep.mubr.msk.bf16.mxu0 %vm4202_vm0, %v4201_v3 }
  0x5e   : > { %1788 = vmatmul.mubr.bf16.gmra.mrb[12].mxu1 %v3955_v36 }
  0x5f   : > { %1795 = vmatprep.mubr.bf16.mxu1 %v3957_v37 }
  0x64   : > { %3573 = vmatmul.mubr.msk.bf16.gmra.mrb[40].mxu0 %vm1541_vm1, %v3980_v41 }
  0x65   : > { %3576 = vmatprep.mubr.msk.bf16.mxu0 %vm4202_vm0, %v4201_v3 }
  0x66   : > { %1796 = vmatmul.mubr.bf16.gmra.mrb[16].mxu1 %v3959_v39 }
  0x67   : > { %1803 = vmatprep.mubr.bf16.mxu1 %v3961_v40  ;;  %v4035_v40 = vld [vmem:[%s4272_s9 + $0x228] ss:$12 sps:$4 sm:$0xff]  }
  0x6c   : > { %3577 = vmatmul.mubr.msk.bf16.gmra.mrb[44].mxu0 %vm1541_vm1, %v3984_v44 }
  0x6d   : > { %3580 = vmatprep.mubr.msk.bf16.mxu0 %vm4202_vm0, %v4201_v3 }
  0x6e   : > { %1804 = vmatmul.mubr.bf16.gmra.mrb[20].mxu1 %v3963_v42  ;;  %v4037_v42 = vld [vmem:[%s4272_s9 + $0x244] ss:$12 sps:$4 sm:$0xff]  }
  0x6f   : > { %1811 = vmatprep.mubr.bf16.mxu1 %v3965_v43 }
  0x74   : > { %3581 = vmatmul.mubr.msk.bf16.gmra.mrb[48].mxu0 %vm1541_vm1, %v3988_v47  ;;  %v4039_v47 = vld [vmem:[%s4272_s9 + $0x240] ss:$12 sps:$4 sm:$0xff]  }
  0x75   : > { %3584 = vmatprep.mubr.msk.bf16.mxu0 %vm4202_vm0, %v4201_v3 }
  0x76   : > { %1812 = vmatmul.mubr.bf16.gmra.mrb[24].mxu1 %v3967_v45  ;;  %v4056_v45 = vld [vmem:[%s4272_s9 + $0x2c0] ss:$12 sps:$4 sm:$0xff]  }
  0x77   : > { %1819 = vmatprep.mubr.bf16.mxu1 %v3969_v46 }
  0x7c   : > { %3585 = vmatmul.mubr.msk.bf16.gmra.mrb[52].mxu0 %vm1541_vm1, %v3992_v50 }
  0x7d   : > { %3588 = vmatprep.mubr.msk.bf16.mxu0 %vm4202_vm0, %v4201_v3 }
  0x7e   : > { %1820 = vmatmul.mubr.bf16.gmra.mrb[28].mxu1 %v3971_v48 }
  0x7f   : > { %1827 = vmatprep.mubr.bf16.mxu1 %v3973_v49  ;;  %v4041_v49 = vld [vmem:[%s4272_s9 + $0x25c] ss:$12 sps:$4 sm:$0xff]  }
  0x84   : > { %3589 = vmatmul.mubr.msk.bf16.gmra.mrb[56].mxu0 %vm1541_vm1, %v3996_v53 }
  0x85   : > { %3592 = vmatprep.mubr.msk.bf16.mxu0 %vm4202_vm0, %v4201_v3 }
  0x86   : > { %1828 = vmatmul.mubr.bf16.gmra.mrb[32].mxu1 %v3975_v51 }
  0x87   : > { %1835 = vmatprep.mubr.bf16.mxu1 %v3977_v52  ;;  %v4060_v52 = vld [vmem:[%s4272_s9 + $0x2d8] ss:$12 sps:$4 sm:$0xff]  }
  0x8c   : > { %3593 = vmatmul.mubr.msk.bf16.gmra.mrb[60].mxu0 %vm1541_vm1, %v4000_v56  ;;  %v4045_v56 = vld [vmem:[%s4272_s9 + $0x274] ss:$12 sps:$4 sm:$0xff]  }
  0x8d   : > { %3596 = vmatprep.mubr.msk.bf16.mxu0 %vm4202_vm0, %v4201_v3 }
  0x8e   : > { %1836 = vmatmul.mubr.bf16.gmra.mrb[36].mxu1 %v3979_v54  ;;  %v4043_v54 = vld [vmem:[%s4272_s9 + $0x258] ss:$12 sps:$4 sm:$0xff]  }
  0x8f   : > { %1843 = vmatprep.mubr.bf16.mxu1 %v3981_v55 }
  0x94   : > { %3597 = vmatmul.mubr.msk.bf16.gmra.mrb[64].mxu0 %vm1541_vm1, %v4004_v59  ;;  %v4064_v59 = vld [vmem:[%s4272_s9 + $0x2f0] ss:$12 sps:$4 sm:$0xff]  }
  0x95   : > { %3600 = vmatprep.mubr.msk.bf16.mxu0 %vm4202_vm0, %v4201_v3 }
  0x96   : > { %1844 = vmatmul.mubr.bf16.gmra.mrb[40].mxu1 %v3983_v57 }
  0x97   : > { %1851 = vmatprep.mubr.bf16.mxu1 %v3985_v58 }
  0x9c   : > { %3601 = vmatmul.mubr.msk.bf16.gmra.mrb[68].mxu0 %vm1541_vm1, %v4008_v62 }
  0x9d   : > { %3604 = vmatprep.mubr.msk.bf16.mxu0 %vm4202_vm0, %v4201_v3 }
  0x9e   : > { %1852 = vmatmul.mubr.bf16.gmra.mrb[44].mxu1 %v3987_v60 }
  0x9f   : > { %1859 = vmatprep.mubr.bf16.mxu1 %v3989_v61  ;;  %v4047_v61 = vld [vmem:[%s4272_s9 + $0x270] ss:$12 sps:$4 sm:$0xff]  }
  0xa4   : > { %3605 = vmatmul.mubr.msk.bf16.gmra.mrb[72].mxu0 %vm1541_vm1, %v4012_v1 }
  0xa5   : > { %3608 = vmatprep.mubr.msk.bf16.mxu0 %vm4202_vm0, %v4201_v3 }
  0xa6   : > { %1860 = vmatmul.mubr.bf16.gmra.mrb[48].mxu1 %v3991_v63  ;;  %v4049_v63 = vld [vmem:[%s4272_s9 + $0x28c] ss:$12 sps:$4 sm:$0xff]  }
  0xa7   : > { %1867 = vmatprep.mubr.bf16.mxu1 %v3993_v0 }
  0xac   : > { %3609 = vmatmul.mubr.msk.bf16.gmra.mrb[76].mxu0 %vm1541_vm1, %v4016_v5 }
  0xad   : > { %3612 = vmatprep.mubr.msk.bf16.mxu0 %vm4202_vm0, %v4201_v3 }
  0xae   : > { %1868 = vmatmul.mubr.bf16.gmra.mrb[52].mxu1 %v3995_v2  ;;  %v4068_v2 = vld [vmem:[%s4272_s9 + $0x308] ss:$12 sps:$4 sm:$0xff]  }
  0xaf   : > { %1875 = vmatprep.mubr.bf16.mxu1 %v3997_v4 }
  0xb4   : > { %3613 = vmatmul.mubr.msk.bf16.gmra.mrb[80].mxu0 %vm1541_vm1, %v4020_v8  ;;  %v4051_v8 = vld [vmem:[%s4272_s9 + $0x288] ss:$12 sps:$4 sm:$0xff]  }
  0xb5   : > { %3616 = vmatprep.mubr.msk.bf16.mxu0 %vm4202_vm0, %v4201_v3 }
  0xb6   : > { %1876 = vmatmul.mubr.bf16.gmra.mrb[56].mxu1 %v3999_v6 }
  0xb7   : > { %1883 = vmatprep.mubr.bf16.mxu1 %v4001_v7 }
  0xbc   : > { %3617 = vmatmul.mubr.msk.bf16.gmra.mrb[84].mxu0 %vm1541_vm1, %v4024_v11  ;;  %v4053_v11 = vld [vmem:[%s4272_s9 + $0x2a4] ss:$12 sps:$4 sm:$0xff]  }
  0xbd   : > { %3620 = vmatprep.mubr.msk.bf16.mxu0 %vm4202_vm0, %v4201_v3 }
  0xbe   : > { %1884 = vmatmul.mubr.bf16.gmra.mrb[60].mxu1 %v4003_v9 }
  0xbf   : > { %1891 = vmatprep.mubr.bf16.mxu1 %v4005_v10 }
  0xc4   : > { %3621 = vmatmul.mubr.msk.bf16.gmra.mrb[88].mxu0 %vm1541_vm1, %v4028_v14 }
  0xc5   : > { %3624 = vmatprep.mubr.msk.bf16.mxu0 %vm4202_vm0, %v4201_v3 }
  0xc6   : > { %1892 = vmatmul.mubr.bf16.gmra.mrb[64].mxu1 %v4007_v12 }
  0xc7   : > { %1899 = vmatprep.mubr.bf16.mxu1 %v4009_v13 }
  0xcc   : > { %3625 = vmatmul.mubr.msk.bf16.gmra.mrb[92].mxu0 %vm1541_vm1, %v4032_v17 }
  0xcd   : > { %3628 = vmatprep.mubr.msk.bf16.mxu0 %vm4202_vm0, %v4201_v3 }
  0xce   : > { %1900 = vmatmul.mubr.bf16.gmra.mrb[68].mxu1 %v4011_v15 }
  0xcf   : > { %1907 = vmatprep.mubr.bf16.mxu1 %v4013_v16  ;;  %v4072_v16 = vld [vmem:[%s4272_s9 + $0x320] ss:$12 sps:$4 sm:$0xff]  }
  0xd4   : > { %3629 = vmatmul.mubr.msk.bf16.gmra.mrb[96].mxu0 %vm1541_vm1, %v4036_v20 }
  0xd5   : > { %3632 = vmatprep.mubr.msk.bf16.mxu0 %vm4202_vm0, %v4201_v3 }
  0xd6   : > { %1908 = vmatmul.mubr.bf16.gmra.mrb[72].mxu1 %v4015_v18 }
  0xd7   : > { %1915 = vmatprep.mubr.bf16.mxu1 %v4017_v19 }
  0xdc   : > { %3633 = vmatmul.mubr.msk.bf16.gmra.mrb[100].mxu0 %vm1541_vm1, %v4040_v23 }
  0xdd   : > { %3636 = vmatprep.mubr.msk.bf16.mxu0 %vm4202_vm0, %v4201_v3 }
  0xde   : > { %1916 = vmatmul.mubr.bf16.gmra.mrb[76].mxu1 %v4019_v21  ;;  %v4055_v21 = vld [vmem:[%s4272_s9 + $0x2a0] ss:$12 sps:$4 sm:$0xff]  }
  0xdf   : > { %1923 = vmatprep.mubr.bf16.mxu1 %v4021_v22 }
  0xe4   : > { %3637 = vmatmul.mubr.msk.bf16.gmra.mrb[104].mxu0 %vm1541_vm1, %v4044_v26 }
  0xe5   : > { %3640 = vmatprep.mubr.msk.bf16.mxu0 %vm4202_vm0, %v4201_v3 }
  0xe6   : > { %1924 = vmatmul.mubr.bf16.gmra.mrb[80].mxu1 %v4023_v24  ;;  %v4057_v24 = vld [vmem:[%s4272_s9 + $0x2bc] ss:$12 sps:$4 sm:$0xff]  }
  0xe7   : > { %1931 = vmatprep.mubr.bf16.mxu1 %v4025_v25  ;;  %v2302_v29 = vpop.f32.mrb[0].mxu0 }
  0xe8   : > { %v3534_v30 = vpop.f32.mrb[1].mxu0 }
  0xe9   : > { %v4473_v32 = vpop.f32.mrb[2].mxu0 }
  0xea   : > { %v3535_v34 = vpop.f32.mrb[3].mxu0 }
  0xeb   : > { %v4059_v34 = vld [vmem:[%s4272_s9 + $0x2b8] ss:$12 sps:$4 sm:$0xff]  }
  0xec   : > { %3641 = vmatmul.mubr.msk.bf16.gmra.mrb[108].mxu0 %vm1541_vm1, %v4048_v31 }
  0xed   : > { %3644 = vmatprep.mubr.msk.bf16.mxu0 %vm4202_vm0, %v4201_v3 }
  0xee   : > { %1932 = vmatmul.mubr.bf16.gmra.mrb[84].mxu1 %v4027_v27 }
  0xef   : > { %1939 = vmatprep.mubr.bf16.mxu1 %v4029_v28  ;;  %v4480_v36 = vpop.f32.mrb[4].mxu0 }
  0xf0   : > { %v3538_v37 = vpop.f32.mrb[5].mxu0 }
  0xf1   : > { %v4483_v39 = vpop.f32.mrb[6].mxu0  ;;  %v4061_v37 = vld [vmem:[%s4272_s9 + $0x2d4] ss:$12 sps:$4 sm:$0xff]  }
  0xf2   : > { %v3539_v41 = vpop.f32.mrb[7].mxu0 }
  0xf4   : > { %3645 = vmatmul.mubr.msk.bf16.gmra.mrb[112].mxu0 %vm1541_vm1, %v4052_v38 }
  0xf5   : > { %3648 = vmatprep.mubr.msk.bf16.mxu0 %vm4202_vm0, %v4201_v3 }
  0xf6   : > { %1940 = vmatmul.mubr.bf16.gmra.mrb[88].mxu1 %v4031_v33 }
  0xf7   : > { %1947 = vmatprep.mubr.bf16.mxu1 %v4033_v35  ;;  %v4490_v43 = vpop.f32.mrb[8].mxu0 }
  0xf8   : > { %v3542_v44 = vpop.f32.mrb[9].mxu0 }
  0xf9   : > { %v4493_v46 = vpop.f32.mrb[10].mxu0 }
  0xfa   : > { %v3543_v48 = vpop.f32.mrb[11].mxu0 }
  0xfc   : > { %3649 = vmatmul.mubr.msk.bf16.gmra.mrb[116].mxu0 %vm1541_vm1, %v4056_v45 }
  0xfd   : > { %3652 = vmatprep.mubr.msk.bf16.mxu0 %vm4202_vm0, %v4201_v3 }
  0xfe   : > { %1948 = vmatmul.mubr.bf16.gmra.mrb[92].mxu1 %v4035_v40 }
  0xff   : > { %1955 = vmatprep.mubr.bf16.mxu1 %v4037_v42  ;;  %v4500_v50 = vpop.f32.mrb[12].mxu0  ;;  %v4080_v42 = vld [vmem:[%s4272_s9 + $0x350] ss:$12 sps:$4 sm:$0xff]  }
 0x100   : > { %v3546_v51 = vpop.f32.mrb[13].mxu0 }
 0x101   : > { %v4503_v53 = vpop.f32.mrb[14].mxu0  ;;  %v4065_v51 = vld [vmem:[%s4272_s9 + $0x2ec] ss:$12 sps:$4 sm:$0xff]  }
 0x102   : > { %v3547_v55 = vpop.f32.mrb[15].mxu0 }
 0x104   : > { %3653 = vmatmul.mubr.msk.bf16.gmra.mrb[120].mxu0 %vm1541_vm1, %v4060_v52 }
 0x105   : > { %3656 = vmatprep.mubr.msk.bf16.mxu0 %vm4202_vm0, %v4201_v3 }
 0x106   : > { %1956 = vmatmul.mubr.bf16.gmra.mrb[96].mxu1 %v4039_v47  ;;  %v4063_v47 = vld [vmem:[%s4272_s9 + $0x2d0] ss:$12 sps:$4 sm:$0xff]  }
 0x107   : > { %1963 = vmatprep.mubr.bf16.mxu1 %v4041_v49  ;;  %v4510_v57 = vpop.f32.mrb[16].mxu0 }
 0x108   : > { %v3550_v58 = vpop.f32.mrb[17].mxu0 }
 0x109   : > { %v4513_v60 = vpop.f32.mrb[18].mxu0 }
 0x10a   : > { %v3551_v62 = vpop.f32.mrb[19].mxu0 }
 0x10b   : > { %v4067_v62 = vld [vmem:[%s4272_s9 + $0x2e8] ss:$12 sps:$4 sm:$0xff]  }
 0x10c   : > { %3657 = vmatmul.mubr.msk.bf16.gmra.mrb[124].mxu0 %vm1541_vm1, %v4064_v59 }
 0x10d   : > { %3660 = vmatprep.mubr.msk.bf16.mxu0 %vm4202_vm0, %v4201_v3 }
 0x10e   : > { %1964 = vmatmul.mubr.bf16.gmra.mrb[100].mxu1 %v4043_v54 }
 0x10f   : > { %1971 = vmatprep.mubr.bf16.mxu1 %v4045_v56  ;;  %v4520_v0 = vpop.f32.mrb[20].mxu0  ;;  %v4084_v56 = vld [vmem:[%s4272_s9 + $0x368] ss:$12 sps:$4 sm:$0xff]  }
 0x110   : > { %v3554_v1 = vpop.f32.mrb[21].mxu0 }
 0x111   : > { %v4523_v5 = vpop.f32.mrb[22].mxu0 }
 0x112   : > { %v3555_v9 = vpop.f32.mrb[23].mxu0 }
 0x113   : > { %v4088_v9 = vld [vmem:[%s4272_s9 + $0x380] ss:$12 sps:$4 sm:$0xff]  }
 0x114   : > { %3661 = vmatmul.mubr.msk.bf16.gmra.mrb[128].mxu0 %vm1541_vm1, %v4068_v2  ;;  %v4069_v2 = vld [vmem:[%s4272_s9 + $0x304] ss:$12 sps:$4 sm:$0xff]  }
 0x115   : > { %3664 = vmatprep.mubr.msk.bf16.mxu0 %vm4202_vm0, %v4201_v3 }
 0x116   : > { %1972 = vmatmul.mubr.bf16.gmra.mrb[104].mxu1 %v4047_v61 }
 0x117   : > { %1979 = vmatprep.mubr.bf16.mxu1 %v4049_v63  ;;  %v4535_v14 = vpop.f32.mrb[24].mxu0 }
 0x118   : > { %v3558_v15 = vpop.f32.mrb[25].mxu0 }
 0x119   : > { %v1765_v4 = vpop.f32.mrb[0].mxu1  ;;  %v4538_v18 = vpop.f32.mrb[26].mxu0  ;;  %v4071_v15 = vld [vmem:[%s4272_s9 + $0x300] ss:$12 sps:$4 sm:$0xff]  }
 0x11a   : > { %v4525_v6 = vadd.f32 %v2302_v29, %v1765_v4  ;;  %v1767_v7 = vpop.f32.mrb[1].mxu1  ;;  %v3559_v22 = vpop.f32.mrb[27].mxu0  ;;  %v4076_v29 = vld [vmem:[%s4272_s9 + $0x338] ss:$12 sps:$4 sm:$0xff]  }
 0x11b   : > { %v1768_v10 = vpop.f32.mrb[2].mxu1 }
 0x11c   : > { %v4530_v12 = vadd.f32 %v4473_v32, %v1768_v10  ;;  %v1770_v13 = vpop.f32.mrb[3].mxu1  ;;  %3665 = vmatmul.mubr.msk.bf16.gmra.mrb[132].mxu0 %vm1541_vm1, %v4072_v16 }
 0x11d   : > { %3668 = vmatprep.mubr.msk.bf16.mxu0 %vm4202_vm0, %v4201_v3 }
 0x11e   : > { %1980 = vmatmul.mubr.bf16.gmra.mrb[108].mxu1 %v4051_v8 }
 0x11f   : > { %1987 = vmatprep.mubr.bf16.mxu1 %v4053_v11  ;;  %v4551_v27 = vpop.f32.mrb[28].mxu0 }
 0x120   : > { %v3562_v28 = vpop.f32.mrb[29].mxu0 }
 0x121   : > { %v1773_v17 = vpop.f32.mrb[4].mxu1  ;;  %v4554_v31 = vpop.f32.mrb[30].mxu0 }
 0x122   : > { %v4541_v19 = vadd.f32 %v4480_v36, %v1773_v17  ;;  %v1775_v20 = vpop.f32.mrb[5].mxu1  ;;  %v3563_v35 = vpop.f32.mrb[31].mxu0 }
 0x123   : > { %v1776_v23 = vpop.f32.mrb[6].mxu1  ;;  %v4073_v20 = vld [vmem:[%s4272_s9 + $0x31c] ss:$12 sps:$4 sm:$0xff]   ;;  %v4077_v35 = vld [vmem:[%s4272_s9 + $0x334] ss:$12 sps:$4 sm:$0xff]  }
 0x124   : > { %v4546_v25 = vadd.f32 %v4483_v39, %v1776_v23  ;;  %v1778_v26 = vpop.f32.mrb[7].mxu1  ;;  %3669 = vmatmul.mubr.msk.bf16.gmra.mrb[136].mxu0 %vm1541_vm1, %v4076_v29 }
 0x125   : > { %3672 = vmatprep.mubr.msk.bf16.mxu0 %vm4202_vm0, %v4201_v3 }
 0x126   : > { %1988 = vmatmul.mubr.bf16.gmra.mrb[112].mxu1 %v4055_v21 }
 0x127   : > { %1995 = vmatprep.mubr.bf16.mxu1 %v4057_v24  ;;  %v4567_v40 = vpop.f32.mrb[32].mxu0  ;;  %v4092_v24 = vld [vmem:[%s4272_s9 + $0x398] ss:$12 sps:$4 sm:$0xff]  }
 0x128   : > { %v3566_v41 = vpop.f32.mrb[33].mxu0 }
 0x129   : > { %v1781_v30 = vpop.f32.mrb[8].mxu1  ;;  %v4570_v44 = vpop.f32.mrb[34].mxu0  ;;  %v4096_v41 = vld [vmem:[%s4272_s9 + $0x3b0] ss:$12 sps:$4 sm:$0xff]  }
 0x12a   : > { %v4557_v32 = vadd.f32 %v4490_v43, %v1781_v30  ;;  %v1783_v33 = vpop.f32.mrb[9].mxu1  ;;  %v3567_v48 = vpop.f32.mrb[35].mxu0  ;;  %v4075_v30 = vld [vmem:[%s4272_s9 + $0x318] ss:$12 sps:$4 sm:$0xff]  }
 0x12b   : > { %v1784_v36 = vpop.f32.mrb[10].mxu1 }
 0x12c   : > { %v4562_v38 = vadd.f32 %v4493_v46, %v1784_v36  ;;  %v1786_v39 = vpop.f32.mrb[11].mxu1  ;;  %3673 = vmatmul.mubr.msk.bf16.gmra.mrb[140].mxu0 %vm1541_vm1, %v4080_v42 }
 0x12d   : > { %3676 = vmatprep.mubr.msk.bf16.mxu0 %vm4202_vm0, %v4201_v3 }
 0x12e   : > { %1996 = vmatmul.mubr.bf16.gmra.mrb[116].mxu1 %v4059_v34 }
 0x12f   : > { %2003 = vmatprep.mubr.bf16.mxu1 %v4061_v37 }
 0x131   : > { %v1789_v43 = vpop.f32.mrb[12].mxu1 }
 0x132   : > { %v4573_v45 = vadd.f32 %v4500_v50, %v1789_v43  ;;  %v1791_v46 = vpop.f32.mrb[13].mxu1  ;;  %v4583_v50 = vpop.f32.mrb[36].mxu0 }
 0x133   : > { %v1792_v49 = vpop.f32.mrb[14].mxu1  ;;  %v3570_v55 = vpop.f32.mrb[37].mxu0 }
 0x134   : > { %v4578_v52 = vadd.f32 %v4503_v53, %v1792_v49  ;;  %v1794_v54 = vpop.f32.mrb[15].mxu1  ;;  %v4586_v59 = vpop.f32.mrb[38].mxu0  ;;  %3677 = vmatmul.mubr.msk.bf16.gmra.mrb[144].mxu0 %vm1541_vm1, %v4084_v56 }
 0x135   : > { %v3571_v63 = vpop.f32.mrb[39].mxu0  ;;  %3680 = vmatprep.mubr.msk.bf16.mxu0 %vm4202_vm0, %v4201_v3 }
 0x136   : > { %2004 = vmatmul.mubr.bf16.gmra.mrb[120].mxu1 %v4063_v47  ;;  %v4079_v47 = vld [vmem:[%s4272_s9 + $0x330] ss:$12 sps:$4 sm:$0xff]  }
 0x137   : > { %2011 = vmatprep.mubr.bf16.mxu1 %v4065_v51  ;;  %v4081_v51 = vld [vmem:[%s4272_s9 + $0x34c] ss:$12 sps:$4 sm:$0xff]  }
 0x139   : > { %v1797_v58 = vpop.f32.mrb[16].mxu1 }
 0x13a   : > { %v4589_v53 = vadd.f32 %v4510_v57, %v1797_v58  ;;  %v1799_v61 = vpop.f32.mrb[17].mxu1  ;;  %v4599_v57 = vpop.f32.mrb[40].mxu0 }
 0x13b   : > { %v1800_v1 = vpop.f32.mrb[18].mxu1  ;;  %v3574_v8 = vpop.f32.mrb[41].mxu0 }
 0x13c   : > { %v4594_v4 = vadd.f32 %v4513_v60, %v1800_v1  ;;  %v1802_v7 = vpop.f32.mrb[19].mxu1  ;;  %v4602_v11 = vpop.f32.mrb[42].mxu0  ;;  %3681 = vmatmul.mubr.msk.bf16.gmra.mrb[148].mxu0 %vm1541_vm1, %v4088_v9 }
 0x13d   : > { %v3575_v16 = vpop.f32.mrb[43].mxu0  ;;  %3684 = vmatprep.mubr.msk.bf16.mxu0 %vm4202_vm0, %v4201_v3  ;;  %v4083_v7 = vld [vmem:[%s4272_s9 + $0x348] ss:$12 sps:$4 sm:$0xff]  }
 0x13e   : > { %2012 = vmatmul.mubr.bf16.gmra.mrb[124].mxu1 %v4067_v62  ;;  %v4100_v62 = vld [vmem:[%s4272_s9 + $0x3c8] ss:$12 sps:$4 sm:$0xff]  }
 0x13f   : > { %2019 = vmatprep.mubr.bf16.mxu1 %v4069_v2 }
 0x141   : > { %v1805_v10 = vpop.f32.mrb[20].mxu1 }
 0x142   : > { %v4605_v60 = vadd.f32 %v4520_v0, %v1805_v10  ;;  %v1807_v13 = vpop.f32.mrb[21].mxu1  ;;  %v4615_v0 = vpop.f32.mrb[44].mxu0  ;;  %v4085_v10 = vld [vmem:[%s4272_s9 + $0x364] ss:$12 sps:$4 sm:$0xff]  }
 0x143   : > { %v1808_v17 = vpop.f32.mrb[22].mxu1  ;;  %v3578_v23 = vpop.f32.mrb[45].mxu0 }
 0x144   : > { %v4610_v21 = vadd.f32 %v4523_v5, %v1808_v17  ;;  %v1810_v22 = vpop.f32.mrb[23].mxu1  ;;  %v4618_v28 = vpop.f32.mrb[46].mxu0  ;;  %3685 = vmatmul.mubr.msk.bf16.gmra.mrb[152].mxu0 %vm1541_vm1, %v4092_v24 }
 0x145   : > { %v3579_v33 = vpop.f32.mrb[47].mxu0  ;;  %3688 = vmatprep.mubr.msk.bf16.mxu0 %vm4202_vm0, %v4201_v3  ;;  %v4104_v22 = vld [vmem:[%s4272_s9 + $0x3e0] ss:$12 sps:$4 sm:$0xff]  }
 0x146   : > { %2020 = vmatmul.mubr.bf16.gmra.mrb[128].mxu1 %v4071_v15 }
 0x147   : > { %2027 = vmatprep.mubr.bf16.mxu1 %v4073_v20 }
 0x149   : > { %v1813_v26 = vpop.f32.mrb[24].mxu1 }
 0x14a   : > { %v4621_v5 = vadd.f32 %v4535_v14, %v1813_v26  ;;  %v1815_v29 = vpop.f32.mrb[25].mxu1  ;;  %v4631_v14 = vpop.f32.mrb[48].mxu0 }
 0x14b   : > { %v1816_v34 = vpop.f32.mrb[26].mxu1  ;;  %v3582_v39 = vpop.f32.mrb[49].mxu0  ;;  %v4087_v29 = vld [vmem:[%s4272_s9 + $0x360] ss:$12 sps:$4 sm:$0xff]  }
 0x14c   : > { %v4626_v36 = vadd.f32 %v4538_v18, %v1816_v34  ;;  %v1818_v37 = vpop.f32.mrb[27].mxu1  ;;  %v4634_v43 = vpop.f32.mrb[50].mxu0  ;;  %3689 = vmatmul.mubr.msk.bf16.gmra.mrb[156].mxu0 %vm1541_vm1, %v4096_v41  ;;  %v4089_v34 = vld [vmem:[%s4272_s9 + $0x37c] ss:$12 sps:$4 sm:$0xff]  }
 0x14d   : > { %v3583_v48 = vpop.f32.mrb[51].mxu0  ;;  %3692 = vmatprep.mubr.msk.bf16.mxu0 %vm4202_vm0, %v4201_v3 }
 0x14e   : > { %2028 = vmatmul.mubr.bf16.gmra.mrb[132].mxu1 %v4075_v30 }
 0x14f   : > { %2035 = vmatprep.mubr.bf16.mxu1 %v4077_v35  ;;  %v4651_v58 = vpop.f32.mrb[52].mxu0 }
 0x150   : > { %v3586_v61 = vpop.f32.mrb[53].mxu0 }
 0x151   : > { %v1821_v42 = vpop.f32.mrb[28].mxu1  ;;  %v4654_v1 = vpop.f32.mrb[54].mxu0 }
 0x152   : > { %v4637_v46 = vadd.f32 %v4551_v27, %v1821_v42  ;;  %v1823_v18 = vpop.f32.mrb[29].mxu1  ;;  %v3587_v8 = vpop.f32.mrb[55].mxu0 }
 0x153   : > { %v1824_v49 = vpop.f32.mrb[30].mxu1  ;;  %v4108_v18 = vld [vmem:[%s4272_s9 + $0x3f8] ss:$12 sps:$4 sm:$0xff]  }
 0x154   : > { %v2805_v54 = vmax.f32 %v4525_v6, %v4637_v46  ;;  %v4644_v55 = vadd.f32 %v4554_v31, %v1824_v49  ;;  %v1826_v56 = vpop.f32.mrb[31].mxu1  ;;  %3693 = vmatmul.mubr.msk.bf16.gmra.mrb[160].mxu0 %vm1541_vm1, %v4100_v62  ;;  %v4093_v62 = vld [vmem:[%s4272_s9 + $0x394] ss:$12 sps:$4 sm:$0xff]  }
 0x155   : > { %3696 = vmatprep.mubr.msk.bf16.mxu0 %vm4202_vm0, %v4201_v3 }
 0x156   : > { %v2806_v27 = vmax.f32 %v4530_v12, %v4644_v55  ;;  %2036 = vmatmul.mubr.bf16.gmra.mrb[136].mxu1 %v4079_v47 }
 0x157   : > { %2043 = vmatprep.mubr.bf16.mxu1 %v4081_v51  ;;  %v4671_v17 = vpop.f32.mrb[56].mxu0  ;;  %v4091_v51 = vld [vmem:[%s4272_s9 + $0x378] ss:$12 sps:$4 sm:$0xff]  }
 0x158   : > { %v3590_v20 = vpop.f32.mrb[57].mxu0 }
 0x159   : > { %v1829_v63 = vpop.f32.mrb[32].mxu1  ;;  %v4674_v24 = vpop.f32.mrb[58].mxu0 }
 0x15a   : > { %v4657_v31 = vadd.f32 %v4567_v40, %v1829_v63  ;;  %v1831_v2 = vpop.f32.mrb[33].mxu1  ;;  %v3591_v30 = vpop.f32.mrb[59].mxu0 }
 0x15b   : > { %v1832_v9 = vpop.f32.mrb[34].mxu1  ;;  %v4097_v30 = vld [vmem:[%s4272_s9 + $0x3ac] ss:$12 sps:$4 sm:$0xff]  }
 0x15c   : > { %v2807_v13 = vmax.f32 %v4541_v19, %v4657_v31  ;;  %v4664_v15 = vadd.f32 %v4570_v44, %v1832_v9  ;;  %v1834_v16 = vpop.f32.mrb[35].mxu1  ;;  %3697 = vmatmul.mubr.msk.bf16.gmra.mrb[164].mxu0 %vm1541_vm1, %v4104_v22 }
 0x15d   : > { %3700 = vmatprep.mubr.msk.bf16.mxu0 %vm4202_vm0, %v4201_v3 }
 0x15e   : > { %v2808_v40 = vmax.f32 %v4546_v25, %v4664_v15  ;;  %2044 = vmatmul.mubr.bf16.gmra.mrb[140].mxu1 %v4083_v7 }
 0x15f   : > { %2051 = vmatprep.mubr.bf16.mxu1 %v4085_v10  ;;  %v4691_v41 = vpop.f32.mrb[60].mxu0  ;;  %v4112_v10 = vld [vmem:[%s4272_s9 + $0x410] ss:$12 sps:$4 sm:$0xff]  }
 0x160   : > { %v3594_v42 = vpop.f32.mrb[61].mxu0 }
 0x161   : > { %v1837_v23 = vpop.f32.mrb[36].mxu1  ;;  %v4694_v48 = vpop.f32.mrb[62].mxu0 }
 0x162   : > { %v4677_v44 = vadd.f32 %v4583_v50, %v1837_v23  ;;  %v1839_v26 = vpop.f32.mrb[37].mxu1  ;;  %v3595_v56 = vpop.f32.mrb[63].mxu0  ;;  %v4095_v23 = vld [vmem:[%s4272_s9 + $0x390] ss:$12 sps:$4 sm:$0xff]  }
 0x163   : > { %v1840_v33 = vpop.f32.mrb[38].mxu1 }
 0x164   : > { %v2809_v35 = vmax.f32 %v4557_v32, %v4677_v44  ;;  %v4684_v37 = vadd.f32 %v4586_v59, %v1840_v33  ;;  %v1842_v39 = vpop.f32.mrb[39].mxu1  ;;  %3701 = vmatmul.mubr.msk.bf16.gmra.mrb[168].mxu0 %vm1541_vm1, %v4108_v18 }
 0x165   : > { %3704 = vmatprep.mubr.msk.bf16.mxu0 %vm4202_vm0, %v4201_v3 }
 0x166   : > { %v2810_v50 = vmax.f32 %v4562_v38, %v4684_v37  ;;  %2052 = vmatmul.mubr.bf16.gmra.mrb[144].mxu1 %v4087_v29 }
 0x167   : > { %2059 = vmatprep.mubr.bf16.mxu1 %v4089_v34  ;;  %v4711_v8 = vpop.f32.mrb[64].mxu0 }
 0x168   : > { %v3598_v9 = vpop.f32.mrb[65].mxu0 }
 0x169   : > { %v1845_v47 = vpop.f32.mrb[40].mxu1  ;;  %v4714_v20 = vpop.f32.mrb[66].mxu0  ;;  %v4101_v9 = vld [vmem:[%s4272_s9 + $0x3c4] ss:$12 sps:$4 sm:$0xff]  }
 0x16a   : > { %v4697_v59 = vadd.f32 %v4599_v57, %v1845_v47  ;;  %v1847_v49 = vpop.f32.mrb[41].mxu1  ;;  %v3599_v26 = vpop.f32.mrb[67].mxu0  ;;  %v4116_v47 = vld [vmem:[%s4272_s9 + $0x428] ss:$12 sps:$4 sm:$0xff]  }
 0x16b   : > { %v1848_v61 = vpop.f32.mrb[42].mxu1 }
 0x16c   : > { %v2811_v63 = vmax.f32 %v4573_v45, %v4697_v59  ;;  %v4704_v2 = vadd.f32 %v4602_v11, %v1848_v61  ;;  %v1850_v7 = vpop.f32.mrb[43].mxu1  ;;  %3705 = vmatmul.mubr.msk.bf16.gmra.mrb[172].mxu0 %vm1541_vm1, %v4112_v10  ;;  %v4099_v61 = vld [vmem:[%s4272_s9 + $0x3a8] ss:$12 sps:$4 sm:$0xff]  }
 0x16d   : > { %3708 = vmatprep.mubr.msk.bf16.mxu0 %vm4202_vm0, %v4201_v3 }
 0x16e   : > { %v2812_v57 = vmax.f32 %v4578_v52, %v4704_v2  ;;  %2060 = vmatmul.mubr.bf16.gmra.mrb[148].mxu1 %v4091_v51 }
 0x16f   : > { %2067 = vmatprep.mubr.bf16.mxu1 %v4093_v62  ;;  %v4731_v42 = vpop.f32.mrb[68].mxu0 }
 0x170   : > { %v3602_v18 = vpop.f32.mrb[69].mxu0 }
 0x171   : > { %v1853_v16 = vpop.f32.mrb[44].mxu1  ;;  %v4734_v51 = vpop.f32.mrb[70].mxu0 }
 0x172   : > { %v4717_v11 = vadd.f32 %v4615_v0, %v1853_v16  ;;  %v1855_v22 = vpop.f32.mrb[45].mxu1  ;;  %v3603_v62 = vpop.f32.mrb[71].mxu0 }
 0x173   : > { %v1856_v29 = vpop.f32.mrb[46].mxu1  ;;  %v4105_v62 = vld [vmem:[%s4272_s9 + $0x3dc] ss:$12 sps:$4 sm:$0xff]  }
 0x174   : > { %v2813_v33 = vmax.f32 %v4589_v53, %v4717_v11  ;;  %v4724_v34 = vadd.f32 %v4618_v28, %v1856_v29  ;;  %v1858_v39 = vpop.f32.mrb[47].mxu1  ;;  %3709 = vmatmul.mubr.msk.bf16.gmra.mrb[176].mxu0 %vm1541_vm1, %v4116_v47  ;;  %v4120_v29 = vld [vmem:[%s4272_s9 + $0x440] ss:$12 sps:$4 sm:$0xff]  }
 0x175   : > { %3712 = vmatprep.mubr.msk.bf16.mxu0 %vm4202_vm0, %v4201_v3  ;;  %v4103_v47 = vld [vmem:[%s4272_s9 + $0x3c0] ss:$12 sps:$4 sm:$0xff]  }
 0x176   : > { %v2814_v0 = vmax.f32 %v4594_v4, %v4724_v34  ;;  %2068 = vmatmul.mubr.bf16.gmra.mrb[152].mxu1 %v4095_v23 }
 0x177   : > { %2075 = vmatprep.mubr.bf16.mxu1 %v4097_v30  ;;  %v4751_v23 = vpop.f32.mrb[72].mxu0 }
 0x178   : > { %v3606_v26 = vpop.f32.mrb[73].mxu0 }
 0x179   : > { %v1861_v49 = vpop.f32.mrb[48].mxu1  ;;  %v4754_v39 = vpop.f32.mrb[74].mxu0 }
 0x17a   : > { %v4737_v28 = vadd.f32 %v4631_v14, %v1861_v49  ;;  %v1863_v56 = vpop.f32.mrb[49].mxu1  ;;  %v3607_v49 = vpop.f32.mrb[75].mxu0  ;;  %v4109_v14 = vld [vmem:[%s4272_s9 + $0x3f4] ss:$12 sps:$4 sm:$0xff]  }
 0x17b   : > { %v1864_v7 = vpop.f32.mrb[50].mxu1 }
 0x17c   : > { %v2815_v10 = vmax.f32 %v4605_v60, %v4737_v28  ;;  %v4744_v16 = vadd.f32 %v4634_v43, %v1864_v7  ;;  %v1866_v22 = vpop.f32.mrb[51].mxu1  ;;  %3713 = vmatmul.mubr.msk.bf16.gmra.mrb[180].mxu0 %vm1541_vm1, %v4120_v29  ;;  %v4107_v29 = vld [vmem:[%s4272_s9 + $0x3d8] ss:$12 sps:$4 sm:$0xff]  }
 0x17d   : > { %3716 = vmatprep.mubr.msk.bf16.mxu0 %vm4202_vm0, %v4201_v3 }
 0x17e   : > { %2076 = vmatmul.mubr.bf16.gmra.mrb[156].mxu1 %v4099_v61 }
 0x17f   : > { %2083 = vmatprep.mubr.bf16.mxu1 %v4101_v9  ;;  %v4771_v22 = vpop.f32.mrb[76].mxu0 }
 0x180   : > { %v3610_v26 = vpop.f32.mrb[77].mxu0 }
 0x181   : > { %v1869_v30 = vpop.f32.mrb[52].mxu1  ;;  %v4774_v49 = vpop.f32.mrb[78].mxu0 }
 0x182   : > { %v4757_v43 = vadd.f32 %v4651_v58, %v1869_v30  ;;  %v1871_v18 = vpop.f32.mrb[53].mxu1  ;;  %v4124_v30 = vld [vmem:[%s4272_s9 + $0x458] ss:$12 sps:$4 sm:$0xff]  }
 0x183   : > { %v1872_v56 = vpop.f32.mrb[54].mxu1 }
 0x184   : > { %v4764_v7 = vadd.f32 %v4654_v1, %v1872_v56  ;;  %v1874_v9 = vpop.f32.mrb[55].mxu1  ;;  %3717 = vmatmul.mubr.msk.bf16.gmra.mrb[184].mxu0 %vm1541_vm1, %v4124_v30 }
 0x185   : > { %v3611_v9 = vpop.f32.mrb[79].mxu0  ;;  %3720 = vmatprep.mubr.msk.bf16.mxu0 %vm4202_vm0, %v4201_v3 }
 0x186   : > { %v2818_v58 = vmax.f32 %v4626_v36, %v4764_v7  ;;  %2084 = vmatmul.mubr.bf16.gmra.mrb[160].mxu1 %v4103_v47  ;;  %v4137_v36 = vld [vmem:[%s4272_s9 + $0x49c] ss:$12 sps:$4 sm:$0xff]  }
 0x187   : > { %2091 = vmatprep.mubr.bf16.mxu1 %v4105_v62  ;;  %v4793_v6 = vpop.f32.mrb[80].mxu0 }
 0x188   : > { %v3614_v46 = vpop.f32.mrb[81].mxu0 }
 0x189   : > { %v1877_v18 = vpop.f32.mrb[56].mxu1  ;;  %v4115_v46 = vld [vmem:[%s4272_s9 + $0x408] ss:$12 sps:$4 sm:$0xff]  }
 0x18a   : > { %v2415_v1 = vadd.f32 %v4671_v17, %v1877_v18  ;;  %v1879_v56 = vpop.f32.mrb[57].mxu1 }
 0x18b   : > { %v1880_v61 = vpop.f32.mrb[58].mxu1 }
 0x18c   : > { %v4782_v47 = vmax.f32 %v2805_v54, %v2415_v1  ;;  %v2418_v62 = vadd.f32 %v4674_v24, %v1880_v61  ;;  %v1882_v26 = vpop.f32.mrb[59].mxu1  ;;  %v4128_v54 = vld [vmem:[%s4272_s9 + $0x470] ss:$12 sps:$4 sm:$0xff]   ;;  %v4796_v24 = vpop.f32.mrb[82].mxu0 }
 0x18d   : > { %v4111_v1 = vld [vmem:[%s4272_s9 + $0x3f0] ss:$12 sps:$4 sm:$0xff]   ;;  %v3615_v56 = vpop.f32.mrb[83].mxu0  ;;  %v4113_v26 = vld [vmem:[%s4272_s9 + $0x40c] ss:$12 sps:$4 sm:$0xff]   ;;  %3721 = vmatmul.mubr.msk.bf16.gmra.mrb[188].mxu0 %vm1541_vm1, %v4128_v54 }
 0x18e   : > { %v4791_v17 = vmax.f32 %v2806_v27, %v2418_v62  ;;  %2092 = vmatmul.mubr.bf16.gmra.mrb[164].mxu1 %v4107_v29  ;;  %3724 = vmatprep.mubr.msk.bf16.mxu0 %vm4202_vm0, %v4201_v3 }
 0x18f   : > { %2099 = vmatprep.mubr.bf16.mxu1 %v4109_v14  ;;  %v4815_v19 = vpop.f32.mrb[84].mxu0 }
 0x190   : > { %v3618_v31 = vpop.f32.mrb[85].mxu0 }
 0x191   : > { %v1885_v18 = vpop.f32.mrb[60].mxu1 }
 0x192   : > { %v2423_v61 = vadd.f32 %v4691_v41, %v1885_v18  ;;  %v1887_v30 = vpop.f32.mrb[61].mxu1 }
 0x193   : > { %v1888_v9 = vpop.f32.mrb[62].mxu1 }
 0x194   : > { %v4804_v12 = vmax.f32 %v2807_v13, %v2423_v61  ;;  %v2426_v55 = vadd.f32 %v4694_v48, %v1888_v9  ;;  %v1890_v27 = vpop.f32.mrb[63].mxu1  ;;  %v4132_v13 = vld [vmem:[%s4272_s9 + $0x488] ss:$12 sps:$4 sm:$0xff]   ;;  %v4818_v48 = vpop.f32.mrb[86].mxu0  ;;  %v4117_v61 = vld [vmem:[%s4272_s9 + $0x424] ss:$12 sps:$4 sm:$0xff]  }
 0x195   : > { %v3619_v54 = vpop.f32.mrb[87].mxu0  ;;  %3725 = vmatmul.mubr.msk.bf16.gmra.mrb[192].mxu0 %vm1541_vm1, %v4132_v13  ;;  %v4119_v9 = vld [vmem:[%s4272_s9 + $0x420] ss:$12 sps:$4 sm:$0xff]   ;;  %v4121_v27 = vld [vmem:[%s4272_s9 + $0x43c] ss:$12 sps:$4 sm:$0xff]  }
 0x196   : > { %v4813_v41 = vmax.f32 %v2808_v40, %v2426_v55  ;;  %2100 = vmatmul.mubr.bf16.gmra.mrb[168].mxu1 %v4111_v1  ;;  %3728 = vmatprep.mubr.msk.bf16.mxu0 %vm4202_vm0, %v4201_v3  ;;  %v4125_v54 = vld [vmem:[%s4272_s9 + $0x454] ss:$12 sps:$4 sm:$0xff]  }
 0x197   : > { %2107 = vmatprep.mubr.bf16.mxu1 %v4113_v26  ;;  %v4837_v32 = vpop.f32.mrb[88].mxu0 }
 0x198   : > { %v3622_v44 = vpop.f32.mrb[89].mxu0 }
 0x199   : > { %v1893_v14 = vpop.f32.mrb[64].mxu1 }
 0x19a   : > { %v2431_v29 = vadd.f32 %v4711_v8, %v1893_v14  ;;  %v1895_v62 = vpop.f32.mrb[65].mxu1 }
 0x19b   : > { %v1896_v18 = vpop.f32.mrb[66].mxu1 }
 0x19c   : > { %v4826_v25 = vmax.f32 %v2809_v35, %v2431_v29  ;;  %v2434_v15 = vadd.f32 %v4714_v20, %v1896_v18  ;;  %v1898_v40 = vpop.f32.mrb[67].mxu1  ;;  %v4136_v35 = vld [vmem:[%s4272_s9 + $0x4a0] ss:$12 sps:$4 sm:$0xff]   ;;  %v4840_v20 = vpop.f32.mrb[90].mxu0  ;;  %v4123_v29 = vld [vmem:[%s4272_s9 + $0x438] ss:$12 sps:$4 sm:$0xff]  }
 0x19d   : > { %v3623_v26 = vpop.f32.mrb[91].mxu0  ;;  %3729 = vmatmul.mubr.msk.bf16.gmra.mrb[196].mxu0 %vm1541_vm1, %v4136_v35  ;;  %v4127_v40 = vld [vmem:[%s4272_s9 + $0x450] ss:$12 sps:$4 sm:$0xff]  }
 0x19e   : > { %v4835_v8 = vmax.f32 %v2810_v50, %v2434_v15  ;;  %2108 = vmatmul.mubr.bf16.gmra.mrb[172].mxu1 %v4115_v46  ;;  %3732 = vmatprep.mubr.msk.bf16.mxu0 %vm4202_vm0, %v4201_v3 }
 0x19f   : > { %2115 = vmatprep.mubr.bf16.mxu1 %v4117_v61  ;;  %v4859_v45 = vpop.f32.mrb[92].mxu0 }
 0x1a0   : > { %v3626_v59 = vpop.f32.mrb[93].mxu0 }
 0x1a1   : > { %v1901_v30 = vpop.f32.mrb[68].mxu1 }
 0x1a2   : > { %v2439_v1 = vadd.f32 %v4731_v42, %v1901_v30  ;;  %v1903_v56 = vpop.f32.mrb[69].mxu1  ;;  %v4129_v30 = vld [vmem:[%s4272_s9 + $0x46c] ss:$12 sps:$4 sm:$0xff]  }
 0x1a3   : > { %v1904_v55 = vpop.f32.mrb[70].mxu1 }
 0x1a4   : > { %v4848_v38 = vmax.f32 %v2811_v63, %v2439_v1  ;;  %v2442_v37 = vadd.f32 %v4734_v51, %v1904_v55  ;;  %v1906_v50 = vpop.f32.mrb[71].mxu1  ;;  %v4140_v63 = vld [vmem:[%s4272_s9 + $0x4b8] ss:$12 sps:$4 sm:$0xff]   ;;  %v4862_v51 = vpop.f32.mrb[94].mxu0  ;;  %v4131_v55 = vld [vmem:[%s4272_s9 + $0x468] ss:$12 sps:$4 sm:$0xff]  }
 0x1a5   : > { %v3627_v62 = vpop.f32.mrb[95].mxu0  ;;  %3733 = vmatmul.mubr.msk.bf16.gmra.mrb[200].mxu0 %vm1541_vm1, %v4140_v63  ;;  %v4133_v50 = vld [vmem:[%s4272_s9 + $0x484] ss:$12 sps:$4 sm:$0xff]  }
 0x1a6   : > { %v4857_v42 = vmax.f32 %v2812_v57, %v2442_v37  ;;  %2116 = vmatmul.mubr.bf16.gmra.mrb[176].mxu1 %v4119_v9  ;;  %3736 = vmatprep.mubr.msk.bf16.mxu0 %vm4202_vm0, %v4201_v3  ;;  %v4135_v62 = vld [vmem:[%s4272_s9 + $0x480] ss:$12 sps:$4 sm:$0xff]  }
 0x1a7   : > { %2123 = vmatprep.mubr.bf16.mxu1 %v4121_v27  ;;  %v4881_v53 = vpop.f32.mrb[96].mxu0 }
 0x1a8   : > { %v3630_v11 = vpop.f32.mrb[97].mxu0 }
 0x1a9   : > { %v1909_v31 = vpop.f32.mrb[72].mxu1 }
 0x1aa   : > { %v2447_v13 = vadd.f32 %v4751_v23, %v1909_v31  ;;  %v1911_v14 = vpop.f32.mrb[73].mxu1  ;;  %v4152_v31 = vld [vmem:[%s4272_s9 + $0x500] ss:$12 sps:$4 sm:$0xff]  }
 0x1ab   : > { %v1912_v46 = vpop.f32.mrb[74].mxu1 }
 0x1ac   : > { %v4870_v52 = vmax.f32 %v2813_v33, %v2447_v13  ;;  %v2450_v2 = vadd.f32 %v4754_v39, %v1912_v46  ;;  %v1914_v57 = vpop.f32.mrb[75].mxu1  ;;  %v4144_v33 = vld [vmem:[%s4272_s9 + $0x4d0] ss:$12 sps:$4 sm:$0xff]   ;;  %v4884_v39 = vpop.f32.mrb[98].mxu0 }
 0x1ad   : > { %v3631_v44 = vpop.f32.mrb[99].mxu0  ;;  %3737 = vmatmul.mubr.msk.bf16.gmra.mrb[204].mxu0 %vm1541_vm1, %v4144_v33  ;;  %v4156_v33 = vld [vmem:[%s4272_s9 + $0x518] ss:$12 sps:$4 sm:$0xff]  }
 0x1ae   : > { %v4879_v23 = vmax.f32 %v2814_v0, %v2450_v2  ;;  %2124 = vmatmul.mubr.bf16.gmra.mrb[180].mxu1 %v4123_v29  ;;  %3740 = vmatprep.mubr.msk.bf16.mxu0 %vm4202_vm0, %v4201_v3 }
 0x1af   : > { %2131 = vmatprep.mubr.bf16.mxu1 %v4125_v54  ;;  %v4903_v60 = vpop.f32.mrb[100].mxu0 }
 0x1b0   : > { %v3634_v28 = vpop.f32.mrb[101].mxu0 }
 0x1b1   : > { %v1917_v18 = vpop.f32.mrb[76].mxu1 }
 0x1b2   : > { %v2455_v61 = vadd.f32 %v4771_v22, %v1917_v18  ;;  %v1919_v15 = vpop.f32.mrb[77].mxu1  ;;  %v5633_v22 = vmax.f32 %v4610_v21, %v4744_v16  ;;  %v5634_v21 = vmax.f32 %v4621_v5, %v4757_v43 }
 0x1b3   : > { %v1920_v35 = vpop.f32.mrb[78].mxu1 }
 0x1b4   : > { %v4892_v4 = vmax.f32 %v2815_v10, %v2455_v61  ;;  %v2458_v34 = vadd.f32 %v4774_v49, %v1920_v35  ;;  %v1922_v0 = vpop.f32.mrb[79].mxu1  ;;  %v4148_v10 = vld [vmem:[%s4272_s9 + $0x4e8] ss:$12 sps:$4 sm:$0xff]   ;;  %v4906_v49 = vpop.f32.mrb[102].mxu0 }
 0x1b5   : > { %v3635_v27 = vpop.f32.mrb[103].mxu0  ;;  %3741 = vmatmul.mubr.msk.bf16.gmra.mrb[208].mxu0 %vm1541_vm1, %v4148_v10 }
 0x1b6   : > { %v4901_v1 = vmax.f32 %v5633_v22, %v2458_v34  ;;  %2132 = vmatmul.mubr.bf16.gmra.mrb[184].mxu1 %v4127_v40  ;;  %3744 = vmatprep.mubr.msk.bf16.mxu0 %vm4202_vm0, %v4201_v3  ;;  %v4139_v40 = vld [vmem:[%s4272_s9 + $0x498] ss:$12 sps:$4 sm:$0xff]   ;;  %v4143_v27 = vld [vmem:[%s4272_s9 + $0x4b0] ss:$12 sps:$4 sm:$0xff]  }
 0x1b7   : > { %2139 = vmatprep.mubr.bf16.mxu1 %v4129_v30  ;;  %v4925_v5 = vpop.f32.mrb[104].mxu0  ;;  %v4141_v30 = vld [vmem:[%s4272_s9 + $0x4b4] ss:$12 sps:$4 sm:$0xff]  }
 0x1b8   : > { %v3638_v43 = vpop.f32.mrb[105].mxu0 }
 0x1b9   : > { %v1925_v56 = vpop.f32.mrb[80].mxu1 }
 0x1ba   : > { %v2463_v9 = vadd.f32 %v4793_v6, %v1925_v56  ;;  %v1927_v26 = vpop.f32.mrb[81].mxu1  ;;  %v4160_v56 = vld [vmem:[%s4272_s9 + $0x530] ss:$12 sps:$4 sm:$0xff]  }
 0x1bb   : > { %v1928_v37 = vpop.f32.mrb[82].mxu1 }
 0x1bc   : > { %v4914_v16 = vmax.f32 %v5634_v21, %v2463_v9  ;;  %v2466_v59 = vadd.f32 %v4796_v24, %v1928_v37  ;;  %v1930_v63 = vpop.f32.mrb[83].mxu1  ;;  %v4928_v24 = vpop.f32.mrb[106].mxu0  ;;  %v4145_v21 = vld [vmem:[%s4272_s9 + $0x4cc] ss:$12 sps:$4 sm:$0xff]  }
 0x1bd   : > { %v3639_v46 = vpop.f32.mrb[107].mxu0  ;;  %3745 = vmatmul.mubr.msk.bf16.gmra.mrb[212].mxu0 %vm1541_vm1, %v4152_v31 }
 0x1be   : > { %v4923_v6 = vmax.f32 %v2818_v58, %v2466_v59  ;;  %2140 = vmatmul.mubr.bf16.gmra.mrb[188].mxu1 %v4131_v55  ;;  %3748 = vmatprep.mubr.msk.bf16.mxu0 %vm4202_vm0, %v4201_v3 }
 0x1bf   : > { %2147 = vmatprep.mubr.bf16.mxu1 %v4133_v50  ;;  %v4945_v57 = vpop.f32.mrb[108].mxu0 }
 0x1c0   : > { %v3642_v11 = vpop.f32.mrb[109].mxu0 }
 0x1c1   : > { %v1933_v13 = vpop.f32.mrb[84].mxu1  ;;  %v4948_v61 = vpop.f32.mrb[110].mxu0 }
 0x1c2   : > { %v4931_v14 = vadd.f32 %v4815_v19, %v1933_v13  ;;  %v1935_v29 = vpop.f32.mrb[85].mxu1  ;;  %v3643_v44 = vpop.f32.mrb[111].mxu0 }
 0x1c3   : > { %v1936_v54 = vpop.f32.mrb[86].mxu1  ;;  %v4164_v29 = vld [vmem:[%s4272_s9 + $0x548] ss:$12 sps:$4 sm:$0xff]  }
 0x1c4   : > { %v2833_v7 = vmax.f32 %v4782_v47, %v4931_v14  ;;  %v4938_v58 = vadd.f32 %v4818_v48, %v1936_v54  ;;  %v1938_v2 = vpop.f32.mrb[87].mxu1 }
 0x1c5   : > { %3749 = vmatmul.mubr.msk.bf16.gmra.mrb[216].mxu0 %vm1541_vm1, %v4156_v33  ;;  %v4149_v33 = vld [vmem:[%s4272_s9 + $0x4e4] ss:$12 sps:$4 sm:$0xff]  }
 0x1c6   : > { %v2834_v19 = vmax.f32 %v4791_v17, %v4938_v58  ;;  %2148 = vmatmul.mubr.bf16.gmra.mrb[192].mxu1 %v4135_v62  ;;  %3752 = vmatprep.mubr.msk.bf16.mxu0 %vm4202_vm0, %v4201_v3 }
 0x1c7   : > { %2155 = vmatprep.mubr.bf16.mxu1 %v4137_v36  ;;  %v4965_v28 = vpop.f32.mrb[112].mxu0  ;;  %v4147_v36 = vld [vmem:[%s4272_s9 + $0x4c8] ss:$12 sps:$4 sm:$0xff]  }
 0x1c8   : > { %v3646_v10 = vpop.f32.mrb[113].mxu0 }
 0x1c9   : > { %v1941_v18 = vpop.f32.mrb[88].mxu1  ;;  %v4968_v26 = vpop.f32.mrb[114].mxu0 }
 0x1ca   : > { %v4951_v48 = vadd.f32 %v4837_v32, %v1941_v18  ;;  %v1943_v15 = vpop.f32.mrb[89].mxu1  ;;  %v3647_v37 = vpop.f32.mrb[115].mxu0 }
 0x1cb   : > { %v1944_v35 = vpop.f32.mrb[90].mxu1  ;;  %v4153_v37 = vld [vmem:[%s4272_s9 + $0x4fc] ss:$12 sps:$4 sm:$0xff]  }
 0x1cc   : > { %v2835_v34 = vmax.f32 %v4804_v12, %v4951_v48  ;;  %v4958_v0 = vadd.f32 %v4840_v20, %v1944_v35  ;;  %v1946_v22 = vpop.f32.mrb[91].mxu1 }
 0x1cd   : > { %3753 = vmatmul.mubr.msk.bf16.gmra.mrb[220].mxu0 %vm1541_vm1, %v4160_v56 }
 0x1ce   : > { %v2836_v32 = vmax.f32 %v4813_v41, %v4958_v0  ;;  %2156 = vmatmul.mubr.bf16.gmra.mrb[196].mxu1 %v4139_v40  ;;  %3756 = vmatprep.mubr.msk.bf16.mxu0 %vm4202_vm0, %v4201_v3 }
 0x1cf   : > { %2163 = vmatprep.mubr.bf16.mxu1 %v4141_v30  ;;  %v4985_v31 = vpop.f32.mrb[116].mxu0  ;;  %v4168_v30 = vld [vmem:[%s4272_s9 + $0x560] ss:$12 sps:$4 sm:$0xff]  }
 0x1d0   : > { %v3650_v13 = vpop.f32.mrb[117].mxu0 }
 0x1d1   : > { %v1949_v9 = vpop.f32.mrb[92].mxu1  ;;  %v4988_v46 = vpop.f32.mrb[118].mxu0 }
 0x1d2   : > { %v4971_v20 = vadd.f32 %v4859_v45, %v1949_v9  ;;  %v1951_v55 = vpop.f32.mrb[93].mxu1  ;;  %v3651_v2 = vpop.f32.mrb[119].mxu0  ;;  %v4151_v9 = vld [vmem:[%s4272_s9 + $0x4e0] ss:$12 sps:$4 sm:$0xff]  }
 0x1d3   : > { %v1952_v50 = vpop.f32.mrb[94].mxu1 }
 0x1d4   : > { %v2837_v59 = vmax.f32 %v4826_v25, %v4971_v20  ;;  %v4978_v63 = vadd.f32 %v4862_v51, %v1952_v50  ;;  %v1954_v43 = vpop.f32.mrb[95].mxu1 }
 0x1d5   : > { %3757 = vmatmul.mubr.msk.bf16.gmra.mrb[224].mxu0 %vm1541_vm1, %v4164_v29 }
 0x1d6   : > { %v2838_v45 = vmax.f32 %v4835_v8, %v4978_v63  ;;  %2164 = vmatmul.mubr.bf16.gmra.mrb[200].mxu1 %v4143_v27  ;;  %3760 = vmatprep.mubr.msk.bf16.mxu0 %vm4202_vm0, %v4201_v3 }
 0x1d7   : > { %2171 = vmatprep.mubr.bf16.mxu1 %v4145_v21  ;;  %v5005_v44 = vpop.f32.mrb[120].mxu0 }
 0x1d8   : > { %v3654_v35 = vpop.f32.mrb[121].mxu0 }
 0x1d9   : > { %v1957_v62 = vpop.f32.mrb[96].mxu1  ;;  %v5008_v10 = vpop.f32.mrb[122].mxu0  ;;  %v4157_v35 = vld [vmem:[%s4272_s9 + $0x514] ss:$12 sps:$4 sm:$0xff]  }
 0x1da   : > { %v4991_v51 = vadd.f32 %v4881_v53, %v1957_v62  ;;  %v1959_v54 = vpop.f32.mrb[97].mxu1  ;;  %v3655_v55 = vpop.f32.mrb[123].mxu0  ;;  %v4172_v62 = vld [vmem:[%s4272_s9 + $0x578] ss:$12 sps:$4 sm:$0xff]  }
 0x1db   : > { %v1960_v11 = vpop.f32.mrb[98].mxu1 }
 0x1dc   : > { %v2839_v18 = vmax.f32 %v4848_v38, %v4991_v51  ;;  %v4998_v15 = vadd.f32 %v4884_v39, %v1960_v11  ;;  %v1962_v40 = vpop.f32.mrb[99].mxu1  ;;  %v4155_v11 = vld [vmem:[%s4272_s9 + $0x4f8] ss:$12 sps:$4 sm:$0xff]  }
 0x1dd   : > { %3761 = vmatmul.mubr.msk.bf16.gmra.mrb[228].mxu0 %vm1541_vm1, %v4168_v30 }
 0x1de   : > { %v2840_v53 = vmax.f32 %v4857_v42, %v4998_v15  ;;  %2172 = vmatmul.mubr.bf16.gmra.mrb[204].mxu1 %v4147_v36  ;;  %3764 = vmatprep.mubr.msk.bf16.mxu0 %vm4202_vm0, %v4201_v3 }
 0x1df   : > { %2179 = vmatprep.mubr.bf16.mxu1 %v4149_v33  ;;  %v5025_v13 = vpop.f32.mrb[124].mxu0 }
 0x1e0   : > { %v3658_v29 = vpop.f32.mrb[125].mxu0 }
 0x1e1   : > { %v1965_v22 = vpop.f32.mrb[100].mxu1  ;;  %v5028_v36 = vpop.f32.mrb[126].mxu0 }
 0x1e2   : > { %v5011_v39 = vadd.f32 %v4903_v60, %v1965_v22  ;;  %v1967_v56 = vpop.f32.mrb[101].mxu1  ;;  %v3659_v33 = vpop.f32.mrb[127].mxu0 }
 0x1e3   : > { %v1968_v27 = vpop.f32.mrb[102].mxu1  ;;  %v4161_v33 = vld [vmem:[%s4272_s9 + $0x52c] ss:$12 sps:$4 sm:$0xff]  }
 0x1e4   : > { %v2841_v50 = vmax.f32 %v4870_v52, %v5011_v39  ;;  %v5018_v21 = vadd.f32 %v4906_v49, %v1968_v27  ;;  %v1970_v43 = vpop.f32.mrb[103].mxu1  ;;  %v4176_v27 = vld [vmem:[%s4272_s9 + $0x590] ss:$12 sps:$4 sm:$0xff]  }
 0x1e5   : > { %3765 = vmatmul.mubr.msk.bf16.gmra.mrb[232].mxu0 %vm1541_vm1, %v4172_v62  ;;  %v4159_v62 = vld [vmem:[%s4272_s9 + $0x510] ss:$12 sps:$4 sm:$0xff]  }
 0x1e6   : > { %v2842_v60 = vmax.f32 %v4879_v23, %v5018_v21  ;;  %2180 = vmatmul.mubr.bf16.gmra.mrb[208].mxu1 %v4151_v9  ;;  %3768 = vmatprep.mubr.msk.bf16.mxu0 %vm4202_vm0, %v4201_v3 }
 0x1e7   : > { %2187 = vmatprep.mubr.bf16.mxu1 %v4153_v37  ;;  %v5045_v9 = vpop.f32.mrb[128].mxu0 }
 0x1e8   : > { %v3662_v55 = vpop.f32.mrb[129].mxu0 }
 0x1e9   : > { %v1973_v54 = vpop.f32.mrb[104].mxu1  ;;  %v5048_v43 = vpop.f32.mrb[130].mxu0 }
 0x1ea   : > { %v5031_v49 = vadd.f32 %v4925_v5, %v1973_v54  ;;  %v1975_v2 = vpop.f32.mrb[105].mxu1  ;;  %v3663_v54 = vpop.f32.mrb[131].mxu0  ;;  %v4165_v5 = vld [vmem:[%s4272_s9 + $0x544] ss:$12 sps:$4 sm:$0xff]  }
 0x1eb   : > { %v1976_v40 = vpop.f32.mrb[106].mxu1 }
 0x1ec   : > { %v2843_v30 = vmax.f32 %v4892_v4, %v5031_v49  ;;  %v5038_v22 = vadd.f32 %v4928_v24, %v1976_v40  ;;  %v1978_v56 = vpop.f32.mrb[107].mxu1 }
 0x1ed   : > { %3769 = vmatmul.mubr.msk.bf16.gmra.mrb[236].mxu0 %vm1541_vm1, %v4176_v27  ;;  %v4163_v27 = vld [vmem:[%s4272_s9 + $0x528] ss:$12 sps:$4 sm:$0xff]  }
 0x1ee   : > { %2188 = vmatmul.mubr.bf16.gmra.mrb[212].mxu1 %v4155_v11  ;;  %3772 = vmatprep.mubr.msk.bf16.mxu0 %vm4202_vm0, %v4201_v3 }
 0x1ef   : > { %2195 = vmatprep.mubr.bf16.mxu1 %v4157_v35  ;;  %v5065_v56 = vpop.f32.mrb[132].mxu0 }
 0x1f0   : > { %v3666_v55 = vpop.f32.mrb[133].mxu0 }
 0x1f1   : > { %v1981_v37 = vpop.f32.mrb[108].mxu1  ;;  %v5068_v54 = vpop.f32.mrb[134].mxu0 }
 0x1f2   : > { %v5051_v24 = vadd.f32 %v4945_v57, %v1981_v37  ;;  %v1983_v29 = vpop.f32.mrb[109].mxu1  ;;  %v4180_v37 = vld [vmem:[%s4272_s9 + $0x5a8] ss:$12 sps:$4 sm:$0xff]  }
 0x1f3   : > { %v1984_v2 = vpop.f32.mrb[110].mxu1 }
 0x1f4   : > { %v5058_v40 = vadd.f32 %v4948_v61, %v1984_v2  ;;  %v1986_v35 = vpop.f32.mrb[111].mxu1 }
 0x1f5   : > { %v3667_v35 = vpop.f32.mrb[135].mxu0  ;;  %3773 = vmatmul.mubr.msk.bf16.gmra.mrb[240].mxu0 %vm1541_vm1, %v4180_v37 }
 0x1f6   : > { %v2846_v57 = vmax.f32 %v4923_v6, %v5058_v40  ;;  %2196 = vmatmul.mubr.bf16.gmra.mrb[216].mxu1 %v4159_v62  ;;  %3776 = vmatprep.mubr.msk.bf16.mxu0 %vm4202_vm0, %v4201_v3 }
 0x1f7   : > { %2203 = vmatprep.mubr.bf16.mxu1 %v4161_v33  ;;  %v5087_v47 = vpop.f32.mrb[136].mxu0 }
 0x1f8   : > { %v3670_v14 = vpop.f32.mrb[137].mxu0 }
 0x1f9   : > { %v1989_v29 = vpop.f32.mrb[112].mxu1  ;;  %v4171_v14 = vld [vmem:[%s4272_s9 + $0x558] ss:$12 sps:$4 sm:$0xff]  }
 0x1fa   : > { %v2527_v61 = vadd.f32 %v4965_v28, %v1989_v29  ;;  %v1991_v2 = vpop.f32.mrb[113].mxu1 }
 0x1fb   : > { %v1992_v11 = vpop.f32.mrb[114].mxu1 }
 0x1fc   : > { %v5076_v62 = vmax.f32 %v2833_v7, %v2527_v61  ;;  %v2530_v33 = vadd.f32 %v4968_v26, %v1992_v11  ;;  %v1994_v55 = vpop.f32.mrb[115].mxu1  ;;  %v4184_v7 = vld [vmem:[%s4272_s9 + $0x5c0] ss:$12 sps:$4 sm:$0xff]   ;;  %v5090_v26 = vpop.f32.mrb[138].mxu0 }
 0x1fd   : > { %v4167_v61 = vld [vmem:[%s4272_s9 + $0x540] ss:$12 sps:$4 sm:$0xff]   ;;  %v3671_v2 = vpop.f32.mrb[139].mxu0  ;;  %v4169_v55 = vld [vmem:[%s4272_s9 + $0x55c] ss:$12 sps:$4 sm:$0xff]   ;;  %3777 = vmatmul.mubr.msk.bf16.gmra.mrb[244].mxu0 %vm1541_vm1, %v4184_v7 }
 0x1fe   : > { %v5085_v28 = vmax.f32 %v2834_v19, %v2530_v33  ;;  %2204 = vmatmul.mubr.bf16.gmra.mrb[220].mxu1 %v4163_v27  ;;  %3780 = vmatprep.mubr.msk.bf16.mxu0 %vm4202_vm0, %v4201_v3 }
 0x1ff   : > { %2211 = vmatprep.mubr.bf16.mxu1 %v4165_v5  ;;  %v5109_v12 = vpop.f32.mrb[140].mxu0 }
 0x200   : > { %v3674_v48 = vpop.f32.mrb[141].mxu0 }
 0x201   : > { %v1997_v29 = vpop.f32.mrb[116].mxu1 }
 0x202   : > { %v2535_v11 = vadd.f32 %v4985_v31, %v1997_v29  ;;  %v1999_v37 = vpop.f32.mrb[117].mxu1  ;;  %v4173_v29 = vld [vmem:[%s4272_s9 + $0x574] ss:$12 sps:$4 sm:$0xff]  }
 0x203   : > { %v2000_v35 = vpop.f32.mrb[118].mxu1 }
 0x204   : > { %v5098_v17 = vmax.f32 %v2835_v34, %v2535_v11  ;;  %v2538_v58 = vadd.f32 %v4988_v46, %v2000_v35  ;;  %v2002_v19 = vpop.f32.mrb[119].mxu1  ;;  %v4188_v34 = vld [vmem:[%s4272_s9 + $0x5d8] ss:$12 sps:$4 sm:$0xff]   ;;  %v5112_v46 = vpop.f32.mrb[142].mxu0 }
 0x205   : > { %v3675_v7 = vpop.f32.mrb[143].mxu0  ;;  %3781 = vmatmul.mubr.msk.bf16.gmra.mrb[248].mxu0 %vm1541_vm1, %v4188_v34 }
 0x206   : > { %v5107_v31 = vmax.f32 %v2836_v32, %v2538_v58  ;;  %2212 = vmatmul.mubr.bf16.gmra.mrb[224].mxu1 %v4167_v61 }
 0x207   : > { %2219 = vmatprep.mubr.bf16.mxu1 %v4169_v55  ;;  %v5129_v11 = vpop.f32.mrb[144].mxu0  ;;  %v4177_v55 = vld [vmem:[%s4272_s9 + $0x58c] ss:$12 sps:$4 sm:$0xff]  }
 0x208   : > { %v3678_v37 = vpop.f32.mrb[145].mxu0 }
 0x209   : > { %v2005_v5 = vpop.f32.mrb[120].mxu1  ;;  %v5131_v25 = vpop.f32.mrb[146].mxu0 }
 0x20a   : > { %v2543_v27 = vadd.f32 %v5005_v44, %v2005_v5  ;;  %v2007_v33 = vpop.f32.mrb[121].mxu1  ;;  %v3679_v2 = vpop.f32.mrb[147].mxu0 }
 0x20b   : > { %v2008_v3 = vpop.f32.mrb[122].mxu1  ;;  %v4189_v2 = vld [vmem:[%s4272_s9 + $0x5d4] ss:$12 sps:$4 sm:$0xff]  }
 0x20c   : > { %v5120_v41 = vmax.f32 %v2837_v59, %v2543_v27  ;;  %v2546_v0 = vadd.f32 %v5008_v10, %v2008_v3  ;;  %v2010_v32 = vpop.f32.mrb[123].mxu1  ;;  %v4175_v10 = vld [vmem:[%s4272_s9 + $0x570] ss:$12 sps:$4 sm:$0xff]  }
 0x20d   : > { %v4181_v27 = vld [vmem:[%s4272_s9 + $0x5a4] ss:$12 sps:$4 sm:$0xff]   ;;  %v5635_v32 = vmax.f32 %v4901_v1, %v5038_v22  ;;  %v5636_v1 = vmax.f32 %v4914_v16, %v5051_v24 }
 0x20e   : > { %v5127_v44 = vmax.f32 %v2838_v45, %v2546_v0  ;;  %2220 = vmatmul.mubr.bf16.gmra.mrb[228].mxu1 %v4171_v14  ;;  %v4185_v0 = vld [vmem:[%s4272_s9 + $0x5bc] ss:$12 sps:$4 sm:$0xff]  }
 0x20f   : > { %2227 = vmatprep.mubr.bf16.mxu1 %v4173_v29 }
 0x211   : > { %v2013_v61 = vpop.f32.mrb[124].mxu1 }
 0x212   : > { %v2551_v20 = vadd.f32 %v5025_v13, %v2013_v61  ;;  %v2015_v59 = vpop.f32.mrb[125].mxu1  ;;  %v5147_v13 = vpop.f32.mrb[148].mxu0 }
 0x213   : > { %v2016_v35 = vpop.f32.mrb[126].mxu1  ;;  %v3682_v19 = vpop.f32.mrb[149].mxu0 }
 0x214   : > { %v5139_v8 = vmax.f32 %v2839_v18, %v2551_v20  ;;  %v2554_v63 = vadd.f32 %v5028_v36, %v2016_v35  ;;  %v2018_v45 = vpop.f32.mrb[127].mxu1  ;;  %v5149_v34 = vpop.f32.mrb[150].mxu0  ;;  %v4179_v18 = vld [vmem:[%s4272_s9 + $0x588] ss:$12 sps:$4 sm:$0xff]  }
 0x215   : > { %v3683_v36 = vpop.f32.mrb[151].mxu0 }
 0x216   : > { %v5145_v58 = vmax.f32 %v2840_v53, %v2554_v63  ;;  %2228 = vmatmul.mubr.bf16.gmra.mrb[232].mxu1 %v4175_v10 }
 0x217   : > { %2235 = vmatprep.mubr.bf16.mxu1 %v4177_v55 }
 0x219   : > { %v2021_v48 = vpop.f32.mrb[128].mxu1 }
 0x21a   : > { %v2559_v38 = vadd.f32 %v5045_v9, %v2021_v48  ;;  %v2023_v51 = vpop.f32.mrb[129].mxu1  ;;  %v5165_v9 = vpop.f32.mrb[152].mxu0 }
 0x21b   : > { %v2024_v5 = vpop.f32.mrb[130].mxu1  ;;  %v3686_v14 = vpop.f32.mrb[153].mxu0 }
 0x21c   : > { %v5157_v42 = vmax.f32 %v2841_v50, %v2559_v38  ;;  %v2562_v15 = vadd.f32 %v5048_v43, %v2024_v5  ;;  %v2026_v53 = vpop.f32.mrb[131].mxu1  ;;  %v5167_v3 = vpop.f32.mrb[154].mxu0  ;;  %v4183_v50 = vld [vmem:[%s4272_s9 + $0x5a0] ss:$12 sps:$4 sm:$0xff]   ;;  %v4191_v38 = vld [vmem:[%s4272_s9 + $0x5d0] ss:$12 sps:$4 sm:$0xff]  }
 0x21d   : > { %v3687_v43 = vpop.f32.mrb[155].mxu0 }
 0x21e   : > { %v5163_v33 = vmax.f32 %v2842_v60, %v2562_v15  ;;  %2236 = vmatmul.mubr.bf16.gmra.mrb[236].mxu1 %v4179_v18 }
 0x21f   : > { %2243 = vmatprep.mubr.bf16.mxu1 %v4181_v27 }
 0x221   : > { %v2029_v7 = vpop.f32.mrb[132].mxu1 }
 0x222   : > { %v2567_v52 = vadd.f32 %v5065_v56, %v2029_v7  ;;  %v2031_v39 = vpop.f32.mrb[133].mxu1  ;;  %v5183_v56 = vpop.f32.mrb[156].mxu0 }
 0x223   : > { %v2032_v29 = vpop.f32.mrb[134].mxu1  ;;  %v3690_v61 = vpop.f32.mrb[157].mxu0 }
 0x224   : > { %v5175_v23 = vmax.f32 %v2843_v30, %v2567_v52  ;;  %v2570_v21 = vadd.f32 %v5068_v54, %v2032_v29  ;;  %v2034_v60 = vpop.f32.mrb[135].mxu1  ;;  %v5185_v59 = vpop.f32.mrb[158].mxu0  ;;  %v4187_v30 = vld [vmem:[%s4272_s9 + $0x5b8] ss:$12 sps:$4 sm:$0xff]  }
 0x225   : > { %v3691_v54 = vpop.f32.mrb[159].mxu0 }
 0x226   : > { %v5181_v37 = vmax.f32 %v5635_v32, %v2570_v21  ;;  %2244 = vmatmul.mubr.bf16.gmra.mrb[240].mxu1 %v4183_v50 }
 0x227   : > { %2251 = vmatprep.mubr.bf16.mxu1 %v4185_v0 }
 0x229   : > { %v2037_v20 = vpop.f32.mrb[136].mxu1 }
 0x22a   : > { %v2575_v4 = vadd.f32 %v5087_v47, %v2037_v20  ;;  %v2039_v49 = vpop.f32.mrb[137].mxu1  ;;  %v5201_v47 = vpop.f32.mrb[160].mxu0 }
 0x22b   : > { %v2040_v10 = vpop.f32.mrb[138].mxu1  ;;  %v3694_v45 = vpop.f32.mrb[161].mxu0 }
 0x22c   : > { %v5193_v22 = vmax.f32 %v5636_v1, %v2575_v4  ;;  %v2578_v35 = vadd.f32 %v5090_v26, %v2040_v10  ;;  %v2042_v55 = vpop.f32.mrb[139].mxu1  ;;  %v5203_v48 = vpop.f32.mrb[162].mxu0 }
 0x22d   : > { %v3695_v26 = vpop.f32.mrb[163].mxu0 }
 0x22e   : > { %v5199_v63 = vmax.f32 %v2846_v57, %v2578_v35  ;;  %2252 = vmatmul.mubr.bf16.gmra.mrb[244].mxu1 %v4187_v30 }
 0x22f   : > { %2259 = vmatprep.mubr.bf16.mxu1 %v4189_v2  ;;  %v5216_v36 = vpop.f32.mrb[164].mxu0 }
 0x230   : > { %v3698_v5 = vpop.f32.mrb[165].mxu0 }
 0x231   : > { %v2045_v19 = vpop.f32.mrb[140].mxu1  ;;  %v5218_v27 = vpop.f32.mrb[166].mxu0 }
 0x232   : > { %v5206_v16 = vadd.f32 %v5109_v12, %v2045_v19  ;;  %v2047_v24 = vpop.f32.mrb[141].mxu1  ;;  %v3699_v14 = vpop.f32.mrb[167].mxu0 }
 0x233   : > { %v2048_v51 = vpop.f32.mrb[142].mxu1 }
 0x234   : > { %v2861_v6 = vmax.f32 %v5076_v62, %v5206_v16  ;;  %v5212_v40 = vadd.f32 %v5112_v46, %v2048_v51  ;;  %v2050_v57 = vpop.f32.mrb[143].mxu1 }
 0x236   : > { %v2862_v18 = vmax.f32 %v5085_v28, %v5212_v40  ;;  %2260 = vmatmul.mubr.bf16.gmra.mrb[248].mxu1 %v4191_v38 }
 0x237   : > { %v5230_v43 = vpop.f32.mrb[168].mxu0 }
 0x238   : > { %v3702_v29 = vpop.f32.mrb[169].mxu0 }
 0x239   : > { %v2053_v12 = vpop.f32.mrb[144].mxu1  ;;  %v5232_v21 = vpop.f32.mrb[170].mxu0 }
 0x23a   : > { %v5221_v15 = vadd.f32 %v5129_v11, %v2053_v12  ;;  %v2055_v53 = vpop.f32.mrb[145].mxu1  ;;  %v3703_v32 = vpop.f32.mrb[171].mxu0 }
 0x23b   : > { %v2056_v7 = vpop.f32.mrb[146].mxu1 }
 0x23c   : > { %v2863_v46 = vmax.f32 %v5098_v17, %v5221_v15  ;;  %v5226_v52 = vadd.f32 %v5131_v25, %v2056_v7  ;;  %v2058_v39 = vpop.f32.mrb[147].mxu1 }
 0x23e   : > { %v2864_v50 = vmax.f32 %v5107_v31, %v5226_v52 }
 0x23f   : > { %v5244_v30 = vpop.f32.mrb[172].mxu0 }
 0x240   : > { %v3706_v54 = vpop.f32.mrb[173].mxu0 }
 0x241   : > { %v2061_v0 = vpop.f32.mrb[148].mxu1  ;;  %v5246_v2 = vpop.f32.mrb[174].mxu0 }
 0x242   : > { %v5235_v11 = vadd.f32 %v5147_v13, %v2061_v0  ;;  %v2063_v60 = vpop.f32.mrb[149].mxu1  ;;  %v3707_v35 = vpop.f32.mrb[175].mxu0 }
 0x243   : > { %v2064_v61 = vpop.f32.mrb[150].mxu1 }
 0x244   : > { %v2865_v25 = vmax.f32 %v5120_v41, %v5235_v11  ;;  %v5240_v20 = vadd.f32 %v5149_v34, %v2064_v61  ;;  %v2066_v4 = vpop.f32.mrb[151].mxu1 }
 0x246   : > { %v2866_v49 = vmax.f32 %v5127_v44, %v5240_v20 }
 0x247   : > { %v5258_v38 = vpop.f32.mrb[176].mxu0 }
 0x248   : > { %v3710_v26 = vpop.f32.mrb[177].mxu0 }
 0x249   : > { %v2069_v10 = vpop.f32.mrb[152].mxu1  ;;  %v5260_v57 = vpop.f32.mrb[178].mxu0 }
 0x24a   : > { %v5249_v13 = vadd.f32 %v5165_v9, %v2069_v10  ;;  %v2071_v1 = vpop.f32.mrb[153].mxu1  ;;  %v3711_v12 = vpop.f32.mrb[179].mxu0 }
 0x24b   : > { %v2072_v55 = vpop.f32.mrb[154].mxu1 }
 0x24c   : > { %v2867_v34 = vmax.f32 %v5139_v8, %v5249_v13  ;;  %v5254_v45 = vadd.f32 %v5167_v3, %v2072_v55  ;;  %v2074_v19 = vpop.f32.mrb[155].mxu1 }
 0x24e   : > { %v2868_v24 = vmax.f32 %v5145_v58, %v5254_v45 }
 0x24f   : > { %v5272_v29 = vpop.f32.mrb[180].mxu0 }
 0x250   : > { %v3714_v0 = vpop.f32.mrb[181].mxu0 }
 0x251   : > { %v2077_v51 = vpop.f32.mrb[156].mxu1  ;;  %v5274_v32 = vpop.f32.mrb[182].mxu0 }
 0x252   : > { %v5263_v9 = vadd.f32 %v5183_v56, %v2077_v51  ;;  %v2079_v5 = vpop.f32.mrb[157].mxu1  ;;  %v3715_v4 = vpop.f32.mrb[183].mxu0 }
 0x253   : > { %v2080_v53 = vpop.f32.mrb[158].mxu1 }
 0x254   : > { %v2869_v3 = vmax.f32 %v5157_v42, %v5263_v9  ;;  %v5268_v14 = vadd.f32 %v5185_v59, %v2080_v53  ;;  %v2082_v7 = vpop.f32.mrb[159].mxu1 }
 0x256   : > { %v2870_v39 = vmax.f32 %v5163_v33, %v5268_v14 }
 0x257   : > { %v5286_v55 = vpop.f32.mrb[184].mxu0 }
 0x258   : > { %v3718_v19 = vpop.f32.mrb[185].mxu0 }
 0x259   : > { %v2085_v60 = vpop.f32.mrb[160].mxu1  ;;  %v5288_v51 = vpop.f32.mrb[186].mxu0 }
 0x25a   : > { %v5277_v56 = vadd.f32 %v5201_v47, %v2085_v60  ;;  %v2087_v61 = vpop.f32.mrb[161].mxu1  ;;  %v3719_v12 = vpop.f32.mrb[187].mxu0 }
 0x25b   : > { %v2088_v54 = vpop.f32.mrb[162].mxu1 }
 0x25c   : > { %v2871_v59 = vmax.f32 %v5175_v23, %v5277_v56  ;;  %v5282_v10 = vadd.f32 %v5203_v48, %v2088_v54  ;;  %v2090_v1 = vpop.f32.mrb[163].mxu1 }
 0x25e   : > { %v2872_v35 = vmax.f32 %v5181_v37, %v5282_v10 }
 0x260   : > { %v5300_v61 = vpop.f32.mrb[188].mxu0 }
 0x261   : > { %v2093_v26 = vpop.f32.mrb[164].mxu1  ;;  %v3722_v4 = vpop.f32.mrb[189].mxu0 }
 0x262   : > { %v5291_v47 = vadd.f32 %v5216_v36, %v2093_v26  ;;  %v2095_v5 = vpop.f32.mrb[165].mxu1  ;;  %v5302_v1 = vpop.f32.mrb[190].mxu0 }
 0x263   : > { %v2096_v53 = vpop.f32.mrb[166].mxu1  ;;  %v3723_v26 = vpop.f32.mrb[191].mxu0 }
 0x264   : > { %v2873_v48 = vmax.f32 %v5193_v22, %v5291_v47  ;;  %v5296_v7 = vadd.f32 %v5218_v27, %v2096_v53  ;;  %v2098_v0 = vpop.f32.mrb[167].mxu1 }
 0x268   : > { %v5316_v4 = vpop.f32.mrb[192].mxu0 }
 0x269   : > { %v2101_v54 = vpop.f32.mrb[168].mxu1  ;;  %v3726_v60 = vpop.f32.mrb[193].mxu0 }
 0x26a   : > { %v2639_v36 = vadd.f32 %v5230_v43, %v2101_v54  ;;  %v2103_v19 = vpop.f32.mrb[169].mxu1  ;;  %v5318_v54 = vpop.f32.mrb[194].mxu0 }
 0x26b   : > { %v2104_v5 = vpop.f32.mrb[170].mxu1  ;;  %v3727_v62 = vpop.f32.mrb[195].mxu0 }
 0x26c   : > { %v5308_v27 = vmax.f32 %v2861_v6, %v2639_v36  ;;  %v2642_v12 = vadd.f32 %v5232_v21, %v2104_v5  ;;  %v2106_v53 = vpop.f32.mrb[171].mxu1 }
 0x26e   : > { %v5314_v0 = vmax.f32 %v2862_v18, %v2642_v12 }
 0x270   : > { %v5332_v21 = vpop.f32.mrb[196].mxu0 }
 0x271   : > { %v2109_v43 = vpop.f32.mrb[172].mxu1  ;;  %v3730_v60 = vpop.f32.mrb[197].mxu0 }
 0x272   : > { %v2647_v19 = vadd.f32 %v5244_v30, %v2109_v43  ;;  %v2111_v26 = vpop.f32.mrb[173].mxu1  ;;  %v5334_v36 = vpop.f32.mrb[198].mxu0 }
 0x273   : > { %v2112_v16 = vpop.f32.mrb[174].mxu1  ;;  %v3731_v17 = vpop.f32.mrb[199].mxu0 }
 0x274   : > { %v5324_v6 = vmax.f32 %v2863_v46, %v2647_v19  ;;  %v2650_v28 = vadd.f32 %v5246_v2, %v2112_v16  ;;  %v2114_v40 = vpop.f32.mrb[175].mxu1 }
 0x276   : > { %v5330_v18 = vmax.f32 %v2864_v50, %v2650_v28 }
 0x278   : > { %v5348_v2 = vpop.f32.mrb[200].mxu0 }
 0x279   : > { %v2117_v30 = vpop.f32.mrb[176].mxu1  ;;  %v3734_v53 = vpop.f32.mrb[201].mxu0 }
 0x27a   : > { %v2655_v5 = vadd.f32 %v5258_v38, %v2117_v30  ;;  %v2119_v12 = vpop.f32.mrb[177].mxu1  ;;  %v5350_v43 = vpop.f32.mrb[202].mxu0 }
 0x27b   : > { %v2120_v15 = vpop.f32.mrb[178].mxu1  ;;  %v3735_v41 = vpop.f32.mrb[203].mxu0 }
 0x27c   : > { %v5340_v46 = vmax.f32 %v2865_v25, %v2655_v5  ;;  %v2658_v31 = vadd.f32 %v5260_v57, %v2120_v15  ;;  %v2122_v52 = vpop.f32.mrb[179].mxu1 }
 0x27e   : > { %v5346_v50 = vmax.f32 %v2866_v49, %v2658_v31 }
 0x280   : > { %v5364_v57 = vpop.f32.mrb[204].mxu0 }
 0x281   : > { %v2125_v38 = vpop.f32.mrb[180].mxu1  ;;  %v3738_v62 = vpop.f32.mrb[205].mxu0 }
 0x282   : > { %v2663_v19 = vadd.f32 %v5272_v29, %v2125_v38  ;;  %v2127_v26 = vpop.f32.mrb[181].mxu1  ;;  %v5366_v16 = vpop.f32.mrb[206].mxu0 }
 0x283   : > { %v2128_v11 = vpop.f32.mrb[182].mxu1  ;;  %v3739_v8 = vpop.f32.mrb[207].mxu0 }
 0x284   : > { %v5356_v25 = vmax.f32 %v2867_v34, %v2663_v19  ;;  %v2666_v44 = vadd.f32 %v5274_v32, %v2128_v11  ;;  %v2130_v20 = vpop.f32.mrb[183].mxu1 }
 0x286   : > { %v5362_v49 = vmax.f32 %v2868_v24, %v2666_v44 }
 0x288   : > { %v5380_v32 = vpop.f32.mrb[208].mxu0 }
 0x289   : > { %v2133_v29 = vpop.f32.mrb[184].mxu1  ;;  %v3742_v60 = vpop.f32.mrb[209].mxu0 }
 0x28a   : > { %v2671_v28 = vadd.f32 %v5286_v55, %v2133_v29  ;;  %v2135_v40 = vpop.f32.mrb[185].mxu1  ;;  %v5382_v30 = vpop.f32.mrb[210].mxu0 }
 0x28b   : > { %v2136_v13 = vpop.f32.mrb[186].mxu1  ;;  %v3743_v42 = vpop.f32.mrb[211].mxu0 }
 0x28c   : > { %v5372_v34 = vmax.f32 %v2869_v3, %v2671_v28  ;;  %v2674_v58 = vadd.f32 %v5288_v51, %v2136_v13  ;;  %v2138_v45 = vpop.f32.mrb[187].mxu1 }
 0x28e   : > { %v5378_v24 = vmax.f32 %v2870_v39, %v2674_v58 }
 0x290   : > { %v5396_v51 = vpop.f32.mrb[212].mxu0 }
 0x291   : > { %v2141_v55 = vpop.f32.mrb[188].mxu1  ;;  %v3746_v17 = vpop.f32.mrb[213].mxu0 }
 0x292   : > { %v2679_v5 = vadd.f32 %v5300_v61, %v2141_v55  ;;  %v2143_v12 = vpop.f32.mrb[189].mxu1  ;;  %v5398_v15 = vpop.f32.mrb[214].mxu0 }
 0x293   : > { %v2144_v9 = vpop.f32.mrb[190].mxu1  ;;  %v3747_v23 = vpop.f32.mrb[215].mxu0 }
 0x294   : > { %v5388_v3 = vmax.f32 %v2871_v59, %v2679_v5  ;;  %v2682_v33 = vadd.f32 %v5302_v1, %v2144_v9  ;;  %v2146_v14 = vpop.f32.mrb[191].mxu1 }
 0x296   : > { %v5394_v39 = vmax.f32 %v2872_v35, %v2682_v33  ;;  %v5637_v35 = vmax.f32 %v5199_v63, %v5296_v7 }
 0x298   : > { %v5412_v53 = vpop.f32.mrb[216].mxu0 }
 0x299   : > { %v2149_v61 = vpop.f32.mrb[192].mxu1  ;;  %v3750_v38 = vpop.f32.mrb[217].mxu0 }
 0x29a   : > { %v2687_v31 = vadd.f32 %v5316_v4, %v2149_v61  ;;  %v2151_v52 = vpop.f32.mrb[193].mxu1  ;;  %v5414_v19 = vpop.f32.mrb[218].mxu0 }
 0x29b   : > { %v2152_v56 = vpop.f32.mrb[194].mxu1  ;;  %v3751_v47 = vpop.f32.mrb[219].mxu0 }
 0x29c   : > { %v5404_v59 = vmax.f32 %v2873_v48, %v2687_v31  ;;  %v2690_v37 = vadd.f32 %v5318_v54, %v2152_v56  ;;  %v2154_v10 = vpop.f32.mrb[195].mxu1 }
 0x29e   : > { %v5410_v1 = vmax.f32 %v5637_v35, %v2690_v37 }
 0x2a0   : > { %v5426_v11 = vpop.f32.mrb[220].mxu0 }
 0x2a1   : > { %v2157_v4 = vpop.f32.mrb[196].mxu1  ;;  %v3754_v44 = vpop.f32.mrb[221].mxu0 }
 0x2a2   : > { %v5417_v26 = vadd.f32 %v5332_v21, %v2157_v4  ;;  %v2159_v22 = vpop.f32.mrb[197].mxu1  ;;  %v5428_v62 = vpop.f32.mrb[222].mxu0 }
 0x2a3   : > { %v2160_v48 = vpop.f32.mrb[198].mxu1  ;;  %v3755_v28 = vpop.f32.mrb[223].mxu0 }
 0x2a4   : > { %v2889_v54 = vmax.f32 %v5308_v27, %v5417_v26  ;;  %v5422_v41 = vadd.f32 %v5334_v36, %v2160_v48  ;;  %v2162_v63 = vpop.f32.mrb[199].mxu1 }
 0x2a6   : > { %v2890_v7 = vmax.f32 %v5314_v0, %v5422_v41 }
 0x2a8   : > { %v5440_v45 = vpop.f32.mrb[224].mxu0 }
 0x2a9   : > { %v2165_v20 = vpop.f32.mrb[200].mxu1  ;;  %v3758_v60 = vpop.f32.mrb[225].mxu0 }
 0x2aa   : > { %v5431_v21 = vadd.f32 %v5348_v2, %v2165_v20  ;;  %v2167_v29 = vpop.f32.mrb[201].mxu1  ;;  %v5442_v5 = vpop.f32.mrb[226].mxu0 }
 0x2ab   : > { %v2168_v40 = vpop.f32.mrb[202].mxu1  ;;  %v3759_v42 = vpop.f32.mrb[227].mxu0 }
 0x2ac   : > { %v2891_v36 = vmax.f32 %v5324_v6, %v5431_v21  ;;  %v5436_v8 = vadd.f32 %v5350_v43, %v2168_v40  ;;  %v2170_v13 = vpop.f32.mrb[203].mxu1 }
 0x2ae   : > { %v2892_v58 = vmax.f32 %v5330_v18, %v5436_v8 }
 0x2b0   : > { %v5454_v61 = vpop.f32.mrb[228].mxu0 }
 0x2b1   : > { %v2173_v55 = vpop.f32.mrb[204].mxu1  ;;  %v3762_v31 = vpop.f32.mrb[229].mxu0 }
 0x2b2   : > { %v5445_v2 = vadd.f32 %v5364_v57, %v2173_v55  ;;  %v2175_v12 = vpop.f32.mrb[205].mxu1  ;;  %v5456_v23 = vpop.f32.mrb[230].mxu0 }
 0x2b3   : > { %v2176_v9 = vpop.f32.mrb[206].mxu1  ;;  %v3763_v37 = vpop.f32.mrb[231].mxu0 }
 0x2b4   : > { %v2893_v43 = vmax.f32 %v5340_v46, %v5445_v2  ;;  %v5450_v33 = vadd.f32 %v5366_v16, %v2176_v9  ;;  %v2178_v14 = vpop.f32.mrb[207].mxu1 }
 0x2b6   : > { %v2894_v17 = vmax.f32 %v5346_v50, %v5450_v33 }
 0x2b8   : > { %v5468_v22 = vpop.f32.mrb[232].mxu0 }
 0x2b9   : > { %v2181_v52 = vpop.f32.mrb[208].mxu1  ;;  %v3766_v47 = vpop.f32.mrb[233].mxu0 }
 0x2ba   : > { %v5459_v57 = vadd.f32 %v5380_v32, %v2181_v52  ;;  %v2183_v56 = vpop.f32.mrb[209].mxu1  ;;  %v5470_v63 = vpop.f32.mrb[234].mxu0 }
 0x2bb   : > { %v2184_v10 = vpop.f32.mrb[210].mxu1  ;;  %v3767_v20 = vpop.f32.mrb[235].mxu0 }
 0x2bc   : > { %v2895_v16 = vmax.f32 %v5356_v25, %v5459_v57  ;;  %v5464_v35 = vadd.f32 %v5382_v30, %v2184_v10  ;;  %v2186_v38 = vpop.f32.mrb[211].mxu1 }
 0x2be   : > { %v2896_v4 = vmax.f32 %v5362_v49, %v5464_v35 }
 0x2c0   : > { %v5482_v60 = vpop.f32.mrb[236].mxu0 }
 0x2c1   : > { %v2189_v48 = vpop.f32.mrb[212].mxu1  ;;  %v3770_v55 = vpop.f32.mrb[237].mxu0 }
 0x2c2   : > { %v5473_v32 = vadd.f32 %v5396_v51, %v2189_v48  ;;  %v2191_v44 = vpop.f32.mrb[213].mxu1  ;;  %v5484_v42 = vpop.f32.mrb[238].mxu0 }
 0x2c3   : > { %v2192_v29 = vpop.f32.mrb[214].mxu1  ;;  %v3771_v14 = vpop.f32.mrb[239].mxu0 }
 0x2c4   : > { %v2897_v30 = vmax.f32 %v5372_v34, %v5473_v32  ;;  %v5478_v28 = vadd.f32 %v5398_v15, %v2192_v29  ;;  %v2194_v40 = vpop.f32.mrb[215].mxu1 }
 0x2c6   : > { %v2898_v13 = vmax.f32 %v5378_v24, %v5478_v28 }
 0x2c8   : > { %v5496_v10 = vpop.f32.mrb[240].mxu0 }
 0x2c9   : > { %v2197_v12 = vpop.f32.mrb[216].mxu1  ;;  %v3774_v38 = vpop.f32.mrb[241].mxu0 }
 0x2ca   : > { %v5487_v51 = vadd.f32 %v5412_v53, %v2197_v12  ;;  %v2199_v9 = vpop.f32.mrb[217].mxu1  ;;  %v5498_v53 = vpop.f32.mrb[242].mxu0 }
 0x2cb   : > { %v2200_v31 = vpop.f32.mrb[218].mxu1  ;;  %v3775_v20 = vpop.f32.mrb[243].mxu0 }
 0x2cc   : > { %v2899_v15 = vmax.f32 %v5388_v3, %v5487_v51  ;;  %v5492_v52 = vadd.f32 %v5414_v19, %v2200_v31  ;;  %v2202_v56 = vpop.f32.mrb[219].mxu1 }
 0x2ce   : > { %v2900_v37 = vmax.f32 %v5394_v39, %v5492_v52 }
 0x2d0   : > { %v5511_v9 = vpop.f32.mrb[244].mxu0 }
 0x2d1   : > { %v2205_v47 = vpop.f32.mrb[220].mxu1  ;;  %v3778_v14 = vpop.f32.mrb[245].mxu0 }
 0x2d2   : > { %v5501_v48 = vadd.f32 %v5426_v11, %v2205_v47  ;;  %v2207_v44 = vpop.f32.mrb[221].mxu1  ;;  %v5513_v11 = vpop.f32.mrb[246].mxu0  ;;  %v5528_v14 = vld [vmem:[%s5631_s3] ss:$0 sm:$0xff] }
 0x2d3   : > { %v2208_v29 = vpop.f32.mrb[222].mxu1  ;;  %v3779_v47 = vpop.f32.mrb[247].mxu0 }
 0x2d4   : > { %v2901_v19 = vmax.f32 %v5404_v59, %v5501_v48  ;;  %v5506_v40 = vadd.f32 %v5428_v62, %v2208_v29  ;;  %v2210_v55 = vpop.f32.mrb[223].mxu1  ;;  %v5519_v62 = vld [vmem:[%s5630_s2] ss:$0 sm:$0xff] }
 0x2d9   : > { %v2213_v31 = vpop.f32.mrb[224].mxu1 }
 0x2da   : > { %v2751_v56 = vadd.f32 %v5440_v45, %v2213_v31  ;;  %v2215_v38 = vpop.f32.mrb[225].mxu1 }
 0x2db   : > { %v2216_v44 = vpop.f32.mrb[226].mxu1  ;;  %v5534_v38 = vpop.f32.mrb[248].mxu0 }
 0x2dc   : > { %v2903_v20 = vmax.f32 %v2889_v54, %v2751_v56  ;;  %v2754_v29 = vadd.f32 %v5442_v5, %v2216_v44  ;;  %v2218_v55 = vpop.f32.mrb[227].mxu1  ;;  %v3782_v54 = vpop.f32.mrb[249].mxu0 }
 0x2dd   : > { %v5538_v56 = vpop.f32.mrb[250].mxu0 }
 0x2de   : > { %v2924_v45 = vadd.f32 %v5519_v62, %v2903_v20  ;;  %v2904_v31 = vmax.f32 %v2890_v7, %v2754_v29  ;;  %v3783_v0 = vpop.f32.mrb[251].mxu0 }
 0x2e0   : > { %v2959_v27 = vmul.f32 %v5528_v14, %v2924_v45  ;;  %v2925_v26 = vadd.f32 %v5519_v62, %v2904_v31  ;;  %vm2938_vm2 = vcmp.ge.f32.partialorder %v2924_v45, 0.0 }
 0x2e1   : > { %v2221_v5 = vpop.f32.mrb[228].mxu1 }
 0x2e2   : > { %vm2939_vm3 = vcmp.ge.f32.partialorder %v2925_v26, 0.0  ;;  %v2960_v47 = vmul.f32 %v5528_v14, %v2925_v26  ;;  %v2759_v44 = vadd.f32 %v5454_v61, %v2221_v5  ;;  %v2223_v20 = vpop.f32.mrb[229].mxu1  ;;  %v2973_v7 = vsel %vm2938_vm2, %v2924_v45, %v2959_v27 }
 0x2e3   : > { %v2224_v41 = vpop.f32.mrb[230].mxu1 }
 0x2e4   : > { %v2974_v29 = vsel %vm2939_vm3, %v2925_v26, %v2960_v47  ;;  %v2905_v55 = vmax.f32 %v2891_v36, %v2759_v44  ;;  %v2762_v31 = vadd.f32 %v5456_v23, %v2224_v41  ;;  %v2226_v54 = vpop.f32.mrb[231].mxu1 }
 0x2e5   : > { %v3425_v12 = vpack.c.bf16 %v2974_v29, %v2973_v7 }
 0x2e6   : > { %v2926_v61 = vadd.f32 %v5519_v62, %v2905_v55  ;;  %v2906_v45 = vmax.f32 %v2892_v58, %v2762_v31 }
 0x2e7   : > { %3426 = vst [vmem:[%s5545_s17] sm:$0xff] %v3425_v12  }
 0x2e8   : > { %v2961_v27 = vmul.f32 %v5528_v14, %v2926_v61  ;;  %v2927_v5 = vadd.f32 %v5519_v62, %v2906_v45  ;;  %vm2940_vm4 = vcmp.ge.f32.partialorder %v2926_v61, 0.0 }
 0x2e9   : > { %v2229_v26 = vpop.f32.mrb[232].mxu1 }
 0x2ea   : > { %vm2941_vm5 = vcmp.ge.f32.partialorder %v2927_v5, 0.0  ;;  %v2962_v6 = vmul.f32 %v5528_v14, %v2927_v5  ;;  %v2767_v21 = vadd.f32 %v5468_v22, %v2229_v26  ;;  %v2231_v36 = vpop.f32.mrb[233].mxu1  ;;  %v2975_v47 = vsel %vm2940_vm4, %v2926_v61, %v2961_v27 }
 0x2eb   : > { %v2232_v23 = vpop.f32.mrb[234].mxu1 }
 0x2ec   : > { %v2976_v44 = vsel %vm2941_vm5, %v2927_v5, %v2962_v6  ;;  %v2907_v18 = vmax.f32 %v2893_v43, %v2767_v21  ;;  %v2770_v8 = vadd.f32 %v5470_v63, %v2232_v23  ;;  %v2234_v58 = vpop.f32.mrb[235].mxu1 }
 0x2ed   : > { %v3430_v12 = vpack.c.bf16 %v2976_v44, %v2975_v47 }
 0x2ee   : > { %v2928_v20 = vadd.f32 %v5519_v62, %v2907_v18  ;;  %v2908_v0 = vmax.f32 %v2894_v17, %v2770_v8 }
 0x2ef   : > { %3457 = vst [vmem:[%s5545_s17 + $0x8] sm:$0xff] %v3430_v12  }
 0x2f0   : > { %v2963_v22 = vmul.f32 %v5528_v14, %v2928_v20  ;;  %v2929_v41 = vadd.f32 %v5519_v62, %v2908_v0  ;;  %vm2942_vm6 = vcmp.ge.f32.partialorder %v2928_v20, 0.0 }
 0x2f1   : > { %v2237_v7 = vpop.f32.mrb[236].mxu1 }
 0x2f2   : > { %vm2943_vm7 = vcmp.ge.f32.partialorder %v2929_v41, 0.0  ;;  %v2964_v46 = vmul.f32 %v5528_v14, %v2929_v41  ;;  %v2775_v2 = vadd.f32 %v5482_v60, %v2237_v7  ;;  %v2239_v43 = vpop.f32.mrb[237].mxu1  ;;  %v2977_v29 = vsel %vm2942_vm6, %v2928_v20, %v2963_v22 }
 0x2f3   : > { %v2240_v63 = vpop.f32.mrb[238].mxu1 }
 0x2f4   : > { %v2978_v55 = vsel %vm2943_vm7, %v2929_v41, %v2964_v46  ;;  %v2909_v50 = vmax.f32 %v2895_v16, %v2775_v2  ;;  %v2778_v33 = vadd.f32 %v5484_v42, %v2240_v63  ;;  %v2242_v17 = vpop.f32.mrb[239].mxu1  ;;  %v5638_v2 = vmax.f32 %v5410_v1, %v5506_v40 }
 0x2f5   : > { %v3435_v31 = vpack.c.bf16 %v2978_v55, %v2977_v29 }
 0x2f6   : > { %v2930_v54 = vadd.f32 %v5519_v62, %v2909_v50  ;;  %v2910_v61 = vmax.f32 %v2896_v4, %v2778_v33 }
 0x2f7   : > { %3458 = vst [vmem:[%s5545_s17 + $0x10] sm:$0xff] %v3435_v31  }
 0x2f8   : > { %v2965_v60 = vmul.f32 %v5528_v14, %v2930_v54  ;;  %v2931_v45 = vadd.f32 %v5519_v62, %v2910_v61  ;;  %vm2944_vm8 = vcmp.ge.f32.partialorder %v2930_v54, 0.0 }
 0x2f9   : > { %v2245_v27 = vpop.f32.mrb[240].mxu1 }
 0x2fa   : > { %vm2945_vm9 = vcmp.ge.f32.partialorder %v2931_v45, 0.0  ;;  %v2966_v25 = vmul.f32 %v5528_v14, %v2931_v45  ;;  %v2783_v57 = vadd.f32 %v5496_v10, %v2245_v27  ;;  %v2247_v16 = vpop.f32.mrb[241].mxu1  ;;  %v2979_v5 = vsel %vm2944_vm8, %v2930_v54, %v2965_v60 }
 0x2fb   : > { %v2248_v42 = vpop.f32.mrb[242].mxu1 }
 0x2fc   : > { %v2980_v26 = vsel %vm2945_vm9, %v2931_v45, %v2966_v25  ;;  %v2911_v49 = vmax.f32 %v2897_v30, %v2783_v57  ;;  %v2786_v35 = vadd.f32 %v5498_v53, %v2248_v42  ;;  %v2250_v4 = vpop.f32.mrb[243].mxu1 }
 0x2fd   : > { %v3440_v6 = vpack.c.bf16 %v2980_v26, %v2979_v5 }
 0x2fe   : > { %v2932_v21 = vadd.f32 %v5519_v62, %v2911_v49  ;;  %v2912_v36 = vmax.f32 %v2898_v13, %v2786_v35 }
 0x2ff   : > { %3459 = vst [vmem:[%s5545_s17 + $0x18] sm:$0xff] %v3440_v6  }
 0x300   : > { %v2967_v10 = vmul.f32 %v5528_v14, %v2932_v21  ;;  %v2933_v23 = vadd.f32 %v5519_v62, %v2912_v36  ;;  %vm2946_vm10 = vcmp.ge.f32.partialorder %v2932_v21, 0.0 }
 0x301   : > { %v2253_v47 = vpop.f32.mrb[244].mxu1 }
 0x302   : > { %vm2947_vm11 = vcmp.ge.f32.partialorder %v2933_v23, 0.0  ;;  %v2968_v34 = vmul.f32 %v5528_v14, %v2933_v23  ;;  %v2791_v32 = vadd.f32 %v5511_v9, %v2253_v47  ;;  %v2255_v30 = vpop.f32.mrb[245].mxu1  ;;  %v2981_v44 = vsel %vm2946_vm10, %v2932_v21, %v2967_v10 }
 0x303   : > { %v2256_v53 = vpop.f32.mrb[246].mxu1 }
 0x304   : > { %v2982_v18 = vsel %vm2947_vm11, %v2933_v23, %v2968_v34  ;;  %v2913_v24 = vmax.f32 %v2899_v15, %v2791_v32  ;;  %v2794_v28 = vadd.f32 %v5513_v11, %v2256_v53  ;;  %v2258_v13 = vpop.f32.mrb[247].mxu1 }
 0x305   : > { %v3445_v8 = vpack.c.bf16 %v2982_v18, %v2981_v44 }
 0x306   : > { %v2934_v58 = vadd.f32 %v5519_v62, %v2913_v24  ;;  %v2914_v12 = vmax.f32 %v2900_v37, %v2794_v28 }
 0x307   : > { %3460 = vst [vmem:[%s5545_s17 + $0x20] sm:$0xff] %v3445_v8  }
 0x308   : > { %v2969_v9 = vmul.f32 %v5528_v14, %v2934_v58  ;;  %v2935_v20 = vadd.f32 %v5519_v62, %v2914_v12  ;;  %vm2948_vm12 = vcmp.ge.f32.partialorder %v2934_v58, 0.0 }
 0x309   : > { %v2261_v0 = vpop.f32.mrb[248].mxu1 }
 0x30a   : > { %vm2949_vm13 = vcmp.ge.f32.partialorder %v2935_v20, 0.0  ;;  %v2970_v3 = vmul.f32 %v5528_v14, %v2935_v20  ;;  %v2799_v51 = vadd.f32 %v5534_v38, %v2261_v0  ;;  %v2263_v15 = vpop.f32.mrb[249].mxu1  ;;  %v2983_v22 = vsel %vm2948_vm12, %v2934_v58, %v2969_v9 }
 0x30b   : > { %v2264_v11 = vpop.f32.mrb[250].mxu1 }
 0x30c   : > { %v2984_v41 = vsel %vm2949_vm13, %v2935_v20, %v2970_v3  ;;  %v2915_v39 = vmax.f32 %v2901_v19, %v2799_v51  ;;  %v2802_v52 = vadd.f32 %v5538_v56, %v2264_v11  ;;  %v2266_v37 = vpop.f32.mrb[251].mxu1 }
 0x30d   : > { %v3450_v7 = vpack.c.bf16 %v2984_v41, %v2983_v22 }
 0x30e   : > { %v2936_v46 = vadd.f32 %v5519_v62, %v2915_v39  ;;  %v2916_v43 = vmax.f32 %v5638_v2, %v2802_v52 }
 0x30f   : > { %3461 = vst [vmem:[%s5545_s17 + $0x28] sm:$0xff] %v3450_v7  }
 0x310   : > { %v2971_v38 = vmul.f32 %v5528_v14, %v2936_v46  ;;  %v2937_v63 = vadd.f32 %v5519_v62, %v2916_v43  ;;  %vm2950_vm14 = vcmp.ge.f32.partialorder %v2936_v46, 0.0 }
 0x312   : > { %vm2951_vm15 = vcmp.ge.f32.partialorder %v2937_v63, 0.0  ;;  %v2972_v59 = vmul.f32 %v5528_v14, %v2937_v63  ;;  %v2985_v48 = vsel %vm2950_vm14, %v2936_v46, %v2971_v38 }
 0x314   : > { %v2986_v19 = vsel %vm2951_vm15, %v2937_v63, %v2972_v59 }
 0x315   : > { %v3455_v56 = vpack.c.bf16 %v2986_v19, %v2985_v48 }
 0x317   : > { %3462 = vst [vmem:[%s5545_s17 + $0x30] sm:$0xff] %v3455_v56  }
 0x318 PF: > { %s14_s15 = sadd.s32 1, %s4198_s15  }
 0x319   : > { %p11_p5 = scmp.ge.s32.totalorder %s14_s15, 4  }
 0x31b   :  { %13 = sbr.rel (!%p11_p5) target bundleno = 1 (0x1), region = 66 }

// kernel: onet_forward.7
= control target key start
LH: loop header
LB: loop body
LE: loop exit
PB: predicated region body
PF: predicated region fallthrough
CT: control target
= control target key end

     0   :  { %s1213_s15 = smov 0   ;;  %s1371_s0 = inlined_call_operand.vmem [shape: bf16[2,64,576], index: 0, kind: input, shape index: {}]   ;;  %s1372_s1 = inlined_call_operand.vmem [shape: bf16[576,128], index: 1, kind: input, shape index: {}]   ;;  %s1373_s2 = inlined_call_operand.vmem [shape: f32[1,128], index: 2, kind: input, shape index: {}]   ;;  %s1374_s3 = inlined_call_operand.vmem [shape: f32[1,128], index: 3, kind: input, shape index: {}]   ;;  %s1375_s4 = inlined_call_operand.vmem [shape: bf16[32,128], index: 4, kind: output, shape index: {}]  }
   0x1 LB: > { %s1219_s16 = sadd.s32 4294967295, %s1186_s15   ;;  %p918_p0 = scmp.ge.s32.totalorder %s1186_s15, 1  ;;  %s1186_s15 = sphi %s1213_s15, %s14_s15  }
   0x2   : > { %p162_p1 = scmp.lt.s32.totalorder %s1186_s15, 3 }
   0x4   : > { %p163_p2 = pnand %p918_p0, %p162_p1 }
   0x5   : > { %v1116_v0 = vld [vmem:[%s1372_s1 + $0x40] sm:$0xff] (!%p163_p2)   ;;  %v1120_v4 = vld [vmem:[%s1372_s1 + $0x48] sm:$0xff] (!%p163_p2)   ;;  %v1124_v8 = vld [vmem:[%s1372_s1 + $0x50] sm:$0xff] (!%p163_p2)   ;;  %p188_p3 = scmp.lt.s32.totalorder (!%p163_p2), %s1219_s16, 1  ;;  %vm612_vm0 = vcmask (!%p163_p2), 523264  }
   0x6   : > { %166 = sbr.rel (%p163_p2) target bundleno = 302 (0x12e), region = 36  ;;  %v1117_v1 = vld [vmem:[%s1372_s1 + $0xc0] sm:$0xff] (!%p163_p2)   ;;  %995 = vmatprep.subr.bf16.mxu0 (!%p163_p2), %v1116_v0  ;;  %v1121_v5 = vld [vmem:[%s1372_s1 + $0xc8] sm:$0xff] (!%p163_p2)   ;;  %v1125_v9 = vld [vmem:[%s1372_s1 + $0xd0] sm:$0xff] (!%p163_p2)  }
   0x7   : > { %v1118_v2 = vld [vmem:[%s1372_s1] sm:$0xff] (!%p163_p2)   ;;  %1035 = vmatprep.subr.bf16.mxu1 (!%p163_p2), %v1117_v1  ;;  %v1122_v6 = vld [vmem:[%s1372_s1 + $0x8] sm:$0xff] (!%p163_p2)   ;;  %v1126_v10 = vld [vmem:[%s1372_s1 + $0x10] sm:$0xff] (!%p163_p2)  }
   0x8   : > { %v1119_v3 = vld [vmem:[%s1372_s1 + $0x80] sm:$0xff] (!%p163_p2)   ;;  %996 = vmatpush3.bf16.msra.mxu0 (!%p163_p2), %v1118_v2  ;;  %v1123_v7 = vld [vmem:[%s1372_s1 + $0x88] sm:$0xff] (!%p163_p2)   ;;  %v1127_v11 = vld [vmem:[%s1372_s1 + $0x90] sm:$0xff] (!%p163_p2)  }
   0x9   : > { %1036 = vmatpush3.bf16.msra.mxu1 (!%p163_p2), %v1119_v3  ;;  %997 = vmatprep.subr.bf16.mxu0 (!%p163_p2), %v1120_v4  ;;  %v1128_v12 = vld [vmem:[%s1372_s1 + $0x58] sm:$0xff] (!%p163_p2)   ;;  %v1132_v16 = vld [vmem:[%s1372_s1 + $0x60] sm:$0xff] (!%p163_p2)   ;;  %v1136_v20 = vld [vmem:[%s1372_s1 + $0x68] sm:$0xff] (!%p163_p2)  }
   0xa   : > { %1037 = vmatprep.subr.bf16.mxu1 (!%p163_p2), %v1121_v5  ;;  %v1129_v13 = vld [vmem:[%s1372_s1 + $0xd8] sm:$0xff] (!%p163_p2)   ;;  %v1133_v17 = vld [vmem:[%s1372_s1 + $0xe0] sm:$0xff] (!%p163_p2)   ;;  %v1137_v21 = vld [vmem:[%s1372_s1 + $0xe8] sm:$0xff] (!%p163_p2)  }
   0xb   : > { %v1130_v14 = vld [vmem:[%s1372_s1 + $0x18] sm:$0xff] (!%p163_p2)   ;;  %v1134_v18 = vld [vmem:[%s1372_s1 + $0x20] sm:$0xff] (!%p163_p2)   ;;  %v1138_v22 = vld [vmem:[%s1372_s1 + $0x28] sm:$0xff] (!%p163_p2)  }
   0xc   : > { %998 = vmatpush3.bf16.msra.mxu0 (!%p163_p2), %v1122_v6  ;;  %v1131_v15 = vld [vmem:[%s1372_s1 + $0x98] sm:$0xff] (!%p163_p2)   ;;  %v1135_v19 = vld [vmem:[%s1372_s1 + $0xa0] sm:$0xff] (!%p163_p2)   ;;  %v1139_v23 = vld [vmem:[%s1372_s1 + $0xa8] sm:$0xff] (!%p163_p2)  }
   0xd   : > { %1038 = vmatpush3.bf16.msra.mxu1 %v1123_v7  ;;  %999 = vmatprep.subr.bf16.mxu0 %v1124_v8  ;;  %s189_s11 = scalar_select %p188_p3, %s1219_s16, 1  ;;  %v1140_v24 = vld [vmem:[%s1372_s1 + $0x70] sm:$0xff]   ;;  %v1144_v28 = vld [vmem:[%s1372_s1 + $0x78] sm:$0xff]   ;;  %v1154_v36 = vld [vmem:[%s1372_s1 + $0x100] sm:$0xff]  }
   0xe   : > { %1039 = vmatprep.subr.bf16.mxu1 %v1125_v9  ;;  %v1141_v25 = vld [vmem:[%s1372_s1 + $0xf0] sm:$0xff]   ;;  %v1145_v29 = vld [vmem:[%s1372_s1 + $0xf8] sm:$0xff]   ;;  %v1161_v39 = vld [vmem:[%s1372_s1 + $0x108] sm:$0xff]  }
   0xf   : > { %s1107_s22 = smul.u32 160, %s189_s11  ;;  %v1142_v26 = vld [vmem:[%s1372_s1 + $0x30] sm:$0xff]   ;;  %v1146_v30 = vld [vmem:[%s1372_s1 + $0x38] sm:$0xff]  }
  0x10   : > { %1000 = vmatpush3.bf16.msra.mxu0 %v1126_v10  ;;  %v1143_v27 = vld [vmem:[%s1372_s1 + $0xb0] sm:$0xff]   ;;  %v1147_v31 = vld [vmem:[%s1372_s1 + $0xb8] sm:$0xff]  }
  0x11   : > { %1040 = vmatpush3.bf16.msra.mxu1 %v1127_v11  ;;  %1001 = vmatprep.subr.bf16.mxu0 %v1128_v12  ;;  %s1318_s7 = scalar_lea.vmem %s1371_s0, %s1107_s22  ;;  %v1168_v44 = vld [vmem:[%s1372_s1 + $0x110] sm:$0xff]   ;;  %v1175_v45 = vld [vmem:[%s1372_s1 + $0x118] sm:$0xff]   ;;  %s920_s22 = sshll.u32 %s1219_s16, 1 }
  0x12   : > { %1041 = vmatprep.subr.bf16.mxu1 %v1129_v13  ;;  %v1148_v32 = vld [vmem:[%s1318_s7] ss:$20 sps:$4 sm:$0xff]   ;;  %v1150_v33 = vld [vmem:[%s1318_s7 + $0x4] ss:$20 sps:$4 sm:$0xff]   ;;  %v1151_v34 = vld [vmem:[%s1318_s7 + $0x8] ss:$20 sps:$4 sm:$0xff]  }
  0x13   : > { %v1153_v35 = vld [vmem:[%s1318_s7 + $0xc] ss:$20 sps:$4 sm:$0xff]   ;;  %657 = vmatprep.mubr.bf16.mxu0 %v1150_v33  ;;  %v1157_v38 = vld [vmem:[%s1318_s7 + $0x34] ss:$20 sps:$4 sm:$0xff]   ;;  %v1160_v41 = vld [vmem:[%s1318_s7 + $0x30] ss:$20 sps:$4 sm:$0xff]  }
  0x14   : > { %1002 = vmatpush3.bf16.msra.mxu0 %v1130_v14  ;;  %722 = vmatprep.mubr.bf16.mxu1 %v1153_v35  ;;  %v1155_v37 = vld [vmem:[%s1318_s7 + $0x2c] ss:$20 sps:$4 sm:$0xff]   ;;  %v1159_v40 = vld [vmem:[%s1318_s7 + $0x28] ss:$20 sps:$4 sm:$0xff]   ;;  %v1166_v46 = vld [vmem:[%s1318_s7 + $0x50] ss:$20 sps:$4 sm:$0xff]  }
  0x15   : > { %1042 = vmatpush3.bf16.msra.mxu1 %v1131_v15  ;;  %1003 = vmatprep.subr.bf16.mxu0 %v1132_v16  ;;  %v1162_v42 = vld [vmem:[%s1318_s7 + $0x54] ss:$20 sps:$4 sm:$0xff]   ;;  %v1164_v43 = vld [vmem:[%s1318_s7 + $0x5c] ss:$20 sps:$4 sm:$0xff]   ;;  %v1167_v47 = vld [vmem:[%s1318_s7 + $0x58] ss:$20 sps:$4 sm:$0xff]  }
  0x16   : > { %1043 = vmatprep.subr.bf16.mxu1 %v1133_v17  ;;  %v1169_v48 = vld [vmem:[%s1318_s7 + $0x7c] ss:$20 sps:$4 sm:$0xff]   ;;  %v1171_v49 = vld [vmem:[%s1318_s7 + $0x84] ss:$20 sps:$4 sm:$0xff]   ;;  %v1174_v51 = vld [vmem:[%s1318_s7 + $0x80] ss:$20 sps:$4 sm:$0xff]  }
  0x17   : > { %v1173_v50 = vld [vmem:[%s1318_s7 + $0x78] ss:$20 sps:$4 sm:$0xff]   ;;  %v1176_v52 = vld [vmem:[%s1318_s7 + $0x10] ss:$20 sps:$4 sm:$0xff]   ;;  %v1177_v53 = vld [vmem:[%s1318_s7 + $0x60] ss:$20 sps:$4 sm:$0xff]  }
  0x18   : > { %1004 = vmatpush3.bf16.msra.mxu0 %v1134_v18  ;;  %v1178_v54 = vld [vmem:[%s1318_s7 + $0x38] ss:$20 sps:$4 sm:$0xff]   ;;  %v1179_v55 = vld [vmem:[%s1318_s7 + $0x88] ss:$20 sps:$4 sm:$0xff]   ;;  %p194_p4 = scmp.lt.s32.totalorder %s920_s22, 3 }
  0x19   : > { %1044 = vmatpush3.bf16.msra.mxu1 %v1135_v19  ;;  %1005 = vmatprep.subr.bf16.mxu0 %v1136_v20 }
  0x1a   : > { %1045 = vmatprep.subr.bf16.mxu1 %v1137_v21  ;;  %s1377_s22 = smov (!%p194_p4, %s920_s22), 3 }
  0x1b   : > { %s921_s26 = sshll.u32 %s1377_s22, 2 }
  0x1c   : > { %1006 = vmatpush3.bf16.msra.mxu0 %v1138_v22  ;;  %s197_s29 = scalar_lea.vmem %s1375_s4, %s921_s26 }
  0x1d   : > { %1046 = vmatpush3.bf16.msra.mxu1 %v1139_v23  ;;  %1007 = vmatprep.subr.bf16.mxu0 %v1140_v24 }
  0x1e   : > { %1047 = vmatprep.subr.bf16.mxu1 %v1141_v25 }
  0x20   : > { %1008 = vmatpush3.bf16.msra.mxu0 %v1142_v26 }
  0x21   : > { %1048 = vmatpush3.bf16.msra.mxu1 %v1143_v27  ;;  %1009 = vmatprep.subr.bf16.mxu0 %v1144_v28 }
  0x22   : > { %1049 = vmatprep.subr.bf16.mxu1 %v1145_v29 }
  0x24   : > { %1010 = vmatpush3.bf16.msra.mxu0 %v1146_v30 }
  0x25   : > { %1050 = vmatpush3.bf16.msra.mxu1 %v1147_v31  ;;  %1083 = vmatprep.subr.bf16.mxu0 %v1154_v36 }
  0x26   : > { %1099 = vmatprep.subr.bf16.mxu1 %v1154_v36 }
  0x27   : > { %658 = vmatmul.mubr.bf16.vlgmr.msra.gmra.mrb[0].mxu0 %v1148_v32 }
  0x28   : > { %723 = vmatmul.mubr.bf16.vlgmr.msra.gmra.mrb[0].mxu1 %v1151_v34  ;;  %1084 = vmatpush3.bf16.msra.mxu0 %v1154_v36 }
  0x29   : > { %1103 = vmatpush3.bf16.msra.mxu1 %v1154_v36  ;;  %665 = vmatprep.mubr.bf16.mxu0 %v1155_v37 }
  0x2a   : > { %730 = vmatprep.mubr.bf16.mxu1 %v1157_v38  ;;  %1085 = vmatprep.subr.bf16.mxu0 %v1161_v39 }
  0x2b   : > { %1100 = vmatprep.subr.bf16.mxu1 %v1161_v39 }
  0x2c   : > { %1086 = vmatpush3.bf16.msra.mxu0 %v1161_v39 }
  0x2d   : > { %1104 = vmatpush3.bf16.msra.mxu1 %v1161_v39  ;;  %1087 = vmatprep.subr.bf16.mxu0 %v1168_v44 }
  0x2e   : > { %1101 = vmatprep.subr.bf16.mxu1 %v1168_v44 }
  0x2f   : > { %666 = vmatmul.mubr.bf16.gmra.mrb[4].mxu0 %v1159_v40 }
  0x30   : > { %731 = vmatmul.mubr.bf16.gmra.mrb[4].mxu1 %v1160_v41  ;;  %673 = vmatprep.mubr.bf16.mxu0 %v1162_v42 }
  0x31   : > { %738 = vmatprep.mubr.bf16.mxu1 %v1164_v43  ;;  %1088 = vmatpush3.bf16.msra.mxu0 %v1168_v44 }
  0x32   : > { %1105 = vmatpush3.bf16.msra.mxu1 %v1168_v44  ;;  %1089 = vmatprep.subr.bf16.mxu0 %v1175_v45 }
  0x33   : > { %1102 = vmatprep.subr.bf16.mxu1 %v1175_v45 }
  0x35   : > { %1090 = vmatpush3.bf16.msra.mxu0 %v1175_v45 }
  0x36   : > { %1106 = vmatpush3.bf16.msra.mxu1 %v1175_v45 }
  0x37   : > { %674 = vmatmul.mubr.bf16.gmra.mrb[8].mxu0 %v1166_v46 }
  0x38   : > { %739 = vmatmul.mubr.bf16.gmra.mrb[8].mxu1 %v1167_v47  ;;  %681 = vmatprep.mubr.bf16.mxu0 %v1169_v48 }
  0x39   : > { %746 = vmatprep.mubr.bf16.mxu1 %v1171_v49 }
  0x3f   : > { %682 = vmatmul.mubr.bf16.gmra.mrb[12].mxu0 %v1173_v50 }
  0x40   : > { %747 = vmatmul.mubr.bf16.gmra.mrb[12].mxu1 %v1174_v51  ;;  %1091 = vmatprep.mubr.msk.bf16.mxu0 %vm612_vm0, %v1176_v52 }
  0x41   : > { %1095 = vmatprep.mubr.msk.bf16.mxu1 %vm612_vm0, %v1177_v53 }
  0x47   : > { %1092 = vmatmul.mubr.msk.bf16.vlgmr.msra.gmra.mrb[16].mxu0 %vm612_vm0, %v1178_v54 }
  0x48   : > { %1096 = vmatmul.mubr.msk.bf16.vlgmr.msra.gmra.mrb[16].mxu1 %vm612_vm0, %v1179_v55 }
  0xfa   : > { %v1011_v56 = vpop.f32.mrb[0].mxu0 }
  0xfb   : > { %v1051_v57 = vpop.f32.mrb[0].mxu1  ;;  %v1012_v58 = vpop.f32.mrb[1].mxu0 }
  0xfc   : > { %v1013_v59 = vadd.f32 %v1012_v58, %v1011_v56  ;;  %v1052_v60 = vpop.f32.mrb[1].mxu1  ;;  %v1014_v61 = vpop.f32.mrb[2].mxu0 }
  0xfd   : > { %v1053_v62 = vadd.f32 %v1052_v60, %v1051_v57  ;;  %v1054_v63 = vpop.f32.mrb[2].mxu1  ;;  %v1015_v0 = vpop.f32.mrb[3].mxu0 }
  0xfe   : > { %v1016_v1 = vadd.f32 %v1015_v0, %v1014_v61  ;;  %v1055_v2 = vpop.f32.mrb[3].mxu1 }
  0xff   : > { %v1056_v3 = vadd.f32 %v1055_v2, %v1054_v63  ;;  %v725_v4 = vadd.f32 %v1053_v62, %v1013_v59 }
 0x101   : > { %v728_v5 = vadd.f32 %v1056_v3, %v1016_v1  ;;  %v982_v3 = vld [vmem:[%s1373_s2] ss:$0 sm:$0xff] }
 0x102   : > { %v1017_v6 = vpop.f32.mrb[4].mxu0 }
 0x103   : > { %v1057_v7 = vpop.f32.mrb[4].mxu1  ;;  %v1018_v8 = vpop.f32.mrb[5].mxu0 }
 0x104   : > { %v1019_v9 = vadd.f32 %v1018_v8, %v1017_v6  ;;  %v1058_v10 = vpop.f32.mrb[5].mxu1  ;;  %v1020_v11 = vpop.f32.mrb[6].mxu0 }
 0x105   : > { %v1059_v12 = vadd.f32 %v1058_v10, %v1057_v7  ;;  %v1060_v13 = vpop.f32.mrb[6].mxu1  ;;  %v1021_v14 = vpop.f32.mrb[7].mxu0  ;;  %v983_v7 = vld [vmem:[%s1374_s3] ss:$0 sm:$0xff] }
 0x106   : > { %v1022_v15 = vadd.f32 %v1021_v14, %v1020_v11  ;;  %v1061_v16 = vpop.f32.mrb[7].mxu1 }
 0x107   : > { %v1062_v17 = vadd.f32 %v1061_v16, %v1060_v13  ;;  %v733_v18 = vadd.f32 %v1059_v12, %v1019_v9 }
 0x109   : > { %v736_v19 = vadd.f32 %v1062_v17, %v1022_v15 }
 0x10a   : > { %v1023_v20 = vpop.f32.mrb[8].mxu0 }
 0x10b   : > { %v1063_v21 = vpop.f32.mrb[8].mxu1  ;;  %v1024_v22 = vpop.f32.mrb[9].mxu0 }
 0x10c   : > { %v1025_v23 = vadd.f32 %v1024_v22, %v1023_v20  ;;  %v1064_v24 = vpop.f32.mrb[9].mxu1  ;;  %v1026_v25 = vpop.f32.mrb[10].mxu0 }
 0x10d   : > { %v1065_v26 = vadd.f32 %v1064_v24, %v1063_v21  ;;  %v1066_v27 = vpop.f32.mrb[10].mxu1  ;;  %v1027_v28 = vpop.f32.mrb[11].mxu0 }
 0x10e   : > { %v1028_v29 = vadd.f32 %v1027_v28, %v1026_v25  ;;  %v1067_v30 = vpop.f32.mrb[11].mxu1 }
 0x10f   : > { %v1068_v31 = vadd.f32 %v1067_v30, %v1066_v27  ;;  %v741_v32 = vadd.f32 %v1065_v26, %v1025_v23 }
 0x111   : > { %v744_v33 = vadd.f32 %v1068_v31, %v1028_v29 }
 0x112   : > { %v1029_v34 = vpop.f32.mrb[12].mxu0 }
 0x113   : > { %v1069_v35 = vpop.f32.mrb[12].mxu1  ;;  %v1030_v36 = vpop.f32.mrb[13].mxu0 }
 0x114   : > { %v1031_v37 = vadd.f32 %v1030_v36, %v1029_v34  ;;  %v1070_v38 = vpop.f32.mrb[13].mxu1  ;;  %v1032_v39 = vpop.f32.mrb[14].mxu0 }
 0x115   : > { %v1071_v40 = vadd.f32 %v1070_v38, %v1069_v35  ;;  %v1072_v41 = vpop.f32.mrb[14].mxu1  ;;  %v1033_v42 = vpop.f32.mrb[15].mxu0 }
 0x116   : > { %v1034_v43 = vadd.f32 %v1033_v42, %v1032_v39  ;;  %v1073_v44 = vpop.f32.mrb[15].mxu1 }
 0x117   : > { %v1074_v45 = vadd.f32 %v1073_v44, %v1072_v41  ;;  %v749_v46 = vadd.f32 %v1071_v40, %v1031_v37 }
 0x119   : > { %v752_v47 = vadd.f32 %v1074_v45, %v1034_v43 }
 0x11a   : > { %v1093_v48 = vpop.f32.mrb[16].mxu0 }
 0x11b   : > { %v798_v49 = vadd.f32 %v1093_v48, %v733_v18  ;;  %v1097_v50 = vpop.f32.mrb[16].mxu1  ;;  %v789_v51 = vpop.f32.mrb[17].mxu0 }
 0x11c   : > { %v814_v52 = vadd.f32 %v1097_v50, %v749_v46  ;;  %v790_v53 = vadd.f32 %v789_v51, %v725_v4  ;;  %v805_v54 = vpop.f32.mrb[17].mxu1  ;;  %v1094_v55 = vpop.f32.mrb[18].mxu0 }
 0x11d   : > { %v806_v56 = vadd.f32 %v805_v54, %v741_v32  ;;  %v801_v57 = vadd.f32 %v1094_v55, %v736_v19  ;;  %v1098_v58 = vpop.f32.mrb[18].mxu1  ;;  %v792_v59 = vpop.f32.mrb[19].mxu0 }
 0x11e   : > { %v820_v60 = vmax.f32 %v790_v53, %v798_v49  ;;  %v817_v61 = vadd.f32 %v1098_v58, %v752_v47  ;;  %v793_v62 = vadd.f32 %v792_v59, %v728_v5  ;;  %v808_v63 = vpop.f32.mrb[19].mxu1 }
 0x11f   : > { %v809_v0 = vadd.f32 %v808_v63, %v744_v33 }
 0x120   : > { %v822_v1 = vmax.f32 %v820_v60, %v806_v56  ;;  %v821_v2 = vmax.f32 %v793_v62, %v801_v57 }
 0x122   : > { %v824_v4 = vmax.f32 %v822_v1, %v814_v52  ;;  %v823_v6 = vmax.f32 %v821_v2, %v809_v0 }
 0x124   : > { %v833_v8 = vadd.f32 %v982_v3, %v824_v4  ;;  %v825_v9 = vmax.f32 %v823_v6, %v817_v61 }
 0x126   : > { %v844_v10 = vmul.f32 %v983_v7, %v833_v8  ;;  %v834_v5 = vadd.f32 %v982_v3, %v825_v9  ;;  %vm835_vm1 = vcmp.ge.f32.partialorder %v833_v8, 0.0 }
 0x128   : > { %vm836_vm2 = vcmp.ge.f32.partialorder %v834_v5, 0.0  ;;  %v845_v11 = vmul.f32 %v983_v7, %v834_v5  ;;  %v846_v12 = vsel %vm835_vm1, %v833_v8, %v844_v10 }
 0x12a   : > { %v847_v13 = vsel %vm836_vm2, %v834_v5, %v845_v11 }
 0x12b   : > { %v993_v14 = vpack.c.bf16 %v847_v13, %v846_v12 }
 0x12d   : > { %994 = vst [vmem:[%s197_s29] sm:$0xff] %v993_v14  }
 0x12e PF: > { %s14_s15 = sadd.s32 1, %s1186_s15  }
 0x12f   : > { %p11_p5 = scmp.ge.s32.totalorder %s14_s15, 4  }
 0x131   :  { %13 = sbr.rel (!%p11_p5) target bundleno = 1 (0x1), region = 66 }

// kernel: onet_forward.8
= control target key start
LH: loop header
LB: loop body
LE: loop exit
PB: predicated region body
PF: predicated region fallthrough
CT: control target
= control target key end

     0   :  { %s473_s1 = inlined_call_operand.vmem [shape: bf16[256,128], index: 1, kind: input, shape index: {}]   ;;  %s474_s0 = inlined_call_operand.vmem [shape: bf16[1,32,256], index: 0, kind: input, shape index: {}]   ;;  %s475_s2 = inlined_call_operand.vmem [shape: f32[1,128], index: 2, kind: input, shape index: {}]   ;;  %s476_s3 = inlined_call_operand.vmem [shape: f32[1,128], index: 3, kind: input, shape index: {}]   ;;  %s477_s4 = inlined_call_operand.vmem [shape: bf16[32,128], index: 4, kind: output, shape index: {}]  }
   0x1   :  { %v354_v0 = vld [vmem:[%s473_s1 + $0x40] sm:$0xff]   ;;  %v356_v2 = vld [vmem:[%s473_s1 + $0x48] sm:$0xff]   ;;  %v358_v4 = vld [vmem:[%s473_s1 + $0x50] sm:$0xff]  }
   0x2   :  { %v355_v1 = vld [vmem:[%s473_s1] sm:$0xff]   ;;  %310 = vmatprep.subr.bf16.mxu0 %v354_v0  ;;  %338 = vmatprep.subr.bf16.mxu1 %v354_v0  ;;  %v357_v3 = vld [vmem:[%s473_s1 + $0x8] sm:$0xff]   ;;  %v359_v5 = vld [vmem:[%s473_s1 + $0x10] sm:$0xff]  }
   0x3   :  { %311 = vmatpush3.bf16.msra.mxu0 %v355_v1  ;;  %346 = vmatpush3.bf16.msra.mxu1 %v355_v1  ;;  %v360_v6 = vld [vmem:[%s473_s1 + $0x58] sm:$0xff]   ;;  %v362_v8 = vld [vmem:[%s473_s1 + $0x60] sm:$0xff]   ;;  %v364_v10 = vld [vmem:[%s473_s1 + $0x68] sm:$0xff]  }
   0x4   :  { %312 = vmatprep.subr.bf16.mxu0 %v356_v2  ;;  %339 = vmatprep.subr.bf16.mxu1 %v356_v2  ;;  %v361_v7 = vld [vmem:[%s473_s1 + $0x18] sm:$0xff]   ;;  %v363_v9 = vld [vmem:[%s473_s1 + $0x20] sm:$0xff]   ;;  %v365_v13 = vld [vmem:[%s473_s1 + $0x28] sm:$0xff]  }
   0x5   :  { %v372_v11 = vld [vmem:[%s474_s0 + $0x4] ss:$8 sps:$4 sm:$0xff]   ;;  %v375_v12 = vld [vmem:[%s474_s0 + $0x14] ss:$8 sps:$4 sm:$0xff]   ;;  %v370_v18 = vld [vmem:[%s474_s0] ss:$8 sps:$4 sm:$0xff]  }
   0x6   :  { %v366_v14 = vld [vmem:[%s473_s1 + $0x70] sm:$0xff]   ;;  %209 = vmatprep.mubr.bf16.mxu0 %v372_v11  ;;  %217 = vmatprep.mubr.bf16.mxu1 %v375_v12  ;;  %v368_v16 = vld [vmem:[%s473_s1 + $0x78] sm:$0xff]   ;;  %v269_v22 = vld [vmem:[%s475_s2] ss:$0 sm:$0xff] }
   0x7   :  { %313 = vmatpush3.bf16.msra.mxu0 %v357_v3  ;;  %347 = vmatpush3.bf16.msra.mxu1 %v357_v3  ;;  %v367_v15 = vld [vmem:[%s473_s1 + $0x30] sm:$0xff]   ;;  %v369_v17 = vld [vmem:[%s473_s1 + $0x38] sm:$0xff]   ;;  %v290_v32 = vld [vmem:[%s476_s3] ss:$0 sm:$0xff] }
   0x8   :  { %314 = vmatprep.subr.bf16.mxu0 %v358_v4  ;;  %340 = vmatprep.subr.bf16.mxu1 %v358_v4  ;;  %v373_v19 = vld [vmem:[%s474_s0 + $0x10] ss:$8 sps:$4 sm:$0xff]  }
   0xb   :  { %315 = vmatpush3.bf16.msra.mxu0 %v359_v5  ;;  %348 = vmatpush3.bf16.msra.mxu1 %v359_v5 }
   0xc   :  { %316 = vmatprep.subr.bf16.mxu0 %v360_v6  ;;  %341 = vmatprep.subr.bf16.mxu1 %v360_v6 }
   0xf   :  { %317 = vmatpush3.bf16.msra.mxu0 %v361_v7  ;;  %349 = vmatpush3.bf16.msra.mxu1 %v361_v7 }
  0x10   :  { %318 = vmatprep.subr.bf16.mxu0 %v362_v8  ;;  %342 = vmatprep.subr.bf16.mxu1 %v362_v8 }
  0x13   :  { %319 = vmatpush3.bf16.msra.mxu0 %v363_v9  ;;  %350 = vmatpush3.bf16.msra.mxu1 %v363_v9 }
  0x14   :  { %320 = vmatprep.subr.bf16.mxu0 %v364_v10  ;;  %343 = vmatprep.subr.bf16.mxu1 %v364_v10 }
  0x17   :  { %321 = vmatpush3.bf16.msra.mxu0 %v365_v13  ;;  %351 = vmatpush3.bf16.msra.mxu1 %v365_v13 }
  0x18   :  { %322 = vmatprep.subr.bf16.mxu0 %v366_v14  ;;  %344 = vmatprep.subr.bf16.mxu1 %v366_v14 }
  0x1b   :  { %323 = vmatpush3.bf16.msra.mxu0 %v367_v15  ;;  %352 = vmatpush3.bf16.msra.mxu1 %v367_v15 }
  0x1c   :  { %324 = vmatprep.subr.bf16.mxu0 %v368_v16  ;;  %345 = vmatprep.subr.bf16.mxu1 %v368_v16 }
  0x1f   :  { %325 = vmatpush3.bf16.msra.mxu0 %v369_v17  ;;  %353 = vmatpush3.bf16.msra.mxu1 %v369_v17 }
  0x22   :  { %210 = vmatmul.mubr.bf16.vlgmr.msra.gmra.mrb[0].mxu0 %v370_v18  ;;  %218 = vmatmul.mubr.bf16.vlgmr.msra.gmra.mrb[0].mxu1 %v373_v19 }
  0xf5   :  { %v326_v20 = vpop.f32.mrb[0].mxu0  ;;  %v332_v21 = vpop.f32.mrb[0].mxu1 }
  0xf6   :  { %v327_v23 = vpop.f32.mrb[1].mxu0  ;;  %v333_v24 = vpop.f32.mrb[1].mxu1 }
  0xf7   :  { %v328_v25 = vadd.f32 %v327_v23, %v326_v20  ;;  %v334_v26 = vadd.f32 %v333_v24, %v332_v21  ;;  %v329_v27 = vpop.f32.mrb[2].mxu0  ;;  %v335_v28 = vpop.f32.mrb[2].mxu1 }
  0xf8   :  { %v330_v29 = vpop.f32.mrb[3].mxu0  ;;  %v336_v30 = vpop.f32.mrb[3].mxu1 }
  0xf9   :  { %v212_v31 = vadd.f32 %v328_v25, %v269_v22  ;;  %v220_v33 = vadd.f32 %v334_v26, %v269_v22  ;;  %v331_v34 = vadd.f32 %v330_v29, %v329_v27  ;;  %v337_v35 = vadd.f32 %v336_v30, %v335_v28 }
  0xfb   :  { %v237_v36 = vmul.f32 %v290_v32, %v212_v31  ;;  %v239_v37 = vmul.f32 %v290_v32, %v220_v33  ;;  %v215_v38 = vadd.f32 %v331_v34, %v269_v22  ;;  %v223_v39 = vadd.f32 %v337_v35, %v269_v22 }
  0xfc   :  { %vm226_vm0 = vcmp.ge.f32.partialorder %v212_v31, 0.0  ;;  %vm228_vm1 = vcmp.ge.f32.partialorder %v220_v33, 0.0 }
  0xfd   :  { %vm227_vm2 = vcmp.ge.f32.partialorder %v215_v38, 0.0  ;;  %v238_v40 = vmul.f32 %v290_v32, %v215_v38  ;;  %vm229_vm3 = vcmp.ge.f32.partialorder %v223_v39, 0.0  ;;  %v240_v41 = vmul.f32 %v290_v32, %v223_v39 }
  0xfe   :  { %v241_v42 = vsel %vm226_vm0, %v212_v31, %v237_v36  ;;  %v243_v43 = vsel %vm228_vm1, %v220_v33, %v239_v37 }
  0xff   :  { %v242_v44 = vsel %vm227_vm2, %v215_v38, %v238_v40  ;;  %v244_v45 = vsel %vm229_vm3, %v223_v39, %v240_v41 }
 0x100   :  { %v302_v46 = vpack.c.bf16 %v242_v44, %v241_v42  ;;  %v307_v47 = vpack.c.bf16 %v244_v45, %v243_v43 }
 0x102   :  { %303 = vst [vmem:[%s477_s4] sm:$0xff] %v302_v46   ;;  %309 = vst [vmem:[%s477_s4 + $0x8] sm:$0xff] %v307_v47  }

// kernel: onet_forward.9
= control target key start
LH: loop header
LB: loop body
LE: loop exit
PB: predicated region body
PF: predicated region fallthrough
CT: control target
= control target key end

     0   :  { %vm1390_vm5 = vcmask 130048   ;;  %s2423_s1 = inlined_call_operand.vmem [shape: bf16[1152,256], index: 1, kind: input, shape index: {}]   ;;  %s2424_s0 = inlined_call_operand.vmem [shape: bf16[16,1152], index: 0, kind: input, shape index: {}]   ;;  %s2425_s4 = inlined_call_operand.vmem [shape: bf16[256,16], index: 4, kind: input, shape index: {}]   ;;  %s2426_s2 = inlined_call_operand.vmem [shape: f32[1,256], index: 2, kind: input, shape index: {}]   ;;  %s2427_s3 = inlined_call_operand.vmem [shape: f32[1,256], index: 3, kind: input, shape index: {}]   ;;  %s2428_s5 = inlined_call_operand.vmem [shape: f32[1,16], index: 5, kind: input, shape index: {}]   ;;  %s2429_s6 = inlined_call_operand.vmem [shape: f32[16,16], index: 6, kind: output, shape index: {}]  }
   0x1   :  { %v1612_v0 = vld [vmem:[%s2423_s1 + $0x4] ss:$8 sps:$4 sm:$0xff]   ;;  %v1616_v2 = vld [vmem:[%s2423_s1] ss:$8 sps:$4 sm:$0xff]   ;;  %v1618_v4 = vld [vmem:[%s2423_s1 + $0x14] ss:$8 sps:$4 sm:$0xff]  }
   0x2   :  { %v1614_v1 = vld [vmem:[%s2423_s1 + $0x204] ss:$8 sps:$4 sm:$0xff]   ;;  %956 = vmatprep.subr.bf16.mxu1 %v1612_v0  ;;  %v1617_v3 = vld [vmem:[%s2423_s1 + $0x200] ss:$8 sps:$4 sm:$0xff]   ;;  %v1620_v5 = vld [vmem:[%s2423_s1 + $0x214] ss:$8 sps:$4 sm:$0xff]  }
   0x3   :  { %1042 = vmatprep.subr.bf16.mxu0 %v1614_v1  ;;  %957 = vmatpush1.bf16.msra.mxu1 %v1616_v2  ;;  %v1622_v6 = vld [vmem:[%s2423_s1 + $0x10] ss:$8 sps:$4 sm:$0xff]   ;;  %v1624_v8 = vld [vmem:[%s2423_s1 + $0x24] ss:$8 sps:$4 sm:$0xff]   ;;  %v1628_v10 = vld [vmem:[%s2423_s1 + $0x20] ss:$8 sps:$4 sm:$0xff]  }
   0x4   :  { %1043 = vmatpush1.bf16.msra.mxu0 %v1617_v3  ;;  %958 = vmatprep.subr.bf16.mxu1 %v1618_v4  ;;  %v1623_v7 = vld [vmem:[%s2423_s1 + $0x210] ss:$8 sps:$4 sm:$0xff]   ;;  %v1626_v9 = vld [vmem:[%s2423_s1 + $0x224] ss:$8 sps:$4 sm:$0xff]   ;;  %v1629_v11 = vld [vmem:[%s2423_s1 + $0x220] ss:$8 sps:$4 sm:$0xff]  }
   0x5   :  { %1044 = vmatprep.subr.bf16.mxu0 %v1620_v5  ;;  %v1630_v12 = vld [vmem:[%s2423_s1 + $0x34] ss:$8 sps:$4 sm:$0xff]   ;;  %v1634_v14 = vld [vmem:[%s2423_s1 + $0x30] ss:$8 sps:$4 sm:$0xff]   ;;  %v1636_v16 = vld [vmem:[%s2423_s1 + $0x44] ss:$8 sps:$4 sm:$0xff]  }
   0x6   :  { %v1632_v13 = vld [vmem:[%s2423_s1 + $0x234] ss:$8 sps:$4 sm:$0xff]   ;;  %v1635_v15 = vld [vmem:[%s2423_s1 + $0x230] ss:$8 sps:$4 sm:$0xff]   ;;  %v1638_v17 = vld [vmem:[%s2423_s1 + $0x244] ss:$8 sps:$4 sm:$0xff]  }
   0x7   :  { %959 = vmatpush1.bf16.msra.mxu1 %v1622_v6  ;;  %v1640_v18 = vld [vmem:[%s2423_s1 + $0x40] ss:$8 sps:$4 sm:$0xff]   ;;  %v1642_v20 = vld [vmem:[%s2423_s1 + $0x54] ss:$8 sps:$4 sm:$0xff]   ;;  %v1646_v22 = vld [vmem:[%s2423_s1 + $0x50] ss:$8 sps:$4 sm:$0xff]  }
   0x8   :  { %1045 = vmatpush1.bf16.msra.mxu0 %v1623_v7  ;;  %960 = vmatprep.subr.bf16.mxu1 %v1624_v8  ;;  %v1641_v19 = vld [vmem:[%s2423_s1 + $0x240] ss:$8 sps:$4 sm:$0xff]   ;;  %v1644_v21 = vld [vmem:[%s2423_s1 + $0x254] ss:$8 sps:$4 sm:$0xff]   ;;  %v1647_v23 = vld [vmem:[%s2423_s1 + $0x250] ss:$8 sps:$4 sm:$0xff]  }
   0x9   :  { %1046 = vmatprep.subr.bf16.mxu0 %v1626_v9  ;;  %v1648_v24 = vld [vmem:[%s2423_s1 + $0x64] ss:$8 sps:$4 sm:$0xff]   ;;  %v1652_v26 = vld [vmem:[%s2423_s1 + $0x60] ss:$8 sps:$4 sm:$0xff]   ;;  %v1654_v28 = vld [vmem:[%s2423_s1 + $0x74] ss:$8 sps:$4 sm:$0xff]  }
   0xa   :  { %v1650_v25 = vld [vmem:[%s2423_s1 + $0x264] ss:$8 sps:$4 sm:$0xff]   ;;  %v1653_v27 = vld [vmem:[%s2423_s1 + $0x260] ss:$8 sps:$4 sm:$0xff]   ;;  %v1656_v29 = vld [vmem:[%s2423_s1 + $0x274] ss:$8 sps:$4 sm:$0xff]  }
   0xb   :  { %961 = vmatpush1.bf16.msra.mxu1 %v1628_v10  ;;  %v1658_v30 = vld [vmem:[%s2423_s1 + $0x70] ss:$8 sps:$4 sm:$0xff]   ;;  %v1660_v32 = vld [vmem:[%s2423_s1 + $0x84] ss:$8 sps:$4 sm:$0xff]   ;;  %v1664_v34 = vld [vmem:[%s2423_s1 + $0x80] ss:$8 sps:$4 sm:$0xff]  }
   0xc   :  { %1047 = vmatpush1.bf16.msra.mxu0 %v1629_v11  ;;  %962 = vmatprep.subr.bf16.mxu1 %v1630_v12  ;;  %v1659_v31 = vld [vmem:[%s2423_s1 + $0x270] ss:$8 sps:$4 sm:$0xff]   ;;  %v1662_v33 = vld [vmem:[%s2423_s1 + $0x284] ss:$8 sps:$4 sm:$0xff]   ;;  %v1665_v35 = vld [vmem:[%s2423_s1 + $0x280] ss:$8 sps:$4 sm:$0xff]  }
   0xd   :  { %1048 = vmatprep.subr.bf16.mxu0 %v1632_v13  ;;  %v1666_v36 = vld [vmem:[%s2423_s1 + $0x94] ss:$8 sps:$4 sm:$0xff]   ;;  %v1670_v38 = vld [vmem:[%s2423_s1 + $0x90] ss:$8 sps:$4 sm:$0xff]   ;;  %v1672_v40 = vld [vmem:[%s2423_s1 + $0xa4] ss:$8 sps:$4 sm:$0xff]  }
   0xe   :  { %v1668_v37 = vld [vmem:[%s2423_s1 + $0x294] ss:$8 sps:$4 sm:$0xff]   ;;  %v1671_v39 = vld [vmem:[%s2423_s1 + $0x290] ss:$8 sps:$4 sm:$0xff]   ;;  %v1674_v41 = vld [vmem:[%s2423_s1 + $0x2a4] ss:$8 sps:$4 sm:$0xff]  }
   0xf   :  { %963 = vmatpush1.bf16.msra.mxu1 %v1634_v14  ;;  %v1676_v42 = vld [vmem:[%s2423_s1 + $0xa0] ss:$8 sps:$4 sm:$0xff]   ;;  %v1678_v44 = vld [vmem:[%s2423_s1 + $0xb4] ss:$8 sps:$4 sm:$0xff]   ;;  %v1682_v46 = vld [vmem:[%s2423_s1 + $0xb0] ss:$8 sps:$4 sm:$0xff]  }
  0x10   :  { %1049 = vmatpush1.bf16.msra.mxu0 %v1635_v15  ;;  %964 = vmatprep.subr.bf16.mxu1 %v1636_v16  ;;  %v1677_v43 = vld [vmem:[%s2423_s1 + $0x2a0] ss:$8 sps:$4 sm:$0xff]   ;;  %v1680_v45 = vld [vmem:[%s2423_s1 + $0x2b4] ss:$8 sps:$4 sm:$0xff]   ;;  %v1683_v47 = vld [vmem:[%s2423_s1 + $0x2b0] ss:$8 sps:$4 sm:$0xff]  }
  0x11   :  { %1050 = vmatprep.subr.bf16.mxu0 %v1638_v17  ;;  %v1710_v48 = vld [vmem:[%s2424_s0 + $0x4] ss:$36 sps:$4 sm:$0xff]   ;;  %v1716_v51 = vld [vmem:[%s2424_s0 + $0x14] ss:$36 sps:$4 sm:$0xff]  }
  0x12   :  { %v1684_v49 = vld [vmem:[%s2423_s1 + $0xc4] ss:$8 sps:$4 sm:$0xff]   ;;  %988 = vmatprep.mubr.bf16.mxu1 %v1710_v48  ;;  %v1688_v52 = vld [vmem:[%s2423_s1 + $0xc0] ss:$8 sps:$4 sm:$0xff]   ;;  %v1690_v54 = vld [vmem:[%s2423_s1 + $0xd4] ss:$8 sps:$4 sm:$0xff]   ;;  %1074 = vmatprep.mubr.bf16.mxu0 %v1716_v51 }
  0x13   :  { %965 = vmatpush1.bf16.msra.mxu1 %v1640_v18  ;;  %v1686_v50 = vld [vmem:[%s2423_s1 + $0x2c4] ss:$8 sps:$4 sm:$0xff]   ;;  %v1689_v53 = vld [vmem:[%s2423_s1 + $0x2c0] ss:$8 sps:$4 sm:$0xff]   ;;  %v1692_v55 = vld [vmem:[%s2423_s1 + $0x2d4] ss:$8 sps:$4 sm:$0xff]  }
  0x14   :  { %1051 = vmatpush1.bf16.msra.mxu0 %v1641_v19  ;;  %966 = vmatprep.subr.bf16.mxu1 %v1642_v20  ;;  %v1694_v56 = vld [vmem:[%s2423_s1 + $0xd0] ss:$8 sps:$4 sm:$0xff]   ;;  %v1696_v58 = vld [vmem:[%s2423_s1 + $0xe4] ss:$8 sps:$4 sm:$0xff]   ;;  %v1700_v60 = vld [vmem:[%s2423_s1 + $0xe0] ss:$8 sps:$4 sm:$0xff]  }
  0x15   :  { %1052 = vmatprep.subr.bf16.mxu0 %v1644_v21  ;;  %v1695_v57 = vld [vmem:[%s2423_s1 + $0x2d0] ss:$8 sps:$4 sm:$0xff]   ;;  %v1698_v59 = vld [vmem:[%s2423_s1 + $0x2e4] ss:$8 sps:$4 sm:$0xff]   ;;  %v1701_v61 = vld [vmem:[%s2423_s1 + $0x2e0] ss:$8 sps:$4 sm:$0xff]  }
  0x16   :  { %v1702_v62 = vld [vmem:[%s2423_s1 + $0xf4] ss:$8 sps:$4 sm:$0xff]   ;;  %v1706_v0 = vld [vmem:[%s2423_s1 + $0xf0] ss:$8 sps:$4 sm:$0xff]   ;;  %v1713_v2 = vld [vmem:[%s2423_s1 + $0x104] ss:$8 sps:$4 sm:$0xff]  }
  0x17   :  { %967 = vmatpush1.bf16.msra.mxu1 %v1646_v22  ;;  %v1704_v63 = vld [vmem:[%s2423_s1 + $0x2f4] ss:$8 sps:$4 sm:$0xff]   ;;  %v1707_v1 = vld [vmem:[%s2423_s1 + $0x2f0] ss:$8 sps:$4 sm:$0xff]   ;;  %v1719_v3 = vld [vmem:[%s2423_s1 + $0x304] ss:$8 sps:$4 sm:$0xff]  }
  0x18   :  { %1053 = vmatpush1.bf16.msra.mxu0 %v1647_v23  ;;  %968 = vmatprep.subr.bf16.mxu1 %v1648_v24  ;;  %v1708_v4 = vld [vmem:[%s2424_s0] ss:$36 sps:$4 sm:$0xff]   ;;  %v1714_v6 = vld [vmem:[%s2424_s0 + $0x10] ss:$36 sps:$4 sm:$0xff]  }
  0x19   :  { %1054 = vmatprep.subr.bf16.mxu0 %v1650_v25  ;;  %v1711_v5 = vld [vmem:[%s2423_s1 + $0x100] ss:$8 sps:$4 sm:$0xff]   ;;  %v1722_v8 = vld [vmem:[%s2423_s1 + $0x114] ss:$8 sps:$4 sm:$0xff]   ;;  %v1720_v10 = vld [vmem:[%s2423_s1 + $0x110] ss:$8 sps:$4 sm:$0xff]  }
  0x1a   :  { %v1717_v7 = vld [vmem:[%s2423_s1 + $0x300] ss:$8 sps:$4 sm:$0xff]   ;;  %v1725_v9 = vld [vmem:[%s2423_s1 + $0x314] ss:$8 sps:$4 sm:$0xff]   ;;  %v1723_v11 = vld [vmem:[%s2423_s1 + $0x310] ss:$8 sps:$4 sm:$0xff]  }
  0x1b   :  { %969 = vmatpush1.bf16.msra.mxu1 %v1652_v26  ;;  %v1728_v12 = vld [vmem:[%s2423_s1 + $0x124] ss:$8 sps:$4 sm:$0xff]   ;;  %v1726_v14 = vld [vmem:[%s2423_s1 + $0x120] ss:$8 sps:$4 sm:$0xff]   ;;  %v1734_v16 = vld [vmem:[%s2423_s1 + $0x134] ss:$8 sps:$4 sm:$0xff]  }
  0x1c   :  { %1055 = vmatpush1.bf16.msra.mxu0 %v1653_v27  ;;  %970 = vmatprep.subr.bf16.mxu1 %v1654_v28  ;;  %v1731_v13 = vld [vmem:[%s2423_s1 + $0x324] ss:$8 sps:$4 sm:$0xff]   ;;  %v1729_v15 = vld [vmem:[%s2423_s1 + $0x320] ss:$8 sps:$4 sm:$0xff]   ;;  %v1737_v17 = vld [vmem:[%s2423_s1 + $0x334] ss:$8 sps:$4 sm:$0xff]  }
  0x1d   :  { %1056 = vmatprep.subr.bf16.mxu0 %v1656_v29  ;;  %v1732_v18 = vld [vmem:[%s2423_s1 + $0x130] ss:$8 sps:$4 sm:$0xff]   ;;  %v1740_v20 = vld [vmem:[%s2423_s1 + $0x144] ss:$8 sps:$4 sm:$0xff]   ;;  %v1738_v22 = vld [vmem:[%s2423_s1 + $0x140] ss:$8 sps:$4 sm:$0xff]  }
  0x1e   :  { %v1735_v19 = vld [vmem:[%s2423_s1 + $0x330] ss:$8 sps:$4 sm:$0xff]   ;;  %v1743_v21 = vld [vmem:[%s2423_s1 + $0x344] ss:$8 sps:$4 sm:$0xff]   ;;  %v1741_v23 = vld [vmem:[%s2423_s1 + $0x340] ss:$8 sps:$4 sm:$0xff]  }
  0x1f   :  { %971 = vmatpush1.bf16.msra.mxu1 %v1658_v30  ;;  %v1746_v24 = vld [vmem:[%s2423_s1 + $0x154] ss:$8 sps:$4 sm:$0xff]   ;;  %v1744_v26 = vld [vmem:[%s2423_s1 + $0x150] ss:$8 sps:$4 sm:$0xff]   ;;  %v1752_v28 = vld [vmem:[%s2423_s1 + $0x164] ss:$8 sps:$4 sm:$0xff]  }
  0x20   :  { %1057 = vmatpush1.bf16.msra.mxu0 %v1659_v31  ;;  %972 = vmatprep.subr.bf16.mxu1 %v1660_v32  ;;  %v1749_v25 = vld [vmem:[%s2423_s1 + $0x354] ss:$8 sps:$4 sm:$0xff]   ;;  %v1747_v27 = vld [vmem:[%s2423_s1 + $0x350] ss:$8 sps:$4 sm:$0xff]   ;;  %v1755_v29 = vld [vmem:[%s2423_s1 + $0x364] ss:$8 sps:$4 sm:$0xff]  }
  0x21   :  { %1058 = vmatprep.subr.bf16.mxu0 %v1662_v33  ;;  %v1750_v30 = vld [vmem:[%s2423_s1 + $0x160] ss:$8 sps:$4 sm:$0xff]   ;;  %v1758_v32 = vld [vmem:[%s2423_s1 + $0x174] ss:$8 sps:$4 sm:$0xff]  }
  0x22   :  { %v1753_v31 = vld [vmem:[%s2423_s1 + $0x360] ss:$8 sps:$4 sm:$0xff]   ;;  %v1761_v33 = vld [vmem:[%s2423_s1 + $0x374] ss:$8 sps:$4 sm:$0xff]  }
  0x23   :  { %973 = vmatpush1.bf16.msra.mxu1 %v1664_v34  ;;  %v1812_v34 = vld [vmem:[%s2424_s0 + $0xc] ss:$36 sps:$4 sm:$0xff]   ;;  %v1774_v48 = vld [vmem:[%s2423_s1 + $0x1a0] ss:$8 sps:$4 sm:$0xff]   ;;  %v1785_v51 = vld [vmem:[%s2423_s1 + $0x3b4] ss:$8 sps:$4 sm:$0xff]  }
  0x24   :  { %1059 = vmatpush1.bf16.msra.mxu0 %v1665_v35  ;;  %974 = vmatprep.subr.bf16.mxu1 %v1666_v36  ;;  %v1815_v35 = vld [vmem:[%s2424_s0 + $0x1c] ss:$36 sps:$4 sm:$0xff]   ;;  %v1756_v36 = vld [vmem:[%s2423_s1 + $0x170] ss:$8 sps:$4 sm:$0xff]  }
  0x25   :  { %1060 = vmatprep.subr.bf16.mxu0 %v1668_v37  ;;  %v1759_v37 = vld [vmem:[%s2423_s1 + $0x370] ss:$8 sps:$4 sm:$0xff]  }
  0x27   :  { %975 = vmatpush1.bf16.msra.mxu1 %v1670_v38  ;;  %v1764_v38 = vld [vmem:[%s2423_s1 + $0x184] ss:$8 sps:$4 sm:$0xff]  }
  0x28   :  { %1061 = vmatpush1.bf16.msra.mxu0 %v1671_v39  ;;  %976 = vmatprep.subr.bf16.mxu1 %v1672_v40  ;;  %v1767_v39 = vld [vmem:[%s2423_s1 + $0x384] ss:$8 sps:$4 sm:$0xff]   ;;  %v1762_v40 = vld [vmem:[%s2423_s1 + $0x180] ss:$8 sps:$4 sm:$0xff]  }
  0x29   :  { %1062 = vmatprep.subr.bf16.mxu0 %v1674_v41  ;;  %v1765_v41 = vld [vmem:[%s2423_s1 + $0x380] ss:$8 sps:$4 sm:$0xff]  }
  0x2b   :  { %977 = vmatpush1.bf16.msra.mxu1 %v1676_v42  ;;  %v1770_v42 = vld [vmem:[%s2423_s1 + $0x194] ss:$8 sps:$4 sm:$0xff]  }
  0x2c   :  { %1063 = vmatpush1.bf16.msra.mxu0 %v1677_v43  ;;  %978 = vmatprep.subr.bf16.mxu1 %v1678_v44  ;;  %v1773_v43 = vld [vmem:[%s2423_s1 + $0x394] ss:$8 sps:$4 sm:$0xff]   ;;  %v1768_v44 = vld [vmem:[%s2423_s1 + $0x190] ss:$8 sps:$4 sm:$0xff]  }
  0x2d   :  { %1064 = vmatprep.subr.bf16.mxu0 %v1680_v45  ;;  %v1771_v45 = vld [vmem:[%s2423_s1 + $0x390] ss:$8 sps:$4 sm:$0xff]  }
  0x2f   :  { %979 = vmatpush1.bf16.msra.mxu1 %v1682_v46  ;;  %v1776_v46 = vld [vmem:[%s2423_s1 + $0x1a4] ss:$8 sps:$4 sm:$0xff]  }
  0x30   :  { %1065 = vmatpush1.bf16.msra.mxu0 %v1683_v47  ;;  %980 = vmatprep.subr.bf16.mxu1 %v1684_v49  ;;  %v1779_v47 = vld [vmem:[%s2423_s1 + $0x3a4] ss:$8 sps:$4 sm:$0xff]   ;;  %v1777_v49 = vld [vmem:[%s2423_s1 + $0x3a0] ss:$8 sps:$4 sm:$0xff]  }
  0x31   :  { %1066 = vmatprep.subr.bf16.mxu0 %v1686_v50  ;;  %v1782_v50 = vld [vmem:[%s2423_s1 + $0x1b4] ss:$8 sps:$4 sm:$0xff]  }
  0x33   :  { %981 = vmatpush1.bf16.msra.mxu1 %v1688_v52  ;;  %v1780_v52 = vld [vmem:[%s2423_s1 + $0x1b0] ss:$8 sps:$4 sm:$0xff]  }
  0x34   :  { %1067 = vmatpush1.bf16.msra.mxu0 %v1689_v53  ;;  %982 = vmatprep.subr.bf16.mxu1 %v1690_v54  ;;  %v1783_v53 = vld [vmem:[%s2423_s1 + $0x3b0] ss:$8 sps:$4 sm:$0xff]   ;;  %v1788_v54 = vld [vmem:[%s2423_s1 + $0x1c4] ss:$8 sps:$4 sm:$0xff]  }
  0x35   :  { %1068 = vmatprep.subr.bf16.mxu0 %v1692_v55  ;;  %v1791_v55 = vld [vmem:[%s2423_s1 + $0x3c4] ss:$8 sps:$4 sm:$0xff]  }
  0x37   :  { %983 = vmatpush1.bf16.msra.mxu1 %v1694_v56  ;;  %v1786_v56 = vld [vmem:[%s2423_s1 + $0x1c0] ss:$8 sps:$4 sm:$0xff]  }
  0x38   :  { %1069 = vmatpush1.bf16.msra.mxu0 %v1695_v57  ;;  %984 = vmatprep.subr.bf16.mxu1 %v1696_v58  ;;  %v1789_v57 = vld [vmem:[%s2423_s1 + $0x3c0] ss:$8 sps:$4 sm:$0xff]   ;;  %v1794_v58 = vld [vmem:[%s2423_s1 + $0x1d4] ss:$8 sps:$4 sm:$0xff]  }
  0x39   :  { %1070 = vmatprep.subr.bf16.mxu0 %v1698_v59  ;;  %v1797_v59 = vld [vmem:[%s2423_s1 + $0x3d4] ss:$8 sps:$4 sm:$0xff]  }
  0x3b   :  { %985 = vmatpush1.bf16.msra.mxu1 %v1700_v60  ;;  %v1792_v60 = vld [vmem:[%s2423_s1 + $0x1d0] ss:$8 sps:$4 sm:$0xff]  }
  0x3c   :  { %1071 = vmatpush1.bf16.msra.mxu0 %v1701_v61  ;;  %986 = vmatprep.subr.bf16.mxu1 %v1702_v62  ;;  %v1795_v61 = vld [vmem:[%s2423_s1 + $0x3d0] ss:$8 sps:$4 sm:$0xff]   ;;  %v1800_v62 = vld [vmem:[%s2423_s1 + $0x1e4] ss:$8 sps:$4 sm:$0xff]  }
  0x3d   :  { %1072 = vmatprep.subr.bf16.mxu0 %v1704_v63  ;;  %v1803_v63 = vld [vmem:[%s2423_s1 + $0x3e4] ss:$8 sps:$4 sm:$0xff]  }
  0x3f   :  { %987 = vmatpush1.bf16.msra.mxu1 %v1706_v0  ;;  %v1798_v0 = vld [vmem:[%s2423_s1 + $0x1e0] ss:$8 sps:$4 sm:$0xff]  }
  0x40   :  { %1073 = vmatpush1.bf16.msra.mxu0 %v1707_v1  ;;  %999 = vmatprep.subr.bf16.mxu1 %v1713_v2  ;;  %v1801_v1 = vld [vmem:[%s2423_s1 + $0x3e0] ss:$8 sps:$4 sm:$0xff]   ;;  %v1806_v2 = vld [vmem:[%s2423_s1 + $0x1f4] ss:$8 sps:$4 sm:$0xff]  }
  0x41   :  { %1085 = vmatprep.subr.bf16.mxu0 %v1719_v3  ;;  %v1809_v3 = vld [vmem:[%s2423_s1 + $0x3f4] ss:$8 sps:$4 sm:$0xff]  }
  0x42   :  { %989 = vmatmul.mubr.bf16.vlgmr.msra.gmra.mrb[0].mxu1 %v1708_v4  ;;  %v1804_v4 = vld [vmem:[%s2423_s1 + $0x1f0] ss:$8 sps:$4 sm:$0xff]  }
  0x43   :  { %1075 = vmatmul.mubr.bf16.vlgmr.msra.gmra.mrb[0].mxu0 %v1714_v6  ;;  %1000 = vmatpush1.bf16.msra.mxu1 %v1711_v5  ;;  %v1807_v5 = vld [vmem:[%s2423_s1 + $0x3f0] ss:$8 sps:$4 sm:$0xff]   ;;  %v1818_v6 = vld [vmem:[%s2423_s1 + $0x404] ss:$8 sps:$4 sm:$0xff]  }
  0x44   :  { %1086 = vmatpush1.bf16.msra.mxu0 %v1717_v7  ;;  %1001 = vmatprep.subr.bf16.mxu1 %v1722_v8  ;;  %v1810_v7 = vld [vmem:[%s2424_s0 + $0x8] ss:$36 sps:$4 sm:$0xff]   ;;  %v1813_v8 = vld [vmem:[%s2424_s0 + $0x18] ss:$36 sps:$4 sm:$0xff]  }
  0x45   :  { %1087 = vmatprep.subr.bf16.mxu0 %v1725_v9  ;;  %1031 = vmatprep.mubr.bf16.mxu1 %v1812_v34  ;;  %v1816_v9 = vld [vmem:[%s2423_s1 + $0x400] ss:$8 sps:$4 sm:$0xff]  }
  0x46   :  { %1117 = vmatprep.mubr.bf16.mxu0 %v1815_v35  ;;  %v1849_v34 = vld [vmem:[%s2425_s4 + $0x60] sm:$0xff]  }
  0x47   :  { %1002 = vmatpush1.bf16.msra.mxu1 %v1720_v10  ;;  %v1821_v10 = vld [vmem:[%s2423_s1 + $0x414] ss:$8 sps:$4 sm:$0xff]   ;;  %v1850_v35 = vld [vmem:[%s2425_s4 + $0x20] sm:$0xff]  }
  0x48   :  { %1088 = vmatpush1.bf16.msra.mxu0 %v1723_v11  ;;  %1003 = vmatprep.subr.bf16.mxu1 %v1728_v12  ;;  %v1819_v11 = vld [vmem:[%s2423_s1 + $0x410] ss:$8 sps:$4 sm:$0xff]   ;;  %v1865_v12 = vmov 0  }
  0x49   :  { %1089 = vmatprep.subr.bf16.mxu0 %v1731_v13  ;;  %v1824_v13 = vld [vmem:[%s2423_s1 + $0x424] ss:$8 sps:$4 sm:$0xff]  }
  0x4b   :  { %1004 = vmatpush1.bf16.msra.mxu1 %v1726_v14  ;;  %v1822_v14 = vld [vmem:[%s2423_s1 + $0x420] ss:$8 sps:$4 sm:$0xff]  }
  0x4c   :  { %1090 = vmatpush1.bf16.msra.mxu0 %v1729_v15  ;;  %1005 = vmatprep.subr.bf16.mxu1 %v1734_v16  ;;  %v1827_v15 = vld [vmem:[%s2423_s1 + $0x434] ss:$8 sps:$4 sm:$0xff]   ;;  %v1825_v16 = vld [vmem:[%s2423_s1 + $0x430] ss:$8 sps:$4 sm:$0xff]  }
  0x4d   :  { %1091 = vmatprep.subr.bf16.mxu0 %v1737_v17  ;;  %v1830_v17 = vld [vmem:[%s2423_s1 + $0x444] ss:$8 sps:$4 sm:$0xff]  }
  0x4f   :  { %1006 = vmatpush1.bf16.msra.mxu1 %v1732_v18  ;;  %v1828_v18 = vld [vmem:[%s2423_s1 + $0x440] ss:$8 sps:$4 sm:$0xff]  }
  0x50   :  { %1092 = vmatpush1.bf16.msra.mxu0 %v1735_v19  ;;  %1007 = vmatprep.subr.bf16.mxu1 %v1740_v20  ;;  %v1833_v19 = vld [vmem:[%s2423_s1 + $0x454] ss:$8 sps:$4 sm:$0xff]   ;;  %v1831_v20 = vld [vmem:[%s2423_s1 + $0x450] ss:$8 sps:$4 sm:$0xff]  }
  0x51   :  { %1093 = vmatprep.subr.bf16.mxu0 %v1743_v21  ;;  %v1836_v21 = vld [vmem:[%s2423_s1 + $0x464] ss:$8 sps:$4 sm:$0xff]  }
  0x53   :  { %1008 = vmatpush1.bf16.msra.mxu1 %v1738_v22  ;;  %v1834_v22 = vld [vmem:[%s2423_s1 + $0x460] ss:$8 sps:$4 sm:$0xff]  }
  0x54   :  { %1094 = vmatpush1.bf16.msra.mxu0 %v1741_v23  ;;  %1009 = vmatprep.subr.bf16.mxu1 %v1746_v24  ;;  %v1839_v23 = vld [vmem:[%s2423_s1 + $0x474] ss:$8 sps:$4 sm:$0xff]   ;;  %v1837_v24 = vld [vmem:[%s2423_s1 + $0x470] ss:$8 sps:$4 sm:$0xff]  }
  0x55   :  { %1095 = vmatprep.subr.bf16.mxu0 %v1749_v25  ;;  %v1840_v25 = vld [vmem:[%s2424_s0 + $0x20] ss:$36 sps:$4 sm:$0xff]  }
  0x57   :  { %1010 = vmatpush1.bf16.msra.mxu1 %v1744_v26  ;;  %v1841_v26 = vld [vmem:[%s2425_s4 + $0x40] sm:$0xff]  }
  0x58   :  { %1096 = vmatpush1.bf16.msra.mxu0 %v1747_v27  ;;  %1011 = vmatprep.subr.bf16.mxu1 %v1752_v28  ;;  %v1842_v27 = vld [vmem:[%s2425_s4] sm:$0xff]   ;;  %v1843_v28 = vld [vmem:[%s2425_s4 + $0x48] sm:$0xff]  }
  0x59   :  { %1097 = vmatprep.subr.bf16.mxu0 %v1755_v29  ;;  %v1844_v29 = vld [vmem:[%s2425_s4 + $0x8] sm:$0xff]  }
  0x5b   :  { %1012 = vmatpush1.bf16.msra.mxu1 %v1750_v30  ;;  %v1845_v30 = vld [vmem:[%s2425_s4 + $0x50] sm:$0xff]  }
  0x5c   :  { %1098 = vmatpush1.bf16.msra.mxu0 %v1753_v31  ;;  %1013 = vmatprep.subr.bf16.mxu1 %v1758_v32  ;;  %v1846_v31 = vld [vmem:[%s2425_s4 + $0x10] sm:$0xff]   ;;  %v1847_v32 = vld [vmem:[%s2425_s4 + $0x58] sm:$0xff]  }
  0x5d   :  { %1099 = vmatprep.subr.bf16.mxu0 %v1761_v33  ;;  %v1848_v33 = vld [vmem:[%s2425_s4 + $0x18] sm:$0xff]  }
  0x5f   :  { %1014 = vmatpush1.bf16.msra.mxu1 %v1756_v36  ;;  %v1851_v36 = vld [vmem:[%s2425_s4 + $0x68] sm:$0xff]  }
  0x60   :  { %1100 = vmatpush1.bf16.msra.mxu0 %v1759_v37  ;;  %1015 = vmatprep.subr.bf16.mxu1 %v1764_v38  ;;  %v1852_v37 = vld [vmem:[%s2425_s4 + $0x28] sm:$0xff]   ;;  %v1853_v38 = vld [vmem:[%s2425_s4 + $0x70] sm:$0xff]  }
  0x61   :  { %1101 = vmatprep.subr.bf16.mxu0 %v1767_v39  ;;  %v1854_v39 = vld [vmem:[%s2425_s4 + $0x30] sm:$0xff]  }
  0x63   :  { %1016 = vmatpush1.bf16.msra.mxu1 %v1762_v40  ;;  %v1855_v40 = vld [vmem:[%s2425_s4 + $0x78] sm:$0xff]  }
  0x64   :  { %1102 = vmatpush1.bf16.msra.mxu0 %v1765_v41  ;;  %1017 = vmatprep.subr.bf16.mxu1 %v1770_v42  ;;  %v1856_v41 = vld [vmem:[%s2425_s4 + $0x38] sm:$0xff]  }
  0x65   :  { %1103 = vmatprep.subr.bf16.mxu0 %v1773_v43 }
  0x67   :  { %1018 = vmatpush1.bf16.msra.mxu1 %v1768_v44 }
  0x68   :  { %1104 = vmatpush1.bf16.msra.mxu0 %v1771_v45  ;;  %1019 = vmatprep.subr.bf16.mxu1 %v1776_v46  ;;  %v180_v46 = vlaneseq }
  0x69   :  { %1105 = vmatprep.subr.bf16.mxu0 %v1779_v47 }
  0x6a   :  { %v181_v47 = vshrl.u32 %v180_v46, 7 }
  0x6b   :  { %1020 = vmatpush1.bf16.msra.mxu1 %v1774_v48 }
  0x6c   :  { %1106 = vmatpush1.bf16.msra.mxu0 %v1777_v49  ;;  %1021 = vmatprep.subr.bf16.mxu1 %v1782_v50  ;;  %v182_v48 = vsub.s32 0, %v181_v47  ;;  %v178_v49 = vld [vmem:[%s2426_s2] sm:$0x3]  ;;  %v186_v50 = vsub.s32 1, %v181_v47 }
  0x6d   :  { %1107 = vmatprep.subr.bf16.mxu0 %v1785_v51 }
  0x6e   :  { %v183_v51 = vrot.slane %v178_v49, %v182_v48 }
  0x6f   :  { %1022 = vmatpush1.bf16.msra.mxu1 %v1780_v52  ;;  %v1175_v52 = vld [vmem:[%s2427_s3] sm:$0x3] }
  0x70   :  { %1108 = vmatpush1.bf16.msra.mxu0 %v1783_v53  ;;  %1023 = vmatprep.subr.bf16.mxu1 %v1788_v54  ;;  %v187_v53 = vrot.slane %v178_v49, %v186_v50 }
  0x71   :  { %1109 = vmatprep.subr.bf16.mxu0 %v1791_v55  ;;  %v1180_v55 = vrot.slane %v1175_v52, %v182_v48 }
  0x73   :  { %1024 = vmatpush1.bf16.msra.mxu1 %v1786_v56 }
  0x74   :  { %1110 = vmatpush1.bf16.msra.mxu0 %v1789_v57  ;;  %1025 = vmatprep.subr.bf16.mxu1 %v1794_v58  ;;  %v1184_v57 = vrot.slane %v1175_v52, %v186_v50 }
  0x75   :  { %1111 = vmatprep.subr.bf16.mxu0 %v1797_v59 }
  0x77   :  { %1026 = vmatpush1.bf16.msra.mxu1 %v1792_v60 }
  0x78   :  { %1112 = vmatpush1.bf16.msra.mxu0 %v1795_v61  ;;  %1027 = vmatprep.subr.bf16.mxu1 %v1800_v62 }
  0x79   :  { %1113 = vmatprep.subr.bf16.mxu0 %v1803_v63 }
  0x7b   :  { %1028 = vmatpush1.bf16.msra.mxu1 %v1798_v0 }
  0x7c   :  { %1114 = vmatpush1.bf16.msra.mxu0 %v1801_v1  ;;  %1029 = vmatprep.subr.bf16.mxu1 %v1806_v2 }
  0x7d   :  { %1115 = vmatprep.subr.bf16.mxu0 %v1809_v3 }
  0x7f   :  { %1030 = vmatpush1.bf16.msra.mxu1 %v1804_v4 }
  0x80   :  { %1116 = vmatpush1.bf16.msra.mxu0 %v1807_v5  ;;  %1569 = vmatprep.subr.bf16.mxu1 %v1841_v26 }
  0x81   :  { %1128 = vmatprep.subr.bf16.mxu0 %v1818_v6 }
  0x82   :  { %1032 = vmatmul.mubr.bf16.vlgmr.msra.gmra.mrb[0].mxu1 %v1810_v7 }
  0x83   :  { %1118 = vmatmul.mubr.bf16.vlgmr.msra.gmra.mrb[0].mxu0 %v1813_v8  ;;  %1570 = vmatpush3.bf16.msra.mxu1 %v1842_v27 }
  0x84   :  { %1129 = vmatpush1.bf16.msra.mxu0 %v1816_v9  ;;  %1160 = vmatprep.mubr.bf16.mxu0 %v1865_v12 }
  0x85   :  { %1130 = vmatprep.subr.bf16.mxu0 %v1821_v10  ;;  %1571 = vmatprep.subr.bf16.mxu1 %v1843_v28 }
  0x87   :  { %1572 = vmatpush3.bf16.msra.mxu1 %v1844_v29  ;;  %v1374_v29 = vand.u32 127, %v180_v46 }
  0x88   :  { %1131 = vmatpush1.bf16.msra.mxu0 %v1819_v11  ;;  %1573 = vmatprep.subr.bf16.mxu1 %v1845_v30 }
  0x89   :  { %1132 = vmatprep.subr.bf16.mxu0 %v1824_v13  ;;  %vm1375_vm4 = vcmp.eq.s32.totalorder %v1374_v29, 0 }
  0x8b   :  { %1574 = vmatpush3.bf16.msra.mxu1 %v1846_v31 }
  0x8c   :  { %1133 = vmatpush1.bf16.msra.mxu0 %v1822_v14  ;;  %1575 = vmatprep.subr.bf16.mxu1 %v1847_v32 }
  0x8d   :  { %1134 = vmatprep.subr.bf16.mxu0 %v1827_v15  ;;  %v1550_v15 = vld [vmem:[%s2428_s5] ss:$0 sm:$0xff] }
  0x8f   :  { %1576 = vmatpush3.bf16.msra.mxu1 %v1848_v33 }
  0x90   :  { %1135 = vmatpush1.bf16.msra.mxu0 %v1825_v16  ;;  %1577 = vmatprep.subr.bf16.mxu1 %v1849_v34 }
  0x91   :  { %1136 = vmatprep.subr.bf16.mxu0 %v1830_v17 }
  0x93   :  { %1578 = vmatpush3.bf16.msra.mxu1 %v1850_v35 }
  0x94   :  { %1137 = vmatpush1.bf16.msra.mxu0 %v1828_v18  ;;  %1579 = vmatprep.subr.bf16.mxu1 %v1851_v36 }
  0x95   :  { %1138 = vmatprep.subr.bf16.mxu0 %v1833_v19 }
  0x97   :  { %1580 = vmatpush3.bf16.msra.mxu1 %v1852_v37 }
  0x98   :  { %1139 = vmatpush1.bf16.msra.mxu0 %v1831_v20  ;;  %1581 = vmatprep.subr.bf16.mxu1 %v1853_v38 }
  0x99   :  { %1140 = vmatprep.subr.bf16.mxu0 %v1836_v21 }
  0x9b   :  { %1582 = vmatpush3.bf16.msra.mxu1 %v1854_v39 }
  0x9c   :  { %1141 = vmatpush1.bf16.msra.mxu0 %v1834_v22  ;;  %1583 = vmatprep.subr.bf16.mxu1 %v1855_v40 }
  0x9d   :  { %1142 = vmatprep.subr.bf16.mxu0 %v1839_v23 }
  0x9f   :  { %1584 = vmatpush3.bf16.msra.mxu1 %v1856_v41 }
  0xa0   :  { %1143 = vmatpush1.bf16.msra.mxu0 %v1837_v24 }
  0xa3   :  { %1161 = vmatmul.mubr.bf16.vlgmr.msra.gmra.mrb[0].mxu0 %v1840_v25 }
 0x155   :  { %v1033_v42 = vpop.f32.mrb[0].mxu1 }
 0x156   :  { %v1035_v43 = vpop.f32.mrb[1].mxu1  ;;  %v1591_v54 = vadd.f32 %v1033_v42, %v183_v51 }
 0x157   :  { %v1037_v44 = vpop.f32.mrb[2].mxu1  ;;  %v1593_v56 = vadd.f32 %v1035_v43, %v187_v53 }
 0x158   :  { %v1039_v45 = vpop.f32.mrb[3].mxu1  ;;  %v1595_v59 = vadd.f32 %v1037_v44, %v183_v51 }
 0x159   :  { %v1597_v62 = vadd.f32 %v1039_v45, %v187_v53 }
 0x176   :  { %v1162_v58 = vpop.f32.mrb[0].mxu0 }
 0x177   :  { %v1592_v60 = vadd.f32 %v1591_v54, %v1162_v58  ;;  %v1164_v61 = vpop.f32.mrb[1].mxu0 }
 0x178   :  { %v1594_v63 = vadd.f32 %v1593_v56, %v1164_v61  ;;  %v1166_v0 = vpop.f32.mrb[2].mxu0 }
 0x179   :  { %v1187_v1 = vmul.f32 %v1592_v60, %v1180_v55  ;;  %v1596_v2 = vadd.f32 %v1595_v59, %v1166_v0  ;;  %v1168_v3 = vpop.f32.mrb[3].mxu0  ;;  %vm1171_vm0 = vcmp.ge.f32.partialorder %v1592_v60, 0.0 }
 0x17a   :  { %v1188_v4 = vmul.f32 %v1594_v63, %v1184_v57  ;;  %v1598_v5 = vadd.f32 %v1597_v62, %v1168_v3  ;;  %vm1172_vm1 = vcmp.ge.f32.partialorder %v1594_v63, 0.0 }
 0x17b   :  { %vm1173_vm2 = vcmp.ge.f32.partialorder %v1596_v2, 0.0  ;;  %v1189_v6 = vmul.f32 %v1596_v2, %v1180_v55  ;;  %v1191_v8 = vsel %vm1171_vm0, %v1592_v60, %v1187_v1 }
 0x17c   :  { %vm1174_vm3 = vcmp.ge.f32.partialorder %v1598_v5, 0.0  ;;  %v1190_v7 = vmul.f32 %v1598_v5, %v1184_v57  ;;  %v1192_v11 = vsel %vm1172_vm1, %v1594_v63, %v1188_v4 }
 0x17d   :  { %v1193_v9 = vsel %vm1173_vm2, %v1596_v2, %v1189_v6 }
 0x17e   :  { %v1195_v10 = vpack.c.bf16 %v1193_v9, %v1191_v8  ;;  %v1194_v12 = vsel %vm1174_vm3, %v1598_v5, %v1190_v7 }
 0x17f   :  { %v1196_v13 = vpack.c.bf16 %v1194_v12, %v1192_v11 }
 0x181   :  { %1364 = vmatprep.mubr.bf16.mxu1 %v1196_v13 }
 0x182   :  { %1365 = vmatmul.mubr.bf16.vlgmr.msra.gmra.mrb[4].mxu1 %v1195_v10 }
 0x255   :  { %v1585_v14 = vpop.f32.mrb[4].mxu1 }
 0x256   :  { %v1586_v16 = vpop.f32.mrb[5].mxu1 }
 0x257   :  { %v1587_v17 = vadd.f32 %v1586_v16, %v1585_v14  ;;  %v1588_v18 = vpop.f32.mrb[6].mxu1 }
 0x258   :  { %v1589_v19 = vpop.f32.mrb[7].mxu1 }
 0x259   :  { %v1367_v20 = vadd.f32 %v1587_v17, %v1550_v15  ;;  %v1590_v21 = vadd.f32 %v1589_v19, %v1588_v18 }
 0x25b   :  { %v1567_v22 = vmul.f32 -1.442695, %v1367_v20  ;;  %v1370_v23 = vadd.f32 %v1590_v21, %v1550_v15 }
 0x25d   :  { %1857 = vpow2.f32 %v1567_v22  ;;  %v1568_v24 = vmul.f32 -1.442695, %v1370_v23 }
 0x25f   :  { %1859 = vpow2.f32 %v1568_v24 }
 0x267   :  { %v1858_v25 = vpop.eup %1857 }
 0x268   :  { %v1382_v26 = vadd.f32 1.0, %v1858_v25 }
 0x269   :  { %v1860_v27 = vpop.eup %1859 }
 0x26a   :  { %1861 = vrcp.f32 %v1382_v26  ;;  %v1383_v28 = vadd.f32 1.0, %v1860_v27 }
 0x26c   :  { %1863 = vrcp.f32 %v1383_v28 }
 0x274   :  { %v1862_v30 = vpop.eup %1861 }
 0x275   :  { %v1388_v31 = vsel %vm1375_vm4, %v1862_v30, %v1367_v20 }
 0x276   :  { %v1864_v32 = vpop.eup %1863  ;;  %1391 = vst.msk [vmem:[%s2429_s6] sm:$0xff] %vm1390_vm5, %v1388_v31 }
 0x277   :  { %v1389_v33 = vsel %vm1375_vm4, %v1864_v32, %v1370_v23 }
 0x278   :  { %1392 = vst.msk [vmem:[%s2429_s6 + $0x8] sm:$0xff] %vm1390_vm5, %v1389_v33 }

</bundles_post_ra>
